<compile_context>
chip_gen: v6e
topology: v6e:2x2x1
jax: 0.10.0
libtpu: 0.0.40
codegen_flags: <defaults>
</compile_context>

<pallas_src>
import functools

import jax
import jax.numpy as jnp
from jax.experimental import pallas as pl
from jax.experimental.pallas import tpu as pltpu

LANE = 128                           # all channel dims zero-padded to 128 lanes
STEM_C, MID_C, OUT_C = 32, 16, 64    # logical channel counts of the stand-in
VMEM_LIMIT = 32 * 1024 * 1024        # safe on every generation (v7x phys = 64 MiB)


# ---------------------------------------------------------------------------
# One kernel = whole network for one image.
# ---------------------------------------------------------------------------
def _fused_model_kernel(x_ref, stem_w_ref, stem_b_ref, b1sc_w_ref, b1sc_b_ref,
                        b2_w_ref, b2_b_ref, b3_w_ref, b3_b_ref,
                        head_w_ref, head_b_ref, pool_ref,
                        o_ref, frame_ref, *, H, W):
    WP = W + 2                       # padded frame width
    NV = H * WP                      # rows covering every valid output position
    shifts = [ki * WP + kj for ki in range(3) for kj in range(3)]

    def conv3x3(tap, w_ref, b_ref):
        # 9 shifted contiguous row-windows -> MXU matmuls, accumulated in a
        # local f32 value (first dot initialises -- no scratch zero / RMW).
        acc = None
        for t, sh in enumerate(shifts):
            p = jnp.dot(tap(sh), w_ref[t], preferred_element_type=jnp.float32)
            acc = p if acc is None else acc + p
        return acc + b_ref[...]

    # ---- body: stem 3x3 conv + ReLU (taps sliced straight from the input block)
    s = conv3x3(lambda sh: x_ref[0, pl.ds(sh, NV), :].astype(jnp.bfloat16),
                stem_w_ref, stem_b_ref)
    s = jnp.maximum(s, 0.0)                                    # [NV, 128] f32

    # ---- body: b1 1x1 and the shortcut 1x1 share the same input -> one fused
    #      [NV,128] @ [128,256] matmul (fills the 256-wide MXU on v6e/v7x).
    bsc = jnp.dot(s.astype(jnp.bfloat16), b1sc_w_ref[...],
                  preferred_element_type=jnp.float32) + b1sc_b_ref[...]
    b1 = jnp.maximum(bsc[:, :LANE], 0.0)                       # [NV, 128] f32
    sc = bsc[:, LANE:]                                         # [NV, 128] f32

    # ---- reframe b1 into a zero-border padded frame (VMEM scratch) so the
    #      second 3x3 conv uses the same contiguous row-window taps.
    col = jax.lax.broadcasted_iota(jnp.int32, (NV, LANE), 0) % WP
    b1 = jnp.where(col < W, b1, 0.0)          # zero the frame-padding columns
    frame_ref[...] = jnp.zeros_like(frame_ref)
    frame_ref[pl.ds(WP + 1, NV), :] = b1      # interior lands at (h+1, w+1)

    # ---- body: b2 3x3 conv + ReLU
    y = conv3x3(lambda sh: frame_ref[pl.ds(sh, NV), :].astype(jnp.bfloat16),
                b2_w_ref, b2_b_ref)
    y = jnp.maximum(y, 0.0)

    # ---- body: b3 1x1 conv + residual add + ReLU
    feat = jnp.dot(y.astype(jnp.bfloat16), b3_w_ref[...],
                   preferred_element_type=jnp.float32) + b3_b_ref[...]
    feat = jnp.maximum(feat + sc, 0.0)                         # [NV, 128] f32

    # ---- neck: masked global-average-pool as an MXU matmul (1/HW scale and
    #      valid-position mask folded into pool_ref)
    pooled = jnp.dot(pool_ref[...], feat.astype(jnp.bfloat16),
                     preferred_element_type=jnp.float32)       # [1, 128] f32

    # ---- head: classifier matmul + bias
    logits = jnp.dot(pooled.astype(jnp.bfloat16), head_w_ref[...],
                     preferred_element_type=jnp.float32) + head_b_ref[...]
    o_ref[0] = logits


# ---------------------------------------------------------------------------
# Wrapper: single input pad (halo + channel lanes) at the model boundary, one
# pallas_call for the whole forward pass.
# ---------------------------------------------------------------------------
def model_forward(params, x_nchw, class_num):
    x = jnp.transpose(x_nchw, (0, 2, 3, 1))        # NCHW -> NHWC
    B, H, W, cin = x.shape
    WP = W + 2
    # rows of the padded frame: >= H+3 so every tap window stays in-bounds and
    # the flattened frame length is a multiple of 8 sublanes.
    R = H + 3
    while (R * WP) % 8:
        R += 1
    NROWS, NV = R * WP, H * WP
    xp = jnp.pad(x, ((0, 0), (1, R - H - 1), (1, 1), (0, LANE - cin)))
    xflat = xp.reshape(B, NROWS, LANE).astype(jnp.float32)

    # pooling vector: 1/HW at valid frame positions, 0 on frame-padding columns
    idx = jnp.arange(NV)
    pool_vec = jnp.where((idx % WP) < W, 1.0 / (H * W), 0.0)
    pool_vec = pool_vec.reshape(1, NV).astype(jnp.bfloat16)

    def const_spec(shape):
        zero = (0,) * len(shape)
        return pl.BlockSpec(shape, lambda b, z=zero: z)

    out = pl.pallas_call(
        functools.partial(_fused_model_kernel, H=H, W=W),
        out_shape=jax.ShapeDtypeStruct((B, 1, LANE), jnp.float32),
        grid=(B,),
        in_specs=[
            pl.BlockSpec((1, NROWS, LANE), lambda b: (b, 0, 0)),   # input frame
            const_spec((9, LANE, LANE)),        # stem_w
            const_spec((1, LANE)),              # stem_b
            const_spec((LANE, 2 * LANE)),       # b1sc_w  (b1 ++ shortcut)
            const_spec((1, 2 * LANE)),          # b1sc_b
            const_spec((9, LANE, LANE)),        # b2_w
            const_spec((1, LANE)),              # b2_b
            const_spec((LANE, LANE)),           # b3_w
            const_spec((1, LANE)),              # b3_b
            const_spec((LANE, LANE)),           # head_w
            const_spec((1, LANE)),              # head_b
            const_spec((1, NV)),                # pooling vector
        ],
        out_specs=pl.BlockSpec((1, 1, LANE), lambda b: (b, 0, 0)),
        scratch_shapes=[pltpu.VMEM((NROWS, LANE), jnp.float32)],
        compiler_params=pltpu.CompilerParams(
            dimension_semantics=("parallel",),   # v7x: two TCs split the batch
            vmem_limit_bytes=VMEM_LIMIT),
    )(xflat, params["stem_w"], params["stem_b"],
      params["b1sc_w"], params["b1sc_b"],
      params["b2_w"], params["b2_b"],
      params["b3_w"], params["b3_b"],
      params["head_w"], params["head_b"], pool_vec)
    return out.reshape(B, LANE)[:, :class_num]


# ---------------------------------------------------------------------------
# Parameters: logical weights zero-padded to 128-lane channel dims (zero lanes
# contribute exactly zero).  b1 and shortcut weights are concatenated along N.
# ---------------------------------------------------------------------------
def init_params(key, class_num):
    ks = jax.random.split(key, 6)

    def w(k, shape, fan_in):
        return jax.random.normal(k, shape, jnp.float32) / jnp.sqrt(float(fan_in))

    def pad2(m):
        return jnp.pad(m, ((0, LANE - m.shape[0]), (0, LANE - m.shape[1])))

    def pad_conv(m):                       # [3,3,cin,cout] -> [9, 128, 128]
        m = jnp.pad(m, ((0, 0), (0, 0),
                        (0, LANE - m.shape[2]), (0, LANE - m.shape[3])))
        return m.reshape(9, LANE, LANE)

    stem = w(ks[0], (3, 3, 3, STEM_C), 27)
    b1 = w(ks[1], (STEM_C, MID_C), STEM_C)
    b2 = w(ks[2], (3, 3, MID_C, MID_C), 9 * MID_C)
    b3 = w(ks[3], (MID_C, OUT_C), MID_C)
    sc = w(ks[4], (STEM_C, OUT_C), STEM_C)
    head = w(ks[5], (OUT_C, class_num), OUT_C)

    zb = jnp.zeros((1, LANE), jnp.float32)
    b1sc = jnp.concatenate([pad2(b1), pad2(sc)], axis=1)       # [128, 256]
    return {
        "stem_w": pad_conv(stem).astype(jnp.bfloat16), "stem_b": zb,
        "b1sc_w": b1sc.astype(jnp.bfloat16),
        "b1sc_b": jnp.zeros((1, 2 * LANE), jnp.float32),
        "b2_w": pad_conv(b2).astype(jnp.bfloat16),     "b2_b": zb,
        "b3_w": pad2(b3).astype(jnp.bfloat16),         "b3_b": zb,
        "head_w": pad2(head).astype(jnp.bfloat16),     "head_b": zb,
    }


if __name__ == "__main__":
    class_num = 10
    key = jax.random.PRNGKey(0)
    k_in, k_par = jax.random.split(key)
    x = jax.random.normal(k_in, (2, 3, 16, 16), jnp.float32)   # NCHW input
    params = init_params(k_par, class_num)

    fwd = jax.jit(model_forward, static_argnums=2)
    out = jax.block_until_ready(fwd(params, x, class_num))
    assert out.shape == (2, class_num), out.shape
    assert bool(jnp.all(jnp.isfinite(out)))
    print("KERNEL_OK")
</pallas_src>

<mosaic_0001>
module attributes {stable_mosaic.version = 11 : i64} {
  func.func @_fused_model_kernel(%arg0: i32, %arg1: memref<1x360x128xf32, #tpu.memory_space<vmem>>, %arg2: memref<9x128x128xbf16, #tpu.memory_space<vmem>>, %arg3: memref<1x128xf32, #tpu.memory_space<vmem>>, %arg4: memref<128x256xbf16, #tpu.memory_space<vmem>>, %arg5: memref<1x256xf32, #tpu.memory_space<vmem>>, %arg6: memref<9x128x128xbf16, #tpu.memory_space<vmem>>, %arg7: memref<1x128xf32, #tpu.memory_space<vmem>>, %arg8: memref<128x128xbf16, #tpu.memory_space<vmem>>, %arg9: memref<1x128xf32, #tpu.memory_space<vmem>>, %arg10: memref<128x128xbf16, #tpu.memory_space<vmem>>, %arg11: memref<1x128xf32, #tpu.memory_space<vmem>>, %arg12: memref<1x288xbf16, #tpu.memory_space<vmem>>, %arg13: memref<1x1x128xf32, #tpu.memory_space<vmem>>, %arg14: memref<360x128xf32, #tpu.memory_space<vmem>>) attributes {dimension_semantics = [#tpu.dimension_semantics<parallel>], iteration_bounds = array<i64: 2>, scalar_prefetch = 0 : i64, scratch_operands = 1 : i64, tpu.core_type = #tpu.core_type<tc>, window_params = [{transform_indices = @transform_0, window_bounds = array<i64: 1, 360, 128>}, {pipeline_mode = #tpu.pipeline_mode<synchronous>, transform_indices = @transform_1, window_bounds = array<i64: 9, 128, 128>}, {pipeline_mode = #tpu.pipeline_mode<synchronous>, transform_indices = @transform_2, window_bounds = array<i64: 1, 128>}, {pipeline_mode = #tpu.pipeline_mode<synchronous>, transform_indices = @transform_3, window_bounds = array<i64: 128, 256>}, {pipeline_mode = #tpu.pipeline_mode<synchronous>, transform_indices = @transform_4, window_bounds = array<i64: 1, 256>}, {pipeline_mode = #tpu.pipeline_mode<synchronous>, transform_indices = @transform_5, window_bounds = array<i64: 9, 128, 128>}, {pipeline_mode = #tpu.pipeline_mode<synchronous>, transform_indices = @transform_6, window_bounds = array<i64: 1, 128>}, {pipeline_mode = #tpu.pipeline_mode<synchronous>, transform_indices = @transform_7, window_bounds = array<i64: 128, 128>}, {pipeline_mode = #tpu.pipeline_mode<synchronous>, transform_indices = @transform_8, window_bounds = array<i64: 1, 128>}, {pipeline_mode = #tpu.pipeline_mode<synchronous>, transform_indices = @transform_9, window_bounds = array<i64: 128, 128>}, {pipeline_mode = #tpu.pipeline_mode<synchronous>, transform_indices = @transform_10, window_bounds = array<i64: 1, 128>}, {pipeline_mode = #tpu.pipeline_mode<synchronous>, transform_indices = @transform_11, window_bounds = array<i64: 1, 288>}, {transform_indices = @transform_12, window_bounds = array<i64: 1, 1, 128>}]} {
    %c0 = arith.constant 0 : index
    %c0_0 = arith.constant 0 : index
    %c0_1 = arith.constant 0 : index
    %0 = vector.load %arg1[%c0, %c0_0, %c0_1] : memref<1x360x128xf32, #tpu.memory_space<vmem>>, vector<1x288x128xf32>
    %1 = vector.shape_cast %0 : vector<1x288x128xf32> to vector<288x128xf32>
    %2 = arith.truncf %1 : vector<288x128xf32> to vector<288x128xbf16>
    %c0_2 = arith.constant 0 : index
    %c0_3 = arith.constant 0 : index
    %c0_4 = arith.constant 0 : index
    %3 = vector.load %arg2[%c0_2, %c0_3, %c0_4] : memref<9x128x128xbf16, #tpu.memory_space<vmem>>, vector<1x128x128xbf16>
    %4 = vector.shape_cast %3 : vector<1x128x128xbf16> to vector<128x128xbf16>
    %cst = arith.constant dense<0.000000e+00> : vector<288x128xf32>
    %5 = tpu.matmul %2, %4, %cst {dimension_numbers = #tpu.dot_dimension_numbers<[1], [0], [0], [1], [0, 0, 1, 1], [], []>} : vector<288x128xbf16>, vector<128x128xbf16>, vector<288x128xf32> -> vector<288x128xf32>
    %c0_5 = arith.constant 0 : index
    %c1 = arith.constant 1 : index
    %c0_6 = arith.constant 0 : index
    %6 = vector.load %arg1[%c0_5, %c1, %c0_6] : memref<1x360x128xf32, #tpu.memory_space<vmem>>, vector<1x288x128xf32>
    %7 = vector.shape_cast %6 : vector<1x288x128xf32> to vector<288x128xf32>
    %8 = arith.truncf %7 : vector<288x128xf32> to vector<288x128xbf16>
    %c1_7 = arith.constant 1 : index
    %c0_8 = arith.constant 0 : index
    %c0_9 = arith.constant 0 : index
    %9 = vector.load %arg2[%c1_7, %c0_8, %c0_9] : memref<9x128x128xbf16, #tpu.memory_space<vmem>>, vector<1x128x128xbf16>
    %10 = vector.shape_cast %9 : vector<1x128x128xbf16> to vector<128x128xbf16>
    %cst_10 = arith.constant dense<0.000000e+00> : vector<288x128xf32>
    %11 = tpu.matmul %8, %10, %cst_10 {dimension_numbers = #tpu.dot_dimension_numbers<[1], [0], [0], [1], [0, 0, 1, 1], [], []>} : vector<288x128xbf16>, vector<128x128xbf16>, vector<288x128xf32> -> vector<288x128xf32>
    %12 = arith.addf %5, %11 : vector<288x128xf32>
    %c0_11 = arith.constant 0 : index
    %c2 = arith.constant 2 : index
    %c0_12 = arith.constant 0 : index
    %13 = vector.load %arg1[%c0_11, %c2, %c0_12] : memref<1x360x128xf32, #tpu.memory_space<vmem>>, vector<1x288x128xf32>
    %14 = vector.shape_cast %13 : vector<1x288x128xf32> to vector<288x128xf32>
    %15 = arith.truncf %14 : vector<288x128xf32> to vector<288x128xbf16>
    %c2_13 = arith.constant 2 : index
    %c0_14 = arith.constant 0 : index
    %c0_15 = arith.constant 0 : index
    %16 = vector.load %arg2[%c2_13, %c0_14, %c0_15] : memref<9x128x128xbf16, #tpu.memory_space<vmem>>, vector<1x128x128xbf16>
    %17 = vector.shape_cast %16 : vector<1x128x128xbf16> to vector<128x128xbf16>
    %cst_16 = arith.constant dense<0.000000e+00> : vector<288x128xf32>
    %18 = tpu.matmul %15, %17, %cst_16 {dimension_numbers = #tpu.dot_dimension_numbers<[1], [0], [0], [1], [0, 0, 1, 1], [], []>} : vector<288x128xbf16>, vector<128x128xbf16>, vector<288x128xf32> -> vector<288x128xf32>
    %19 = arith.addf %12, %18 : vector<288x128xf32>
    %c0_17 = arith.constant 0 : index
    %c18 = arith.constant 18 : index
    %c0_18 = arith.constant 0 : index
    %20 = vector.load %arg1[%c0_17, %c18, %c0_18] : memref<1x360x128xf32, #tpu.memory_space<vmem>>, vector<1x288x128xf32>
    %21 = vector.shape_cast %20 : vector<1x288x128xf32> to vector<288x128xf32>
    %22 = arith.truncf %21 : vector<288x128xf32> to vector<288x128xbf16>
    %c3 = arith.constant 3 : index
    %c0_19 = arith.constant 0 : index
    %c0_20 = arith.constant 0 : index
    %23 = vector.load %arg2[%c3, %c0_19, %c0_20] : memref<9x128x128xbf16, #tpu.memory_space<vmem>>, vector<1x128x128xbf16>
    %24 = vector.shape_cast %23 : vector<1x128x128xbf16> to vector<128x128xbf16>
    %cst_21 = arith.constant dense<0.000000e+00> : vector<288x128xf32>
    %25 = tpu.matmul %22, %24, %cst_21 {dimension_numbers = #tpu.dot_dimension_numbers<[1], [0], [0], [1], [0, 0, 1, 1], [], []>} : vector<288x128xbf16>, vector<128x128xbf16>, vector<288x128xf32> -> vector<288x128xf32>
    %26 = arith.addf %19, %25 : vector<288x128xf32>
    %c0_22 = arith.constant 0 : index
    %c19 = arith.constant 19 : index
    %c0_23 = arith.constant 0 : index
    %27 = vector.load %arg1[%c0_22, %c19, %c0_23] : memref<1x360x128xf32, #tpu.memory_space<vmem>>, vector<1x288x128xf32>
    %28 = vector.shape_cast %27 : vector<1x288x128xf32> to vector<288x128xf32>
    %29 = arith.truncf %28 : vector<288x128xf32> to vector<288x128xbf16>
    %c4 = arith.constant 4 : index
    %c0_24 = arith.constant 0 : index
    %c0_25 = arith.constant 0 : index
    %30 = vector.load %arg2[%c4, %c0_24, %c0_25] : memref<9x128x128xbf16, #tpu.memory_space<vmem>>, vector<1x128x128xbf16>
    %31 = vector.shape_cast %30 : vector<1x128x128xbf16> to vector<128x128xbf16>
    %cst_26 = arith.constant dense<0.000000e+00> : vector<288x128xf32>
    %32 = tpu.matmul %29, %31, %cst_26 {dimension_numbers = #tpu.dot_dimension_numbers<[1], [0], [0], [1], [0, 0, 1, 1], [], []>} : vector<288x128xbf16>, vector<128x128xbf16>, vector<288x128xf32> -> vector<288x128xf32>
    %33 = arith.addf %26, %32 : vector<288x128xf32>
    %c0_27 = arith.constant 0 : index
    %c20 = arith.constant 20 : index
    %c0_28 = arith.constant 0 : index
    %34 = vector.load %arg1[%c0_27, %c20, %c0_28] : memref<1x360x128xf32, #tpu.memory_space<vmem>>, vector<1x288x128xf32>
    %35 = vector.shape_cast %34 : vector<1x288x128xf32> to vector<288x128xf32>
    %36 = arith.truncf %35 : vector<288x128xf32> to vector<288x128xbf16>
    %c5 = arith.constant 5 : index
    %c0_29 = arith.constant 0 : index
    %c0_30 = arith.constant 0 : index
    %37 = vector.load %arg2[%c5, %c0_29, %c0_30] : memref<9x128x128xbf16, #tpu.memory_space<vmem>>, vector<1x128x128xbf16>
    %38 = vector.shape_cast %37 : vector<1x128x128xbf16> to vector<128x128xbf16>
    %cst_31 = arith.constant dense<0.000000e+00> : vector<288x128xf32>
    %39 = tpu.matmul %36, %38, %cst_31 {dimension_numbers = #tpu.dot_dimension_numbers<[1], [0], [0], [1], [0, 0, 1, 1], [], []>} : vector<288x128xbf16>, vector<128x128xbf16>, vector<288x128xf32> -> vector<288x128xf32>
    %40 = arith.addf %33, %39 : vector<288x128xf32>
    %c0_32 = arith.constant 0 : index
    %c36 = arith.constant 36 : index
    %c0_33 = arith.constant 0 : index
    %41 = vector.load %arg1[%c0_32, %c36, %c0_33] : memref<1x360x128xf32, #tpu.memory_space<vmem>>, vector<1x288x128xf32>
    %42 = vector.shape_cast %41 : vector<1x288x128xf32> to vector<288x128xf32>
    %43 = arith.truncf %42 : vector<288x128xf32> to vector<288x128xbf16>
    %c6 = arith.constant 6 : index
    %c0_34 = arith.constant 0 : index
    %c0_35 = arith.constant 0 : index
    %44 = vector.load %arg2[%c6, %c0_34, %c0_35] : memref<9x128x128xbf16, #tpu.memory_space<vmem>>, vector<1x128x128xbf16>
    %45 = vector.shape_cast %44 : vector<1x128x128xbf16> to vector<128x128xbf16>
    %cst_36 = arith.constant dense<0.000000e+00> : vector<288x128xf32>
    %46 = tpu.matmul %43, %45, %cst_36 {dimension_numbers = #tpu.dot_dimension_numbers<[1], [0], [0], [1], [0, 0, 1, 1], [], []>} : vector<288x128xbf16>, vector<128x128xbf16>, vector<288x128xf32> -> vector<288x128xf32>
    %47 = arith.addf %40, %46 : vector<288x128xf32>
    %c0_37 = arith.constant 0 : index
    %c37 = arith.constant 37 : index
    %c0_38 = arith.constant 0 : index
    %48 = vector.load %arg1[%c0_37, %c37, %c0_38] : memref<1x360x128xf32, #tpu.memory_space<vmem>>, vector<1x288x128xf32>
    %49 = vector.shape_cast %48 : vector<1x288x128xf32> to vector<288x128xf32>
    %50 = arith.truncf %49 : vector<288x128xf32> to vector<288x128xbf16>
    %c7 = arith.constant 7 : index
    %c0_39 = arith.constant 0 : index
    %c0_40 = arith.constant 0 : index
    %51 = vector.load %arg2[%c7, %c0_39, %c0_40] : memref<9x128x128xbf16, #tpu.memory_space<vmem>>, vector<1x128x128xbf16>
    %52 = vector.shape_cast %51 : vector<1x128x128xbf16> to vector<128x128xbf16>
    %cst_41 = arith.constant dense<0.000000e+00> : vector<288x128xf32>
    %53 = tpu.matmul %50, %52, %cst_41 {dimension_numbers = #tpu.dot_dimension_numbers<[1], [0], [0], [1], [0, 0, 1, 1], [], []>} : vector<288x128xbf16>, vector<128x128xbf16>, vector<288x128xf32> -> vector<288x128xf32>
    %54 = arith.addf %47, %53 : vector<288x128xf32>
    %c0_42 = arith.constant 0 : index
    %c38 = arith.constant 38 : index
    %c0_43 = arith.constant 0 : index
    %55 = vector.load %arg1[%c0_42, %c38, %c0_43] : memref<1x360x128xf32, #tpu.memory_space<vmem>>, vector<1x288x128xf32>
    %56 = vector.shape_cast %55 : vector<1x288x128xf32> to vector<288x128xf32>
    %57 = arith.truncf %56 : vector<288x128xf32> to vector<288x128xbf16>
    %c8 = arith.constant 8 : index
    %c0_44 = arith.constant 0 : index
    %c0_45 = arith.constant 0 : index
    %58 = vector.load %arg2[%c8, %c0_44, %c0_45] : memref<9x128x128xbf16, #tpu.memory_space<vmem>>, vector<1x128x128xbf16>
    %59 = vector.shape_cast %58 : vector<1x128x128xbf16> to vector<128x128xbf16>
    %cst_46 = arith.constant dense<0.000000e+00> : vector<288x128xf32>
    %60 = tpu.matmul %57, %59, %cst_46 {dimension_numbers = #tpu.dot_dimension_numbers<[1], [0], [0], [1], [0, 0, 1, 1], [], []>} : vector<288x128xbf16>, vector<128x128xbf16>, vector<288x128xf32> -> vector<288x128xf32>
    %61 = arith.addf %54, %60 : vector<288x128xf32>
    %c0_47 = arith.constant 0 : index
    %c0_48 = arith.constant 0 : index
    %62 = vector.load %arg3[%c0_47, %c0_48] : memref<1x128xf32, #tpu.memory_space<vmem>>, vector<1x128xf32>
    %63 = vector.broadcast %62 : vector<1x128xf32> to vector<288x128xf32>
    %64 = arith.addf %61, %63 : vector<288x128xf32>
    %cst_49 = arith.constant 0.000000e+00 : f32
    %65 = vector.broadcast %cst_49 : f32 to vector<288x128xf32>
    %66 = arith.maximumf %64, %65 : vector<288x128xf32>
    %67 = arith.truncf %66 : vector<288x128xf32> to vector<288x128xbf16>
    %c0_50 = arith.constant 0 : index
    %c0_51 = arith.constant 0 : index
    %68 = vector.load %arg4[%c0_50, %c0_51] : memref<128x256xbf16, #tpu.memory_space<vmem>>, vector<128x256xbf16>
    %cst_52 = arith.constant dense<0.000000e+00> : vector<288x256xf32>
    %69 = tpu.matmul %67, %68, %cst_52 {dimension_numbers = #tpu.dot_dimension_numbers<[1], [0], [0], [1], [0, 0, 1, 1], [], []>} : vector<288x128xbf16>, vector<128x256xbf16>, vector<288x256xf32> -> vector<288x256xf32>
    %c0_53 = arith.constant 0 : index
    %c0_54 = arith.constant 0 : index
    %70 = vector.load %arg5[%c0_53, %c0_54] : memref<1x256xf32, #tpu.memory_space<vmem>>, vector<1x256xf32>
    %71 = vector.broadcast %70 : vector<1x256xf32> to vector<288x256xf32>
    %72 = arith.addf %69, %71 : vector<288x256xf32>
    %73 = vector.extract_strided_slice %72 {offsets = [0, 0], sizes = [288, 128], strides = [1, 1]} : vector<288x256xf32> to vector<288x128xf32>
    %cst_55 = arith.constant 0.000000e+00 : f32
    %74 = vector.broadcast %cst_55 : f32 to vector<288x128xf32>
    %75 = arith.maximumf %73, %74 : vector<288x128xf32>
    %76 = vector.extract_strided_slice %72 {offsets = [0, 128], sizes = [288, 128], strides = [1, 1]} : vector<288x256xf32> to vector<288x128xf32>
    %77 = tpu.iota {dimensions = array<i32: 0>} : vector<288x128xi32>
    %c18_i32 = arith.constant 18 : i32
    %c0_i32 = arith.constant 0 : i32
    %78 = arith.cmpi eq, %c18_i32, %c0_i32 : i32
    %c1_i32 = arith.constant 1 : i32
    %79 = arith.select %78, %c1_i32, %c18_i32 : i32
    %80 = vector.broadcast %79 : i32 to vector<288x128xi32>
    %81 = arith.remsi %77, %80 : vector<288x128xi32>
    %c0_i32_56 = arith.constant 0 : i32
    %82 = vector.broadcast %c0_i32_56 : i32 to vector<288x128xi32>
    %83 = arith.cmpi ne, %81, %82 : vector<288x128xi32>
    %c0_i32_57 = arith.constant 0 : i32
    %84 = vector.broadcast %c0_i32_57 : i32 to vector<288x128xi32>
    %85 = arith.cmpi slt, %81, %84 : vector<288x128xi32>
    %c0_i32_58 = arith.constant 0 : i32
    %86 = arith.cmpi slt, %79, %c0_i32_58 : i32
    %87 = vector.broadcast %86 : i1 to vector<288x128xi1>
    %88 = vector.broadcast %87 : vector<288x128xi1> to vector<288x128xi1>
    %89 = arith.xori %85, %88 : vector<288x128xi1>
    %90 = arith.andi %89, %83 : vector<288x128xi1>
    %91 = vector.broadcast %79 : i32 to vector<288x128xi32>
    %92 = arith.addi %81, %91 : vector<288x128xi32>
    %93 = arith.select %90, %92, %81 : vector<288x128xi1>, vector<288x128xi32>
    %c16_i32 = arith.constant 16 : i32
    %94 = vector.broadcast %c16_i32 : i32 to vector<288x128xi32>
    %95 = arith.cmpi slt, %93, %94 : vector<288x128xi32>
    %cst_59 = arith.constant 0.000000e+00 : f32
    %96 = vector.broadcast %cst_59 : f32 to vector<288x128xf32>
    %97 = arith.select %95, %75, %96 : vector<288x128xi1>, vector<288x128xf32>
    %cst_60 = arith.constant 0.000000e+00 : f32
    %98 = vector.broadcast %cst_60 : f32 to vector<360x128xf32>
    %c0_61 = arith.constant 0 : index
    %c0_62 = arith.constant 0 : index
    %99 = vector.load %arg14[%c0_61, %c0_62] : memref<360x128xf32, #tpu.memory_space<vmem>>, vector<360x128xf32>
    tpu.vector_store %arg14[%c0_61, %c0_62], %98 {strides = array<i32>} : memref<360x128xf32, #tpu.memory_space<vmem>>, vector<360x128xf32>,
    %c19_63 = arith.constant 19 : index
    %c0_64 = arith.constant 0 : index
    %100 = vector.load %arg14[%c19_63, %c0_64] : memref<360x128xf32, #tpu.memory_space<vmem>>, vector<288x128xf32>
    tpu.vector_store %arg14[%c19_63, %c0_64], %97 {strides = array<i32>} : memref<360x128xf32, #tpu.memory_space<vmem>>, vector<288x128xf32>,
    %c0_65 = arith.constant 0 : index
    %c0_66 = arith.constant 0 : index
    %101 = vector.load %arg14[%c0_65, %c0_66] : memref<360x128xf32, #tpu.memory_space<vmem>>, vector<288x128xf32>
    %102 = arith.truncf %101 : vector<288x128xf32> to vector<288x128xbf16>
    %c0_67 = arith.constant 0 : index
    %c0_68 = arith.constant 0 : index
    %c0_69 = arith.constant 0 : index
    %103 = vector.load %arg6[%c0_67, %c0_68, %c0_69] : memref<9x128x128xbf16, #tpu.memory_space<vmem>>, vector<1x128x128xbf16>
    %104 = vector.shape_cast %103 : vector<1x128x128xbf16> to vector<128x128xbf16>
    %cst_70 = arith.constant dense<0.000000e+00> : vector<288x128xf32>
    %105 = tpu.matmul %102, %104, %cst_70 {dimension_numbers = #tpu.dot_dimension_numbers<[1], [0], [0], [1], [0, 0, 1, 1], [], []>} : vector<288x128xbf16>, vector<128x128xbf16>, vector<288x128xf32> -> vector<288x128xf32>
    %c1_71 = arith.constant 1 : index
    %c0_72 = arith.constant 0 : index
    %106 = vector.load %arg14[%c1_71, %c0_72] : memref<360x128xf32, #tpu.memory_space<vmem>>, vector<288x128xf32>
    %107 = arith.truncf %106 : vector<288x128xf32> to vector<288x128xbf16>
    %c1_73 = arith.constant 1 : index
    %c0_74 = arith.constant 0 : index
    %c0_75 = arith.constant 0 : index
    %108 = vector.load %arg6[%c1_73, %c0_74, %c0_75] : memref<9x128x128xbf16, #tpu.memory_space<vmem>>, vector<1x128x128xbf16>
    %109 = vector.shape_cast %108 : vector<1x128x128xbf16> to vector<128x128xbf16>
    %cst_76 = arith.constant dense<0.000000e+00> : vector<288x128xf32>
    %110 = tpu.matmul %107, %109, %cst_76 {dimension_numbers = #tpu.dot_dimension_numbers<[1], [0], [0], [1], [0, 0, 1, 1], [], []>} : vector<288x128xbf16>, vector<128x128xbf16>, vector<288x128xf32> -> vector<288x128xf32>
    %111 = arith.addf %105, %110 : vector<288x128xf32>
    %c2_77 = arith.constant 2 : index
    %c0_78 = arith.constant 0 : index
    %112 = vector.load %arg14[%c2_77, %c0_78] : memref<360x128xf32, #tpu.memory_space<vmem>>, vector<288x128xf32>
    %113 = arith.truncf %112 : vector<288x128xf32> to vector<288x128xbf16>
    %c2_79 = arith.constant 2 : index
    %c0_80 = arith.constant 0 : index
    %c0_81 = arith.constant 0 : index
    %114 = vector.load %arg6[%c2_79, %c0_80, %c0_81] : memref<9x128x128xbf16, #tpu.memory_space<vmem>>, vector<1x128x128xbf16>
    %115 = vector.shape_cast %114 : vector<1x128x128xbf16> to vector<128x128xbf16>
    %cst_82 = arith.constant dense<0.000000e+00> : vector<288x128xf32>
    %116 = tpu.matmul %113, %115, %cst_82 {dimension_numbers = #tpu.dot_dimension_numbers<[1], [0], [0], [1], [0, 0, 1, 1], [], []>} : vector<288x128xbf16>, vector<128x128xbf16>, vector<288x128xf32> -> vector<288x128xf32>
    %117 = arith.addf %111, %116 : vector<288x128xf32>
    %c18_83 = arith.constant 18 : index
    %c0_84 = arith.constant 0 : index
    %118 = vector.load %arg14[%c18_83, %c0_84] : memref<360x128xf32, #tpu.memory_space<vmem>>, vector<288x128xf32>
    %119 = arith.truncf %118 : vector<288x128xf32> to vector<288x128xbf16>
    %c3_85 = arith.constant 3 : index
    %c0_86 = arith.constant 0 : index
    %c0_87 = arith.constant 0 : index
    %120 = vector.load %arg6[%c3_85, %c0_86, %c0_87] : memref<9x128x128xbf16, #tpu.memory_space<vmem>>, vector<1x128x128xbf16>
    %121 = vector.shape_cast %120 : vector<1x128x128xbf16> to vector<128x128xbf16>
    %cst_88 = arith.constant dense<0.000000e+00> : vector<288x128xf32>
    %122 = tpu.matmul %119, %121, %cst_88 {dimension_numbers = #tpu.dot_dimension_numbers<[1], [0], [0], [1], [0, 0, 1, 1], [], []>} : vector<288x128xbf16>, vector<128x128xbf16>, vector<288x128xf32> -> vector<288x128xf32>
    %123 = arith.addf %117, %122 : vector<288x128xf32>
    %c19_89 = arith.constant 19 : index
    %c0_90 = arith.constant 0 : index
    %124 = vector.load %arg14[%c19_89, %c0_90] : memref<360x128xf32, #tpu.memory_space<vmem>>, vector<288x128xf32>
    %125 = arith.truncf %124 : vector<288x128xf32> to vector<288x128xbf16>
    %c4_91 = arith.constant 4 : index
    %c0_92 = arith.constant 0 : index
    %c0_93 = arith.constant 0 : index
    %126 = vector.load %arg6[%c4_91, %c0_92, %c0_93] : memref<9x128x128xbf16, #tpu.memory_space<vmem>>, vector<1x128x128xbf16>
    %127 = vector.shape_cast %126 : vector<1x128x128xbf16> to vector<128x128xbf16>
    %cst_94 = arith.constant dense<0.000000e+00> : vector<288x128xf32>
    %128 = tpu.matmul %125, %127, %cst_94 {dimension_numbers = #tpu.dot_dimension_numbers<[1], [0], [0], [1], [0, 0, 1, 1], [], []>} : vector<288x128xbf16>, vector<128x128xbf16>, vector<288x128xf32> -> vector<288x128xf32>
    %129 = arith.addf %123, %128 : vector<288x128xf32>
    %c20_95 = arith.constant 20 : index
    %c0_96 = arith.constant 0 : index
    %130 = vector.load %arg14[%c20_95, %c0_96] : memref<360x128xf32, #tpu.memory_space<vmem>>, vector<288x128xf32>
    %131 = arith.truncf %130 : vector<288x128xf32> to vector<288x128xbf16>
    %c5_97 = arith.constant 5 : index
    %c0_98 = arith.constant 0 : index
    %c0_99 = arith.constant 0 : index
    %132 = vector.load %arg6[%c5_97, %c0_98, %c0_99] : memref<9x128x128xbf16, #tpu.memory_space<vmem>>, vector<1x128x128xbf16>
    %133 = vector.shape_cast %132 : vector<1x128x128xbf16> to vector<128x128xbf16>
    %cst_100 = arith.constant dense<0.000000e+00> : vector<288x128xf32>
    %134 = tpu.matmul %131, %133, %cst_100 {dimension_numbers = #tpu.dot_dimension_numbers<[1], [0], [0], [1], [0, 0, 1, 1], [], []>} : vector<288x128xbf16>, vector<128x128xbf16>, vector<288x128xf32> -> vector<288x128xf32>
    %135 = arith.addf %129, %134 : vector<288x128xf32>
    %c36_101 = arith.constant 36 : index
    %c0_102 = arith.constant 0 : index
    %136 = vector.load %arg14[%c36_101, %c0_102] : memref<360x128xf32, #tpu.memory_space<vmem>>, vector<288x128xf32>
    %137 = arith.truncf %136 : vector<288x128xf32> to vector<288x128xbf16>
    %c6_103 = arith.constant 6 : index
    %c0_104 = arith.constant 0 : index
    %c0_105 = arith.constant 0 : index
    %138 = vector.load %arg6[%c6_103, %c0_104, %c0_105] : memref<9x128x128xbf16, #tpu.memory_space<vmem>>, vector<1x128x128xbf16>
    %139 = vector.shape_cast %138 : vector<1x128x128xbf16> to vector<128x128xbf16>
    %cst_106 = arith.constant dense<0.000000e+00> : vector<288x128xf32>
    %140 = tpu.matmul %137, %139, %cst_106 {dimension_numbers = #tpu.dot_dimension_numbers<[1], [0], [0], [1], [0, 0, 1, 1], [], []>} : vector<288x128xbf16>, vector<128x128xbf16>, vector<288x128xf32> -> vector<288x128xf32>
    %141 = arith.addf %135, %140 : vector<288x128xf32>
    %c37_107 = arith.constant 37 : index
    %c0_108 = arith.constant 0 : index
    %142 = vector.load %arg14[%c37_107, %c0_108] : memref<360x128xf32, #tpu.memory_space<vmem>>, vector<288x128xf32>
    %143 = arith.truncf %142 : vector<288x128xf32> to vector<288x128xbf16>
    %c7_109 = arith.constant 7 : index
    %c0_110 = arith.constant 0 : index
    %c0_111 = arith.constant 0 : index
    %144 = vector.load %arg6[%c7_109, %c0_110, %c0_111] : memref<9x128x128xbf16, #tpu.memory_space<vmem>>, vector<1x128x128xbf16>
    %145 = vector.shape_cast %144 : vector<1x128x128xbf16> to vector<128x128xbf16>
    %cst_112 = arith.constant dense<0.000000e+00> : vector<288x128xf32>
    %146 = tpu.matmul %143, %145, %cst_112 {dimension_numbers = #tpu.dot_dimension_numbers<[1], [0], [0], [1], [0, 0, 1, 1], [], []>} : vector<288x128xbf16>, vector<128x128xbf16>, vector<288x128xf32> -> vector<288x128xf32>
    %147 = arith.addf %141, %146 : vector<288x128xf32>
    %c38_113 = arith.constant 38 : index
    %c0_114 = arith.constant 0 : index
    %148 = vector.load %arg14[%c38_113, %c0_114] : memref<360x128xf32, #tpu.memory_space<vmem>>, vector<288x128xf32>
    %149 = arith.truncf %148 : vector<288x128xf32> to vector<288x128xbf16>
    %c8_115 = arith.constant 8 : index
    %c0_116 = arith.constant 0 : index
    %c0_117 = arith.constant 0 : index
    %150 = vector.load %arg6[%c8_115, %c0_116, %c0_117] : memref<9x128x128xbf16, #tpu.memory_space<vmem>>, vector<1x128x128xbf16>
    %151 = vector.shape_cast %150 : vector<1x128x128xbf16> to vector<128x128xbf16>
    %cst_118 = arith.constant dense<0.000000e+00> : vector<288x128xf32>
    %152 = tpu.matmul %149, %151, %cst_118 {dimension_numbers = #tpu.dot_dimension_numbers<[1], [0], [0], [1], [0, 0, 1, 1], [], []>} : vector<288x128xbf16>, vector<128x128xbf16>, vector<288x128xf32> -> vector<288x128xf32>
    %153 = arith.addf %147, %152 : vector<288x128xf32>
    %c0_119 = arith.constant 0 : index
    %c0_120 = arith.constant 0 : index
    %154 = vector.load %arg7[%c0_119, %c0_120] : memref<1x128xf32, #tpu.memory_space<vmem>>, vector<1x128xf32>
    %155 = vector.broadcast %154 : vector<1x128xf32> to vector<288x128xf32>
    %156 = arith.addf %153, %155 : vector<288x128xf32>
    %cst_121 = arith.constant 0.000000e+00 : f32
    %157 = vector.broadcast %cst_121 : f32 to vector<288x128xf32>
    %158 = arith.maximumf %156, %157 : vector<288x128xf32>
    %159 = arith.truncf %158 : vector<288x128xf32> to vector<288x128xbf16>
    %c0_122 = arith.constant 0 : index
    %c0_123 = arith.constant 0 : index
    %160 = vector.load %arg8[%c0_122, %c0_123] : memref<128x128xbf16, #tpu.memory_space<vmem>>, vector<128x128xbf16>
    %cst_124 = arith.constant dense<0.000000e+00> : vector<288x128xf32>
    %161 = tpu.matmul %159, %160, %cst_124 {dimension_numbers = #tpu.dot_dimension_numbers<[1], [0], [0], [1], [0, 0, 1, 1], [], []>} : vector<288x128xbf16>, vector<128x128xbf16>, vector<288x128xf32> -> vector<288x128xf32>
    %c0_125 = arith.constant 0 : index
    %c0_126 = arith.constant 0 : index
    %162 = vector.load %arg9[%c0_125, %c0_126] : memref<1x128xf32, #tpu.memory_space<vmem>>, vector<1x128xf32>
    %163 = vector.broadcast %162 : vector<1x128xf32> to vector<288x128xf32>
    %164 = arith.addf %161, %163 : vector<288x128xf32>
    %165 = arith.addf %164, %76 : vector<288x128xf32>
    %cst_127 = arith.constant 0.000000e+00 : f32
    %166 = vector.broadcast %cst_127 : f32 to vector<288x128xf32>
    %167 = arith.maximumf %165, %166 : vector<288x128xf32>
    %c0_128 = arith.constant 0 : index
    %c0_129 = arith.constant 0 : index
    %168 = vector.load %arg12[%c0_128, %c0_129] : memref<1x288xbf16, #tpu.memory_space<vmem>>, vector<1x288xbf16>
    %169 = arith.truncf %167 : vector<288x128xf32> to vector<288x128xbf16>
    %cst_130 = arith.constant dense<0.000000e+00> : vector<1x128xf32>
    %170 = tpu.matmul %168, %169, %cst_130 {dimension_numbers = #tpu.dot_dimension_numbers<[1], [0], [0], [1], [0, 0, 1, 1], [], []>} : vector<1x288xbf16>, vector<288x128xbf16>, vector<1x128xf32> -> vector<1x128xf32>
    %171 = arith.truncf %170 : vector<1x128xf32> to vector<1x128xbf16>
    %c0_131 = arith.constant 0 : index
    %c0_132 = arith.constant 0 : index
    %172 = vector.load %arg10[%c0_131, %c0_132] : memref<128x128xbf16, #tpu.memory_space<vmem>>, vector<128x128xbf16>
    %cst_133 = arith.constant dense<0.000000e+00> : vector<1x128xf32>
    %173 = tpu.matmul %171, %172, %cst_133 {dimension_numbers = #tpu.dot_dimension_numbers<[1], [0], [0], [1], [0, 0, 1, 1], [], []>} : vector<1x128xbf16>, vector<128x128xbf16>, vector<1x128xf32> -> vector<1x128xf32>
    %c0_134 = arith.constant 0 : index
    %c0_135 = arith.constant 0 : index
    %174 = vector.load %arg11[%c0_134, %c0_135] : memref<1x128xf32, #tpu.memory_space<vmem>>, vector<1x128xf32>
    %175 = arith.addf %173, %174 : vector<1x128xf32>
    %c0_136 = arith.constant 0 : index
    %c0_137 = arith.constant 0 : index
    %c0_138 = arith.constant 0 : index
    %176 = vector.load %arg13[%c0_136, %c0_137, %c0_138] : memref<1x1x128xf32, #tpu.memory_space<vmem>>, vector<1x1x128xf32>
    %177 = vector.shape_cast %176 : vector<1x1x128xf32> to vector<1x128xf32>
    %178 = vector.shape_cast %175 : vector<1x128xf32> to vector<1x1x128xf32>
    tpu.vector_store %arg13[%c0_136, %c0_137, %c0_138], %178 {strides = array<i32>} : memref<1x1x128xf32, #tpu.memory_space<vmem>>, vector<1x1x128xf32>,
    return
  }
  func.func @transform_0(%arg0: i32) -> (i32, i32, i32) {
    %c0_i32 = arith.constant 0 : i32
    %c0_i32_0 = arith.constant 0 : i32
    %c0_i32_1 = arith.constant 0 : i32
    return %arg0, %c0_i32, %c0_i32_0 : i32, i32, i32
  }
  func.func @transform_1(%arg0: i32) -> (i32, i32, i32) {
    %c0_i32 = arith.constant 0 : i32
    %c0_i32_0 = arith.constant 0 : i32
    %c0_i32_1 = arith.constant 0 : i32
    %c0_i32_2 = arith.constant 0 : i32
    return %c0_i32, %c0_i32_0, %c0_i32_1 : i32, i32, i32
  }
  func.func @transform_2(%arg0: i32) -> (i32, i32) {
    %c0_i32 = arith.constant 0 : i32
    %c0_i32_0 = arith.constant 0 : i32
    %c0_i32_1 = arith.constant 0 : i32
    return %c0_i32, %c0_i32_0 : i32, i32
  }
  func.func @transform_3(%arg0: i32) -> (i32, i32) {
    %c0_i32 = arith.constant 0 : i32
    %c0_i32_0 = arith.constant 0 : i32
    %c0_i32_1 = arith.constant 0 : i32
    return %c0_i32, %c0_i32_0 : i32, i32
  }
  func.func @transform_4(%arg0: i32) -> (i32, i32) {
    %c0_i32 = arith.constant 0 : i32
    %c0_i32_0 = arith.constant 0 : i32
    %c0_i32_1 = arith.constant 0 : i32
    return %c0_i32, %c0_i32_0 : i32, i32
  }
  func.func @transform_5(%arg0: i32) -> (i32, i32, i32) {
    %c0_i32 = arith.constant 0 : i32
    %c0_i32_0 = arith.constant 0 : i32
    %c0_i32_1 = arith.constant 0 : i32
    %c0_i32_2 = arith.constant 0 : i32
    return %c0_i32, %c0_i32_0, %c0_i32_1 : i32, i32, i32
  }
  func.func @transform_6(%arg0: i32) -> (i32, i32) {
    %c0_i32 = arith.constant 0 : i32
    %c0_i32_0 = arith.constant 0 : i32
    %c0_i32_1 = arith.constant 0 : i32
    return %c0_i32, %c0_i32_0 : i32, i32
  }
  func.func @transform_7(%arg0: i32) -> (i32, i32) {
    %c0_i32 = arith.constant 0 : i32
    %c0_i32_0 = arith.constant 0 : i32
    %c0_i32_1 = arith.constant 0 : i32
    return %c0_i32, %c0_i32_0 : i32, i32
  }
  func.func @transform_8(%arg0: i32) -> (i32, i32) {
    %c0_i32 = arith.constant 0 : i32
    %c0_i32_0 = arith.constant 0 : i32
    %c0_i32_1 = arith.constant 0 : i32
    return %c0_i32, %c0_i32_0 : i32, i32
  }
  func.func @transform_9(%arg0: i32) -> (i32, i32) {
    %c0_i32 = arith.constant 0 : i32
    %c0_i32_0 = arith.constant 0 : i32
    %c0_i32_1 = arith.constant 0 : i32
    return %c0_i32, %c0_i32_0 : i32, i32
  }
  func.func @transform_10(%arg0: i32) -> (i32, i32) {
    %c0_i32 = arith.constant 0 : i32
    %c0_i32_0 = arith.constant 0 : i32
    %c0_i32_1 = arith.constant 0 : i32
    return %c0_i32, %c0_i32_0 : i32, i32
  }
  func.func @transform_11(%arg0: i32) -> (i32, i32) {
    %c0_i32 = arith.constant 0 : i32
    %c0_i32_0 = arith.constant 0 : i32
    %c0_i32_1 = arith.constant 0 : i32
    return %c0_i32, %c0_i32_0 : i32, i32
  }
  func.func @transform_12(%arg0: i32) -> (i32, i32, i32) {
    %c0_i32 = arith.constant 0 : i32
    %c0_i32_0 = arith.constant 0 : i32
    %c0_i32_1 = arith.constant 0 : i32
    return %arg0, %c0_i32, %c0_i32_0 : i32, i32, i32
  }
}

</mosaic_0001>

<bundles_post_ra>
// kernel: model_forward.1
= control target key start
LH: loop header
LB: loop body
LE: loop exit
PB: predicated region body
PF: predicated region fallthrough
CT: control target
= control target key end

     0   :  { %17 = vsyncpa [#allocation4], 0  ;;  %s14733_s0 = inlined_call_operand.vmem [shape: f32[2,360,128], index: 0, kind: input, shape index: {}]   ;;  %s14734_s1 = inlined_call_operand.vmem [shape: bf16[9,128,128], index: 1, kind: input, shape index: {}]   ;;  %s14735_s2 = inlined_call_operand.vmem [shape: f32[1,128], index: 2, kind: input, shape index: {}]   ;;  %s14736_s3 = inlined_call_operand.vmem [shape: bf16[128,256], index: 3, kind: input, shape index: {}]   ;;  %s14737_s4 = inlined_call_operand.vmem [shape: f32[1,256], index: 4, kind: input, shape index: {}]   ;;  %s14738_s5 = inlined_call_operand.vmem [shape: bf16[9,128,128], index: 5, kind: input, shape index: {}]   ;;  %s14739_s6 = inlined_call_operand.vmem [shape: f32[1,128], index: 6, kind: input, shape index: {}]   ;;  %s14740_s7 = inlined_call_operand.vmem [shape: bf16[128,128], index: 7, kind: input, shape index: {}]   ;;  %s14741_s8 = inlined_call_operand.vmem [shape: f32[1,128], index: 8, kind: input, shape index: {}]   ;;  %s14742_s9 = inlined_call_operand.vmem [shape: bf16[128,128], index: 9, kind: input, shape index: {}]   ;;  %s14743_s10 = inlined_call_operand.vmem [shape: f32[1,128], index: 10, kind: input, shape index: {}]   ;;  %s14744_s11 = inlined_call_operand.vmem [shape: bf16[1,288], index: 11, kind: input, shape index: {}]   ;;  %s14745_s12 = inlined_call_operand.hbm [shape: f32[2,1,128], index: 12, kind: output, shape index: {}]  }
   0x1   :  { %19 = vsyncpa [#allocation4 + $0x1], 0  ;;  %s10631_s21 = smov 0   ;;  %s10633_s22 = smov 0  }
   0x2   :  { %s10635_s23 = smov 0   ;;  %s10637_s24 = smov 0  }
   0x3 LB: > { %14768 = sst [smem:[#allocation6_spill]] %s10554_s23  ;;  %s10652_s25 = sadd.s32 4294967295, %s10558_s24   ;;  %s10558_s24 = sphi %s10637_s24, %s15349_s24   ;;  %s10554_s23 = sphi %s10635_s23, %s15346_s23   ;;  %s10550_s22 = sphi %s10633_s22, %s15348_s22   ;;  %s10546_s21 = sphi %s10631_s21, %s15347_s21  }
   0x4   : > { %s8183_s26 = sadd.s32 4294967294, %s10558_s24   ;;  %s10656_s27 = sadd.s32 1, %s10558_s24  }
   0x5   : > { %s289_s28 = sadd.s32 1, %s10554_s23  ;;  %s286_s29 = ssub.s32 %s10558_s24, %s10656_s27 }
   0x6   : > { %p299_p0 = scmp.ne.s32.totalorder %s10554_s23, %s10550_s22  ;;  %p287_p1 = scmp.eq.s32.totalorder %s286_s29, 0 }
   0x7   : > { %p300_p2 = scmp.eq.s32.totalorder %s10652_s25, 1  ;;  %p305_p3 = scmp.ne.s32.totalorder %s10550_s22, %s10546_s21 }
   0x8   : > { %p306_p4 = scmp.eq.s32.totalorder %s8183_s26, 1  ;;  %p8186_p7 = scmp.ge.s32.totalorder %s10558_s24, 1 }
   0x9   : > { %s10667_s30 = scalar_select %p287_p1, %s10554_s23, %s289_s28  }
   0xa   : > { %p10669_p5 = por %p300_p2, %p299_p0  ;;  %p10673_p6 = por %p306_p4, %p305_p3 }
   0xb   : > { %14769 = sst [smem:[#allocation7_spill]] %s10667_s30  ;;  %p365_p8 = scmp.lt.s32.totalorder %s10558_s24, 3 }
   0xd   : > { %p366_p9 = pnand %p8186_p7, %p365_p8 }
   0xf   : > { %369 = sbr.rel (%p366_p9) target bundleno = 2029 (0x7ed), region = 68 }
  0x14   : > { %v10288_v0 = vld [vmem:[%s14734_s1 + $0x78] sm:$0xff]   ;;  %p406_p10 = scmp.lt.s32.totalorder %s10652_s25, 1  ;;  %v10290_v2 = vld [vmem:[%s14734_s1 + $0x70] sm:$0xff]   ;;  %v10292_v4 = vld [vmem:[%s14734_s1 + $0x68] sm:$0xff]   ;;  %s404_s28 = sand.u32 1, %s10550_s22  }
  0x15   : > { %v10289_v1 = vld [vmem:[%s14734_s1 + $0x38] sm:$0xff]   ;;  %9156 = vmatprep.subr.bf16.mxu0 %v10288_v0  ;;  %v10291_v3 = vld [vmem:[%s14734_s1 + $0x30] sm:$0xff]   ;;  %v10293_v5 = vld [vmem:[%s14734_s1 + $0x28] sm:$0xff]   ;;  %s8625_s16 = sshll.u32 %s10652_s25, 4  ;;  %s405_s17 = scalar_lea.vmem [#allocation3], %s404_s28 }
  0x16   : > { %9208 = vmatprep.subr.bf16.mxu1 %v10289_v1  ;;  %9157 = vmatpush3.bf16.msra.mxu0 %v10288_v0  ;;  %s407_s18 = scalar_select %p406_p10, %s10652_s25, 1  ;;  %v10294_v6 = vld [vmem:[%s14734_s1 + $0x60] sm:$0xff]   ;;  %v10296_v8 = vld [vmem:[%s14734_s1 + $0x58] sm:$0xff]   ;;  %v10298_v10 = vld [vmem:[%s14734_s1 + $0x50] sm:$0xff]  }
  0x17   : > { %9209 = vmatpush3.bf16.msra.mxu1 %v10289_v1  ;;  %9158 = vmatprep.subr.bf16.mxu0 %v10290_v2  ;;  %v10295_v7 = vld [vmem:[%s14734_s1 + $0x20] sm:$0xff]   ;;  %v10297_v9 = vld [vmem:[%s14734_s1 + $0x18] sm:$0xff]   ;;  %v10299_v14 = vld [vmem:[%s14734_s1 + $0x10] sm:$0xff]   ;;  %s8128_s19 = sshll.u32 %s405_s17, 4  ;;  %s8116_s26 = scalar_lea.sflag [#allocation4], %s404_s28  ;;  %s14694_s19 = int_to_ptr.vmem [resolvable:$true] %s8128_s19 }
  0x18   : > { %9210 = vmatprep.subr.bf16.mxu1 %v10291_v3  ;;  %s10172_s29 = smul.u32 360, %s407_s18  ;;  %v10300_v18 = vld [vmem:[%s14734_s1 + $0x48] sm:$0xff]   ;;  %v10302_v20 = vld [vmem:[%s14734_s1 + $0x40] sm:$0xff]   ;;  %v10304_v34 = vld [vmem:[%s14734_s1 + $0xb8] sm:$0xff]   ;;  %s14692_s18 = scalar_lea.hbm %s14745_s12, %s8625_s16 }
  0x19   : > { %v10301_v19 = vld [vmem:[%s14734_s1 + $0x8] sm:$0xff]   ;;  %v10303_v21 = vld [vmem:[%s14734_s1] sm:$0xff]   ;;  %v10305_v37 = vld [vmem:[%s14734_s1 + $0xf8] sm:$0xff]   ;;  %s10498_s30 = scalar_lea.vmem %s14694_s19, 16  ;;  %s10565_s25 = smov [#allocation3]  }
  0x1a   : > { %9159 = vmatpush3.bf16.msra.mxu0 %v10290_v2  ;;  %s10714_s23 = scalar_lea.vmem %s14733_s0, %s10172_s29  ;;  %v10306_v39 = vld [vmem:[%s14734_s1 + $0xb0] sm:$0xff]   ;;  %v10308_v49 = vld [vmem:[%s14734_s1 + $0xa8] sm:$0xff]   ;;  %v10310_v52 = vld [vmem:[%s14734_s1 + $0xa0] sm:$0xff]   ;;  %p10499_p11 = scmp.ne.s32.totalorder %s14694_s19, %s10498_s30 }
  0x1b   : > { %9211 = vmatpush3.bf16.msra.mxu1 %v10291_v3  ;;  %9160 = vmatprep.subr.bf16.mxu0 %v10292_v4  ;;  %v482_v11 = vld [vmem:[%s10714_s23 + $0x1] sm:$0xff]  ;;  %v483_v12 = vld [vmem:[%s10714_s23 + $0x9] sm:$0xff]  ;;  %v484_v22 = vld [vmem:[%s10714_s23 + $0x11] sm:$0xff]  ;;  %s10502_s29 = sshll.u32 %s10565_s25, 4  ;;  %s10503_s29 = int_to_ptr.vmem [resolvable:$false] %s10502_s29 }
  0x1c   : > { %9212 = vmatprep.subr.bf16.mxu1 %v10293_v5  ;;  %v412_v13 = vld [vmem:[%s10714_s23] sm:$0xff]  ;;  %v518_v15 = vpack.c.bf16 %v483_v12, %v482_v11  ;;  %v413_v16 = vld [vmem:[%s10714_s23 + $0x8] sm:$0xff]  ;;  %v414_v24 = vld [vmem:[%s10714_s23 + $0x10] sm:$0xff]  ;;  %p10500_p12 = pnand %p10499_p11, %p10669_p5  ;;  %s10504_s15 = scalar_lea.vmem %s10503_s29, 32 }
  0x1d   : > { %v448_v17 = vpack.c.bf16 %v413_v16, %v412_v13  ;;  %v485_v23 = vld [vmem:[%s10714_s23 + $0x19] sm:$0xff]  ;;  %v486_v26 = vld [vmem:[%s10714_s23 + $0x21] sm:$0xff]  ;;  %v487_v27 = vld [vmem:[%s10714_s23 + $0x29] sm:$0xff]  ;;  %p10505_p0 = scmp.lt.s32.totalorder %s14694_s19, %s10503_s29  ;;  %p10506_p1 = scmp.lt.s32.totalorder %s10504_s15, %s10498_s30 }
  0x1e   : > { %9161 = vmatpush3.bf16.msra.mxu0 %v10292_v4  ;;  %9172 = vmatprep.mubr.bf16.mxu0 %v518_v15  ;;  %v415_v25 = vld [vmem:[%s10714_s23 + $0x18] sm:$0xff]  ;;  %v416_v28 = vld [vmem:[%s10714_s23 + $0x20] sm:$0xff]  ;;  %v417_v29 = vld [vmem:[%s10714_s23 + $0x28] sm:$0xff]  ;;  %v519_v30 = vpack.c.bf16 %v485_v23, %v484_v22  ;;  %v520_v32 = vpack.c.bf16 %v487_v27, %v486_v26  ;;  %p10501_p13 = pneg %p10500_p12 }
  0x1f   : > { %9213 = vmatpush3.bf16.msra.mxu1 %v10293_v5  ;;  %9162 = vmatprep.subr.bf16.mxu0 %v10294_v6  ;;  %v449_v31 = vpack.c.bf16 %v415_v25, %v414_v24  ;;  %v450_v33 = vpack.c.bf16 %v417_v29, %v416_v28  ;;  %v488_v35 = vld [vmem:[%s10714_s23 + $0x31] sm:$0xff]  ;;  %v489_v36 = vld [vmem:[%s10714_s23 + $0x39] sm:$0xff]  ;;  %v490_v42 = vld [vmem:[%s10714_s23 + $0x41] sm:$0xff]  ;;  %p10507_p2 = por %p10506_p1, %p10505_p0 }
  0x20   : > { %9214 = vmatprep.subr.bf16.mxu1 %v10295_v7  ;;  %9224 = vmatprep.mubr.bf16.mxu1 %v448_v17  ;;  %v418_v38 = vld [vmem:[%s10714_s23 + $0x30] sm:$0xff]  ;;  %v419_v41 = vld [vmem:[%s10714_s23 + $0x38] sm:$0xff]  ;;  %v420_v44 = vld [vmem:[%s10714_s23 + $0x40] sm:$0xff]  ;;  %v521_v46 = vpack.c.bf16 %v489_v36, %v488_v35 }
  0x21   : > { %v10307_v40 = vld [vmem:[%s14734_s1 + $0xf0] sm:$0xff]   ;;  %v421_v45 = vld [vmem:[%s10714_s23 + $0x48] sm:$0xff]  ;;  %v451_v47 = vpack.c.bf16 %v419_v41, %v418_v38  ;;  %v493_v54 = vld [vmem:[%s10714_s23 + $0x59] sm:$0xff]  ;;  %p10508_p3 = pnand %p10507_p2, %p10501_p13 }
  0x22   : > { %9163 = vmatpush3.bf16.msra.mxu0 %v10294_v6  ;;  %v491_v43 = vld [vmem:[%s10714_s23 + $0x49] sm:$0xff]  ;;  %v452_v50 = vpack.c.bf16 %v421_v45, %v420_v44  ;;  %v492_v53 = vld [vmem:[%s10714_s23 + $0x51] sm:$0xff]  ;;  %v10311_v57 = vld [vmem:[%s14734_s1 + $0xe0] sm:$0xff]  }
  0x23   : > { %9215 = vmatpush3.bf16.msra.mxu1 %v10295_v7  ;;  %9164 = vmatprep.subr.bf16.mxu0 %v10296_v8  ;;  %v522_v48 = vpack.c.bf16 %v491_v43, %v490_v42  ;;  %v10309_v51 = vld [vmem:[%s14734_s1 + $0xe8] sm:$0xff]   ;;  %v422_v55 = vld [vmem:[%s10714_s23 + $0x50] sm:$0xff]  ;;  %v423_v56 = vld [vmem:[%s10714_s23 + $0x58] sm:$0xff]  ;;  %v523_v62 = vpack.c.bf16 %v493_v54, %v492_v53 }
  0x24   : > { %9216 = vmatprep.subr.bf16.mxu1 %v10297_v9  ;;  %v494_v58 = vld [vmem:[%s10714_s23 + $0x61] sm:$0xff]  ;;  %v495_v59 = vld [vmem:[%s10714_s23 + $0x69] sm:$0xff]  ;;  %v10312_v63 = vld [vmem:[%s14734_s1 + $0x98] sm:$0xff]   ;;  %v453_v0 = vpack.c.bf16 %v423_v56, %v422_v55 }
  0x25   : > { %v424_v60 = vld [vmem:[%s10714_s23 + $0x60] sm:$0xff]  ;;  %v425_v61 = vld [vmem:[%s10714_s23 + $0x68] sm:$0xff]  ;;  %v524_v1 = vpack.c.bf16 %v495_v59, %v494_v58  ;;  %v496_v3 = vld [vmem:[%s10714_s23 + $0x71] sm:$0xff] }
  0x26   : > { %9165 = vmatpush3.bf16.msra.mxu0 %v10296_v8  ;;  %v454_v2 = vpack.c.bf16 %v425_v61, %v424_v60  ;;  %v497_v4 = vld [vmem:[%s10714_s23 + $0x79] sm:$0xff]  ;;  %v10314_v6 = vld [vmem:[%s14734_s1 + $0x90] sm:$0xff]   ;;  %v429_v13 = vld [vmem:[%s10714_s23 + $0x88] sm:$0xff] }
  0x27   : > { %9217 = vmatpush3.bf16.msra.mxu1 %v10297_v9  ;;  %9166 = vmatprep.subr.bf16.mxu0 %v10298_v10  ;;  %v10313_v5 = vld [vmem:[%s14734_s1 + $0xd8] sm:$0xff]   ;;  %v426_v7 = vld [vmem:[%s10714_s23 + $0x70] sm:$0xff]  ;;  %v498_v9 = vld [vmem:[%s10714_s23 + $0x81] sm:$0xff]  ;;  %v525_v15 = vpack.c.bf16 %v497_v4, %v496_v3 }
  0x28   : > { %9218 = vmatprep.subr.bf16.mxu1 %v10299_v14  ;;  %v427_v8 = vld [vmem:[%s10714_s23 + $0x78] sm:$0xff]  ;;  %v428_v11 = vld [vmem:[%s10714_s23 + $0x80] sm:$0xff]  ;;  %v10315_v12 = vld [vmem:[%s14734_s1 + $0xd0] sm:$0xff]  }
  0x29   : > { %v455_v16 = vpack.c.bf16 %v427_v8, %v426_v7  ;;  %v501_v22 = vld [vmem:[%s10714_s23 + $0x99] sm:$0xff]  ;;  %v430_v23 = vld [vmem:[%s10714_s23 + $0x90] sm:$0xff]  ;;  %v502_v26 = vld [vmem:[%s10714_s23 + $0xa1] sm:$0xff] }
  0x2a   : > { %9167 = vmatpush3.bf16.msra.mxu0 %v10298_v10  ;;  %v499_v10 = vld [vmem:[%s10714_s23 + $0x89] sm:$0xff]  ;;  %v10319_v24 = vld [vmem:[%s14734_s1 + $0xc0] sm:$0xff]   ;;  %v431_v25 = vld [vmem:[%s10714_s23 + $0x98] sm:$0xff] }
  0x2b   : > { %9219 = vmatpush3.bf16.msra.mxu1 %v10299_v14  ;;  %9168 = vmatprep.subr.bf16.mxu0 %v10300_v18  ;;  %v10316_v14 = vld [vmem:[%s14734_s1 + $0x88] sm:$0xff]   ;;  %v526_v17 = vpack.c.bf16 %v499_v10, %v498_v9  ;;  %v432_v28 = vld [vmem:[%s10714_s23 + $0xa0] sm:$0xff]  ;;  %v504_v35 = vld [vmem:[%s10714_s23 + $0xb1] sm:$0xff] }
  0x2c   : > { %9220 = vmatprep.subr.bf16.mxu1 %v10301_v19  ;;  %v503_v27 = vld [vmem:[%s10714_s23 + $0xa9] sm:$0xff]  ;;  %v505_v36 = vld [vmem:[%s10714_s23 + $0xb9] sm:$0xff]  ;;  %v512_v60 = vld [vmem:[%s10714_s23 + $0xf1] sm:$0xff] }
  0x2d   : > { %v433_v29 = vld [vmem:[%s10714_s23 + $0xa8] sm:$0xff]  ;;  %v435_v38 = vld [vmem:[%s10714_s23 + $0xb8] sm:$0xff]  ;;  %v436_v42 = vld [vmem:[%s10714_s23 + $0xc0] sm:$0xff]  ;;  %v529_v44 = vpack.c.bf16 %v505_v36, %v504_v35 }
  0x2e   : > { %9169 = vmatpush3.bf16.msra.mxu0 %v10300_v18  ;;  %v456_v18 = vpack.c.bf16 %v429_v13, %v428_v11  ;;  %v507_v41 = vld [vmem:[%s10714_s23 + $0xc9] sm:$0xff]  ;;  %v440_v54 = vld [vmem:[%s10714_s23 + $0xe0] sm:$0xff]  ;;  %v516_v8 = vld [vmem:[%s10714_s23 + $0x111] sm:$0xff] }
  0x2f   : > { %9221 = vmatpush3.bf16.msra.mxu1 %v10301_v19  ;;  %9170 = vmatprep.subr.bf16.mxu0 %v10302_v20  ;;  %v10317_v19 = vld [vmem:[%s14734_s1 + $0xc8] sm:$0xff]   ;;  %v513_v61 = vld [vmem:[%s10714_s23 + $0xf9] sm:$0xff]  ;;  %v446_v10 = vld [vmem:[%s10714_s23 + $0x110] sm:$0xff] }
  0x30   : > { %9222 = vmatprep.subr.bf16.mxu1 %v10303_v21  ;;  %v437_v43 = vld [vmem:[%s10714_s23 + $0xc8] sm:$0xff]  ;;  %v533_v4 = vpack.c.bf16 %v513_v61, %v512_v60  ;;  %v517_v9 = vld [vmem:[%s10714_s23 + $0x119] sm:$0xff] }
  0x31   : > { %v511_v53 = vld [vmem:[%s10714_s23 + $0xe9] sm:$0xff]  ;;  %v447_v11 = vld [vmem:[%s10714_s23 + $0x118] sm:$0xff] }
  0x32   : > { %9171 = vmatpush3.bf16.msra.mxu0 %v10302_v20  ;;  %v10318_v20 = vld [vmem:[%s14734_s1 + $0x80] sm:$0xff]   ;;  %v441_v55 = vld [vmem:[%s10714_s23 + $0xe8] sm:$0xff]  ;;  %v1025_v60 = vld [vmem:[%s10714_s23 + $0xb2] sm:$0xff] }
  0x33   : > { %9223 = vmatpush3.bf16.msra.mxu1 %v10303_v21  ;;  %9260 = vmatprep.subr.bf16.mxu0 %v10304_v34  ;;  %v500_v21 = vld [vmem:[%s10714_s23 + $0x91] sm:$0xff]  ;;  %v462_v59 = vpack.c.bf16 %v441_v55, %v440_v54  ;;  %v445_v3 = vld [vmem:[%s10714_s23 + $0x108] sm:$0xff]  ;;  %v1026_v61 = vld [vmem:[%s10714_s23 + $0xba] sm:$0xff] }
  0x34   : > { %9312 = vmatprep.subr.bf16.mxu1 %v10305_v37  ;;  %v1004_v13 = vld [vmem:[%s10714_s23 + $0xa] sm:$0xff] }
  0x35   : > { %9173 = vmatmul.mubr.bf16.vlgmr.msra.gmra.mxu0 %v519_v30  ;;  %v527_v30 = vpack.c.bf16 %v501_v22, %v500_v21  ;;  %v1338_v21 = vld [vmem:[%s10714_s23 + $0x2a] sm:$0xff]  ;;  %v1009_v22 = vld [vmem:[%s10714_s23 + $0x32] sm:$0xff] }
  0x36   : > { %9225 = vmatmul.mubr.bf16.vlgmr.msra.gmra.mxu1 %v449_v31  ;;  %9176 = vmatprep.mubr.bf16.mxu0 %v520_v32  ;;  %v457_v31 = vpack.c.bf16 %v431_v25, %v430_v23  ;;  %v528_v32 = vpack.c.bf16 %v503_v27, %v502_v26  ;;  %v1010_v23 = vld [vmem:[%s10714_s23 + $0x3a] sm:$0xff]  ;;  %v10322_v26 = vld [vmem:[%s14734_s1 + $0x130] sm:$0xff]  }
  0x37   : > { %9228 = vmatprep.mubr.bf16.mxu1 %v450_v33  ;;  %9261 = vmatpush3.bf16.msra.mxu0 %v10304_v34  ;;  %v458_v33 = vpack.c.bf16 %v433_v29, %v432_v28  ;;  %v10829_v34 = vld [vmem:[%s14734_s1 + $0x138] sm:$0xff]   ;;  %v1042_v25 = vpack.c.bf16 %v1010_v23, %v1009_v22  ;;  %v10323_v27 = vld [vmem:[%s14734_s1 + $0x170] sm:$0xff]   ;;  %v1341_v28 = vld [vmem:[%s10714_s23 + $0x42] sm:$0xff] }
  0x38   : > { %9262 = vmatprep.subr.bf16.mxu0 %v10306_v39  ;;  %9313 = vmatpush3.bf16.msra.mxu1 %v10305_v37  ;;  %v434_v37 = vld [vmem:[%s10714_s23 + $0xb0] sm:$0xff]  ;;  %v1668_v23 = vld [vmem:[%s10714_s23 + $0x1b] sm:$0xff] }
  0x39   : > { %9314 = vmatprep.subr.bf16.mxu1 %v10307_v40  ;;  %v459_v45 = vpack.c.bf16 %v435_v38, %v434_v37  ;;  %v1342_v29 = vld [vmem:[%s10714_s23 + $0x4a] sm:$0xff]  ;;  %v1345_v37 = vld [vmem:[%s10714_s23 + $0x62] sm:$0xff]  ;;  %v1667_v22 = vld [vmem:[%s10714_s23 + $0x13] sm:$0xff] }
  0x3a   : > { %v1374_v35 = vpack.c.bf16 %v1342_v29, %v1341_v28  ;;  %v1346_v38 = vld [vmem:[%s10714_s23 + $0x6a] sm:$0xff] }
  0x3b   : > { %9263 = vmatpush3.bf16.msra.mxu0 %v10306_v39  ;;  %v10838_v39 = vld [vmem:[%s14734_s1 + $0x178] sm:$0xff]   ;;  %v1669_v29 = vld [vmem:[%s10714_s23 + $0x23] sm:$0xff] }
  0x3c   : > { %9264 = vmatprep.subr.bf16.mxu0 %v10308_v49  ;;  %9315 = vmatpush3.bf16.msra.mxu1 %v10307_v40  ;;  %v506_v40 = vld [vmem:[%s10714_s23 + $0xc1] sm:$0xff] }
  0x3d   : > { %9177 = vmatmul.mubr.bf16.gmra.mxu0 %v521_v46  ;;  %9316 = vmatprep.subr.bf16.mxu1 %v10309_v51  ;;  %v530_v46 = vpack.c.bf16 %v507_v41, %v506_v40  ;;  %v1017_v40 = vld [vmem:[%s10714_s23 + $0x72] sm:$0xff]  ;;  %v1018_v41 = vld [vmem:[%s10714_s23 + $0x7a] sm:$0xff] }
  0x3e   : > { %9229 = vmatmul.mubr.bf16.gmra.mxu1 %v451_v47  ;;  %9180 = vmatprep.mubr.bf16.mxu0 %v522_v48  ;;  %v460_v47 = vpack.c.bf16 %v437_v43, %v436_v42  ;;  %v508_v48 = vld [vmem:[%s10714_s23 + $0xd1] sm:$0xff] }
  0x3f   : > { %9232 = vmatprep.mubr.bf16.mxu1 %v452_v50  ;;  %9265 = vmatpush3.bf16.msra.mxu0 %v10308_v49  ;;  %v509_v49 = vld [vmem:[%s10714_s23 + $0xd9] sm:$0xff]  ;;  %v438_v50 = vld [vmem:[%s10714_s23 + $0xd0] sm:$0xff] }
  0x40   : > { %9266 = vmatprep.subr.bf16.mxu0 %v10310_v52  ;;  %9317 = vmatpush3.bf16.msra.mxu1 %v10309_v51  ;;  %v439_v51 = vld [vmem:[%s10714_s23 + $0xd8] sm:$0xff]  ;;  %v531_v56 = vpack.c.bf16 %v509_v49, %v508_v48  ;;  %v1349_v48 = vld [vmem:[%s10714_s23 + $0x82] sm:$0xff]  ;;  %v1350_v49 = vld [vmem:[%s10714_s23 + $0x8a] sm:$0xff] }
  0x41   : > { %9318 = vmatprep.subr.bf16.mxu1 %v10311_v57  ;;  %v10328_v42 = vld [vmem:[%s14734_s1 + $0x118] sm:$0xff]   ;;  %v1378_v54 = vpack.c.bf16 %v1350_v49, %v1349_v48  ;;  %v10339_v48 = vld [vmem:[%s14734_s1 + $0x1f0] sm:$0xff]  }
  0x42   : > { %v10329_v43 = vld [vmem:[%s14734_s1 + $0x158] sm:$0xff]  }
  0x43   : > { %9267 = vmatpush3.bf16.msra.mxu0 %v10310_v52  ;;  %v510_v52 = vld [vmem:[%s10714_s23 + $0xe1] sm:$0xff]  ;;  %v2007_v49 = vld [vmem:[%s10714_s23 + $0x54] sm:$0xff] }
  0x44   : > { %9268 = vmatprep.subr.bf16.mxu0 %v10312_v63  ;;  %9319 = vmatpush3.bf16.msra.mxu1 %v10311_v57  ;;  %v461_v57 = vpack.c.bf16 %v439_v51, %v438_v50  ;;  %v532_v58 = vpack.c.bf16 %v511_v53, %v510_v52  ;;  %v1021_v50 = vld [vmem:[%s10714_s23 + $0x92] sm:$0xff]  ;;  %v1022_v51 = vld [vmem:[%s10714_s23 + $0x9a] sm:$0xff]  ;;  %v10332_v52 = vld [vmem:[%s14734_s1 + $0x108] sm:$0xff]  }
  0x45   : > { %9181 = vmatmul.mubr.bf16.gmra.mxu0 %v523_v62  ;;  %9320 = vmatprep.subr.bf16.mxu1 %v10313_v5  ;;  %v442_v62 = vld [vmem:[%s10714_s23 + $0xf0] sm:$0xff]  ;;  %v10333_v53 = vld [vmem:[%s14734_s1 + $0x148] sm:$0xff]   ;;  %v1048_v55 = vpack.c.bf16 %v1022_v51, %v1021_v50  ;;  %v2008_v50 = vld [vmem:[%s10714_s23 + $0x5c] sm:$0xff] }
  0x46   : > { %9233 = vmatmul.mubr.bf16.gmra.mxu1 %v453_v0  ;;  %9184 = vmatprep.mubr.bf16.mxu0 %v524_v1  ;;  %v514_v0 = vld [vmem:[%s10714_s23 + $0x101] sm:$0xff]  ;;  %v515_v1 = vld [vmem:[%s10714_s23 + $0x109] sm:$0xff] }
  0x47   : > { %9236 = vmatprep.mubr.bf16.mxu1 %v454_v2  ;;  %9269 = vmatpush3.bf16.msra.mxu0 %v10312_v63  ;;  %v443_v63 = vld [vmem:[%s10714_s23 + $0xf8] sm:$0xff]  ;;  %v444_v2 = vld [vmem:[%s10714_s23 + $0x100] sm:$0xff]  ;;  %v10340_v51 = vld [vmem:[%s14734_s1 + $0x1a8] sm:$0xff]  }
  0x48   : > { %9270 = vmatprep.subr.bf16.mxu0 %v10314_v6  ;;  %9321 = vmatpush3.bf16.msra.mxu1 %v10313_v5  ;;  %v463_v5 = vpack.c.bf16 %v443_v63, %v442_v62  ;;  %v464_v7 = vpack.c.bf16 %v445_v3, %v444_v2  ;;  %v10937_v62 = vld [vmem:[%s14734_s1 + $0x1b8] sm:$0xff]   ;;  %v1357_v2 = vld [vmem:[%s10714_s23 + $0xc2] sm:$0xff]  ;;  %v1358_v3 = vld [vmem:[%s10714_s23 + $0xca] sm:$0xff] }
  0x49   : > { %9322 = vmatprep.subr.bf16.mxu1 %v10315_v12  ;;  %v10942_v63 = vld [vmem:[%s14734_s1 + $0x1f8] sm:$0xff]  }
  0x4b   : > { %9271 = vmatpush3.bf16.msra.mxu0 %v10314_v6  ;;  %v534_v6 = vpack.c.bf16 %v515_v1, %v514_v0  ;;  %v1050_v1 = vpack.c.bf16 %v1026_v61, %v1025_v60  ;;  %v2009_v60 = vld [vmem:[%s10714_s23 + $0x64] sm:$0xff]  ;;  %v2010_v61 = vld [vmem:[%s10714_s23 + $0x6c] sm:$0xff] }
  0x4c   : > { %9272 = vmatprep.subr.bf16.mxu0 %v10316_v14  ;;  %9323 = vmatpush3.bf16.msra.mxu1 %v10315_v12  ;;  %v1003_v12 = vld [vmem:[%s10714_s23 + $0x2] sm:$0xff] }
  0x4d   : > { %9185 = vmatmul.mubr.bf16.gmra.mxu0 %v525_v15  ;;  %9324 = vmatprep.subr.bf16.mxu1 %v10317_v19  ;;  %v1006_v15 = vld [vmem:[%s10714_s23 + $0x1a] sm:$0xff] }
  0x4e   : > { %9237 = vmatmul.mubr.bf16.gmra.mxu1 %v455_v16  ;;  %9188 = vmatprep.mubr.bf16.mxu0 %v526_v17  ;;  %v535_v16 = vpack.c.bf16 %v517_v9, %v516_v8  ;;  %v465_v17 = vpack.c.bf16 %v447_v11, %v446_v10  ;;  %v1361_v8 = vld [vmem:[%s10714_s23 + $0xe2] sm:$0xff]  ;;  %v1362_v9 = vld [vmem:[%s10714_s23 + $0xea] sm:$0xff]  ;;  %v1033_v10 = vld [vmem:[%s10714_s23 + $0xf2] sm:$0xff] }
  0x4f   : > { %9240 = vmatprep.mubr.bf16.mxu1 %v456_v18  ;;  %9273 = vmatpush3.bf16.msra.mxu0 %v10316_v14  ;;  %v1005_v14 = vld [vmem:[%s10714_s23 + $0x12] sm:$0xff]  ;;  %v1039_v18 = vpack.c.bf16 %v1004_v13, %v1003_v12  ;;  %v1034_v11 = vld [vmem:[%s10714_s23 + $0xfa] sm:$0xff]  ;;  %v1384_v12 = vpack.c.bf16 %v1362_v9, %v1361_v8 }
  0x50   : > { %9274 = vmatprep.subr.bf16.mxu0 %v10318_v20  ;;  %9325 = vmatpush3.bf16.msra.mxu1 %v10317_v19  ;;  %v1040_v19 = vpack.c.bf16 %v1006_v15, %v1005_v14  ;;  %v1054_v13 = vpack.c.bf16 %v1034_v11, %v1033_v10  ;;  %v1365_v14 = vld [vmem:[%s10714_s23 + $0x102] sm:$0xff]  ;;  %v1366_v15 = vld [vmem:[%s10714_s23 + $0x10a] sm:$0xff] }
  0x51   : > { %9326 = vmatprep.subr.bf16.mxu1 %v10319_v24  ;;  %v10346_v9 = vld [vmem:[%s14734_s1 + $0x190] sm:$0xff]   ;;  %v1681_v11 = vld [vmem:[%s10714_s23 + $0x83] sm:$0xff] }
  0x52   : > { %v10347_v10 = vld [vmem:[%s14734_s1 + $0x1d0] sm:$0xff]  }
  0x53   : > { %9275 = vmatpush3.bf16.msra.mxu0 %v10318_v20  ;;  %v1337_v20 = vld [vmem:[%s10714_s23 + $0x22] sm:$0xff] }
  0x54   : > { %9327 = vmatpush3.bf16.msra.mxu1 %v10319_v24  ;;  %9364 = vmatprep.subr.bf16.mxu0 %v10829_v34  ;;  %v1372_v24 = vpack.c.bf16 %v1338_v21, %v1337_v20  ;;  %v1369_v20 = vld [vmem:[%s10714_s23 + $0x122] sm:$0xff]  ;;  %v1370_v21 = vld [vmem:[%s10714_s23 + $0x12a] sm:$0xff] }
  0x55   : > { %9189 = vmatmul.mubr.bf16.gmra.mxu0 %v527_v30  ;;  %9416 = vmatprep.subr.bf16.mxu1 %v10838_v39  ;;  %v1013_v30 = vld [vmem:[%s10714_s23 + $0x52] sm:$0xff] }
  0x56   : > { %9241 = vmatmul.mubr.bf16.gmra.mxu1 %v457_v31  ;;  %9192 = vmatprep.mubr.bf16.mxu0 %v528_v32  ;;  %v1014_v31 = vld [vmem:[%s10714_s23 + $0x5a] sm:$0xff]  ;;  %v10324_v32 = vld [vmem:[%s14734_s1 + $0x128] sm:$0xff]  }
  0x57   : > { %9244 = vmatprep.mubr.bf16.mxu1 %v458_v33  ;;  %v10325_v33 = vld [vmem:[%s14734_s1 + $0x168] sm:$0xff]   ;;  %v1044_v36 = vpack.c.bf16 %v1014_v31, %v1013_v30 }
  0x58   : > { %v1670_v30 = vld [vmem:[%s10714_s23 + $0x2b] sm:$0xff] }
  0x59   : > { %v2001_v31 = vld [vmem:[%s10714_s23 + $0x24] sm:$0xff] }
  0x5d   : > { %9193 = vmatmul.mubr.bf16.gmra.mxu0 %v529_v44  ;;  %v1376_v44 = vpack.c.bf16 %v1346_v38, %v1345_v37  ;;  %v1704_v37 = vpack.c.bf16 %v1670_v30, %v1669_v29  ;;  %v2017_v29 = vld [vmem:[%s10714_s23 + $0xa4] sm:$0xff]  ;;  %v2018_v30 = vld [vmem:[%s10714_s23 + $0xac] sm:$0xff] }
  0x5e   : > { %9245 = vmatmul.mubr.bf16.gmra.mxu1 %v459_v45  ;;  %9196 = vmatprep.mubr.bf16.mxu0 %v530_v46  ;;  %v1046_v45 = vpack.c.bf16 %v1018_v41, %v1017_v40  ;;  %v10330_v46 = vld [vmem:[%s14734_s1 + $0x110] sm:$0xff]   ;;  %v1673_v41 = vld [vmem:[%s10714_s23 + $0x43] sm:$0xff] }
  0x5f   : > { %9248 = vmatprep.mubr.bf16.mxu1 %v460_v47  ;;  %v10331_v47 = vld [vmem:[%s14734_s1 + $0x150] sm:$0xff]  }
  0x65   : > { %9197 = vmatmul.mubr.bf16.gmra.mxu0 %v531_v56  ;;  %v10334_v56 = vld [vmem:[%s14734_s1 + $0x100] sm:$0xff]  }
  0x66   : > { %9249 = vmatmul.mubr.bf16.gmra.mxu1 %v461_v57  ;;  %9200 = vmatprep.mubr.bf16.mxu0 %v532_v58  ;;  %v1353_v57 = vld [vmem:[%s10714_s23 + $0xa2] sm:$0xff]  ;;  %v1354_v58 = vld [vmem:[%s10714_s23 + $0xaa] sm:$0xff] }
  0x67   : > { %9252 = vmatprep.mubr.bf16.mxu1 %v462_v59  ;;  %v10335_v59 = vld [vmem:[%s14734_s1 + $0x140] sm:$0xff]   ;;  %v1380_v0 = vpack.c.bf16 %v1354_v58, %v1353_v57  ;;  %v1678_v58 = vld [vmem:[%s10714_s23 + $0x6b] sm:$0xff] }
  0x68   : > { %v1677_v57 = vld [vmem:[%s10714_s23 + $0x63] sm:$0xff] }
  0x6d   : > { %9201 = vmatmul.mubr.bf16.gmra.mxu0 %v533_v4  ;;  %v1029_v4 = vld [vmem:[%s10714_s23 + $0xd2] sm:$0xff] }
  0x6e   : > { %9253 = vmatmul.mubr.bf16.gmra.mxu1 %v463_v5  ;;  %9204 = vmatprep.mubr.bf16.mxu0 %v534_v6  ;;  %v1030_v5 = vld [vmem:[%s10714_s23 + $0xda] sm:$0xff]  ;;  %v1382_v6 = vpack.c.bf16 %v1358_v3, %v1357_v2 }
  0x6f   : > { %9256 = vmatprep.mubr.bf16.mxu1 %v464_v7  ;;  %v1052_v7 = vpack.c.bf16 %v1030_v5, %v1029_v4  ;;  %v2012_v2 = vld [vmem:[%s10714_s23 + $0x7c] sm:$0xff]  ;;  %v1708_v5 = vpack.c.bf16 %v1678_v58, %v1677_v57  ;;  %v1694_v57 = vld [vmem:[%s10714_s23 + $0xeb] sm:$0xff] }
  0x70   : > { %v10344_v3 = vld [vmem:[%s14734_s1 + $0x198] sm:$0xff]   ;;  %v2025_v58 = vld [vmem:[%s10714_s23 + $0xe4] sm:$0xff] }
  0x71   : > { %v10345_v4 = vld [vmem:[%s14734_s1 + $0x1d8] sm:$0xff]  }
  0x75   : > { %9205 = vmatmul.mubr.bf16.gmra.mxu0 %v535_v16  ;;  %v1037_v16 = vld [vmem:[%s10714_s23 + $0x112] sm:$0xff] }
  0x76   : > { %9257 = vmatmul.mubr.bf16.gmra.mxu1 %v465_v17  ;;  %9276 = vmatprep.mubr.bf16.mxu0 %v1039_v18  ;;  %v1038_v17 = vld [vmem:[%s10714_s23 + $0x11a] sm:$0xff]  ;;  %v1386_v18 = vpack.c.bf16 %v1366_v15, %v1365_v14  ;;  %v2014_v14 = vld [vmem:[%s10714_s23 + $0x8c] sm:$0xff] }
  0x77   : > { %9328 = vmatprep.mubr.bf16.mxu1 %v1040_v19  ;;  %v1683_v15 = vld [vmem:[%s10714_s23 + $0x93] sm:$0xff] }
  0x7d   : > { %9277 = vmatmul.mubr.bf16.vlgmr.msra.gmra.mxu0 %v1040_v19  ;;  %v1056_v19 = vpack.c.bf16 %v1038_v17, %v1037_v16  ;;  %v1684_v16 = vld [vmem:[%s10714_s23 + $0x9b] sm:$0xff] }
  0x7e   : > { %9329 = vmatmul.mubr.bf16.vlgmr.msra.gmra.mxu1 %v1372_v24  ;;  %9280 = vmatprep.mubr.bf16.mxu0 %v1372_v24  ;;  %v1999_v24 = vld [vmem:[%s10714_s23 + $0x14] sm:$0xff] }
  0x7f   : > { %9332 = vmatprep.mubr.bf16.mxu1 %v1042_v25  ;;  %9365 = vmatpush3.bf16.msra.mxu0 %v10829_v34  ;;  %v10326_v34 = vld [vmem:[%s14734_s1 + $0x120] sm:$0xff]   ;;  %v2015_v17 = vld [vmem:[%s10714_s23 + $0x94] sm:$0xff] }
  0x80   : > { %9417 = vmatpush3.bf16.msra.mxu1 %v10838_v39  ;;  %9366 = vmatprep.subr.bf16.mxu0 %v10322_v26  ;;  %v10327_v39 = vld [vmem:[%s14734_s1 + $0x160] sm:$0xff]  }
  0x81   : > { %9418 = vmatprep.subr.bf16.mxu1 %v10323_v27 }
  0x83   : > { %9367 = vmatpush3.bf16.msra.mxu0 %v10322_v26  ;;  %v1388_v26 = vpack.c.bf16 %v1370_v21, %v1369_v20  ;;  %v10349_v20 = vld [vmem:[%s14734_s1 + $0x1c8] sm:$0xff]  }
  0x84   : > { %9419 = vmatpush3.bf16.msra.mxu1 %v10323_v27  ;;  %9368 = vmatprep.subr.bf16.mxu0 %v10324_v32  ;;  %v1703_v27 = vpack.c.bf16 %v1668_v23, %v1667_v22  ;;  %v1711_v23 = vpack.c.bf16 %v1684_v16, %v1683_v15  ;;  %v1700_v15 = vld [vmem:[%s10714_s23 + $0x11b] sm:$0xff] }
  0x85   : > { %9281 = vmatmul.mubr.bf16.gmra.mxu0 %v1042_v25  ;;  %9420 = vmatprep.subr.bf16.mxu1 %v10325_v33  ;;  %v2000_v25 = vld [vmem:[%s10714_s23 + $0x1c] sm:$0xff] }
  0x86   : > { %9333 = vmatmul.mubr.bf16.gmra.mxu1 %v1374_v35  ;;  %9284 = vmatprep.mubr.bf16.mxu0 %v1374_v35  ;;  %v2035_v28 = vpack.c.bf16 %v2000_v25, %v1999_v24  ;;  %v1672_v35 = vld [vmem:[%s10714_s23 + $0x3b] sm:$0xff] }
  0x87   : > { %9336 = vmatprep.mubr.bf16.mxu1 %v1044_v36  ;;  %9369 = vmatpush3.bf16.msra.mxu0 %v10324_v32  ;;  %v2002_v32 = vld [vmem:[%s10714_s23 + $0x2c] sm:$0xff]  ;;  %v10350_v25 = vld [vmem:[%s14734_s1 + $0x180] sm:$0xff]  }
  0x88   : > { %9421 = vmatpush3.bf16.msra.mxu1 %v10325_v33  ;;  %9370 = vmatprep.subr.bf16.mxu0 %v10326_v34  ;;  %v1671_v33 = vld [vmem:[%s10714_s23 + $0x33] sm:$0xff]  ;;  %v10972_v38 = vpack.c.bf16 %v2002_v32, %v2001_v31  ;;  %v1688_v32 = vld [vmem:[%s10714_s23 + $0xbb] sm:$0xff] }
  0x89   : > { %9422 = vmatprep.subr.bf16.mxu1 %v10327_v39  ;;  %v1687_v31 = vld [vmem:[%s10714_s23 + $0xb3] sm:$0xff] }
  0x8b   : > { %9371 = vmatpush3.bf16.msra.mxu0 %v10326_v34  ;;  %v2004_v34 = vld [vmem:[%s10714_s23 + $0x3c] sm:$0xff] }
  0x8c   : > { %9423 = vmatpush3.bf16.msra.mxu1 %v10327_v39  ;;  %9372 = vmatprep.subr.bf16.mxu0 %v10328_v42  ;;  %v1705_v39 = vpack.c.bf16 %v1672_v35, %v1671_v33  ;;  %v2019_v33 = vld [vmem:[%s10714_s23 + $0xb4] sm:$0xff]  ;;  %v2020_v35 = vld [vmem:[%s10714_s23 + $0xbc] sm:$0xff] }
  0x8d   : > { %9285 = vmatmul.mubr.bf16.gmra.mxu0 %v1044_v36  ;;  %9424 = vmatprep.subr.bf16.mxu1 %v10329_v43  ;;  %v2003_v36 = vld [vmem:[%s10714_s23 + $0x34] sm:$0xff] }
  0x8e   : > { %9337 = vmatmul.mubr.bf16.gmra.mxu1 %v1376_v44  ;;  %9288 = vmatprep.mubr.bf16.mxu0 %v1376_v44  ;;  %v10974_v40 = vpack.c.bf16 %v2004_v34, %v2003_v36  ;;  %v2005_v44 = vld [vmem:[%s10714_s23 + $0x44] sm:$0xff]  ;;  %v11074_v36 = vld [vmem:[%s14734_s1 + $0x238] sm:$0xff]  }
  0x8f   : > { %9340 = vmatprep.mubr.bf16.mxu1 %v1046_v45  ;;  %9373 = vmatpush3.bf16.msra.mxu0 %v10328_v42  ;;  %v1674_v42 = vld [vmem:[%s10714_s23 + $0x4b] sm:$0xff] }
  0x90   : > { %9425 = vmatpush3.bf16.msra.mxu1 %v10329_v43  ;;  %9374 = vmatprep.subr.bf16.mxu0 %v10330_v46  ;;  %v10338_v43 = vld [vmem:[%s14734_s1 + $0x1b0] sm:$0xff]  }
  0x91   : > { %9426 = vmatprep.subr.bf16.mxu1 %v10331_v47 }
  0x93   : > { %9375 = vmatpush3.bf16.msra.mxu0 %v10330_v46  ;;  %v1675_v46 = vld [vmem:[%s10714_s23 + $0x53] sm:$0xff] }
  0x94   : > { %9427 = vmatpush3.bf16.msra.mxu1 %v10331_v47  ;;  %9376 = vmatprep.subr.bf16.mxu0 %v10332_v52  ;;  %v1676_v47 = vld [vmem:[%s10714_s23 + $0x5b] sm:$0xff] }
  0x95   : > { %9289 = vmatmul.mubr.bf16.gmra.mxu0 %v1046_v45  ;;  %9428 = vmatprep.subr.bf16.mxu1 %v10333_v53  ;;  %v2006_v45 = vld [vmem:[%s10714_s23 + $0x4c] sm:$0xff] }
  0x96   : > { %9341 = vmatmul.mubr.bf16.gmra.mxu1 %v1378_v54  ;;  %9292 = vmatprep.mubr.bf16.mxu0 %v1378_v54  ;;  %v11000_v54 = vpack.c.bf16 %v2006_v45, %v2005_v44  ;;  %v2021_v44 = vld [vmem:[%s10714_s23 + $0xc4] sm:$0xff]  ;;  %v2022_v45 = vld [vmem:[%s10714_s23 + $0xcc] sm:$0xff] }
  0x97   : > { %9344 = vmatprep.mubr.bf16.mxu1 %v1048_v55  ;;  %9377 = vmatpush3.bf16.msra.mxu0 %v10332_v52  ;;  %v10341_v52 = vld [vmem:[%s14734_s1 + $0x1e8] sm:$0xff]  }
  0x98   : > { %9429 = vmatpush3.bf16.msra.mxu1 %v10333_v53  ;;  %9378 = vmatprep.subr.bf16.mxu0 %v10334_v56  ;;  %v1706_v53 = vpack.c.bf16 %v1674_v42, %v1673_v41  ;;  %v11079_v41 = vpack.c.bf16 %v2020_v35, %v2019_v33  ;;  %v1689_v42 = vld [vmem:[%s10714_s23 + $0xc3] sm:$0xff] }
  0x99   : > { %9430 = vmatprep.subr.bf16.mxu1 %v10335_v59  ;;  %v1701_v35 = vld [vmem:[%s10714_s23 + $0x123] sm:$0xff] }
  0x9b   : > { %9379 = vmatpush3.bf16.msra.mxu0 %v10334_v56  ;;  %v11002_v56 = vpack.c.bf16 %v2008_v50, %v2007_v49  ;;  %v2024_v49 = vld [vmem:[%s10714_s23 + $0xdc] sm:$0xff] }
  0x9c   : > { %9431 = vmatpush3.bf16.msra.mxu1 %v10335_v59  ;;  %9468 = vmatprep.subr.bf16.mxu0 %v10937_v62  ;;  %v10342_v59 = vld [vmem:[%s14734_s1 + $0x1a0] sm:$0xff]  }
  0x9d   : > { %9293 = vmatmul.mubr.bf16.gmra.mxu0 %v1048_v55  ;;  %9520 = vmatprep.subr.bf16.mxu1 %v10942_v63  ;;  %v1707_v55 = vpack.c.bf16 %v1676_v47, %v1675_v46  ;;  %v1691_v46 = vld [vmem:[%s10714_s23 + $0xd3] sm:$0xff]  ;;  %v1692_v47 = vld [vmem:[%s10714_s23 + $0xdb] sm:$0xff] }
  0x9e   : > { %9345 = vmatmul.mubr.bf16.gmra.mxu1 %v1380_v0  ;;  %9296 = vmatprep.mubr.bf16.mxu0 %v1380_v0  ;;  %v10343_v0 = vld [vmem:[%s14734_s1 + $0x1e0] sm:$0xff]  }
  0x9f   : > { %9348 = vmatprep.mubr.bf16.mxu1 %v1050_v1 }
  0xa5   : > { %9297 = vmatmul.mubr.bf16.gmra.mxu0 %v1050_v1  ;;  %v2011_v1 = vld [vmem:[%s10714_s23 + $0x74] sm:$0xff] }
  0xa6   : > { %9349 = vmatmul.mubr.bf16.gmra.mxu1 %v1382_v6  ;;  %9300 = vmatprep.mubr.bf16.mxu0 %v1382_v6  ;;  %v11026_v6 = vpack.c.bf16 %v2010_v61, %v2009_v60  ;;  %v11028_v8 = vpack.c.bf16 %v2012_v2, %v2011_v1  ;;  %v1695_v60 = vld [vmem:[%s10714_s23 + $0xf3] sm:$0xff]  ;;  %v1696_v61 = vld [vmem:[%s10714_s23 + $0xfb] sm:$0xff] }
  0xa7   : > { %9352 = vmatprep.mubr.bf16.mxu1 %v1052_v7  ;;  %v1717_v2 = vpack.c.bf16 %v1696_v61, %v1695_v60 }
  0xad   : > { %9301 = vmatmul.mubr.bf16.gmra.mxu0 %v1052_v7 }
  0xae   : > { %9353 = vmatmul.mubr.bf16.gmra.mxu1 %v1384_v12  ;;  %9304 = vmatprep.mubr.bf16.mxu0 %v1384_v12  ;;  %v1682_v12 = vld [vmem:[%s10714_s23 + $0x8b] sm:$0xff] }
  0xaf   : > { %9356 = vmatprep.mubr.bf16.mxu1 %v1054_v13  ;;  %v1710_v21 = vpack.c.bf16 %v1682_v12, %v1681_v11 }
  0xb5   : > { %9305 = vmatmul.mubr.bf16.gmra.mxu0 %v1054_v13  ;;  %v2013_v13 = vld [vmem:[%s10714_s23 + $0x84] sm:$0xff] }
  0xb6   : > { %9357 = vmatmul.mubr.bf16.gmra.mxu1 %v1386_v18  ;;  %9308 = vmatprep.mubr.bf16.mxu0 %v1386_v18  ;;  %v2016_v18 = vld [vmem:[%s10714_s23 + $0x9c] sm:$0xff]  ;;  %v11052_v22 = vpack.c.bf16 %v2014_v14, %v2013_v13  ;;  %v2030_v13 = vld [vmem:[%s10714_s23 + $0x10c] sm:$0xff] }
  0xb7   : > { %9360 = vmatprep.mubr.bf16.mxu1 %v1056_v19  ;;  %v11054_v24 = vpack.c.bf16 %v2016_v18, %v2015_v17  ;;  %v1699_v14 = vld [vmem:[%s10714_s23 + $0x113] sm:$0xff]  ;;  %v2032_v18 = vld [vmem:[%s10714_s23 + $0x11c] sm:$0xff] }
  0xb8   : > { %v2031_v17 = vld [vmem:[%s10714_s23 + $0x114] sm:$0xff] }
  0xbd   : > { %9309 = vmatmul.mubr.bf16.gmra.mxu0 %v1056_v19  ;;  %v10348_v19 = vld [vmem:[%s14734_s1 + $0x188] sm:$0xff]  }
  0xbe   : > { %9361 = vmatmul.mubr.bf16.gmra.mxu1 %v1388_v26  ;;  %9380 = vmatprep.mubr.bf16.mxu0 %v1703_v27  ;;  %v10351_v26 = vld [vmem:[%s14734_s1 + $0x1c0] sm:$0xff]  }
  0xbf   : > { %9432 = vmatprep.mubr.bf16.mxu1 %v2035_v28  ;;  %v1685_v27 = vld [vmem:[%s10714_s23 + $0xa3] sm:$0xff]  ;;  %v1686_v28 = vld [vmem:[%s10714_s23 + $0xab] sm:$0xff] }
  0xc0   : > { %v1712_v34 = vpack.c.bf16 %v1686_v28, %v1685_v27 }
  0xc5   : > { %9381 = vmatmul.mubr.bf16.vlgmr.msra.gmra.mxu0 %v1704_v37  ;;  %v11077_v37 = vpack.c.bf16 %v2018_v30, %v2017_v29  ;;  %v11128_v29 = vpack.c.bf16 %v2032_v18, %v2031_v17 }
  0xc6   : > { %9433 = vmatmul.mubr.bf16.vlgmr.msra.gmra.mxu1 %v10972_v38  ;;  %9384 = vmatprep.mubr.bf16.mxu0 %v1705_v39  ;;  %v1713_v39 = vpack.c.bf16 %v1688_v32, %v1687_v31 }
  0xc7   : > { %9436 = vmatprep.mubr.bf16.mxu1 %v10974_v40  ;;  %9469 = vmatpush3.bf16.msra.mxu0 %v10937_v62  ;;  %v1679_v62 = vld [vmem:[%s10714_s23 + $0x73] sm:$0xff] }
  0xc8   : > { %9521 = vmatpush3.bf16.msra.mxu1 %v10942_v63  ;;  %9470 = vmatprep.subr.bf16.mxu0 %v10338_v43  ;;  %v1680_v63 = vld [vmem:[%s10714_s23 + $0x7b] sm:$0xff] }
  0xc9   : > { %9522 = vmatprep.subr.bf16.mxu1 %v10339_v48  ;;  %v1709_v7 = vpack.c.bf16 %v1680_v63, %v1679_v62  ;;  %v2027_v62 = vld [vmem:[%s10714_s23 + $0xf4] sm:$0xff]  ;;  %v2028_v63 = vld [vmem:[%s10714_s23 + $0xfc] sm:$0xff] }
  0xcb   : > { %9471 = vmatpush3.bf16.msra.mxu0 %v10338_v43  ;;  %v1690_v43 = vld [vmem:[%s10714_s23 + $0xcb] sm:$0xff] }
  0xcc   : > { %9523 = vmatpush3.bf16.msra.mxu1 %v10339_v48  ;;  %9472 = vmatprep.subr.bf16.mxu0 %v10340_v51  ;;  %v2023_v48 = vld [vmem:[%s10714_s23 + $0xd4] sm:$0xff]  ;;  %v1714_v50 = vpack.c.bf16 %v1690_v43, %v1689_v42  ;;  %v2033_v43 = vld [vmem:[%s10714_s23 + $0x124] sm:$0xff] }
  0xcd   : > { %9385 = vmatmul.mubr.bf16.gmra.mxu0 %v1706_v53  ;;  %9524 = vmatprep.subr.bf16.mxu1 %v10341_v52  ;;  %v11094_v53 = vpack.c.bf16 %v2024_v49, %v2023_v48 }
  0xce   : > { %9437 = vmatmul.mubr.bf16.gmra.mxu1 %v11000_v54  ;;  %9388 = vmatprep.mubr.bf16.mxu0 %v1707_v55  ;;  %v1693_v55 = vld [vmem:[%s10714_s23 + $0xe3] sm:$0xff] }
  0xcf   : > { %9440 = vmatprep.mubr.bf16.mxu1 %v11002_v56  ;;  %9473 = vmatpush3.bf16.msra.mxu0 %v10340_v51  ;;  %v11092_v51 = vpack.c.bf16 %v2022_v45, %v2021_v44  ;;  %v2034_v44 = vld [vmem:[%s10714_s23 + $0x12c] sm:$0xff] }
  0xd0   : > { %9525 = vmatpush3.bf16.msra.mxu1 %v10341_v52  ;;  %9474 = vmatprep.subr.bf16.mxu0 %v10342_v59  ;;  %v1715_v52 = vpack.c.bf16 %v1692_v47, %v1691_v46  ;;  %v2663_v46 = vld [vmem:[%s10714_s23 + $0x25] sm:$0xff]  ;;  %v2664_v47 = vld [vmem:[%s10714_s23 + $0x2d] sm:$0xff] }
  0xd1   : > { %9526 = vmatprep.subr.bf16.mxu1 %v10343_v0 }
  0xd3   : > { %9475 = vmatpush3.bf16.msra.mxu0 %v10342_v59  ;;  %v2026_v59 = vld [vmem:[%s10714_s23 + $0xec] sm:$0xff] }
  0xd4   : > { %9527 = vmatpush3.bf16.msra.mxu1 %v10343_v0  ;;  %9476 = vmatprep.subr.bf16.mxu0 %v10344_v3  ;;  %v1716_v0 = vpack.c.bf16 %v1694_v57, %v1693_v55  ;;  %v11106_v1 = vpack.c.bf16 %v2026_v59, %v2025_v58  ;;  %v11144_v55 = vpack.c.bf16 %v2034_v44, %v2033_v43 }
  0xd5   : > { %9389 = vmatmul.mubr.bf16.gmra.mxu0 %v1708_v5  ;;  %9528 = vmatprep.subr.bf16.mxu1 %v10345_v4  ;;  %v2699_v59 = vpack.c.bf16 %v2664_v47, %v2663_v46 }
  0xd6   : > { %9441 = vmatmul.mubr.bf16.gmra.mxu1 %v11026_v6  ;;  %9392 = vmatprep.mubr.bf16.mxu0 %v1709_v7  ;;  %v1697_v7 = vld [vmem:[%s10714_s23 + $0x103] sm:$0xff] }
  0xd7   : > { %9444 = vmatprep.mubr.bf16.mxu1 %v11028_v8  ;;  %9477 = vmatpush3.bf16.msra.mxu0 %v10344_v3  ;;  %v11108_v3 = vpack.c.bf16 %v2028_v63, %v2027_v62 }
  0xd8   : > { %9529 = vmatpush3.bf16.msra.mxu1 %v10345_v4  ;;  %9478 = vmatprep.subr.bf16.mxu0 %v10346_v9 }
  0xd9   : > { %9530 = vmatprep.subr.bf16.mxu1 %v10347_v10 }
  0xdb   : > { %9479 = vmatpush3.bf16.msra.mxu0 %v10346_v9  ;;  %v1698_v9 = vld [vmem:[%s10714_s23 + $0x10b] sm:$0xff] }
  0xdc   : > { %9531 = vmatpush3.bf16.msra.mxu1 %v10347_v10  ;;  %9480 = vmatprep.subr.bf16.mxu0 %v10348_v19  ;;  %v2029_v10 = vld [vmem:[%s10714_s23 + $0x104] sm:$0xff] }
  0xdd   : > { %9393 = vmatmul.mubr.bf16.gmra.mxu0 %v1710_v21  ;;  %9532 = vmatprep.subr.bf16.mxu1 %v10349_v20  ;;  %v1718_v21 = vpack.c.bf16 %v1698_v9, %v1697_v7  ;;  %v2667_v9 = vld [vmem:[%s10714_s23 + $0x45] sm:$0xff] }
  0xde   : > { %9445 = vmatmul.mubr.bf16.gmra.mxu1 %v11052_v22  ;;  %9396 = vmatprep.mubr.bf16.mxu0 %v1711_v23 }
  0xdf   : > { %9448 = vmatprep.mubr.bf16.mxu1 %v11054_v24  ;;  %9481 = vmatpush3.bf16.msra.mxu0 %v10348_v19 }
  0xe0   : > { %9533 = vmatpush3.bf16.msra.mxu1 %v10349_v20  ;;  %9482 = vmatprep.subr.bf16.mxu0 %v10350_v25 }
  0xe1   : > { %9534 = vmatprep.subr.bf16.mxu1 %v10351_v26 }
  0xe3   : > { %9483 = vmatpush3.bf16.msra.mxu0 %v10350_v25  ;;  %v11124_v25 = vpack.c.bf16 %v2030_v13, %v2029_v10  ;;  %v2668_v10 = vld [vmem:[%s10714_s23 + $0x4d] sm:$0xff] }
  0xe4   : > { %9535 = vmatpush3.bf16.msra.mxu1 %v10351_v26  ;;  %9572 = vmatprep.subr.bf16.mxu0 %v11074_v36  ;;  %v1719_v26 = vpack.c.bf16 %v1700_v15, %v1699_v14 }
  0xe5   : > { %9397 = vmatmul.mubr.bf16.gmra.mxu0 %v1712_v34  ;;  %v1702_v34 = vld [vmem:[%s10714_s23 + $0x12b] sm:$0xff] }
  0xe6   : > { %9449 = vmatmul.mubr.bf16.gmra.mxu1 %v11077_v37  ;;  %9400 = vmatprep.mubr.bf16.mxu0 %v1713_v39 }
  0xe7   : > { %9452 = vmatprep.mubr.bf16.mxu1 %v11079_v41 }
  0xed   : > { %9401 = vmatmul.mubr.bf16.gmra.mxu0 %v1714_v50  ;;  %v1720_v50 = vpack.c.bf16 %v1702_v34, %v1701_v35  ;;  %v2671_v34 = vld [vmem:[%s10714_s23 + $0x65] sm:$0xff] }
  0xee   : > { %9453 = vmatmul.mubr.bf16.gmra.mxu1 %v11092_v51  ;;  %9404 = vmatprep.mubr.bf16.mxu0 %v1715_v52 }
  0xef   : > { %9456 = vmatprep.mubr.bf16.mxu1 %v11094_v53 }
  0xf5   : > { %v9174_v4 = vpop.f32.mrf.mxu0  ;;  %9405 = vmatmul.mubr.bf16.gmra.mxu0 %v1716_v0 }
  0xf6   : > { %v9226_v5 = vpop.f32.mrf.mxu1  ;;  %9457 = vmatmul.mubr.bf16.gmra.mxu1 %v11106_v1  ;;  %9408 = vmatprep.mubr.bf16.mxu0 %v1717_v2 }
  0xf7   : > { %v11114_v11 = vadd.f32 %v9226_v5, %v9174_v4  ;;  %v635_v12 = vpop.f32.mrf.mxu0  ;;  %9460 = vmatprep.mubr.bf16.mxu1 %v11108_v3  ;;  %v2665_v4 = vld [vmem:[%s10714_s23 + $0x35] sm:$0xff]  ;;  %v2666_v5 = vld [vmem:[%s10714_s23 + $0x3d] sm:$0xff] }
  0xf8   : > { %v860_v16 = vpop.f32.mrf.mxu1  ;;  %v2700_v15 = vpack.c.bf16 %v2666_v5, %v2665_v4  ;;  %v2675_v5 = vld [vmem:[%s10714_s23 + $0x85] sm:$0xff] }
  0xf9   : > { %v11122_v19 = vadd.f32 %v860_v16, %v635_v12  ;;  %v9175_v20 = vpop.f32.mrf.mxu0 }
  0xfa   : > { %v9227_v23 = vpop.f32.mrf.mxu1 }
  0xfb   : > { %v11126_v27 = vadd.f32 %v9227_v23, %v9175_v20  ;;  %v638_v28 = vpop.f32.mrf.mxu0  ;;  %v10353_v20 = vld [vmem:[%s14734_s1 + $0x230] sm:$0xff]  }
  0xfc   : > { %v863_v30 = vpop.f32.mrf.mxu1 }
  0xfd   : > { %v11130_v31 = vadd.f32 %v863_v30, %v638_v28  ;;  %v9178_v32 = vpop.f32.mrf.mxu0  ;;  %9409 = vmatmul.mubr.bf16.gmra.mxu0 %v1718_v21 }
  0xfe   : > { %v9230_v33 = vpop.f32.mrf.mxu1  ;;  %9461 = vmatmul.mubr.bf16.gmra.mxu1 %v11124_v25  ;;  %9412 = vmatprep.mubr.bf16.mxu0 %v1719_v26 }
  0xff   : > { %v11135_v39 = vadd.f32 %v9230_v33, %v9178_v32  ;;  %v651_v42 = vpop.f32.mrf.mxu0  ;;  %9464 = vmatprep.mubr.bf16.mxu1 %v11128_v29  ;;  %v2669_v32 = vld [vmem:[%s10714_s23 + $0x55] sm:$0xff]  ;;  %v2670_v33 = vld [vmem:[%s10714_s23 + $0x5d] sm:$0xff] }
 0x100   : > { %v876_v45 = vpop.f32.mrf.mxu1 }
 0x101   : > { %v11142_v48 = vadd.f32 %v876_v45, %v651_v42  ;;  %v9179_v49 = vpop.f32.mrf.mxu0  ;;  %v2672_v42 = vld [vmem:[%s10714_s23 + $0x6d] sm:$0xff]  ;;  %v2702_v45 = vpack.c.bf16 %v2670_v33, %v2669_v32  ;;  %v2677_v33 = vld [vmem:[%s10714_s23 + $0x95] sm:$0xff] }
 0x102   : > { %v9231_v52 = vpop.f32.mrf.mxu1 }
 0x103   : > { %v11146_v57 = vadd.f32 %v9231_v52, %v9179_v49  ;;  %v654_v58 = vpop.f32.mrf.mxu0  ;;  %v2703_v49 = vpack.c.bf16 %v2672_v42, %v2671_v34  ;;  %v2679_v42 = vld [vmem:[%s10714_s23 + $0xa5] sm:$0xff] }
 0x104   : > { %v879_v60 = vpop.f32.mrf.mxu1 }
 0x105   : > { %v11148_v61 = vadd.f32 %v879_v60, %v654_v58  ;;  %v9182_v62 = vpop.f32.mrf.mxu0  ;;  %9413 = vmatmul.mubr.bf16.gmra.mxu0 %v1720_v50  ;;  %v10355_v50 = vld [vmem:[%s14734_s1 + $0x220] sm:$0xff]  }
 0x106   : > { %v9234_v63 = vpop.f32.mrf.mxu1  ;;  %9465 = vmatmul.mubr.bf16.gmra.mxu1 %v11144_v55  ;;  %9484 = vmatprep.mubr.bf16.mxu0 %v10972_v38  ;;  %v2701_v38 = vpack.c.bf16 %v2668_v10, %v2667_v9  ;;  %v10356_v9 = vld [vmem:[%s14734_s1 + $0x218] sm:$0xff]  }
 0x107   : > { %v11152_v0 = vadd.f32 %v9234_v63, %v9182_v62  ;;  %v667_v2 = vpop.f32.mrf.mxu0  ;;  %9536 = vmatprep.mubr.bf16.mxu1 %v2699_v59  ;;  %v2673_v63 = vld [vmem:[%s10714_s23 + $0x75] sm:$0xff] }
 0x108   : > { %v892_v7 = vpop.f32.mrf.mxu1 }
 0x109   : > { %v11158_v12 = vadd.f32 %v892_v7, %v667_v2  ;;  %v9183_v13 = vpop.f32.mrf.mxu0  ;;  %v2674_v2 = vld [vmem:[%s10714_s23 + $0x7d] sm:$0xff]  ;;  %v2676_v7 = vld [vmem:[%s10714_s23 + $0x8d] sm:$0xff] }
 0x10a   : > { %v9235_v14 = vpop.f32.mrf.mxu1 }
 0x10b   : > { %v11160_v16 = vadd.f32 %v9235_v14, %v9183_v13  ;;  %v670_v17 = vpop.f32.mrf.mxu0 }
 0x10c   : > { %v895_v18 = vpop.f32.mrf.mxu1 }
 0x10d   : > { %v11165_v21 = vadd.f32 %v895_v18, %v670_v17  ;;  %v9186_v23 = vpop.f32.mrf.mxu0  ;;  %9485 = vmatmul.mubr.bf16.vlgmr.msra.gmra.mxu0 %v10974_v40  ;;  %v10354_v40 = vld [vmem:[%s14734_s1 + $0x228] sm:$0xff]   ;;  %v2705_v17 = vpack.c.bf16 %v2676_v7, %v2675_v5  ;;  %v10357_v18 = vld [vmem:[%s14734_s1 + $0x210] sm:$0xff]   ;;  %v2682_v7 = vld [vmem:[%s10714_s23 + $0xbd] sm:$0xff] }
 0x10e   : > { %v9238_v26 = vpop.f32.mrf.mxu1  ;;  %9537 = vmatmul.mubr.bf16.vlgmr.msra.gmra.mxu1 %v2700_v15  ;;  %9488 = vmatprep.mubr.bf16.mxu0 %v11000_v54  ;;  %v2681_v5 = vld [vmem:[%s10714_s23 + $0xb5] sm:$0xff] }
 0x10f   : > { %v11169_v28 = vadd.f32 %v9238_v26, %v9186_v23  ;;  %v683_v30 = vpop.f32.mrf.mxu0  ;;  %9540 = vmatprep.mubr.bf16.mxu1 %v2701_v38  ;;  %9573 = vmatpush3.bf16.msra.mxu0 %v11074_v36 }
 0x110   : > { %v908_v35 = vpop.f32.mrf.mxu1  ;;  %9574 = vmatprep.subr.bf16.mxu0 %v10353_v20 }
 0x111   : > { %v11179_v43 = vadd.f32 %v908_v35, %v683_v30  ;;  %v9187_v44 = vpop.f32.mrf.mxu0  ;;  %v2678_v35 = vld [vmem:[%s10714_s23 + $0x9d] sm:$0xff] }
 0x112   : > { %v9239_v54 = vpop.f32.mrf.mxu1 }
 0x113   : > { %v11181_v46 = vadd.f32 %v9239_v54, %v9187_v44  ;;  %v686_v47 = vpop.f32.mrf.mxu0  ;;  %9575 = vmatpush3.bf16.msra.mxu0 %v10353_v20  ;;  %v10358_v44 = vld [vmem:[%s14734_s1 + $0x208] sm:$0xff]  }
 0x114   : > { %v911_v36 = vpop.f32.mrf.mxu1  ;;  %9576 = vmatprep.subr.bf16.mxu0 %v10354_v40 }
 0x115   : > { %v11186_v52 = vadd.f32 %v911_v36, %v686_v47  ;;  %v9190_v58 = vpop.f32.mrf.mxu0  ;;  %9489 = vmatmul.mubr.bf16.gmra.mxu0 %v11002_v56 }
 0x116   : > { %v9242_v59 = vpop.f32.mrf.mxu1  ;;  %9541 = vmatmul.mubr.bf16.gmra.mxu1 %v2702_v45  ;;  %9492 = vmatprep.mubr.bf16.mxu0 %v11026_v6  ;;  %v2704_v6 = vpack.c.bf16 %v2674_v2, %v2673_v63 }
 0x117   : > { %v11190_v60 = vadd.f32 %v9242_v59, %v9190_v58  ;;  %v699_v62 = vpop.f32.mrf.mxu0  ;;  %9544 = vmatprep.mubr.bf16.mxu1 %v2703_v49  ;;  %9577 = vmatpush3.bf16.msra.mxu0 %v10354_v40  ;;  %v2680_v40 = vld [vmem:[%s10714_s23 + $0xad] sm:$0xff]  ;;  %v10359_v58 = vld [vmem:[%s14734_s1 + $0x200] sm:$0xff]  }
 0x118   : > { %v924_v4 = vpop.f32.mrf.mxu1  ;;  %9578 = vmatprep.subr.bf16.mxu0 %v10355_v50  ;;  %v2707_v36 = vpack.c.bf16 %v2680_v40, %v2679_v42  ;;  %v2685_v42 = vld [vmem:[%s10714_s23 + $0xd5] sm:$0xff]  ;;  %v2686_v40 = vld [vmem:[%s10714_s23 + $0xdd] sm:$0xff] }
 0x119   : > { %v11199_v56 = vadd.f32 %v924_v4, %v699_v62  ;;  %v9191_v10 = vpop.f32.mrf.mxu0 }
 0x11a   : > { %v9243_v13 = vpop.f32.mrf.mxu1 }
 0x11b   : > { %v11201_v14 = vadd.f32 %v9243_v13, %v9191_v10  ;;  %v702_v15 = vpop.f32.mrf.mxu0  ;;  %9579 = vmatpush3.bf16.msra.mxu0 %v10355_v50  ;;  %v2683_v10 = vld [vmem:[%s10714_s23 + $0xc5] sm:$0xff]  ;;  %v2684_v13 = vld [vmem:[%s10714_s23 + $0xcd] sm:$0xff] }
 0x11c   : > { %v927_v38 = vpop.f32.mrf.mxu1  ;;  %9580 = vmatprep.subr.bf16.mxu0 %v10356_v9 }
 0x11d   : > { %v11206_v20 = vadd.f32 %v927_v38, %v702_v15  ;;  %v9194_v23 = vpop.f32.mrf.mxu0  ;;  %9493 = vmatmul.mubr.bf16.gmra.mxu0 %v11028_v8 }
 0x11e   : > { %v9246_v26 = vpop.f32.mrf.mxu1  ;;  %9545 = vmatmul.mubr.bf16.gmra.mxu1 %v2704_v6  ;;  %9496 = vmatprep.mubr.bf16.mxu0 %v11052_v22  ;;  %v2706_v22 = vpack.c.bf16 %v2678_v35, %v2677_v33 }
 0x11f   : > { %v11210_v30 = vadd.f32 %v9246_v26, %v9194_v23  ;;  %v715_v32 = vpop.f32.mrf.mxu0  ;;  %9548 = vmatprep.mubr.bf16.mxu1 %v2705_v17  ;;  %9581 = vmatpush3.bf16.msra.mxu0 %v10356_v9 }
 0x120   : > { %v940_v34 = vpop.f32.mrf.mxu1  ;;  %9582 = vmatprep.subr.bf16.mxu0 %v10357_v18 }
 0x121   : > { %v11219_v8 = vadd.f32 %v940_v34, %v715_v32  ;;  %v9195_v54 = vpop.f32.mrf.mxu0 }
 0x122   : > { %v9247_v45 = vpop.f32.mrf.mxu1 }
 0x123   : > { %v11221_v47 = vadd.f32 %v9247_v45, %v9195_v54  ;;  %v718_v49 = vpop.f32.mrf.mxu0  ;;  %9583 = vmatpush3.bf16.msra.mxu0 %v10357_v18  ;;  %v2709_v18 = vpack.c.bf16 %v2684_v13, %v2683_v10  ;;  %v2687_v54 = vld [vmem:[%s10714_s23 + $0xe5] sm:$0xff]  ;;  %v2688_v45 = vld [vmem:[%s10714_s23 + $0xed] sm:$0xff]  ;;  %v2689_v10 = vld [vmem:[%s10714_s23 + $0xf5] sm:$0xff] }
 0x124   : > { %v943_v50 = vpop.f32.mrf.mxu1  ;;  %9584 = vmatprep.subr.bf16.mxu0 %v10358_v44  ;;  %v2690_v13 = vld [vmem:[%s10714_s23 + $0xfd] sm:$0xff] }
 0x125   : > { %v11226_v59 = vadd.f32 %v943_v50, %v718_v49  ;;  %v9198_v62 = vpop.f32.mrf.mxu0  ;;  %9497 = vmatmul.mubr.bf16.gmra.mxu0 %v11054_v24  ;;  %v2708_v24 = vpack.c.bf16 %v2682_v7, %v2681_v5 }
 0x126   : > { %v9250_v63 = vpop.f32.mrf.mxu1  ;;  %9549 = vmatmul.mubr.bf16.gmra.mxu1 %v2706_v22  ;;  %9500 = vmatprep.mubr.bf16.mxu0 %v11077_v37 }
 0x127   : > { %v11230_v2 = vadd.f32 %v9250_v63, %v9198_v62  ;;  %v731_v4 = vpop.f32.mrf.mxu0  ;;  %9552 = vmatprep.mubr.bf16.mxu1 %v2707_v36  ;;  %9585 = vmatpush3.bf16.msra.mxu0 %v10358_v44 }
 0x128   : > { %v956_v9 = vpop.f32.mrf.mxu1  ;;  %9586 = vmatprep.subr.bf16.mxu0 %v10359_v58 }
 0x129   : > { %v11236_v6 = vadd.f32 %v956_v9, %v731_v4  ;;  %v9199_v15 = vpop.f32.mrf.mxu0 }
 0x12a   : > { %v9251_v17 = vpop.f32.mrf.mxu1 }
 0x12b   : > { %v11238_v38 = vadd.f32 %v9251_v17, %v9199_v15  ;;  %v734_v37 = vpop.f32.mrf.mxu0  ;;  %9587 = vmatpush3.bf16.msra.mxu0 %v10359_v58  ;;  %v2711_v58 = vpack.c.bf16 %v2688_v45, %v2687_v54  ;;  %v2691_v17 = vld [vmem:[%s10714_s23 + $0x105] sm:$0xff]  ;;  %v2693_v45 = vld [vmem:[%s10714_s23 + $0x115] sm:$0xff] }
 0x12c   : > { %v959_v23 = vpop.f32.mrf.mxu1 }
 0x12d   : > { %v11240_v26 = vadd.f32 %v959_v23, %v734_v37  ;;  %v9202_v32 = vpop.f32.mrf.mxu0  ;;  %9501 = vmatmul.mubr.bf16.gmra.mxu0 %v11079_v41  ;;  %v2710_v41 = vpack.c.bf16 %v2686_v40, %v2685_v42 }
 0x12e   : > { %v9254_v33 = vpop.f32.mrf.mxu1  ;;  %9553 = vmatmul.mubr.bf16.gmra.mxu1 %v2708_v24  ;;  %9504 = vmatprep.mubr.bf16.mxu0 %v11092_v51  ;;  %v2692_v24 = vld [vmem:[%s10714_s23 + $0x10d] sm:$0xff] }
 0x12f   : > { %v11244_v35 = vadd.f32 %v9254_v33, %v9202_v32  ;;  %v747_v34 = vpop.f32.mrf.mxu0  ;;  %9556 = vmatprep.mubr.bf16.mxu1 %v2709_v18 }
 0x130   : > { %v972_v44 = vpop.f32.mrf.mxu1 }
 0x131   : > { %v11250_v22 = vadd.f32 %v972_v44, %v747_v34  ;;  %v9203_v49 = vpop.f32.mrf.mxu0 }
 0x132   : > { %v9255_v36 = vpop.f32.mrf.mxu1 }
 0x133   : > { %v11252_v50 = vadd.f32 %v9255_v36, %v9203_v49  ;;  %v750_v51 = vpop.f32.mrf.mxu0  ;;  %v2694_v49 = vld [vmem:[%s10714_s23 + $0x11d] sm:$0xff] }
 0x134   : > { %v975_v62 = vpop.f32.mrf.mxu1 }
 0x135   : > { %v11254_v63 = vadd.f32 %v975_v62, %v750_v51  ;;  %v9206_v4 = vpop.f32.mrf.mxu0  ;;  %9505 = vmatmul.mubr.bf16.gmra.mxu0 %v11094_v53  ;;  %v2712_v53 = vpack.c.bf16 %v2690_v13, %v2689_v10  ;;  %v2696_v62 = vld [vmem:[%s10714_s23 + $0x12d] sm:$0xff] }
 0x136   : > { %v9258_v5 = vpop.f32.mrf.mxu1  ;;  %9557 = vmatmul.mubr.bf16.gmra.mxu1 %v2710_v41  ;;  %9508 = vmatprep.mubr.bf16.mxu0 %v11106_v1  ;;  %v2713_v1 = vpack.c.bf16 %v2692_v24, %v2691_v17 }
 0x137   : > { %v11258_v7 = vadd.f32 %v9258_v5, %v9206_v4  ;;  %v763_v9 = vpop.f32.mrf.mxu0  ;;  %9560 = vmatprep.mubr.bf16.mxu1 %v2711_v58  ;;  %v2695_v58 = vld [vmem:[%s10714_s23 + $0x125] sm:$0xff]  ;;  %v2714_v5 = vpack.c.bf16 %v2694_v49, %v2693_v45 }
 0x138   : > { %v988_v15 = vpop.f32.mrf.mxu1  ;;  %v2715_v10 = vpack.c.bf16 %v2696_v62, %v2695_v58 }
 0x139   : > { %v11264_v37 = vadd.f32 %v988_v15, %v763_v9  ;;  %v9207_v18 = vpop.f32.mrf.mxu0 }
 0x13a   : > { %v9259_v23 = vpop.f32.mrf.mxu1 }
 0x13b   : > { %v11266_v32 = vadd.f32 %v9259_v23, %v9207_v18  ;;  %v11268_v33 = vpop.f32.mrf.mxu0  ;;  %v2365_v18 = vld [vmem:[%s10714_s23 + $0x134] sm:$0xff]  ;;  %v2366_v23 = vld [vmem:[%s10714_s23 + $0x13c] sm:$0xff] }
 0x13c   : > { %14772 = vst [vmem:[#allocation8_spill] sm:$0xff] %v11268_v33  ;;  %v11270_v34 = vpop.f32.mrf.mxu1  ;;  %v2384_v49 = vpack.c.bf16 %v2366_v23, %v2365_v18 }
 0x13d   : > { %14773 = vst [vmem:[#allocation9_spill] sm:$0xff] %v11270_v34  ;;  %v9278_v42 = vpop.f32.mrf.mxu0  ;;  %9509 = vmatmul.mubr.bf16.gmra.mxu0 %v11108_v3 }
 0x13e   : > { %v1301_v40 = vadd.f32 %v9278_v42, %v11114_v11  ;;  %v9330_v44 = vpop.f32.mrf.mxu1  ;;  %9561 = vmatmul.mubr.bf16.gmra.mxu1 %v2712_v53  ;;  %9512 = vmatprep.mubr.bf16.mxu0 %v11124_v25  ;;  %v2697_v53 = vld [vmem:[%s10714_s23 + $0x135] sm:$0xff]  ;;  %v2995_v42 = vld [vmem:[%s10714_s23 + $0x26] sm:$0xff] }
 0x13f   : > { %v1156_v54 = vpop.f32.mrf.mxu0  ;;  %9564 = vmatprep.mubr.bf16.mxu1 %v2713_v1 }
 0x140   : > { %v1299_v36 = vadd.f32 %v1156_v54, %v11122_v19  ;;  %v11278_v41 = vadd.f32 %v9330_v44, %v1301_v40  ;;  %v1488_v51 = vpop.f32.mrf.mxu1  ;;  %v2996_v40 = vld [vmem:[%s10714_s23 + $0x2e] sm:$0xff] }
 0x141   : > { %v9279_v4 = vpop.f32.mrf.mxu0  ;;  %v3031_v58 = vpack.c.bf16 %v2996_v40, %v2995_v42 }
 0x142   : > { %v1302_v3 = vadd.f32 %v9279_v4, %v11126_v27  ;;  %v11283_v11 = vadd.f32 %v1488_v51, %v1299_v36  ;;  %v9331_v25 = vpop.f32.mrf.mxu1 }
 0x143   : > { %v1159_v9 = vpop.f32.mrf.mxu0 }
 0x144   : > { %v11286_v19 = vadd.f32 %v1159_v9, %v11130_v31  ;;  %v11288_v13 = vadd.f32 %v9331_v25, %v1302_v3  ;;  %v11290_v15 = vpop.f32.mrf.mxu1  ;;  %v2698_v31 = vld [vmem:[%s10714_s23 + $0x13d] sm:$0xff] }
 0x145   : > { %v9282_v17 = vpop.f32.mrf.mxu0  ;;  %9513 = vmatmul.mubr.bf16.gmra.mxu0 %v11128_v29  ;;  %v2716_v51 = vpack.c.bf16 %v2698_v31, %v2697_v53  ;;  %v2997_v9 = vld [vmem:[%s10714_s23 + $0x36] sm:$0xff] }
 0x146   : > { %v1305_v27 = vadd.f32 %v9282_v17, %v11135_v39  ;;  %v9334_v24 = vpop.f32.mrf.mxu1  ;;  %9565 = vmatmul.mubr.bf16.gmra.mxu1 %v2714_v5  ;;  %9516 = vmatprep.mubr.bf16.mxu0 %v11144_v55 }
 0x147   : > { %v1172_v1 = vpop.f32.mrf.mxu0  ;;  %9568 = vmatprep.mubr.bf16.mxu1 %v2715_v10  ;;  %v2998_v10 = vld [vmem:[%s10714_s23 + $0x3e] sm:$0xff] }
 0x148   : > { %v1303_v44 = vadd.f32 %v1172_v1, %v11142_v48  ;;  %v11302_v54 = vadd.f32 %v9334_v24, %v1305_v27  ;;  %v1504_v45 = vpop.f32.mrf.mxu1  ;;  %v2999_v27 = vld [vmem:[%s10714_s23 + $0x46] sm:$0xff]  ;;  %v3000_v24 = vld [vmem:[%s10714_s23 + $0x4e] sm:$0xff]  ;;  %v3032_v1 = vpack.c.bf16 %v2998_v10, %v2997_v9 }
 0x149   : > { %v9283_v29 = vpop.f32.mrf.mxu0  ;;  %v3033_v40 = vpack.c.bf16 %v3000_v24, %v2999_v27 }
 0x14a   : > { %v1306_v39 = vadd.f32 %v9283_v29, %v11146_v57  ;;  %v11305_v55 = vadd.f32 %v1504_v45, %v1303_v44  ;;  %v9335_v36 = vpop.f32.mrf.mxu1 }
 0x14b   : > { %v1175_v62 = vpop.f32.mrf.mxu0 }
 0x14c   : > { %v11308_v4 = vadd.f32 %v1175_v62, %v11148_v61  ;;  %v11310_v48 = vadd.f32 %v9335_v36, %v1306_v39  ;;  %v11312_v3 = vpop.f32.mrf.mxu1  ;;  %v3003_v62 = vld [vmem:[%s10714_s23 + $0x66] sm:$0xff] }
 0x14d   : > { %v9286_v25 = vpop.f32.mrf.mxu0  ;;  %9517 = vmatmul.mubr.bf16.gmra.mxu0 %v2384_v49 }
 0x14e   : > { %v1309_v57 = vadd.f32 %v9286_v25, %v11152_v0  ;;  %v9338_v5 = vpop.f32.mrf.mxu1  ;;  %9569 = vmatmul.mubr.bf16.gmra.mxu1 %v2716_v51  ;;  %9588 = vmatprep.mubr.bf16.mxu0 %v3031_v58  ;;  %v3002_v51 = vld [vmem:[%s10714_s23 + $0x5e] sm:$0xff]  ;;  %v3004_v25 = vld [vmem:[%s10714_s23 + $0x6e] sm:$0xff] }
 0x14f   : > { %v1188_v17 = vpop.f32.mrf.mxu0  ;;  %v3035_v24 = vpack.c.bf16 %v3004_v25, %v3003_v62 }
 0x150   : > { %v1307_v18 = vadd.f32 %v1188_v17, %v11158_v12  ;;  %v11320_v61 = vadd.f32 %v9338_v5, %v1309_v57  ;;  %v1520_v23 = vpop.f32.mrf.mxu1 }
 0x151   : > { %v9287_v53 = vpop.f32.mrf.mxu0 }
 0x152   : > { %v1310_v31 = vadd.f32 %v9287_v53, %v11160_v16  ;;  %v11323_v0 = vadd.f32 %v1520_v23, %v1307_v18  ;;  %v9339_v42 = vpop.f32.mrf.mxu1  ;;  %v3001_v16 = vld [vmem:[%s10714_s23 + $0x56] sm:$0xff] }
 0x153   : > { %v1191_v44 = vpop.f32.mrf.mxu0  ;;  %v3034_v10 = vpack.c.bf16 %v3002_v51, %v3001_v16 }
 0x154   : > { %v11326_v45 = vadd.f32 %v1191_v44, %v11165_v21  ;;  %v11328_v12 = vadd.f32 %v9339_v42, %v1310_v31  ;;  %v11330_v29 = vpop.f32.mrf.mxu1 }
 0x155   : > { %v9290_v49 = vpop.f32.mrf.mxu0  ;;  %9589 = vmatmul.mubr.bf16.vlgmr.msra.gmra.mxu0 %v3032_v1 }
 0x156   : > { %v1313_v39 = vadd.f32 %v9290_v49, %v11169_v28  ;;  %v9342_v36 = vpop.f32.mrf.mxu1  ;;  %9592 = vmatprep.mubr.bf16.mxu0 %v3033_v40  ;;  %v3006_v40 = vld [vmem:[%s10714_s23 + $0x7e] sm:$0xff]  ;;  %v3007_v49 = vld [vmem:[%s10714_s23 + $0x86] sm:$0xff] }
 0x157   : > { %v1204_v58 = vpop.f32.mrf.mxu0 }
 0x158   : > { %v1311_v57 = vadd.f32 %v1204_v58, %v11179_v43  ;;  %v11338_v5 = vadd.f32 %v9342_v36, %v1313_v39  ;;  %v1536_v21 = vpop.f32.mrf.mxu1  ;;  %v3008_v39 = vld [vmem:[%s10714_s23 + $0x8e] sm:$0xff] }
 0x159   : > { %v9291_v9 = vpop.f32.mrf.mxu0 }
 0x15a   : > { %v1314_v17 = vadd.f32 %v9291_v9, %v11181_v46  ;;  %v11341_v28 = vadd.f32 %v1536_v21, %v1311_v57  ;;  %v9343_v27 = vpop.f32.mrf.mxu1  ;;  %v3005_v46 = vld [vmem:[%s10714_s23 + $0x76] sm:$0xff]  ;;  %v3037_v57 = vpack.c.bf16 %v3008_v39, %v3007_v49 }
 0x15b   : > { %v1207_v18 = vpop.f32.mrf.mxu0  ;;  %v3036_v58 = vpack.c.bf16 %v3006_v40, %v3005_v46 }
 0x15c   : > { %v11344_v23 = vadd.f32 %v1207_v18, %v11186_v52  ;;  %v11346_v43 = vadd.f32 %v9343_v27, %v1314_v17  ;;  %v11348_v53 = vpop.f32.mrf.mxu1  ;;  %v3010_v18 = vld [vmem:[%s10714_s23 + $0x9e] sm:$0xff] }
 0x15d   : > { %v9294_v1 = vpop.f32.mrf.mxu0  ;;  %9593 = vmatmul.mubr.bf16.gmra.mxu0 %v3034_v10 }
 0x15e   : > { %v1317_v31 = vadd.f32 %v9294_v1, %v11190_v60  ;;  %v9346_v42 = vpop.f32.mrf.mxu1  ;;  %9596 = vmatprep.mubr.bf16.mxu0 %v3035_v24 }
 0x15f   : > { %v1220_v44 = vpop.f32.mrf.mxu0 }
 0x160   : > { %v1315_v36 = vadd.f32 %v1220_v44, %v11199_v56  ;;  %v11356_v16 = vadd.f32 %v9346_v42, %v1317_v31  ;;  %v1552_v52 = vpop.f32.mrf.mxu1  ;;  %v3011_v31 = vld [vmem:[%s10714_s23 + $0xa6] sm:$0xff]  ;;  %v3012_v42 = vld [vmem:[%s10714_s23 + $0xae] sm:$0xff] }
 0x161   : > { %v9295_v51 = vpop.f32.mrf.mxu0 }
 0x162   : > { %v1318_v62 = vadd.f32 %v9295_v51, %v11201_v14  ;;  %v11359_v60 = vadd.f32 %v1552_v52, %v1315_v36  ;;  %v9347_v25 = vpop.f32.mrf.mxu1  ;;  %v3009_v14 = vld [vmem:[%s10714_s23 + $0x96] sm:$0xff]  ;;  %v3039_v52 = vpack.c.bf16 %v3012_v42, %v3011_v31 }
 0x163   : > { %v1223_v21 = vpop.f32.mrf.mxu0  ;;  %v3038_v49 = vpack.c.bf16 %v3010_v18, %v3009_v14  ;;  %v3016_v14 = vld [vmem:[%s10714_s23 + $0xce] sm:$0xff] }
 0x164   : > { %v11362_v9 = vadd.f32 %v1223_v21, %v11206_v20  ;;  %v11364_v56 = vadd.f32 %v9347_v25, %v1318_v62  ;;  %v11366_v10 = vpop.f32.mrf.mxu1 }
 0x165   : > { %14775 = vst [vmem:[#allocation11_spill] sm:$0xff] %v11366_v10  ;;  %v9298_v17 = vpop.f32.mrf.mxu0  ;;  %9597 = vmatmul.mubr.bf16.gmra.mxu0 %v3036_v58 }
 0x166   : > { %14774 = vst [vmem:[#allocation10_spill] sm:$0xff] %v11362_v9  ;;  %v1321_v27 = vadd.f32 %v9298_v17, %v11210_v30  ;;  %v9350_v24 = vpop.f32.mrf.mxu1  ;;  %9600 = vmatprep.mubr.bf16.mxu0 %v3037_v57  ;;  %v3014_v17 = vld [vmem:[%s10714_s23 + $0xbe] sm:$0xff] }
 0x167   : > { %v1236_v1 = vpop.f32.mrf.mxu0 }
 0x168   : > { %v1319_v46 = vadd.f32 %v1236_v1, %v11219_v8  ;;  %v11374_v40 = vadd.f32 %v9350_v24, %v1321_v27  ;;  %v1568_v20 = vpop.f32.mrf.mxu1  ;;  %v3015_v24 = vld [vmem:[%s10714_s23 + $0xc6] sm:$0xff] }
 0x169   : > { %v9299_v44 = vpop.f32.mrf.mxu0 }
 0x16a   : > { %v1322_v39 = vadd.f32 %v9299_v44, %v11221_v47  ;;  %v11377_v30 = vadd.f32 %v1568_v20, %v1319_v46  ;;  %v9351_v36 = vpop.f32.mrf.mxu1  ;;  %v3013_v47 = vld [vmem:[%s10714_s23 + $0xb6] sm:$0xff]  ;;  %v3041_v44 = vpack.c.bf16 %v3016_v14, %v3015_v24 }
 0x16b   : > { %v1239_v51 = vpop.f32.mrf.mxu0  ;;  %v3040_v42 = vpack.c.bf16 %v3014_v17, %v3013_v47  ;;  %v3019_v47 = vld [vmem:[%s10714_s23 + $0xe6] sm:$0xff]  ;;  %v3020_v17 = vld [vmem:[%s10714_s23 + $0xee] sm:$0xff] }
 0x16c   : > { %v11380_v58 = vadd.f32 %v1239_v51, %v11226_v59  ;;  %v11382_v8 = vadd.f32 %v9351_v36, %v1322_v39  ;;  %v11384_v62 = vpop.f32.mrf.mxu1 }
 0x16d   : > { %14777 = vst [vmem:[#allocation13_spill] sm:$0xff] %v11384_v62  ;;  %v9302_v25 = vpop.f32.mrf.mxu0  ;;  %9601 = vmatmul.mubr.bf16.gmra.mxu0 %v3038_v49 }
 0x16e   : > { %14776 = vst [vmem:[#allocation12_spill] sm:$0xff] %v11380_v58  ;;  %v1325_v57 = vadd.f32 %v9302_v25, %v11230_v2  ;;  %v9354_v21 = vpop.f32.mrf.mxu1  ;;  %9604 = vmatprep.mubr.bf16.mxu0 %v3039_v52 }
 0x16f   : > { %v1252_v27 = vpop.f32.mrf.mxu0 }
 0x170   : > { %v1323_v18 = vadd.f32 %v1252_v27, %v11236_v6  ;;  %v11392_v1 = vadd.f32 %v9354_v21, %v1325_v57  ;;  %v1584_v59 = vpop.f32.mrf.mxu1  ;;  %v3018_v57 = vld [vmem:[%s10714_s23 + $0xde] sm:$0xff] }
 0x171   : > { %v9303_v31 = vpop.f32.mrf.mxu0 }
 0x172   : > { %v1326_v46 = vadd.f32 %v9303_v31, %v11238_v38  ;;  %v11395_v2 = vadd.f32 %v1584_v59, %v1323_v18  ;;  %v9355_v20 = vpop.f32.mrf.mxu1  ;;  %v3017_v38 = vld [vmem:[%s10714_s23 + $0xd6] sm:$0xff] }
 0x173   : > { %v1255_v49 = vpop.f32.mrf.mxu0  ;;  %v3042_v18 = vpack.c.bf16 %v3018_v57, %v3017_v38  ;;  %v3023_v57 = vld [vmem:[%s10714_s23 + $0x106] sm:$0xff] }
 0x174   : > { %v11398_v39 = vadd.f32 %v1255_v49, %v11240_v26  ;;  %v11400_v6 = vadd.f32 %v9355_v20, %v1326_v46  ;;  %v11402_v36 = vpop.f32.mrf.mxu1 }
 0x175   : > { %14779 = vst [vmem:[#allocation15_spill] sm:$0xff] %v11402_v36  ;;  %v9306_v52 = vpop.f32.mrf.mxu0  ;;  %9605 = vmatmul.mubr.bf16.gmra.mxu0 %v3040_v42  ;;  %v3043_v42 = vpack.c.bf16 %v3020_v17, %v3019_v47 }
 0x176   : > { %14778 = vst [vmem:[#allocation14_spill] sm:$0xff] %v11398_v39  ;;  %v1329_v51 = vadd.f32 %v9306_v52, %v11244_v35  ;;  %v9358_v25 = vpop.f32.mrf.mxu1  ;;  %9608 = vmatprep.mubr.bf16.mxu0 %v3041_v44 }
 0x177   : > { %v1268_v21 = vpop.f32.mrf.mxu0 }
 0x178   : > { %v1327_v27 = vadd.f32 %v1268_v21, %v11250_v22  ;;  %v11410_v24 = vadd.f32 %v9358_v25, %v1329_v51  ;;  %v1600_v26 = vpop.f32.mrf.mxu1  ;;  %v3022_v25 = vld [vmem:[%s10714_s23 + $0xfe] sm:$0xff]  ;;  %v3024_v21 = vld [vmem:[%s10714_s23 + $0x10e] sm:$0xff] }
 0x179   : > { %v9307_v14 = vpop.f32.mrf.mxu0 }
 0x17a   : > { %v1330_v59 = vadd.f32 %v9307_v14, %v11252_v50  ;;  %v11413_v35 = vadd.f32 %v1600_v26, %v1327_v27  ;;  %v9359_v31 = vpop.f32.mrf.mxu1  ;;  %v3021_v50 = vld [vmem:[%s10714_s23 + $0xf6] sm:$0xff] }
 0x17b   : > { %v1271_v46 = vpop.f32.mrf.mxu0  ;;  %v3044_v26 = vpack.c.bf16 %v3022_v25, %v3021_v50  ;;  %v3025_v50 = vld [vmem:[%s10714_s23 + $0x116] sm:$0xff]  ;;  %v3026_v25 = vld [vmem:[%s10714_s23 + $0x11e] sm:$0xff] }
 0x17c   : > { %v11416_v20 = vadd.f32 %v1271_v46, %v11254_v63  ;;  %v11418_v22 = vadd.f32 %v9359_v31, %v1330_v59  ;;  %v11420_v44 = vpop.f32.mrf.mxu1  ;;  %v3045_v59 = vpack.c.bf16 %v3024_v21, %v3023_v57  ;;  %v3027_v57 = vld [vmem:[%s10714_s23 + $0x126] sm:$0xff]  ;;  %v3028_v21 = vld [vmem:[%s10714_s23 + $0x12e] sm:$0xff] }
 0x17d   : > { %14781 = vst [vmem:[#allocation17_spill] sm:$0xff] %v11420_v44  ;;  %v9310_v49 = vpop.f32.mrf.mxu0  ;;  %9609 = vmatmul.mubr.bf16.gmra.mxu0 %v3042_v18 }
 0x17e   : > { %14780 = vst [vmem:[#allocation16_spill] sm:$0xff] %v11416_v20  ;;  %v1333_v52 = vadd.f32 %v9310_v49, %v11258_v7  ;;  %v9362_v51 = vpop.f32.mrf.mxu1  ;;  %9612 = vmatprep.mubr.bf16.mxu0 %v3043_v42 }
 0x17f   : > { %v1284_v38 = vpop.f32.mrf.mxu0 }
 0x180   : > { %v1331_v47 = vadd.f32 %v1284_v38, %v11264_v37  ;;  %v11428_v17 = vadd.f32 %v9362_v51, %v1333_v52  ;;  %v1616_v63 = vpop.f32.mrf.mxu1  ;;  %v10362_v37 = vld [vmem:[%s14736_s3 + $0x74] ss:$8 sps:$4 sm:$0xff]  }
 0x181   : > { %v9311_v27 = vpop.f32.mrf.mxu0  ;;  %3532 = vmatprep.subr.bf16.mxu1 %v10362_v37 }
 0x182   : > { %v1334_v14 = vadd.f32 %v9311_v27, %v11266_v32  ;;  %v11431_v18 = vadd.f32 %v1616_v63, %v1331_v47  ;;  %v9363_v7 = vpop.f32.mrf.mxu1  ;;  %v10360_v32 = vld [vmem:[%s14736_s3 + $0x70] ss:$8 sps:$4 sm:$0xff]   ;;  %v10365_v47 = vld [vmem:[%s14736_s3 + $0x64] ss:$8 sps:$4 sm:$0xff]  }
 0x183   : > { %v11433_v31 = vpop.f32.mrf.mxu0  ;;  %3533 = vmatpush1.bf16.msra.mxu1 %v10360_v32 }
 0x184   : > { %14782 = vst [vmem:[#allocation18_spill] sm:$0xff] %v11433_v31  ;;  %v11438_v42 = vadd.f32 %v9363_v7, %v1334_v14  ;;  %v11440_v46 = vpop.f32.mrf.mxu1  ;;  %v3046_v7 = vpack.c.bf16 %v3026_v25, %v3025_v50  ;;  %3534 = vmatprep.subr.bf16.mxu1 %v10365_v47  ;;  %v3030_v47 = vld [vmem:[%s10714_s23 + $0x13e] sm:$0xff] }
 0x185   : > { %14783 = vst [vmem:[#allocation19_spill] sm:$0xff] %v11440_v46  ;;  %v9382_v49 = vpop.f32.mrf.mxu0  ;;  %9613 = vmatmul.mubr.bf16.gmra.mxu0 %v3044_v26 }
 0x186   : > { %v1965_v52 = vadd.f32 %v9382_v49, %v11278_v41  ;;  %v9434_v51 = vpop.f32.mrf.mxu1  ;;  %9616 = vmatprep.mubr.bf16.mxu0 %v3045_v59  ;;  %v10363_v41 = vld [vmem:[%s14736_s3 + $0x60] ss:$8 sps:$4 sm:$0xff]   ;;  %v3047_v49 = vpack.c.bf16 %v3028_v21, %v3027_v57  ;;  %v3029_v21 = vld [vmem:[%s10714_s23 + $0x136] sm:$0xff] }
 0x187   : > { %v1820_v38 = vpop.f32.mrf.mxu0  ;;  %3535 = vmatpush1.bf16.msra.mxu1 %v10363_v41 }
 0x188   : > { %v1963_v63 = vadd.f32 %v1820_v38, %v11283_v11  ;;  %v11454_v27 = vadd.f32 %v9434_v51, %v1965_v52  ;;  %v2152_v26 = vpop.f32.mrf.mxu1  ;;  %v10368_v52 = vld [vmem:[%s14736_s3 + $0x54] ss:$8 sps:$4 sm:$0xff]  }
 0x189   : > { %v9383_v14 = vpop.f32.mrf.mxu0  ;;  %3536 = vmatprep.subr.bf16.mxu1 %v10368_v52 }
 0x18a   : > { %v1966_v59 = vadd.f32 %v9383_v14, %v11288_v13  ;;  %v11460_v37 = vadd.f32 %v2152_v26, %v1963_v63  ;;  %v9435_v32 = vpop.f32.mrf.mxu1  ;;  %v10366_v13 = vld [vmem:[%s14736_s3 + $0x50] ss:$8 sps:$4 sm:$0xff]   ;;  %v10371_v26 = vld [vmem:[%s14736_s3 + $0x44] ss:$8 sps:$4 sm:$0xff]  }
 0x18b   : > { %v11462_v11 = vpop.f32.mrf.mxu0  ;;  %3537 = vmatpush1.bf16.msra.mxu1 %v10366_v13 }
 0x18c   : > { %v11467_v51 = vadd.f32 %v9435_v32, %v1966_v59  ;;  %v11469_v38 = vpop.f32.mrf.mxu1  ;;  %v3048_v32 = vpack.c.bf16 %v3030_v47, %v3029_v21  ;;  %3538 = vmatprep.subr.bf16.mxu1 %v10371_v26  ;;  %v10372_v21 = vld [vmem:[%s14736_s3 + $0x30] ss:$8 sps:$4 sm:$0xff]  }
 0x18d   : > { %v9386_v50 = vpop.f32.mrf.mxu0  ;;  %9617 = vmatmul.mubr.bf16.gmra.mxu0 %v3046_v7  ;;  %v10369_v7 = vld [vmem:[%s14736_s3 + $0x40] ss:$8 sps:$4 sm:$0xff]  }
 0x18e   : > { %v1969_v25 = vadd.f32 %v9386_v50, %v11302_v54  ;;  %v9438_v57 = vpop.f32.mrf.mxu1  ;;  %9620 = vmatprep.mubr.bf16.mxu0 %v3047_v49 }
 0x18f   : > { %v1836_v63 = vpop.f32.mrf.mxu0  ;;  %3539 = vmatpush1.bf16.msra.mxu1 %v10369_v7 }
 0x190   : > { %v1967_v41 = vadd.f32 %v1836_v63, %v11305_v55  ;;  %v11481_v14 = vadd.f32 %v9438_v57, %v1969_v25  ;;  %v2168_v59 = vpop.f32.mrf.mxu1  ;;  %v10374_v55 = vld [vmem:[%s14736_s3 + $0x34] ss:$8 sps:$4 sm:$0xff]  }
 0x191   : > { %v9387_v54 = vpop.f32.mrf.mxu0  ;;  %3540 = vmatprep.subr.bf16.mxu1 %v10374_v55 }
 0x192   : > { %v1970_v49 = vadd.f32 %v9387_v54, %v11310_v48  ;;  %v11487_v52 = vadd.f32 %v2168_v59, %v1967_v41  ;;  %v9439_v13 = vpop.f32.mrf.mxu1  ;;  %v10377_v41 = vld [vmem:[%s14736_s3 + $0x24] ss:$8 sps:$4 sm:$0xff]  }
 0x193   : > { %v11489_v50 = vpop.f32.mrf.mxu0  ;;  %3541 = vmatpush1.bf16.msra.mxu1 %v10372_v21 }
 0x194   : > { %v11494_v25 = vadd.f32 %v9439_v13, %v1970_v49  ;;  %v11496_v57 = vpop.f32.mrf.mxu1  ;;  %v10375_v49 = vld [vmem:[%s14736_s3 + $0x20] ss:$8 sps:$4 sm:$0xff]   ;;  %3542 = vmatprep.subr.bf16.mxu1 %v10377_v41 }
 0x195   : > { %v9390_v47 = vpop.f32.mrf.mxu0  ;;  %9621 = vmatmul.mubr.bf16.gmra.mxu0 %v3048_v32 }
 0x196   : > { %v1973_v48 = vadd.f32 %v9390_v47, %v11320_v61  ;;  %v9442_v63 = vpop.f32.mrf.mxu1 }
 0x197   : > { %v1852_v26 = vpop.f32.mrf.mxu0  ;;  %3543 = vmatpush1.bf16.msra.mxu1 %v10375_v49 }
 0x198   : > { %v1971_v59 = vadd.f32 %v1852_v26, %v11323_v0  ;;  %v11506_v7 = vadd.f32 %v9442_v63, %v1973_v48  ;;  %v2184_v54 = vpop.f32.mrf.mxu1  ;;  %v10380_v0 = vld [vmem:[%s14736_s3 + $0x14] ss:$8 sps:$4 sm:$0xff]   ;;  %v10378_v63 = vld [vmem:[%s14736_s3 + $0x10] ss:$8 sps:$4 sm:$0xff]  }
 0x199   : > { %v9391_v32 = vpop.f32.mrf.mxu0  ;;  %3544 = vmatprep.subr.bf16.mxu1 %v10380_v0 }
 0x19a   : > { %v1974_v61 = vadd.f32 %v9391_v32, %v11328_v12  ;;  %v11512_v13 = vadd.f32 %v2184_v54, %v1971_v59  ;;  %v9443_v55 = vpop.f32.mrf.mxu1  ;;  %v10383_v54 = vld [vmem:[%s14736_s3 + $0x4] ss:$8 sps:$4 sm:$0xff]  }
 0x19b   : > { %v11514_v21 = vpop.f32.mrf.mxu0  ;;  %3545 = vmatpush1.bf16.msra.mxu1 %v10378_v63 }
 0x19c   : > { %v11519_v47 = vadd.f32 %v9443_v55, %v1974_v61  ;;  %v11521_v48 = vpop.f32.mrf.mxu1  ;;  %v10381_v55 = vld [vmem:[%s14736_s3] ss:$8 sps:$4 sm:$0xff]   ;;  %3546 = vmatprep.subr.bf16.mxu1 %v10383_v54 }
 0x19d   : > { %v9394_v26 = vpop.f32.mrf.mxu0 }
 0x19e   : > { %v1977_v12 = vadd.f32 %v9394_v26, %v11338_v5  ;;  %v9446_v41 = vpop.f32.mrf.mxu1 }
 0x19f   : > { %v1868_v59 = vpop.f32.mrf.mxu0  ;;  %3547 = vmatpush1.bf16.msra.mxu1 %v10381_v55 }
 0x1a0   : > { %v1975_v49 = vadd.f32 %v1868_v59, %v11341_v28  ;;  %v11531_v32 = vadd.f32 %v9446_v41, %v1977_v12  ;;  %v2200_v61 = vpop.f32.mrf.mxu1  ;;  %v14747_v12 = vmov 0  }
 0x1a1   : > { %v9395_v46 = vpop.f32.mrf.mxu0  ;;  %3564 = vmatprep.mubr.bf16.mxu1 %v14747_v12 }
 0x1a2   : > { %v1978_v5 = vadd.f32 %v9395_v46, %v11346_v43  ;;  %v11537_v0 = vadd.f32 %v2200_v61, %v1975_v49  ;;  %v9447_v63 = vpop.f32.mrf.mxu1 }
 0x1a3   : > { %v11539_v26 = vpop.f32.mrf.mxu0 }
 0x1a4   : > { %v11541_v31 = vadd.f32 %v9447_v63, %v1978_v5  ;;  %v11543_v28 = vpop.f32.mrf.mxu1 }
 0x1a5   : > { %v9398_v41 = vpop.f32.mrf.mxu0 }
 0x1a6   : > { %v1981_v59 = vadd.f32 %v9398_v41, %v11356_v16  ;;  %v9450_v34 = vpop.f32.mrf.mxu1 }
 0x1a7   : > { %v1884_v54 = vpop.f32.mrf.mxu0 }
 0x1a8   : > { %v1979_v43 = vadd.f32 %v1884_v54, %v11359_v60  ;;  %v11548_v46 = vadd.f32 %v9450_v34, %v1981_v59  ;;  %v2216_v49 = vpop.f32.mrf.mxu1 }
 0x1a9   : > { %v9399_v61 = vpop.f32.mrf.mxu0 }
 0x1aa   : > { %v1982_v55 = vadd.f32 %v9399_v61, %v11364_v56  ;;  %v11551_v5 = vadd.f32 %v2216_v49, %v1979_v43  ;;  %v9451_v63 = vpop.f32.mrf.mxu1 }
 0x1ab   : > { %v11553_v33 = vpop.f32.mrf.mxu0 }
 0x1ac   : > { %14784 = vst [vmem:[#allocation20_spill] sm:$0xff] %v11553_v33  ;;  %v11555_v44 = vadd.f32 %v9451_v63, %v1982_v55  ;;  %v11557_v12 = vpop.f32.mrf.mxu1 }
 0x1ad   : > { %14785 = vst [vmem:[#allocation21_spill] sm:$0xff] %v11557_v12  ;;  %v9402_v16 = vpop.f32.mrf.mxu0 }
 0x1ae   : > { %v1985_v41 = vadd.f32 %v9402_v16, %v11374_v40  ;;  %v9454_v20 = vpop.f32.mrf.mxu1 }
 0x1af   : > { %v1900_v60 = vpop.f32.mrf.mxu0 }
 0x1b0   : > { %v1983_v34 = vadd.f32 %v1900_v60, %v11377_v30  ;;  %v11561_v59 = vadd.f32 %v9454_v20, %v1985_v41  ;;  %v2232_v54 = vpop.f32.mrf.mxu1 }
 0x1b1   : > { %v9403_v56 = vpop.f32.mrf.mxu0 }
 0x1b2   : > { %v1986_v43 = vadd.f32 %v9403_v56, %v11382_v8  ;;  %v11564_v49 = vadd.f32 %v2232_v54, %v1983_v34  ;;  %v9455_v61 = vpop.f32.mrf.mxu1 }
 0x1b3   : > { %v11566_v55 = vpop.f32.mrf.mxu0 }
 0x1b4   : > { %14786 = vst [vmem:[#allocation22_spill] sm:$0xff] %v11566_v55  ;;  %v11568_v63 = vadd.f32 %v9455_v61, %v1986_v43  ;;  %v11570_v36 = vpop.f32.mrf.mxu1 }
 0x1b5   : > { %14787 = vst [vmem:[#allocation23_spill] sm:$0xff] %v11570_v36  ;;  %v9406_v40 = vpop.f32.mrf.mxu0 }
 0x1b6   : > { %v1989_v16 = vadd.f32 %v9406_v40, %v11392_v1  ;;  %v9458_v39 = vpop.f32.mrf.mxu1 }
 0x1b7   : > { %v1916_v30 = vpop.f32.mrf.mxu0 }
 0x1b8   : > { %v1987_v20 = vadd.f32 %v1916_v30, %v11395_v2  ;;  %v11574_v41 = vadd.f32 %v9458_v39, %v1989_v16  ;;  %v2248_v60 = vpop.f32.mrf.mxu1 }
 0x1b9   : > { %v9407_v8 = vpop.f32.mrf.mxu0 }
 0x1ba   : > { %v1990_v34 = vadd.f32 %v9407_v8, %v11400_v6  ;;  %v11577_v54 = vadd.f32 %v2248_v60, %v1987_v20  ;;  %v9459_v56 = vpop.f32.mrf.mxu1 }
 0x1bb   : > { %v11579_v43 = vpop.f32.mrf.mxu0 }
 0x1bc   : > { %14788 = vst [vmem:[#allocation24_spill] sm:$0xff] %v11579_v43  ;;  %v11581_v61 = vadd.f32 %v9459_v56, %v1990_v34  ;;  %v11583_v36 = vpop.f32.mrf.mxu1 }
 0x1bd   : > { %14789 = vst [vmem:[#allocation25_spill] sm:$0xff] %v11583_v36  ;;  %v9410_v1 = vpop.f32.mrf.mxu0 }
 0x1be   : > { %v1993_v40 = vadd.f32 %v9410_v1, %v11410_v24  ;;  %v9462_v55 = vpop.f32.mrf.mxu1 }
 0x1bf   : > { %v1932_v2 = vpop.f32.mrf.mxu0 }
 0x1c0   : > { %v1991_v39 = vadd.f32 %v1932_v2, %v11413_v35  ;;  %v11587_v16 = vadd.f32 %v9462_v55, %v1993_v40  ;;  %v2264_v30 = vpop.f32.mrf.mxu1 }
 0x1c1   : > { %v9411_v6 = vpop.f32.mrf.mxu0 }
 0x1c2   : > { %v1994_v20 = vadd.f32 %v9411_v6, %v11418_v22  ;;  %v11590_v60 = vadd.f32 %v2264_v30, %v1991_v39  ;;  %v9463_v8 = vpop.f32.mrf.mxu1 }
 0x1c3   : > { %v11592_v34 = vpop.f32.mrf.mxu0 }
 0x1c4   : > { %14790 = vst [vmem:[#allocation26_spill] sm:$0xff] %v11592_v34  ;;  %v11594_v56 = vadd.f32 %v9463_v8, %v1994_v20  ;;  %v11596_v36 = vpop.f32.mrf.mxu1 }
 0x1c5   : > { %14791 = vst [vmem:[#allocation27_spill] sm:$0xff] %v11596_v36  ;;  %v9414_v24 = vpop.f32.mrf.mxu0 }
 0x1c6   : > { %v1997_v1 = vadd.f32 %v9414_v24, %v11428_v17  ;;  %v9466_v43 = vpop.f32.mrf.mxu1 }
 0x1c7   : > { %v1948_v35 = vpop.f32.mrf.mxu0 }
 0x1c8   : > { %v1995_v55 = vadd.f32 %v1948_v35, %v11431_v18  ;;  %v11600_v40 = vadd.f32 %v9466_v43, %v1997_v1  ;;  %v2280_v2 = vpop.f32.mrf.mxu1 }
 0x1c9   : > { %v9415_v22 = vpop.f32.mrf.mxu0 }
 0x1ca   : > { %v1998_v39 = vadd.f32 %v9415_v22, %v11438_v42  ;;  %v11603_v30 = vadd.f32 %v2280_v2, %v1995_v55  ;;  %v9467_v6 = vpop.f32.mrf.mxu1 }
 0x1cb   : > { %v11605_v20 = vpop.f32.mrf.mxu0 }
 0x1cc   : > { %14792 = vst [vmem:[#allocation28_spill] sm:$0xff] %v11605_v20  ;;  %v11607_v8 = vadd.f32 %v9467_v6, %v1998_v39  ;;  %v11609_v36 = vpop.f32.mrf.mxu1 }
 0x1cd   : > { %14793 = vst [vmem:[#allocation29_spill] sm:$0xff] %v11609_v36  ;;  %v9486_v17 = vpop.f32.mrf.mxu0 }
 0x1ce   : > { %v11612_v24 = vadd.f32 %v9486_v17, %v11454_v27  ;;  %v11614_v18 = vpop.f32.mrf.mxu1 }
 0x1cf   : > { %v2484_v43 = vpop.f32.mrf.mxu0 }
 0x1d0   : > { %v11617_v1 = vadd.f32 %v2484_v43, %v11460_v37  ;;  %v11619_v42 = vpop.f32.mrf.mxu1 }
 0x1d1   : > { %v9487_v35 = vpop.f32.mrf.mxu0 }
 0x1d2   : > { %v11622_v55 = vadd.f32 %v9487_v35, %v11467_v51  ;;  %v11626_v22 = vpop.f32.mrf.mxu1 }
 0x1d3   : > { %v11624_v2 = vpop.f32.mrf.mxu0 }
 0x1d4   : > { %v11631_v6 = vpop.f32.mrf.mxu1 }
 0x1d5   : > { %v9490_v39 = vpop.f32.mrf.mxu0 }
 0x1d6   : > { %v11629_v27 = vadd.f32 %v9490_v39, %v11481_v14  ;;  %v11639_v51 = vpop.f32.mrf.mxu1 }
 0x1d7   : > { %v2500_v17 = vpop.f32.mrf.mxu0 }
 0x1d8   : > { %v11634_v37 = vadd.f32 %v2500_v17, %v11487_v52  ;;  %v11646_v14 = vpop.f32.mrf.mxu1 }
 0x1d9   : > { %v9491_v43 = vpop.f32.mrf.mxu0 }
 0x1da   : > { %v11637_v36 = vadd.f32 %v9491_v43, %v11494_v25  ;;  %v11654_v25 = vpop.f32.mrf.mxu1 }
 0x1db   : > { %v11641_v35 = vpop.f32.mrf.mxu0 }
 0x1dd   : > { %v9494_v20 = vpop.f32.mrf.mxu0 }
 0x1de   : > { %v11644_v34 = vadd.f32 %v9494_v20, %v11506_v7  ;;  %v11661_v7 = vpop.f32.mrf.mxu1 }
 0x1df   : > { %v2516_v39 = vpop.f32.mrf.mxu0 }
 0x1e0   : > { %v11649_v62 = vadd.f32 %v2516_v39, %v11512_v13 }
 0x1e1   : > { %v9495_v52 = vpop.f32.mrf.mxu0 }
 0x1e2   : > { %v11652_v17 = vadd.f32 %v9495_v52, %v11519_v47  ;;  %v11669_v47 = vpop.f32.mrf.mxu1 }
 0x1e3   : > { %v11656_v43 = vpop.f32.mrf.mxu0 }
 0x1e5   : > { %v9498_v58 = vpop.f32.mrf.mxu0 }
 0x1e6   : > { %v11659_v12 = vadd.f32 %v9498_v58, %v11531_v32  ;;  %v11676_v58 = vpop.f32.mrf.mxu1 }
 0x1e7   : > { %v2532_v20 = vpop.f32.mrf.mxu0 }
 0x1e8   : > { %14794 = vst [vmem:[#allocation30_spill] sm:$0xff] %v11659_v12  ;;  %v11664_v33 = vadd.f32 %v2532_v20, %v11537_v0 }
 0x1e9   : > { %v9499_v13 = vpop.f32.mrf.mxu0 }
 0x1ea   : > { %v11667_v39 = vadd.f32 %v9499_v13, %v11541_v31  ;;  %v11684_v31 = vpop.f32.mrf.mxu1 }
 0x1eb   : > { %v11671_v52 = vpop.f32.mrf.mxu0 }
 0x1ec   : > { %14795 = vst [vmem:[#allocation31_spill] sm:$0xff] %v11667_v39  ;;  %14796 = vst [vmem:[#allocation32_spill] sm:$0xff] %v11671_v52 }
 0x1ed   : > { %v9502_v10 = vpop.f32.mrf.mxu0 }
 0x1ee   : > { %v11674_v9 = vadd.f32 %v9502_v10, %v11548_v46  ;;  %v11691_v10 = vpop.f32.mrf.mxu1 }
 0x1ef   : > { %v2548_v32 = vpop.f32.mrf.mxu0 }
 0x1f0   : > { %14797 = vst [vmem:[#allocation33_spill] sm:$0xff] %v11674_v9  ;;  %v11679_v12 = vadd.f32 %v2548_v32, %v11551_v5 }
 0x1f1   : > { %v9503_v0 = vpop.f32.mrf.mxu0 }
 0x1f2   : > { %v11682_v20 = vadd.f32 %v9503_v0, %v11555_v44  ;;  %v11699_v44 = vpop.f32.mrf.mxu1 }
 0x1f3   : > { %v11686_v13 = vpop.f32.mrf.mxu0 }
 0x1f4   : > { %14798 = vst [vmem:[#allocation34_spill] sm:$0xff] %v11682_v20  ;;  %14799 = vst [vmem:[#allocation35_spill] sm:$0xff] %v11686_v13 }
 0x1f5   : > { %v9506_v39 = vpop.f32.mrf.mxu0 }
 0x1f6   : > { %v11689_v52 = vadd.f32 %v9506_v39, %v11561_v59  ;;  %v11706_v59 = vpop.f32.mrf.mxu1 }
 0x1f7   : > { %v2564_v46 = vpop.f32.mrf.mxu0 }
 0x1f8   : > { %14800 = vst [vmem:[#allocation36_spill] sm:$0xff] %v11689_v52  ;;  %v11694_v9 = vadd.f32 %v2564_v46, %v11564_v49 }
 0x1f9   : > { %v9507_v5 = vpop.f32.mrf.mxu0 }
 0x1fa   : > { %v11697_v32 = vadd.f32 %v9507_v5, %v11568_v63  ;;  %v11714_v63 = vpop.f32.mrf.mxu1 }
 0x1fb   : > { %v11701_v0 = vpop.f32.mrf.mxu0 }
 0x1fc   : > { %14801 = vst [vmem:[#allocation37_spill] sm:$0xff] %v11697_v32  ;;  %14802 = vst [vmem:[#allocation38_spill] sm:$0xff] %v11701_v0 }
 0x1fd   : > { %v9510_v20 = vpop.f32.mrf.mxu0 }
 0x1fe   : > { %v11704_v13 = vadd.f32 %v9510_v20, %v11574_v41  ;;  %v11721_v41 = vpop.f32.mrf.mxu1 }
 0x1ff   : > { %v2580_v39 = vpop.f32.mrf.mxu0 }
 0x200   : > { %14803 = vst [vmem:[#allocation39_spill] sm:$0xff] %v11704_v13  ;;  %v11709_v52 = vadd.f32 %v2580_v39, %v11577_v54 }
 0x201   : > { %v9511_v49 = vpop.f32.mrf.mxu0 }
 0x202   : > { %v11712_v46 = vadd.f32 %v9511_v49, %v11581_v61  ;;  %v11729_v61 = vpop.f32.mrf.mxu1 }
 0x203   : > { %v11716_v5 = vpop.f32.mrf.mxu0 }
 0x204   : > { %14804 = vst [vmem:[#allocation40_spill] sm:$0xff] %v11712_v46  ;;  %14805 = vst [vmem:[#allocation41_spill] sm:$0xff] %v11716_v5  ;;  %v1632_v5 = vadd.f32 %v11290_v15, %v11286_v19  ;;  %v2961_v15 = vadd.f32 %v11614_v18, %v11612_v24 }
 0x205   : > { %v9514_v32 = vpop.f32.mrf.mxu0 }
 0x206   : > { %v11719_v0 = vadd.f32 %v9514_v32, %v11587_v16  ;;  %v11738_v32 = vpop.f32.mrf.mxu1 }
 0x207   : > { %v2596_v20 = vpop.f32.mrf.mxu0 }
 0x208   : > { %14806 = vst [vmem:[#allocation42_spill] sm:$0xff] %v11719_v0  ;;  %v11724_v13 = vadd.f32 %v2596_v20, %v11590_v60  ;;  %v1964_v60 = vadd.f32 %v11462_v11, %v1632_v5 }
 0x209   : > { %v9515_v54 = vpop.f32.mrf.mxu0 }
 0x20a   : > { %v11727_v39 = vadd.f32 %v9515_v54, %v11594_v56  ;;  %v2296_v19 = vadd.f32 %v11469_v38, %v1964_v60  ;;  %v11765_v38 = vld [vmem:[%s14735_s2] ss:$0 sm:$0xff] }
 0x20b   : > { %v11731_v49 = vpop.f32.mrf.mxu0 }
 0x20c   : > { %14807 = vst [vmem:[#allocation43_spill] sm:$0xff] %v11727_v39  ;;  %14808 = vst [vmem:[#allocation44_spill] sm:$0xff] %v11731_v49  ;;  %v11747_v39 = vpop.f32.mrf.mxu1 }
 0x20d   : > { %v9518_v46 = vpop.f32.mrf.mxu0 }
 0x20e   : > { %v11736_v16 = vadd.f32 %v9518_v46, %v11600_v40  ;;  %v1636_v40 = vadd.f32 %v11312_v3, %v11308_v4  ;;  %v11760_v5 = vpop.f32.mrf.mxu1  ;;  %v2962_v4 = vadd.f32 %v11626_v22, %v11622_v55  ;;  %v1640_v22 = vadd.f32 %v11330_v29, %v11326_v45 }
 0x20f   : > { %v2612_v0 = vpop.f32.mrf.mxu0 }
 0x210   : > { %v11742_v20 = vadd.f32 %v2612_v0, %v11603_v30  ;;  %v2959_v30 = vadd.f32 %v11619_v42, %v11617_v1  ;;  %v2628_v0 = vadd.f32 %v11624_v2, %v2296_v19  ;;  %v1968_v46 = vadd.f32 %v11489_v50, %v1636_v40  ;;  %v11772_v60 = vpop.f32.mrf.mxu1 }
 0x211   : > { %v9519_v56 = vpop.f32.mrf.mxu0  ;;  %v2965_v19 = vadd.f32 %v11639_v51, %v11629_v27  ;;  %v1972_v27 = vadd.f32 %v11514_v21, %v1640_v22  ;;  %v2966_v51 = vadd.f32 %v11654_v25, %v11637_v36  ;;  %v2969_v36 = vadd.f32 %v11669_v47, %v11644_v34 }
 0x212   : > { %v11745_v54 = vadd.f32 %v9519_v56, %v11607_v8  ;;  %v2960_v1 = vadd.f32 %v11631_v6, %v2628_v0  ;;  %v2300_v50 = vadd.f32 %v11496_v57, %v1968_v46  ;;  %v2963_v6 = vadd.f32 %v11646_v14, %v11634_v37 }
 0x213   : > { %v11749_v49 = vpop.f32.mrf.mxu0 }
 0x215   : > { %v9590_v11 = vpop.f32.mrf.mxu0 }
 0x216   : > { %v3293_v8 = vadd.f32 %v9590_v11, %v2961_v15  ;;  %v2632_v11 = vadd.f32 %v11641_v35, %v2300_v50 }
 0x217   : > { %v3148_v24 = vpop.f32.mrf.mxu0 }
 0x218   : > { %v3291_v3 = vadd.f32 %v3148_v24, %v2959_v30  ;;  %v3336_v42 = vadd.f32 %v11765_v38, %v3293_v8  ;;  %v11787_v24 = vpop.f32.mrf.mxu1  ;;  %v2964_v35 = vadd.f32 %v11661_v7, %v2632_v11  ;;  %v1644_v7 = vadd.f32 %v11348_v53, %v11344_v23 }
 0x219   : > { %v9591_v18 = vpop.f32.mrf.mxu0 }
 0x21a   : > { %v3294_v2 = vadd.f32 %v9591_v18, %v2962_v4  ;;  %v3334_v15 = vadd.f32 %v11765_v38, %v3291_v3  ;;  %v3372_v30 = vmax.f32 %v3336_v42, 0.0  ;;  %v11792_v21 = vpop.f32.mrf.mxu1  ;;  %v1976_v11 = vadd.f32 %v11539_v26, %v1644_v7 }
 0x21b   : > { %v3151_v56 = vpop.f32.mrf.mxu0 }
 0x21c   : > { %v3337_v40 = vadd.f32 %v11765_v38, %v3294_v2  ;;  %v3292_v55 = vadd.f32 %v3151_v56, %v2960_v1  ;;  %v3370_v45 = vmax.f32 %v3334_v15, 0.0  ;;  %v2304_v2 = vadd.f32 %v11521_v48, %v1972_v27 }
 0x21d   : > { %v9594_v57 = vpop.f32.mrf.mxu0  ;;  %v2967_v15 = vadd.f32 %v11676_v58, %v11649_v62  ;;  %v2308_v26 = vadd.f32 %v11543_v28, %v1976_v11  ;;  %v10385_v28 = vld [vmem:[%s14738_s5 + $0xb8] sm:$0xff]  }
 0x21e   : > { %v3373_v0 = vmax.f32 %v3337_v40, 0.0  ;;  %v3335_v8 = vadd.f32 %v11765_v38, %v3292_v55  ;;  %v3297_v46 = vadd.f32 %v9594_v57, %v2965_v19  ;;  %v2636_v48 = vadd.f32 %v11656_v43, %v2304_v2  ;;  %v14813_v2 = vld [vmem:[#allocation32_spill] sm:$0xff]  ;;  %9728 = vmatprep.subr.bf16.mxu1 %v10385_v28 }
 0x21f   : > { %v3164_v4 = vpop.f32.mrf.mxu0  ;;  %v14809_v55 = vmov 0   ;;  %v2970_v57 = vadd.f32 %v11684_v31, %v11652_v17  ;;  %v14810_v31 = vld [vmem:[#allocation30_spill] sm:$0xff] }
 0x220   : > { %v3407_v29 = vpack.c.bf16 %v3373_v0, %v3372_v30  ;;  %v3371_v3 = vmax.f32 %v3335_v8, 0.0  ;;  %v3295_v37 = vadd.f32 %v3164_v4, %v2963_v6  ;;  %v3340_v1 = vadd.f32 %v11765_v38, %v3297_v46  ;;  %v11808_v30 = vpop.f32.mrf.mxu1 }
 0x221   : > { %v9595_v14 = vpop.f32.mrf.mxu0  ;;  %v2968_v8 = vadd.f32 %v11691_v10, %v2636_v48  ;;  %v10384_v10 = vld [vmem:[%s14738_s5 + $0x78] sm:$0xff]  }
 0x222   : > { %v3406_v18 = vpack.c.bf16 %v3371_v3, %v3370_v45  ;;  %v3298_v42 = vadd.f32 %v9595_v14, %v2966_v51  ;;  %v3338_v25 = vadd.f32 %v11765_v38, %v3295_v37  ;;  %v3376_v22 = vmax.f32 %v3340_v1, 0.0  ;;  %v11815_v4 = vpop.f32.mrf.mxu1  ;;  %9624 = vmatprep.subr.bf16.mxu0 %v10384_v10 }
 0x223   : > { %v3167_v50 = vpop.f32.mrf.mxu0  ;;  %v2973_v45 = vadd.f32 %v11699_v44, %v14810_v31  ;;  %v14812_v44 = vld [vmem:[#allocation11_spill] sm:$0xff]  ;;  %9625 = vmatpush3.bf16.msra.mxu0 %v10384_v10 }
 0x224   : > { %v3341_v56 = vadd.f32 %v11765_v38, %v3298_v42  ;;  %v3296_v19 = vadd.f32 %v3167_v50, %v2964_v35  ;;  %3565 = vmatmul.mubr.bf16.vlgmr.msra.gmra.mxu1 %v3406_v18  ;;  %v3374_v53 = vmax.f32 %v3338_v25, 0.0  ;;  %v10386_v35 = vld [vmem:[%s14738_s5 + $0x70] sm:$0xff]   ;;  %v14811_v18 = vld [vmem:[#allocation10_spill] sm:$0xff]  ;;  %v2971_v42 = vadd.f32 %v11706_v59, %v11664_v33  ;;  %v11843_v59 = vpop.f32.mrf.mxu1 }
 0x225   : > { %v9598_v40 = vpop.f32.mrf.mxu0  ;;  %3574 = vmatprep.mubr.bf16.mxu1 %v14809_v55  ;;  %v1648_v1 = vadd.f32 %v14812_v44, %v14811_v18  ;;  %9729 = vmatpush3.bf16.msra.mxu1 %v10385_v28  ;;  %v2975_v28 = vadd.f32 %v11738_v32, %v11679_v12  ;;  %v14820_v18 = vld [vmem:[#allocation35_spill] sm:$0xff] }
 0x226   : > { %v3377_v6 = vmax.f32 %v3341_v56, 0.0  ;;  %v3339_v34 = vadd.f32 %v11765_v38, %v3296_v19  ;;  %v3301_v47 = vadd.f32 %v9598_v40, %v2969_v36  ;;  %v10387_v36 = vld [vmem:[%s14738_s5 + $0xb0] sm:$0xff]   ;;  %v14815_v40 = vld [vmem:[#allocation31_spill] sm:$0xff]  ;;  %9626 = vmatprep.subr.bf16.mxu0 %v10386_v35 }
 0x227   : > { %v3180_v23 = vpop.f32.mrf.mxu0  ;;  %v2974_v33 = vadd.f32 %v11714_v63, %v14815_v40  ;;  %9730 = vmatprep.subr.bf16.mxu1 %v10387_v36  ;;  %v10389_v63 = vld [vmem:[%s14738_s5 + $0xa8] sm:$0xff]   ;;  %9627 = vmatpush3.bf16.msra.mxu0 %v10386_v35 }
 0x228   : > { %v11810_v62 = vpack.c.bf16 %v3377_v6, %v3376_v22  ;;  %v3375_v43 = vmax.f32 %v3339_v34, 0.0  ;;  %v3299_v58 = vadd.f32 %v3180_v23, %v2967_v15  ;;  %v3344_v27 = vadd.f32 %v11765_v38, %v3301_v47  ;;  %v14814_v15 = vld [vmem:[#allocation20_spill] sm:$0xff] }
 0x229   : > { %v9599_v0 = vpop.f32.mrf.mxu0  ;;  %v1980_v48 = vadd.f32 %v14814_v15, %v1648_v1  ;;  %9731 = vmatpush3.bf16.msra.mxu1 %v10387_v36 }
 0x22a   : > { %v3408_v46 = vpack.c.bf16 %v3375_v43, %v3374_v53  ;;  %v3302_v51 = vadd.f32 %v9599_v0, %v2970_v57  ;;  %v3342_v3 = vadd.f32 %v11765_v38, %v3299_v58  ;;  %v3380_v25 = vmax.f32 %v3344_v27, 0.0  ;;  %v10388_v57 = vld [vmem:[%s14738_s5 + $0x68] sm:$0xff]   ;;  %9732 = vmatprep.subr.bf16.mxu1 %v10389_v63 }
 0x22b   : > { %v3183_v17 = vpop.f32.mrf.mxu0  ;;  %9628 = vmatprep.subr.bf16.mxu0 %v10388_v57 }
 0x22c   : > { %v3345_v37 = vadd.f32 %v11765_v38, %v3302_v51  ;;  %v3300_v14 = vadd.f32 %v3183_v17, %v2968_v8  ;;  %3575 = vmatmul.mubr.bf16.gmra.mxu1 %v3407_v29  ;;  %v2640_v29 = vadd.f32 %v14813_v2, %v2308_v26  ;;  %v3378_v6 = vmax.f32 %v3342_v3, 0.0  ;;  %v14816_v8 = vld [vmem:[#allocation21_spill] sm:$0xff]  ;;  %v11860_v17 = vpop.f32.mrf.mxu1  ;;  %9629 = vmatpush3.bf16.msra.mxu0 %v10388_v57  ;;  %v14824_v57 = vld [vmem:[#allocation36_spill] sm:$0xff] }
 0x22d   : > { %v9602_v50 = vpop.f32.mrf.mxu0  ;;  %3584 = vmatprep.mubr.bf16.mxu1 %v14809_v55  ;;  %v2312_v27 = vadd.f32 %v14816_v8, %v1980_v48  ;;  %v14817_v51 = vld [vmem:[#allocation33_spill] sm:$0xff]  ;;  %9733 = vmatpush3.bf16.msra.mxu1 %v10389_v63 }
 0x22e   : > { %v3381_v56 = vmax.f32 %v3345_v37, 0.0  ;;  %v3343_v19 = vadd.f32 %v11765_v38, %v3300_v14  ;;  %v3305_v7 = vadd.f32 %v9602_v50, %v2973_v45  ;;  %v2972_v53 = vadd.f32 %v11721_v41, %v2640_v29  ;;  %v14818_v37 = vld [vmem:[#allocation12_spill] sm:$0xff]  ;;  %v14819_v14 = vld [vmem:[#allocation13_spill] sm:$0xff]  ;;  %v14821_v29 = vld [vmem:[#allocation22_spill] sm:$0xff] }
 0x22f   : > { %v3196_v22 = vpop.f32.mrf.mxu0  ;;  %v2977_v26 = vadd.f32 %v11729_v61, %v14817_v51  ;;  %v1652_v10 = vadd.f32 %v14819_v14, %v14818_v37  ;;  %v2644_v61 = vadd.f32 %v14820_v18, %v2312_v27  ;;  %v14822_v50 = vld [vmem:[#allocation34_spill] sm:$0xff]  ;;  %v2979_v27 = vadd.f32 %v11787_v24, %v11694_v9  ;;  %v14828_v37 = vld [vmem:[#allocation24_spill] sm:$0xff] }
 0x230   : > { %v11845_v34 = vpack.c.bf16 %v3381_v56, %v3380_v25  ;;  %v3379_v47 = vmax.f32 %v3343_v19, 0.0  ;;  %v3303_v11 = vadd.f32 %v3196_v22, %v2971_v42  ;;  %v3348_v58 = vadd.f32 %v11765_v38, %v3305_v7  ;;  %v11874_v25 = vpop.f32.mrf.mxu1  ;;  %v14827_v51 = vld [vmem:[#allocation38_spill] sm:$0xff] }
 0x231   : > { %v9603_v23 = vpop.f32.mrf.mxu0  ;;  %v2978_v36 = vadd.f32 %v11747_v39, %v14822_v50  ;;  %v2976_v48 = vadd.f32 %v11760_v5, %v2644_v61  ;;  %v14825_v5 = vld [vmem:[#allocation14_spill] sm:$0xff] }
 0x232   : > { %v11854_v43 = vpack.c.bf16 %v3379_v47, %v3378_v6  ;;  %v3306_v0 = vadd.f32 %v9603_v23, %v2974_v33  ;;  %v3346_v45 = vadd.f32 %v11765_v38, %v3303_v11  ;;  %v3384_v35 = vmax.f32 %v3348_v58, 0.0  ;;  %v14823_v6 = vld [vmem:[#allocation23_spill] sm:$0xff]  ;;  %v11883_v47 = vpop.f32.mrf.mxu1 }
 0x233   : > { %v3199_v31 = vpop.f32.mrf.mxu0  ;;  %v2981_v23 = vadd.f32 %v11772_v60, %v14824_v57 }
 0x234   : > { %v3349_v3 = vadd.f32 %v11765_v38, %v3306_v0  ;;  %v3304_v41 = vadd.f32 %v3199_v31, %v2972_v53  ;;  %3585 = vmatmul.mubr.bf16.gmra.mxu1 %v3408_v46  ;;  %v1984_v46 = vadd.f32 %v14821_v29, %v1652_v10  ;;  %v3382_v12 = vmax.f32 %v3346_v45, 0.0  ;;  %v14826_v0 = vld [vmem:[#allocation15_spill] sm:$0xff]  ;;  %v14829_v10 = vld [vmem:[#allocation37_spill] sm:$0xff] }
 0x235   : > { %v9606_v44 = vpop.f32.mrf.mxu0  ;;  %3594 = vmatprep.mubr.bf16.mxu1 %v14809_v55  ;;  %v1656_v8 = vadd.f32 %v14826_v0, %v14825_v5 }
 0x236   : > { %v3385_v1 = vmax.f32 %v3349_v3, 0.0  ;;  %v3347_v42 = vadd.f32 %v11765_v38, %v3304_v41  ;;  %v3309_v2 = vadd.f32 %v9606_v44, %v2977_v26  ;;  %v2316_v39 = vadd.f32 %v14823_v6, %v1984_v46  ;;  %v14830_v46 = vld [vmem:[#allocation25_spill] sm:$0xff] }
 0x237   : > { %v3212_v56 = vpop.f32.mrf.mxu0  ;;  %v1988_v14 = vadd.f32 %v14828_v37, %v1656_v8  ;;  %v14834_v6 = vld [vmem:[#allocation41_spill] sm:$0xff]  ;;  %v14838_v8 = vld [vmem:[#allocation40_spill] sm:$0xff] }
 0x238   : > { %v11876_v32 = vpack.c.bf16 %v3385_v1, %v3384_v35  ;;  %v3383_v19 = vmax.f32 %v3347_v42, 0.0  ;;  %v3307_v7 = vadd.f32 %v3212_v56, %v2975_v28  ;;  %v3352_v33 = vadd.f32 %v11765_v38, %v3309_v2  ;;  %v2928_v28 = vpop.f32.mrf.mxu1 }
 0x239   : > { %v9607_v15 = vpop.f32.mrf.mxu0  ;;  %v2648_v26 = vadd.f32 %v14827_v51, %v2316_v39  ;;  %v2320_v50 = vadd.f32 %v14830_v46, %v1988_v14 }
 0x23a   : > { %v11879_v40 = vpack.c.bf16 %v3383_v19, %v3382_v12  ;;  %v3310_v22 = vadd.f32 %v9607_v15, %v2978_v36  ;;  %v3350_v63 = vadd.f32 %v11765_v38, %v3307_v7  ;;  %v3388_v45 = vmax.f32 %v3352_v33, 0.0  ;;  %v9567_v36 = vpop.f32.mrf.mxu1 }
 0x23b   : > { %v3215_v11 = vpop.f32.mrf.mxu0  ;;  %v2980_v1 = vadd.f32 %v11808_v30, %v2648_v26  ;;  %v14832_v30 = vld [vmem:[#allocation16_spill] sm:$0xff]  ;;  %v2652_v39 = vadd.f32 %v14834_v6, %v2320_v50  ;;  %v2987_v50 = vadd.f32 %v2928_v28, %v11724_v13 }
 0x23c   : > { %v3353_v53 = vadd.f32 %v11765_v38, %v3310_v22  ;;  %v3308_v58 = vadd.f32 %v3215_v11, %v2976_v48  ;;  %3595 = vmatmul.mubr.bf16.gmra.mxu1 %v11810_v62  ;;  %v2982_v62 = vadd.f32 %v11792_v21, %v14829_v10  ;;  %v3386_v61 = vmax.f32 %v3350_v63, 0.0  ;;  %v14831_v21 = vld [vmem:[#allocation39_spill] sm:$0xff]  ;;  %v14833_v48 = vld [vmem:[#allocation17_spill] sm:$0xff]  ;;  %v2931_v51 = vpop.f32.mrf.mxu1 }
 0x23d   : > { %v9610_v31 = vpop.f32.mrf.mxu0  ;;  %3604 = vmatprep.mubr.bf16.mxu1 %v14809_v55  ;;  %v2985_v12 = vadd.f32 %v11815_v4, %v14831_v21  ;;  %v1660_v33 = vadd.f32 %v14833_v48, %v14832_v30  ;;  %v2983_v22 = vadd.f32 %v11843_v59, %v11709_v52  ;;  %v2984_v37 = vadd.f32 %v11874_v25, %v2652_v39  ;;  %v14842_v25 = vld [vmem:[#allocation19_spill] sm:$0xff]  ;;  %v14844_v30 = vld [vmem:[#allocation28_spill] sm:$0xff] }
 0x23e   : > { %v3389_v60 = vmax.f32 %v3353_v53, 0.0  ;;  %v3351_v3 = vadd.f32 %v11765_v38, %v3308_v58  ;;  %v3313_v41 = vadd.f32 %v9610_v31, %v2981_v23  ;;  %v14835_v53 = vld [vmem:[#allocation8_spill] sm:$0xff]  ;;  %v14836_v58 = vld [vmem:[#allocation9_spill] sm:$0xff] }
 0x23f   : > { %v3228_v18 = vpop.f32.mrf.mxu0  ;;  %v992_v5 = vadd.f32 %v14836_v58, %v14835_v53  ;;  %v14846_v58 = vld [vmem:[#allocation29_spill] sm:$0xff] }
 0x240   : > { %v11900_v44 = vpack.c.bf16 %v3389_v60, %v3388_v45  ;;  %v3387_v9 = vmax.f32 %v3351_v3, 0.0  ;;  %v3311_v24 = vadd.f32 %v3228_v18, %v2979_v27  ;;  %v3356_v2 = vadd.f32 %v11765_v38, %v3313_v41  ;;  %v14839_v60 = vld [vmem:[#allocation18_spill] sm:$0xff]  ;;  %v14840_v18 = vld [vmem:[#allocation27_spill] sm:$0xff] }
 0x241   : > { %v9611_v35 = vpop.f32.mrf.mxu0  ;;  %v2986_v27 = vadd.f32 %v11860_v17, %v14838_v8  ;;  %v1332_v3 = vadd.f32 %v14839_v60, %v992_v5  ;;  %v9570_v17 = vpop.f32.mrf.mxu1 }
 0x242   : > { %v11903_v42 = vpack.c.bf16 %v3387_v9, %v3386_v61  ;;  %v3314_v29 = vadd.f32 %v9611_v35, %v2982_v62  ;;  %v3354_v19 = vadd.f32 %v11765_v38, %v3311_v24  ;;  %v3392_v57 = vmax.f32 %v3356_v2, 0.0  ;;  %v14841_v24 = vld [vmem:[#allocation42_spill] sm:$0xff] }
 0x243   : > { %v3231_v56 = vpop.f32.mrf.mxu0  ;;  %v2989_v35 = vadd.f32 %v11883_v47, %v14841_v24  ;;  %v1664_v46 = vadd.f32 %v14842_v25, %v1332_v3  ;;  %v2944_v6 = vpop.f32.mrf.mxu1 }
 0x244   : > { %v3357_v7 = vadd.f32 %v11765_v38, %v3314_v29  ;;  %v3312_v15 = vadd.f32 %v3231_v56, %v2980_v1  ;;  %3605 = vmatmul.mubr.bf16.gmra.mxu1 %v11854_v43  ;;  %v14837_v43 = vld [vmem:[#allocation26_spill] sm:$0xff]  ;;  %v3390_v59 = vmax.f32 %v3354_v19, 0.0  ;;  %v14843_v56 = vld [vmem:[#allocation44_spill] sm:$0xff] }
 0x245   : > { %v9614_v11 = vpop.f32.mrf.mxu0  ;;  %3614 = vmatprep.mubr.bf16.mxu1 %v14809_v55  ;;  %v1992_v0 = vadd.f32 %v14837_v43, %v1660_v33  ;;  %v1996_v48 = vadd.f32 %v14844_v30, %v1664_v46  ;;  %v14845_v33 = vld [vmem:[#allocation43_spill] sm:$0xff]  ;;  %v9571_v43 = vpop.f32.mrf.mxu1 }
 0x246   : > { %v3393_v4 = vmax.f32 %v3357_v7, 0.0  ;;  %v3355_v23 = vadd.f32 %v11765_v38, %v3312_v15  ;;  %v3317_v63 = vadd.f32 %v9614_v11, %v2985_v12  ;;  %v10396_v30 = vld [vmem:[%s14738_s5 + $0x48] sm:$0xff]  }
 0x247   : > { %v3244_v52 = vpop.f32.mrf.mxu0  ;;  %v2324_v61 = vadd.f32 %v14840_v18, %v1992_v0  ;;  %v2328_v5 = vadd.f32 %v14846_v58, %v1996_v48  ;;  %v10397_v48 = vld [vmem:[%s14738_s5 + $0x88] sm:$0xff]  }
 0x248   : > { %v11924_v26 = vpack.c.bf16 %v3393_v4, %v3392_v57  ;;  %v3391_v31 = vmax.f32 %v3355_v23, 0.0  ;;  %v3315_v45 = vadd.f32 %v3244_v52, %v2983_v22  ;;  %v3360_v10 = vadd.f32 %v11765_v38, %v3317_v63 }
 0x249   : > { %v9615_v41 = vpop.f32.mrf.mxu0  ;;  %v2656_v21 = vadd.f32 %v14843_v56, %v2324_v61  ;;  %v2990_v22 = vadd.f32 %v9567_v36, %v14845_v33  ;;  %v2993_v36 = vadd.f32 %v9570_v17, %v11736_v16  ;;  %v2994_v16 = vadd.f32 %v9571_v43, %v11745_v54  ;;  %v10399_v33 = vld [vmem:[%s14738_s5 + $0x80] sm:$0xff]  }
 0x24a   : > { %v11928_v14 = vpack.c.bf16 %v3391_v31, %v3390_v59  ;;  %v3318_v62 = vadd.f32 %v9615_v41, %v2986_v27  ;;  %v3358_v1 = vadd.f32 %v11765_v38, %v3315_v45  ;;  %v3396_v19 = vmax.f32 %v3360_v10, 0.0 }
 0x24b   : > { %v3247_v9 = vpop.f32.mrf.mxu0  ;;  %v2988_v4 = vadd.f32 %v2931_v51, %v2656_v21  ;;  %v2991_v51 = vadd.f32 %v2944_v6, %v11742_v20  ;;  %v2660_v59 = vadd.f32 %v11749_v49, %v2328_v5 }
 0x24c   : > { %v3361_v2 = vadd.f32 %v11765_v38, %v3318_v62  ;;  %v3316_v29 = vadd.f32 %v3247_v9, %v2984_v37  ;;  %3615 = vmatmul.mubr.bf16.gmra.mxu1 %v11845_v34  ;;  %v3394_v39 = vmax.f32 %v3358_v1, 0.0  ;;  %v2947_v37 = vpop.f32.mrf.mxu1 }
 0x24d   : > { %v9618_v12 = vpop.f32.mrf.mxu0  ;;  %3624 = vmatprep.mubr.bf16.mxu1 %v14809_v55  ;;  %v2992_v17 = vadd.f32 %v2947_v37, %v2660_v59 }
 0x24e   : > { %v3397_v7 = vmax.f32 %v3361_v2, 0.0  ;;  %v3359_v47 = vadd.f32 %v11765_v38, %v3316_v29  ;;  %v3321_v15 = vadd.f32 %v9618_v12, %v2989_v35 }
 0x24f   : > { %v3260_v34 = vpop.f32.mrf.mxu0 }
 0x250   : > { %v11944_v11 = vpack.c.bf16 %v3397_v7, %v3396_v19  ;;  %v3395_v13 = vmax.f32 %v3359_v47, 0.0  ;;  %v3319_v28 = vadd.f32 %v3260_v34, %v2987_v50  ;;  %v3364_v63 = vadd.f32 %v11765_v38, %v3321_v15  ;;  %v10390_v19 = vld [vmem:[%s14738_s5 + $0x60] sm:$0xff]   ;;  %v10393_v7 = vld [vmem:[%s14738_s5 + $0x98] sm:$0xff]   ;;  %v10395_v15 = vld [vmem:[%s14738_s5 + $0x90] sm:$0xff]  }
 0x251   : > { %v9619_v57 = vpop.f32.mrf.mxu0  ;;  %9630 = vmatprep.subr.bf16.mxu0 %v10390_v19  ;;  %v10561_v47 = vmov 0.0  }
 0x252   : > { %v11946_v23 = vpack.c.bf16 %v3395_v13, %v3394_v39  ;;  %v3322_v53 = vadd.f32 %v9619_v57, %v2990_v22  ;;  %v3362_v8 = vadd.f32 %v11765_v38, %v3319_v28  ;;  %v3400_v45 = vmax.f32 %v3364_v63, 0.0  ;;  %9631 = vmatpush3.bf16.msra.mxu0 %v10390_v19  ;;  %4468 = vst [vmem:[#allocation2 + $0x10] sm:$0xff] %v10561_v47 }
 0x253   : > { %v3263_v0 = vpop.f32.mrf.mxu0  ;;  %4469 = vst [vmem:[#allocation2 + $0x18] sm:$0xff] %v10561_v47  ;;  %4466 = vst [vmem:[#allocation2] sm:$0xff] %v10561_v47 }
 0x254   : > { %v3365_v27 = vadd.f32 %v11765_v38, %v3322_v53  ;;  %v3320_v52 = vadd.f32 %v3263_v0, %v2988_v4  ;;  %3625 = vmatmul.mubr.bf16.gmra.mxu1 %v11879_v40  ;;  %v3398_v62 = vmax.f32 %v3362_v8, 0.0  ;;  %4467 = vst [vmem:[#allocation2 + $0x8] sm:$0xff] %v10561_v47  ;;  %4470 = vst [vmem:[#allocation2 + $0x20] sm:$0xff] %v10561_v47 }
 0x255   : > { %v9622_v31 = vpop.f32.mrf.mxu0  ;;  %3634 = vmatprep.mubr.bf16.mxu1 %v14809_v55  ;;  %4471 = vst [vmem:[#allocation2 + $0x28] sm:$0xff] %v10561_v47  ;;  %4472 = vst [vmem:[#allocation2 + $0x30] sm:$0xff] %v10561_v47 }
 0x256   : > { %v3401_v60 = vmax.f32 %v3365_v27, 0.0  ;;  %v3363_v3 = vadd.f32 %v11765_v38, %v3320_v52  ;;  %v3325_v41 = vadd.f32 %v9622_v31, %v2993_v36  ;;  %4473 = vst [vmem:[#allocation2 + $0x38] sm:$0xff] %v10561_v47  ;;  %4474 = vst [vmem:[#allocation2 + $0x40] sm:$0xff] %v10561_v47 }
 0x257   : > { %v3276_v10 = vpop.f32.mrf.mxu0  ;;  %4475 = vst [vmem:[#allocation2 + $0x48] sm:$0xff] %v10561_v47  ;;  %4476 = vst [vmem:[#allocation2 + $0x50] sm:$0xff] %v10561_v47 }
 0x258   : > { %v11959_v18 = vpack.c.bf16 %v3401_v60, %v3400_v45  ;;  %v3399_v40 = vmax.f32 %v3363_v3, 0.0  ;;  %v3323_v61 = vadd.f32 %v3276_v10, %v2991_v51  ;;  %v3368_v9 = vadd.f32 %v11765_v38, %v3325_v41  ;;  %4477 = vst [vmem:[#allocation2 + $0x58] sm:$0xff] %v10561_v47  ;;  %4478 = vst [vmem:[#allocation2 + $0x60] sm:$0xff] %v10561_v47 }
 0x259   : > { %v9623_v20 = vpop.f32.mrf.mxu0  ;;  %4479 = vst [vmem:[#allocation2 + $0x68] sm:$0xff] %v10561_v47  ;;  %4480 = vst [vmem:[#allocation2 + $0x70] sm:$0xff] %v10561_v47 }
 0x25a   : > { %v11961_v49 = vpack.c.bf16 %v3399_v40, %v3398_v62  ;;  %v3326_v24 = vadd.f32 %v9623_v20, %v2994_v16  ;;  %v3366_v1 = vadd.f32 %v11765_v38, %v3323_v61  ;;  %v3404_v29 = vmax.f32 %v3368_v9, 0.0  ;;  %4481 = vst [vmem:[#allocation2 + $0x78] sm:$0xff] %v10561_v47  ;;  %4482 = vst [vmem:[#allocation2 + $0x80] sm:$0xff] %v10561_v47 }
 0x25b   : > { %v3279_v35 = vpop.f32.mrf.mxu0  ;;  %4483 = vst [vmem:[#allocation2 + $0x88] sm:$0xff] %v10561_v47  ;;  %4484 = vst [vmem:[#allocation2 + $0x90] sm:$0xff] %v10561_v47  ;;  %v4617_v22 = vld [vmem:[#allocation2 + $0x1] sm:$0xff]  ;;  %v4618_v6 = vld [vmem:[#allocation2 + $0x9] sm:$0xff] }
 0x25c   : > { %v3369_v2 = vadd.f32 %v11765_v38, %v3326_v24  ;;  %v3324_v54 = vadd.f32 %v3279_v35, %v2992_v17  ;;  %3635 = vmatmul.mubr.bf16.gmra.mxu1 %v11876_v32  ;;  %v3402_v50 = vmax.f32 %v3366_v1, 0.0  ;;  %v10391_v32 = vld [vmem:[%s14738_s5 + $0xa0] sm:$0xff]   ;;  %4485 = vst [vmem:[#allocation2 + $0x98] sm:$0xff] %v10561_v47  ;;  %4486 = vst [vmem:[#allocation2 + $0xa0] sm:$0xff] %v10561_v47 }
 0x25d   : > { %3644 = vmatprep.mubr.bf16.mxu1 %v14809_v55  ;;  %9734 = vmatprep.subr.bf16.mxu1 %v10391_v32  ;;  %4487 = vst [vmem:[#allocation2 + $0xa8] sm:$0xff] %v10561_v47  ;;  %4488 = vst [vmem:[#allocation2 + $0xb0] sm:$0xff] %v10561_v47  ;;  %v4653_v34 = vpack.c.bf16 %v4618_v6, %v4617_v22 }
 0x25e   : > { %v3405_v25 = vmax.f32 %v3369_v2, 0.0  ;;  %v3367_v46 = vadd.f32 %v11765_v38, %v3324_v54  ;;  %9735 = vmatpush3.bf16.msra.mxu1 %v10391_v32  ;;  %v10392_v38 = vld [vmem:[%s14738_s5 + $0x58] sm:$0xff]   ;;  %4489 = vst [vmem:[#allocation2 + $0xb8] sm:$0xff] %v10561_v47  ;;  %4490 = vst [vmem:[#allocation2 + $0xc0] sm:$0xff] %v10561_v47  ;;  %v3440_v54 = vld [vmem:[%s14737_s4] sm:$0x3] }
 0x25f   : > { %9632 = vmatprep.subr.bf16.mxu0 %v10392_v38  ;;  %9736 = vmatprep.subr.bf16.mxu1 %v10393_v7  ;;  %4491 = vst [vmem:[#allocation2 + $0xc8] sm:$0xff] %v10561_v47  ;;  %4492 = vst [vmem:[#allocation2 + $0xd0] sm:$0xff] %v10561_v47 }
 0x260   : > { %v11969_v56 = vpack.c.bf16 %v3405_v25, %v3404_v29  ;;  %v3403_v21 = vmax.f32 %v3367_v46, 0.0  ;;  %4493 = vst [vmem:[#allocation2 + $0xd8] sm:$0xff] %v10561_v47  ;;  %4494 = vst [vmem:[#allocation2 + $0xe0] sm:$0xff] %v10561_v47  ;;  %9633 = vmatpush3.bf16.msra.mxu0 %v10392_v38  ;;  %9640 = vmatprep.mubr.bf16.mxu0 %v4653_v34 }
 0x261   : > { %4495 = vst [vmem:[#allocation2 + $0xe8] sm:$0xff] %v10561_v47  ;;  %4496 = vst [vmem:[#allocation2 + $0xf0] sm:$0xff] %v10561_v47 }
 0x262   : > { %v11971_v12 = vpack.c.bf16 %v3403_v21, %v3402_v50  ;;  %4497 = vst [vmem:[#allocation2 + $0xf8] sm:$0xff] %v10561_v47  ;;  %4498 = vst [vmem:[#allocation2 + $0x100] sm:$0xff] %v10561_v47  ;;  %9737 = vmatpush3.bf16.msra.mxu1 %v10393_v7  ;;  %v12096_v21 = vld [vmem:[%s14738_s5 + $0x38] sm:$0xff]  }
 0x263   : > { %4499 = vst [vmem:[#allocation2 + $0x108] sm:$0xff] %v10561_v47  ;;  %4500 = vst [vmem:[#allocation2 + $0x110] sm:$0xff] %v10561_v47  ;;  %9738 = vmatprep.subr.bf16.mxu1 %v10395_v15 }
 0x264   : > { %3645 = vmatmul.mubr.bf16.gmra.mxu1 %v11903_v42  ;;  %4501 = vst [vmem:[#allocation2 + $0x118] sm:$0xff] %v10561_v47  ;;  %4502 = vst [vmem:[#allocation2 + $0x120] sm:$0xff] %v10561_v47  ;;  %v10394_v42 = vld [vmem:[%s14738_s5 + $0x50] sm:$0xff]  }
 0x265   : > { %3654 = vmatprep.mubr.bf16.mxu1 %v14809_v55  ;;  %4503 = vst [vmem:[#allocation2 + $0x128] sm:$0xff] %v10561_v47  ;;  %4504 = vst [vmem:[#allocation2 + $0x130] sm:$0xff] %v10561_v47  ;;  %9634 = vmatprep.subr.bf16.mxu0 %v10394_v42 }
 0x266   : > { %4505 = vst [vmem:[#allocation2 + $0x138] sm:$0xff] %v10561_v47  ;;  %4506 = vst [vmem:[#allocation2 + $0x140] sm:$0xff] %v10561_v47  ;;  %9635 = vmatpush3.bf16.msra.mxu0 %v10394_v42  ;;  %9739 = vmatpush3.bf16.msra.mxu1 %v10395_v15 }
 0x267   : > { %9636 = vmatprep.subr.bf16.mxu0 %v10396_v30  ;;  %9740 = vmatprep.subr.bf16.mxu1 %v10397_v48 }
 0x26a   : > { %9637 = vmatpush3.bf16.msra.mxu0 %v10396_v30  ;;  %9741 = vmatpush3.bf16.msra.mxu1 %v10397_v48 }
 0x26b   : > { %9742 = vmatprep.subr.bf16.mxu1 %v10399_v33 }
 0x26c   : > { %3655 = vmatmul.mubr.bf16.gmra.mxu1 %v11900_v44  ;;  %v10398_v44 = vld [vmem:[%s14738_s5 + $0x40] sm:$0xff]  }
 0x26d   : > { %3664 = vmatprep.mubr.bf16.mxu1 %v14809_v55  ;;  %9638 = vmatprep.subr.bf16.mxu0 %v10398_v44 }
 0x26e   : > { %9639 = vmatpush3.bf16.msra.mxu0 %v10398_v44  ;;  %9743 = vmatpush3.bf16.msra.mxu1 %v10399_v33 }
 0x26f   : > { %9676 = vmatprep.subr.bf16.mxu0 %v12096_v21 }
 0x274   : > { %3665 = vmatmul.mubr.bf16.gmra.mxu1 %v11928_v14  ;;  %v5139_v14 = vld [vmem:[#allocation2 + $0xa] sm:$0xff] }
 0x275   : > { %3674 = vmatprep.mubr.bf16.mxu1 %v14809_v55 }
 0x27c   : > { %3675 = vmatmul.mubr.bf16.gmra.mxu1 %v11924_v26  ;;  %v5138_v26 = vld [vmem:[#allocation2 + $0x2] sm:$0xff] }
 0x27d   : > { %3684 = vmatprep.mubr.bf16.mxu1 %v14809_v55  ;;  %v5174_v39 = vpack.c.bf16 %v5139_v14, %v5138_v26 }
 0x284   : > { %3685 = vmatmul.mubr.bf16.gmra.mxu1 %v11946_v23 }
 0x285   : > { %3694 = vmatprep.mubr.bf16.mxu1 %v14809_v55 }
 0x28c   : > { %3695 = vmatmul.mubr.bf16.gmra.mxu1 %v11944_v11  ;;  %v3442_v11 = vlaneseq }
 0x28d   : > { %3704 = vmatprep.mubr.bf16.mxu1 %v14809_v55 }
 0x28e   : > { %v12022_v13 = vshrl.u32 %v3442_v11, 7 }
 0x290   : > { %14847 = vst [vmem:[#allocation30_spill] sm:$0xff] %v12022_v13  ;;  %v12025_v28 = vmul.u32.u64.low 3817748708, %v12022_v13  ;;  %v12026_v57 = vmul.u32.u64.high 3817748708, %v12022_v13, %v12025_v28  ;;  %v3783_v4 = vadd.s32 8, %v12022_v13  ;;  %v3784_v23 = vadd.s32 16, %v12022_v13 }
 0x291   : > { %v3785_v5 = vadd.s32 24, %v12022_v13  ;;  %v3786_v0 = vadd.s32 32, %v12022_v13  ;;  %v12048_v45 = vadd.s32 40, %v12022_v13  ;;  %v12052_v41 = vadd.s32 48, %v12022_v13 }
 0x292   : > { %v12030_v63 = vmul.u32.u64.low 3817748708, %v3783_v4  ;;  %v12031_v53 = vmul.u32.u64.high 3817748708, %v3783_v4, %v12030_v63  ;;  %v3824_v43 = vshrl.u32 %v12026_v57, 4  ;;  %v12067_v17 = vadd.s32 56, %v12022_v13 }
 0x293   : > { %v12039_v36 = vmul.u32.u64.low 3817748708, %v3785_v5  ;;  %v12040_v8 = vmul.u32.u64.high 3817748708, %v3785_v5, %v12039_v36  ;;  %v12043_v51 = vmul.u32.u64.low 3817748708, %v3786_v0  ;;  %v12044_v59 = vmul.u32.u64.high 3817748708, %v3786_v0, %v12043_v51 }
 0x294   : > { %3705 = vmatmul.mubr.bf16.gmra.mxu1 %v11961_v49  ;;  %v3825_v27 = vmul.u32 18, %v3824_v43  ;;  %v3835_v52 = vshrl.u32 %v12031_v53, 4  ;;  %v12056_v10 = vmul.u32.u64.low 3817748708, %v12048_v45  ;;  %v12057_v62 = vmul.u32.u64.high 3817748708, %v12048_v45, %v12056_v10 }
 0x295   : > { %3714 = vmatprep.mubr.bf16.mxu1 %v14809_v55  ;;  %v3857_v37 = vshrl.u32 %v12040_v8, 4  ;;  %v3868_v40 = vshrl.u32 %v12044_v59, 4  ;;  %v12063_v61 = vmul.u32.u64.low 3817748708, %v12052_v41  ;;  %v12064_v20 = vmul.u32.u64.high 3817748708, %v12052_v41, %v12063_v61 }
 0x296   : > { %v3826_v60 = vsub.s32 %v12022_v13, %v3825_v27  ;;  %v3836_v3 = vmul.u32 18, %v3835_v52  ;;  %v12076_v1 = vadd.s32 64, %v12022_v13  ;;  %v3444_v2 = vsub.s32 0, %v12022_v13 }
 0x297   : > { %v3858_v35 = vmul.u32 18, %v3857_v37  ;;  %v3869_v29 = vmul.u32 18, %v3868_v40  ;;  %v3879_v32 = vshrl.u32 %v12057_v62, 4  ;;  %v3890_v33 = vshrl.u32 %v12064_v20, 4 }
 0x298   : > { %vm4214_vm0 = vcmp.ne.s32.totalorder %v3826_v60, 0  ;;  %vm4250_vm1 = vcmp.lt.s32.totalorder %v3826_v60, 0  ;;  %v4322_v49 = vadd.s32 18, %v3826_v60  ;;  %v12108_v47 = vrot.slane %v3440_v54, %v3444_v2 }
 0x299   : > { %vm12071_vm2 = vmand %vm4250_vm1, %vm4214_vm0  ;;  %v12085_v25 = vmul.u32.u64.low 3817748708, %v12067_v17  ;;  %v12086_v46 = vmul.u32.u64.high 3817748708, %v12067_v17, %v12085_v25  ;;  %v3859_v19 = vsub.s32 %v3785_v5, %v3858_v35  ;;  %v12124_v44 = vsub.s32 %v3786_v0, %v3869_v29 }
 0x29a   : > { %v4358_v50 = vsel %vm12071_vm2, %v4322_v49, %v3826_v60  ;;  %v12105_v38 = vmul.u32.u64.low 3817748708, %v12076_v1  ;;  %v12106_v7 = vmul.u32.u64.high 3817748708, %v12076_v1, %v12105_v38  ;;  %v12134_v34 = vadd.s32 72, %v12022_v13 }
 0x29b   : > { %vm12127_vm9 = vcmp.lt.s32.totalorder %v4358_v50, 16  ;;  %vm4217_vm10 = vcmp.ne.s32.totalorder %v3859_v19, 0  ;;  %vm4253_vm11 = vcmp.lt.s32.totalorder %v3859_v19, 0  ;;  %v3880_v14 = vmul.u32 18, %v3879_v32 }
 0x29c   : > { %3715 = vmatmul.mubr.bf16.gmra.mxu1 %v11959_v18  ;;  %v12059_v18 = vsub.s32 %v3783_v4, %v3836_v3  ;;  %v4325_v4 = vadd.s32 18, %v3859_v19  ;;  %vm4218_vm12 = vcmp.ne.s32.totalorder %v12124_v44, 0  ;;  %vm4254_vm13 = vcmp.lt.s32.totalorder %v12124_v44, 0  ;;  %vm12154_vm14 = vmand %vm4253_vm11, %vm4217_vm10 }
 0x29d   : > { %3724 = vmatprep.mubr.bf16.mxu1 %v14809_v55  ;;  %v3891_v63 = vmul.u32 18, %v3890_v33  ;;  %v3901_v53 = vshrl.u32 %v12086_v46, 4  ;;  %v12159_v43 = vmul.u32.u64.low 3817748708, %v12134_v34  ;;  %v12160_v0 = vmul.u32.u64.high 3817748708, %v12134_v34, %v12159_v43  ;;  %vm12193_vm1 = vmand %vm4254_vm13, %vm4218_vm12 }
 0x29e   : > { %vm4215_vm3 = vcmp.ne.s32.totalorder %v12059_v18, 0  ;;  %vm4251_vm4 = vcmp.lt.s32.totalorder %v12059_v18, 0  ;;  %v4323_v15 = vadd.s32 18, %v12059_v18  ;;  %v12163_v8 = vsub.s32 %v12048_v45, %v3880_v14 }
 0x29f   : > { %vm12112_vm7 = vmand %vm4251_vm4, %vm4215_vm3  ;;  %v3912_v27 = vshrl.u32 %v12106_v7, 4  ;;  %v4361_v45 = vsel %vm12154_vm14, %v4325_v4, %v3859_v19  ;;  %v12183_v37 = vsub.s32 %v12052_v41, %v3891_v63  ;;  %v3902_v40 = vmul.u32 18, %v3901_v53 }
 0x2a0   : > { %v4359_v28 = vsel %vm12112_vm7, %v4323_v15, %v12059_v18  ;;  %vm4219_vm2 = vcmp.ne.s32.totalorder %v12163_v8, 0  ;;  %vm4255_vm3 = vcmp.lt.s32.totalorder %v12163_v8, 0  ;;  %v12200_v20 = vadd.s32 88, %v12022_v13 }
 0x2a1   : > { %vm12173_vm15 = vcmp.lt.s32.totalorder %v4359_v28, 16  ;;  %v3913_v41 = vmul.u32 18, %v3912_v27  ;;  %vm12205_vm4 = vcmp.lt.s32.totalorder %v4361_v45, 16  ;;  %v12210_v35 = vadd.s32 96, %v12022_v13  ;;  %vm12227_vm7 = vmand %vm4255_vm3, %vm4219_vm2 }
 0x2a2   : > { %v12216_v29 = vadd.s32 18, %v12163_v8  ;;  %v3923_v19 = vshrl.u32 %v12160_v0, 4  ;;  %v12240_v42 = vmul.u32.u64.low 3817748708, %v12200_v20  ;;  %v12241_v15 = vmul.u32.u64.high 3817748708, %v12200_v20, %v12240_v42 }
 0x2a3   : > { %v12236_v38 = vsub.s32 %v12076_v1, %v3913_v41  ;;  %v12262_v14 = vadd.s32 104, %v12022_v13  ;;  %v12277_v53 = vadd.s32 112, %v12022_v13 }
 0x2a4   : > { %3725 = vmatmul.mubr.bf16.gmra.mxu1 %v11971_v12  ;;  %v12101_v12 = vld [vmem:[%s14738_s5 + $0x138] sm:$0xff]   ;;  %v4363_v22 = vsel %vm12227_vm7, %v12216_v29, %v12163_v8  ;;  %v3924_v28 = vmul.u32 18, %v3923_v19  ;;  %v3945_v24 = vshrl.u32 %v12241_v15, 4 }
 0x2a5   : > { %3734 = vmatprep.mubr.bf16.mxu1 %v14809_v55  ;;  %v12033_v55 = vmul.u32.u64.low 3817748708, %v3784_v23  ;;  %v12034_v58 = vmul.u32.u64.high 3817748708, %v3784_v23, %v12033_v55  ;;  %9832 = vmatprep.subr.bf16.mxu1 %v12101_v12  ;;  %vm4222_vm12 = vcmp.ne.s32.totalorder %v12236_v38, 0  ;;  %vm4258_vm13 = vcmp.lt.s32.totalorder %v12236_v38, 0 }
 0x2a6   : > { %v12286_v27 = vadd.s32 18, %v12236_v38  ;;  %v12297_v60 = vmul.u32.u64.low 3817748708, %v12262_v14  ;;  %v12298_v45 = vmul.u32.u64.high 3817748708, %v12262_v14, %v12297_v60  ;;  %v12321_v41 = vsub.s32 %v12134_v34, %v3924_v28 }
 0x2a7   : > { %v3846_v31 = vshrl.u32 %v12034_v58, 4 }
 0x2a8   : > { %vm4223_vm2 = vcmp.ne.s32.totalorder %v12321_v41, 0  ;;  %vm4259_vm3 = vcmp.lt.s32.totalorder %v12321_v41, 0  ;;  %v12367_v15 = vadd.s32 18, %v12321_v41 }
 0x2a9   : > { %v3847_v16 = vmul.u32 18, %v3846_v31 }
 0x2ab   : > { %v12069_v9 = vsub.s32 %v3784_v23, %v3847_v16  ;;  %v4326_v16 = vadd.s32 18, %v12124_v44 }
 0x2ac   : > { %3735 = vmatmul.mubr.bf16.gmra.mxu1 %v11969_v56  ;;  %v3448_v56 = vsub.s32 1, %v12022_v13 }
 0x2ad   : > { %9744 = vmatprep.mubr.bf16.mxu1 %v5174_v39  ;;  %vm4216_vm5 = vcmp.ne.s32.totalorder %v12069_v9, 0  ;;  %vm4252_vm6 = vcmp.lt.s32.totalorder %v12069_v9, 0  ;;  %v4324_v30 = vadd.s32 18, %v12069_v9  ;;  %v12137_v39 = vadd.s32 80, %v12022_v13 }
 0x2ae   : > { %vm12120_vm8 = vmand %vm4252_vm6, %vm4216_vm5  ;;  %v12131_v6 = vrot.slane %v3440_v54, %v3448_v56  ;;  %v4362_v54 = vsel %vm12193_vm1, %v4326_v16, %v12124_v44  ;;  %vm4220_vm5 = vcmp.ne.s32.totalorder %v12183_v37, 0  ;;  %vm4256_vm6 = vcmp.lt.s32.totalorder %v12183_v37, 0  ;;  %v10402_v16 = vld [vmem:[%s14738_s5 + $0x30] sm:$0xff]  }
 0x2af   : > { %v4360_v57 = vsel %vm12120_vm8, %v4324_v30, %v12069_v9  ;;  %v12167_v52 = vmul.u32.u64.low 3817748708, %v12137_v39  ;;  %v12168_v51 = vmul.u32.u64.high 3817748708, %v12137_v39, %v12167_v52  ;;  %v12232_v56 = vsub.s32 %v12067_v17, %v3902_v40  ;;  %vm12270_vm11 = vmand %vm4256_vm6, %vm4220_vm5 }
 0x2b0   : > { %14856 = vst [vmem:[#allocation10_spill] sm:$0xff] %v12131_v6  ;;  %vm12185_vm0 = vcmp.lt.s32.totalorder %v4360_v57, 16  ;;  %v12247_v17 = vmul.u32.u64.low 3817748708, %v12210_v35  ;;  %v12248_v44 = vmul.u32.u64.high 3817748708, %v12210_v35, %v12247_v17  ;;  %vm12252_vm8 = vcmp.lt.s32.totalorder %v4362_v54, 16  ;;  %vm12394_vm6 = vmand %vm4259_vm3, %vm4223_vm2 }
 0x2b1   : > { %v3934_v7 = vshrl.u32 %v12168_v51, 4  ;;  %vm4257_vm10 = vcmp.lt.s32.totalorder %v12232_v56, 0  ;;  %v12283_v8 = vadd.s32 18, %v12232_v56 }
 0x2b2   : > { %v3956_v34 = vshrl.u32 %v12248_v44, 4 }
 0x2b3   : > { %v3935_v63 = vmul.u32 18, %v3934_v7 }
 0x2e4   : > { %v3566_v26 = vpop.f32.mrf.mxu1 }
 0x2e5   : > { %v3567_v11 = vadd.f32 %v3566_v26, %v12108_v47  ;;  %v4328_v26 = vadd.s32 18, %v12183_v37 }
 0x2e6   : > { %v3568_v23 = vpop.f32.mrf.mxu1 }
 0x2e7   : > { %v3745_v55 = vmax.f32 %v3567_v11, 0.0  ;;  %v12150_v58 = vadd.f32 %v3568_v23, %v12131_v6  ;;  %v4364_v40 = vsel %vm12270_vm11, %v4328_v26, %v12183_v37 }
 0x2e8   : > { %v3570_v36 = vpop.f32.mrf.mxu1  ;;  %vm12343_vm1 = vcmp.lt.s32.totalorder %v4364_v40, 16 }
 0x2e9   : > { %14857 = vst [vmem:[#allocation11_spill] sm:$0xff] %v12150_v58  ;;  %v4430_v59 = vsel %vm12127_vm9, %v3745_v55, 0.0  ;;  %v3571_v31 = vadd.f32 %v3570_v36, %v12108_v47  ;;  %vm4221_vm9 = vcmp.ne.s32.totalorder %v12232_v56, 0 }
 0x2ea   : > { %4511 = vst [vmem:[#allocation2 + $0x13] sm:$0xff] %v4430_v59  ;;  %v12177_v3 = vpop.f32.mrf.mxu1  ;;  %vm12292_vm14 = vmand %vm4257_vm10, %vm4221_vm9 }
 0x2eb   : > { %14862 = vst [vmem:[#allocation32_spill] sm:$0xff] %v12177_v3  ;;  %v3746_v10 = vmax.f32 %v3571_v31, 0.0  ;;  %v4365_v19 = vsel %vm12292_vm14, %v12283_v8, %v12232_v56  ;;  %v12364_v56 = vadd.s32 120, %v12022_v13 }
 0x2ec   : > { %v3576_v61 = vpop.f32.mrf.mxu1 }
 0x2ed   : > { %v4431_v49 = vsel %vm12173_vm15, %v3746_v10, 0.0  ;;  %v3577_v9 = vadd.f32 %v3576_v61, %v12108_v47  ;;  %v10403_v10 = vld [vmem:[%s14738_s5 + $0x130] sm:$0xff]   ;;  %vm12316_vm15 = vmand %vm4258_vm13, %vm4222_vm12 }
 0x2ee   : > { %4512 = vst [vmem:[#allocation2 + $0x1b] sm:$0xff] %v4431_v49  ;;  %v3578_v2 = vpop.f32.mrf.mxu1 }
 0x2ef   : > { %v3747_v25 = vmax.f32 %v3577_v9, 0.0  ;;  %v12221_v46 = vadd.f32 %v3578_v2, %v12131_v6  ;;  %v12324_v9 = vsub.s32 %v12137_v39, %v3935_v63  ;;  %v3967_v63 = vshrl.u32 %v12298_v45, 4 }
 0x2f0   : > { %v3580_v32 = vpop.f32.mrf.mxu1  ;;  %v12328_v37 = vmul.u32.u64.low 3817748708, %v12277_v53  ;;  %v12329_v2 = vmul.u32.u64.high 3817748708, %v12277_v53, %v12328_v37 }
 0x2f1   : > { %14869 = vst [vmem:[#allocation20_spill] sm:$0xff] %v12221_v46  ;;  %v4432_v30 = vsel %vm12185_vm0, %v3747_v25, 0.0  ;;  %v3581_v48 = vadd.f32 %v3580_v32, %v12108_v47  ;;  %v4619_v4 = vld [vmem:[#allocation2 + $0x11] sm:$0xff]  ;;  %vm12337_vm0 = vcmp.lt.s32.totalorder %v4363_v22, 16  ;;  %v10405_v32 = vld [vmem:[%s14738_s5 + $0x128] sm:$0xff]   ;;  %vm4260_vm5 = vcmp.lt.s32.totalorder %v12324_v9, 0 }
 0x2f2   : > { %4513 = vst [vmem:[#allocation2 + $0x23] sm:$0xff] %v4432_v30  ;;  %v12250_v33 = vpop.f32.mrf.mxu1  ;;  %v5140_v0 = vld [vmem:[#allocation2 + $0x12] sm:$0xff]  ;;  %v3946_v30 = vmul.u32 18, %v3945_v24  ;;  %v12378_v23 = vadd.s32 18, %v12324_v9  ;;  %v3978_v31 = vshrl.u32 %v12329_v2, 4  ;;  %v4367_v2 = vsel %vm12394_vm6, %v12367_v15, %v12321_v41 }
 0x2f3   : > { %14872 = vst [vmem:[#allocation31_spill] sm:$0xff] %v12250_v33  ;;  %v3748_v11 = vmax.f32 %v3581_v48, 0.0  ;;  %v12371_v48 = vadd.s32 128, %v12022_v13  ;;  %v10409_v24 = vld [vmem:[%s14738_s5 + $0x118] sm:$0xff]  }
 0x2f4   : > { %v3586_v57 = vpop.f32.mrf.mxu1  ;;  %v3979_v50 = vmul.u32 18, %v3978_v31  ;;  %v10413_v31 = vld [vmem:[%s14738_s5 + $0x108] sm:$0xff]  }
 0x2f5   : > { %v4433_v55 = vsel %vm12205_vm4, %v3748_v11, 0.0  ;;  %v3587_v5 = vadd.f32 %v3586_v57, %v12108_v47  ;;  %v4620_v43 = vld [vmem:[#allocation2 + $0x19] sm:$0xff]  ;;  %vm4224_vm4 = vcmp.ne.s32.totalorder %v12324_v9, 0  ;;  %v3957_v11 = vmul.u32 18, %v3956_v34 }
 0x2f6   : > { %v5141_v36 = vld [vmem:[#allocation2 + $0x1a] sm:$0xff]  ;;  %4514 = vst [vmem:[#allocation2 + $0x2b] sm:$0xff] %v4433_v55  ;;  %v3588_v52 = vpop.f32.mrf.mxu1  ;;  %v4654_v51 = vpack.c.bf16 %v4620_v43, %v4619_v4  ;;  %vm12406_vm7 = vmand %vm4260_vm5, %vm4224_vm4  ;;  %v12415_v60 = vmul.u32.u64.low 3817748708, %v12371_v48  ;;  %v12416_v45 = vmul.u32.u64.high 3817748708, %v12371_v48, %v12415_v60 }
 0x2f7   : > { %v5175_v59 = vpack.c.bf16 %v5141_v36, %v5140_v0  ;;  %v3749_v62 = vmax.f32 %v3587_v5, 0.0  ;;  %v12307_v18 = vadd.f32 %v3588_v52, %v12131_v6  ;;  %v10406_v55 = vld [vmem:[%s14738_s5 + $0x20] sm:$0xff]   ;;  %v12501_v36 = vadd.s32 152, %v12022_v13 }
 0x2f8   : > { %v3590_v49 = vpop.f32.mrf.mxu1  ;;  %9641 = vmatmul.mubr.bf16.vlgmr.msra.gmra.mxu0 %v4654_v51  ;;  %v10407_v5 = vld [vmem:[%s14738_s5 + $0x120] sm:$0xff]   ;;  %v10412_v51 = vld [vmem:[%s14738_s5 + $0x8] sm:$0xff]  }
 0x2f9   : > { %14879 = vst [vmem:[#allocation21_spill] sm:$0xff] %v12307_v18  ;;  %9745 = vmatmul.mubr.bf16.vlgmr.msra.gmra.mxu1 %v5175_v59  ;;  %v4434_v54 = vsel %vm12252_vm8, %v3749_v62, 0.0  ;;  %v3591_v29 = vadd.f32 %v3590_v49, %v12108_v47  ;;  %9677 = vmatpush3.bf16.msra.mxu0 %v12096_v21  ;;  %v4366_v21 = vsel %vm12316_vm15, %v12286_v27, %v12236_v38  ;;  %v4621_v38 = vld [vmem:[#allocation2 + $0x21] sm:$0xff]  ;;  %vm12424_vm8 = vcmp.lt.s32.totalorder %v4365_v19, 16 }
 0x2fa   : > { %9833 = vmatpush3.bf16.msra.mxu1 %v12101_v12  ;;  %4515 = vst [vmem:[#allocation2 + $0x33] sm:$0xff] %v4434_v54  ;;  %v12341_v25 = vpop.f32.mrf.mxu1  ;;  %9678 = vmatprep.subr.bf16.mxu0 %v10402_v16  ;;  %v10404_v12 = vld [vmem:[%s14738_s5 + $0x28] sm:$0xff]   ;;  %v12399_v8 = vmul.u32.u64.low 3817748708, %v12364_v56  ;;  %v12400_v27 = vmul.u32.u64.high 3817748708, %v12364_v56, %v12399_v8  ;;  %v12411_v59 = vsub.s32 %v12200_v20, %v3946_v30  ;;  %v12422_v62 = vsub.s32 %v12210_v35, %v3957_v11  ;;  %v10408_v35 = vld [vmem:[%s14738_s5 + $0x18] sm:$0xff]  }
 0x2fb   : > { %14884 = vst [vmem:[#allocation33_spill] sm:$0xff] %v12341_v25  ;;  %9834 = vmatprep.subr.bf16.mxu1 %v10403_v10  ;;  %v3750_v7 = vmax.f32 %v3591_v29, 0.0  ;;  %v5142_v22 = vld [vmem:[#allocation2 + $0x22] sm:$0xff]  ;;  %vm12430_vm9 = vcmp.lt.s32.totalorder %v4366_v21, 16  ;;  %v12435_v49 = vadd.s32 136, %v12022_v13  ;;  %v4368_v54 = vsel %vm12406_vm7, %v12378_v23, %v12324_v9 }
 0x2fc   : > { %v3596_v42 = vpop.f32.mrf.mxu1  ;;  %v3968_v29 = vmul.u32 18, %v3967_v63  ;;  %vm4225_vm10 = vcmp.ne.s32.totalorder %v12411_v59, 0  ;;  %vm4261_vm11 = vcmp.lt.s32.totalorder %v12411_v59, 0  ;;  %v12454_v19 = vadd.s32 144, %v12022_v13 }
 0x2fd   : > { %v4435_v17 = vsel %vm12337_vm0, %v3750_v7, 0.0  ;;  %v3597_v44 = vadd.f32 %v3596_v42, %v12108_v47  ;;  %v4622_v1 = vld [vmem:[#allocation2 + $0x29] sm:$0xff]  ;;  %9679 = vmatpush3.bf16.msra.mxu0 %v10402_v16  ;;  %v12460_v9 = vadd.s32 18, %v12411_v59  ;;  %vm4226_vm12 = vcmp.ne.s32.totalorder %v12422_v62, 0  ;;  %vm12480_vm13 = vmand %vm4261_vm11, %vm4225_vm10 }
 0x2fe   : > { %v5143_v26 = vld [vmem:[#allocation2 + $0x2a] sm:$0xff]  ;;  %9835 = vmatpush3.bf16.msra.mxu1 %v10403_v10  ;;  %4516 = vst [vmem:[#allocation2 + $0x3b] sm:$0xff] %v4435_v17  ;;  %v3598_v28 = vpop.f32.mrf.mxu1  ;;  %v4655_v57 = vpack.c.bf16 %v4622_v1, %v4621_v38  ;;  %9680 = vmatprep.subr.bf16.mxu0 %v10404_v12  ;;  %v12464_v30 = vmul.u32.u64.low 3817748708, %v12435_v49  ;;  %v12465_v17 = vmul.u32.u64.high 3817748708, %v12435_v49, %v12464_v30  ;;  %v12489_v23 = vsub.s32 %v12277_v53, %v3979_v50 }
 0x2ff   : > { %v5176_v4 = vpack.c.bf16 %v5143_v26, %v5142_v22  ;;  %9836 = vmatprep.subr.bf16.mxu1 %v10405_v32  ;;  %v3751_v43 = vmax.f32 %v3597_v44, 0.0  ;;  %v12388_v0 = vadd.f32 %v3598_v28, %v12131_v6  ;;  %v10410_v44 = vld [vmem:[%s14738_s5 + $0x10] sm:$0xff]   ;;  %v12485_v28 = vsub.s32 %v12262_v14, %v3968_v29 }
 0x300   : > { %v3600_v52 = vpop.f32.mrf.mxu1  ;;  %9644 = vmatprep.mubr.bf16.mxu0 %v4655_v57  ;;  %v10411_v1 = vld [vmem:[%s14738_s5 + $0x110] sm:$0xff]   ;;  %v3989_v57 = vshrl.u32 %v12400_v27, 4  ;;  %v4000_v63 = vshrl.u32 %v12416_v45, 4  ;;  %vm4262_vm14 = vcmp.lt.s32.totalorder %v12422_v62, 0  ;;  %vm12503_vm15 = vcmp.lt.s32.totalorder %v4367_v2, 16 }
 0x301   : > { %14887 = vst [vmem:[#allocation12_spill] sm:$0xff] %v12388_v0  ;;  %9748 = vmatprep.mubr.bf16.mxu1 %v5176_v4  ;;  %v4436_v16 = vsel %vm12343_vm1, %v3751_v43, 0.0  ;;  %v3601_v10 = vadd.f32 %v3600_v52, %v12108_v47  ;;  %9681 = vmatpush3.bf16.msra.mxu0 %v10404_v12  ;;  %v4623_v39 = vld [vmem:[#allocation2 + $0x31] sm:$0xff]  ;;  %vm12509_vm0 = vcmp.lt.s32.totalorder %v4368_v54, 16  ;;  %v4369_v52 = vsel %vm12480_vm13, %v12460_v9, %v12411_v59  ;;  %vm12530_vm3 = vmand %vm4262_vm14, %vm4226_vm12 }
 0x302   : > { %9837 = vmatpush3.bf16.msra.mxu1 %v10405_v32  ;;  %4517 = vst [vmem:[#allocation2 + $0x43] sm:$0xff] %v4436_v16  ;;  %v12428_v40 = vpop.f32.mrf.mxu1  ;;  %9682 = vmatprep.subr.bf16.mxu0 %v10406_v55  ;;  %v5144_v32 = vld [vmem:[#allocation2 + $0x32] sm:$0xff]  ;;  %v4334_v45 = vadd.s32 18, %v12422_v62  ;;  %vm4227_vm1 = vcmp.ne.s32.totalorder %v12485_v28, 0  ;;  %vm4263_vm2 = vcmp.lt.s32.totalorder %v12485_v28, 0  ;;  %vm4228_vm4 = vcmp.ne.s32.totalorder %v12489_v23, 0 }
 0x303   : > { %14894 = vst [vmem:[#allocation13_spill] sm:$0xff] %v12428_v40  ;;  %9838 = vmatprep.subr.bf16.mxu1 %v10407_v5  ;;  %v3752_v37 = vmax.f32 %v3601_v10, 0.0  ;;  %vm4264_vm5 = vcmp.lt.s32.totalorder %v12489_v23, 0  ;;  %v3990_v20 = vmul.u32 18, %v3989_v57  ;;  %v4001_v61 = vmul.u32 18, %v4000_v63  ;;  %vm12560_vm6 = vmand %vm4263_vm2, %vm4227_vm1 }
 0x304   : > { %v3606_v34 = vpop.f32.mrf.mxu1  ;;  %v12566_v30 = vadd.s32 18, %v12489_v23  ;;  %vm12575_vm7 = vmand %vm4264_vm5, %vm4228_vm4 }
 0x305   : > { %v4437_v21 = vsel %vm12424_vm8, %v3752_v37, 0.0  ;;  %v3607_v41 = vadd.f32 %v3606_v34, %v12108_v47  ;;  %v4624_v12 = vld [vmem:[#allocation2 + $0x39] sm:$0xff]  ;;  %9683 = vmatpush3.bf16.msra.mxu0 %v10406_v55  ;;  %v12540_v29 = vmul.u32.u64.low 3817748708, %v12501_v36  ;;  %v12541_v34 = vmul.u32.u64.high 3817748708, %v12501_v36, %v12540_v29 }
 0x306   : > { %v5145_v7 = vld [vmem:[#allocation2 + $0x3a] sm:$0xff]  ;;  %9839 = vmatpush3.bf16.msra.mxu1 %v10407_v5  ;;  %4518 = vst [vmem:[#allocation2 + $0x4b] sm:$0xff] %v4437_v21  ;;  %v3608_v42 = vpop.f32.mrf.mxu1  ;;  %v4656_v38 = vpack.c.bf16 %v4624_v12, %v4623_v39  ;;  %9684 = vmatprep.subr.bf16.mxu0 %v10408_v35  ;;  %v12493_v55 = vmul.u32.u64.low 3817748708, %v12454_v19  ;;  %v12494_v5 = vmul.u32.u64.high 3817748708, %v12454_v19, %v12493_v55  ;;  %v12545_v12 = vadd.s32 160, %v12022_v13 }
 0x307   : > { %v5177_v15 = vpack.c.bf16 %v5145_v7, %v5144_v32  ;;  %9840 = vmatprep.subr.bf16.mxu1 %v10409_v24  ;;  %v3753_v22 = vmax.f32 %v3607_v41, 0.0  ;;  %v12474_v26 = vadd.f32 %v3608_v42, %v12131_v6  ;;  %v4011_v41 = vshrl.u32 %v12465_v17, 4  ;;  %v10414_v32 = vld [vmem:[%s14738_s5] sm:$0xff]  }
 0x308   : > { %v3610_v4 = vpop.f32.mrf.mxu1  ;;  %9645 = vmatmul.mubr.bf16.gmra.mxu0 %v4656_v38  ;;  %v10415_v7 = vld [vmem:[%s14738_s5 + $0x100] sm:$0xff]   ;;  %v4022_v11 = vshrl.u32 %v12494_v5, 4  ;;  %vm12589_vm8 = vcmp.lt.s32.totalorder %v4369_v52, 16  ;;  %v4372_v27 = vsel %vm12575_vm7, %v12566_v30, %v12489_v23  ;;  %v12629_v29 = vadd.s32 176, %v12022_v13 }
 0x309   : > { %14897 = vst [vmem:[#allocation35_spill] sm:$0xff] %v12474_v26  ;;  %9749 = vmatmul.mubr.bf16.gmra.mxu1 %v5177_v15  ;;  %v4438_v43 = vsel %vm12430_vm9, %v3753_v22, 0.0  ;;  %v3611_v14 = vadd.f32 %v3610_v4, %v12108_v47  ;;  %9685 = vmatpush3.bf16.msra.mxu0 %v10408_v35  ;;  %v4625_v10 = vld [vmem:[#allocation2 + $0x41] sm:$0xff]  ;;  %v4335_v15 = vadd.s32 18, %v12485_v28  ;;  %v12580_v22 = vsub.s32 %v12364_v56, %v3990_v20 }
 0x30a   : > { %9841 = vmatpush3.bf16.msra.mxu1 %v10409_v24  ;;  %4519 = vst [vmem:[#allocation2 + $0x53] sm:$0xff] %v4438_v43  ;;  %v12507_v8 = vpop.f32.mrf.mxu1  ;;  %9686 = vmatprep.subr.bf16.mxu0 %v10410_v44  ;;  %v5146_v2 = vld [vmem:[#allocation2 + $0x42] sm:$0xff]  ;;  %v4012_v56 = vmul.u32 18, %v4011_v41  ;;  %v12596_v5 = vmul.u32.u64.low 3817748708, %v12545_v12  ;;  %v12597_v43 = vmul.u32.u64.high 3817748708, %v12545_v12, %v12596_v5  ;;  %vm12664_vm1 = vcmp.lt.s32.totalorder %v4372_v27, 16 }
 0x30b   : > { %14902 = vst [vmem:[#allocation22_spill] sm:$0xff] %v12507_v8  ;;  %9842 = vmatprep.subr.bf16.mxu1 %v10411_v1  ;;  %v3754_v60 = vmax.f32 %v3611_v14, 0.0  ;;  %v4371_v53 = vsel %vm12560_vm6, %v4335_v15, %v12485_v28  ;;  %vm4229_vm10 = vcmp.ne.s32.totalorder %v12580_v22, 0  ;;  %vm4265_vm11 = vcmp.lt.s32.totalorder %v12580_v22, 0  ;;  %v5804_v26 = vld [vmem:[#allocation2 + $0x23] sm:$0xff] }
 0x30c   : > { %v3616_v16 = vpop.f32.mrf.mxu1  ;;  %vm12635_vm14 = vmand %vm4265_vm11, %vm4229_vm10 }
 0x30d   : > { %v4439_v35 = vsel %vm12503_vm15, %v3754_v60, 0.0  ;;  %v3617_v24 = vadd.f32 %v3616_v16, %v12108_v47  ;;  %v4626_v37 = vld [vmem:[#allocation2 + $0x49] sm:$0xff]  ;;  %9687 = vmatpush3.bf16.msra.mxu0 %v10410_v44  ;;  %v4370_v44 = vsel %vm12530_vm3, %v4334_v45, %v12422_v62  ;;  %v12587_v62 = vsub.s32 %v12371_v48, %v4001_v61 }
 0x30e   : > { %v5147_v54 = vld [vmem:[#allocation2 + $0x4a] sm:$0xff]  ;;  %9843 = vmatpush3.bf16.msra.mxu1 %v10411_v1  ;;  %4520 = vst [vmem:[#allocation2 + $0x5b] sm:$0xff] %v4439_v35  ;;  %v3618_v39 = vpop.f32.mrf.mxu1  ;;  %v4657_v50 = vpack.c.bf16 %v4626_v37, %v4625_v10  ;;  %9688 = vmatprep.subr.bf16.mxu0 %v10412_v51  ;;  %vm12599_vm9 = vcmp.lt.s32.totalorder %v4370_v44, 16  ;;  %v12613_v60 = vadd.s32 168, %v12022_v13  ;;  %v12621_v35 = vsub.s32 %v12435_v49, %v4012_v56 }
 0x30f   : > { %v5178_v21 = vpack.c.bf16 %v5147_v54, %v5146_v2  ;;  %9844 = vmatprep.subr.bf16.mxu1 %v10413_v31  ;;  %v3755_v9 = vmax.f32 %v3617_v24, 0.0  ;;  %v12554_v42 = vadd.f32 %v3618_v39, %v12131_v6  ;;  %vm4230_vm12 = vcmp.ne.s32.totalorder %v12587_v62, 0 }
 0x310   : > { %v3620_v17 = vpop.f32.mrf.mxu1  ;;  %9648 = vmatprep.mubr.bf16.mxu0 %v4657_v50  ;;  %vm4266_vm13 = vcmp.lt.s32.totalorder %v12587_v62, 0  ;;  %v4033_v24 = vshrl.u32 %v12541_v34, 4  ;;  %v4337_v54 = vadd.s32 18, %v12580_v22  ;;  %v4338_v34 = vadd.s32 18, %v12587_v62 }
 0x311   : > { %14907 = vst [vmem:[#allocation34_spill] sm:$0xff] %v12554_v42  ;;  %9752 = vmatprep.mubr.bf16.mxu1 %v5178_v21  ;;  %v4440_v57 = vsel %vm12509_vm0, %v3755_v9, 0.0  ;;  %v3621_v4 = vadd.f32 %v3620_v17, %v12108_v47  ;;  %9689 = vmatpush3.bf16.msra.mxu0 %v10412_v51  ;;  %v4627_v51 = vld [vmem:[#allocation2 + $0x51] sm:$0xff]  ;;  %v12644_v21 = vmul.u32.u64.low 3817748708, %v12613_v60  ;;  %v12645_v41 = vmul.u32.u64.high 3817748708, %v12613_v60, %v12644_v21  ;;  %vm12658_vm0 = vmand %vm4266_vm13, %vm4230_vm12 }
 0x312   : > { %9845 = vmatpush3.bf16.msra.mxu1 %v10413_v31  ;;  %4521 = vst [vmem:[#allocation2 + $0x63] sm:$0xff] %v4440_v57  ;;  %v12593_v55 = vpop.f32.mrf.mxu1  ;;  %9690 = vmatprep.subr.bf16.mxu0 %v10414_v32  ;;  %v4023_v31 = vmul.u32 18, %v4022_v11  ;;  %v5148_v10 = vld [vmem:[#allocation2 + $0x52] sm:$0xff]  ;;  %vm12650_vm15 = vcmp.lt.s32.totalorder %v4371_v53, 16  ;;  %vm4231_vm2 = vcmp.ne.s32.totalorder %v12621_v35, 0  ;;  %v4034_v30 = vmul.u32 18, %v4033_v24 }
 0x313   : > { %14914 = vst [vmem:[#allocation23_spill] sm:$0xff] %v12593_v55  ;;  %9846 = vmatprep.subr.bf16.mxu1 %v10415_v7  ;;  %v3756_v14 = vmax.f32 %v3621_v4, 0.0  ;;  %v4044_v17 = vshrl.u32 %v12597_v43, 4  ;;  %vm4267_vm3 = vcmp.lt.s32.totalorder %v12621_v35, 0  ;;  %v4373_v4 = vsel %vm12635_vm14, %v4337_v54, %v12580_v22 }
 0x314   : > { %v3626_v52 = vpop.f32.mrf.mxu1  ;;  %v12641_v50 = vsub.s32 %v12454_v19, %v4023_v31  ;;  %v12672_v1 = vmul.u32.u64.low 3817748708, %v12629_v29  ;;  %v12673_v11 = vmul.u32.u64.high 3817748708, %v12629_v29, %v12672_v1  ;;  %v4374_v56 = vsel %vm12658_vm0, %v4338_v34, %v12587_v62  ;;  %vm12696_vm6 = vmand %vm4267_vm3, %vm4231_vm2 }
 0x315   : > { %v4441_v45 = vsel %vm12589_vm8, %v3756_v14, 0.0  ;;  %v3627_v28 = vadd.f32 %v3626_v52, %v12108_v47  ;;  %v4628_v16 = vld [vmem:[#allocation2 + $0x59] sm:$0xff]  ;;  %9691 = vmatpush3.bf16.msra.mxu0 %v10414_v32  ;;  %v12687_v27 = vadd.s32 18, %v12621_v35  ;;  %vm12724_vm8 = vcmp.lt.s32.totalorder %v4373_v4, 16 }
 0x316   : > { %v5149_v59 = vld [vmem:[#allocation2 + $0x5a] sm:$0xff]  ;;  %9847 = vmatpush3.bf16.msra.mxu1 %v10415_v7  ;;  %4522 = vst [vmem:[#allocation2 + $0x6b] sm:$0xff] %v4441_v45  ;;  %v3628_v23 = vpop.f32.mrf.mxu1  ;;  %v4658_v20 = vpack.c.bf16 %v4628_v16, %v4627_v51  ;;  %vm4232_vm4 = vcmp.ne.s32.totalorder %v12641_v50, 0  ;;  %vm4268_vm5 = vcmp.lt.s32.totalorder %v12641_v50, 0  ;;  %v12690_v22 = vadd.s32 18, %v12641_v50 }
 0x317   : > { %v5179_v61 = vpack.c.bf16 %v5149_v59, %v5148_v10  ;;  %v3757_v37 = vmax.f32 %v3627_v28, 0.0  ;;  %v12625_v2 = vadd.f32 %v3628_v23, %v12131_v6  ;;  %v12701_v45 = vsub.s32 %v12501_v36, %v4034_v30  ;;  %vm12710_vm7 = vmand %vm4268_vm5, %vm4232_vm4 }
 0x318   : > { %v3630_v39 = vpop.f32.mrf.mxu1  ;;  %9649 = vmatmul.mubr.bf16.gmra.mxu0 %v4658_v20  ;;  %v4045_v28 = vmul.u32 18, %v4044_v17  ;;  %v12715_v23 = vadd.s32 184, %v12022_v13  ;;  %v4055_v36 = vshrl.u32 %v12645_v41, 4  ;;  %v4375_v34 = vsel %vm12696_vm6, %v12687_v27, %v12621_v35 }
 0x319   : > { %14917 = vst [vmem:[#allocation36_spill] sm:$0xff] %v12625_v2  ;;  %9753 = vmatmul.mubr.bf16.gmra.mxu1 %v5179_v61  ;;  %v4442_v32 = vsel %vm12599_vm9, %v3757_v37, 0.0  ;;  %v3631_v7 = vadd.f32 %v3630_v39, %v12108_v47  ;;  %v4629_v63 = vld [vmem:[#allocation2 + $0x61] sm:$0xff]  ;;  %v12719_v61 = vadd.s32 192, %v12022_v13  ;;  %vm12728_vm9 = vcmp.lt.s32.totalorder %v4374_v56, 16 }
 0x31a   : > { %4523 = vst [vmem:[#allocation2 + $0x73] sm:$0xff] %v4442_v32  ;;  %v12662_v38 = vpop.f32.mrf.mxu1  ;;  %v5150_v48 = vld [vmem:[#allocation2 + $0x62] sm:$0xff]  ;;  %v4376_v21 = vsel %vm12710_vm7, %v12690_v22, %v12641_v50  ;;  %vm4233_vm10 = vcmp.ne.s32.totalorder %v12701_v45, 0  ;;  %v12744_v41 = vsub.s32 %v12545_v12, %v4045_v28  ;;  %v4056_v35 = vmul.u32 18, %v4055_v36  ;;  %v12774_v22 = vld [vmem:[%s14738_s5 + $0xf8] sm:$0xff]  }
 0x31b   : > { %14924 = vst [vmem:[#allocation14_spill] sm:$0xff] %v12662_v38  ;;  %v3758_v44 = vmax.f32 %v3631_v7, 0.0  ;;  %v4066_v7 = vshrl.u32 %v12673_v11, 4  ;;  %v12748_v9 = vmul.u32.u64.low 3817748708, %v12715_v23  ;;  %v12749_v19 = vmul.u32.u64.high 3817748708, %v12715_v23, %v12748_v9  ;;  %9780 = vmatprep.subr.bf16.mxu0 %v12774_v22  ;;  %v5805_v38 = vld [vmem:[#allocation2 + $0x2b] sm:$0xff] }
 0x31c   : > { %v3636_v57 = vpop.f32.mrf.mxu1  ;;  %v12756_v50 = vadd.s32 200, %v12022_v13  ;;  %vm4269_vm11 = vcmp.lt.s32.totalorder %v12701_v45, 0  ;;  %vm4234_vm12 = vcmp.ne.s32.totalorder %v12744_v41, 0  ;;  %vm4270_vm13 = vcmp.lt.s32.totalorder %v12744_v41, 0 }
 0x31d   : > { %v4443_v5 = vsel %vm12650_vm15, %v3758_v44, 0.0  ;;  %v3637_v43 = vadd.f32 %v3636_v57, %v12108_v47  ;;  %v4630_v14 = vld [vmem:[#allocation2 + $0x69] sm:$0xff]  ;;  %v12752_v17 = vmul.u32.u64.low 3817748708, %v12719_v61  ;;  %v12753_v44 = vmul.u32.u64.high 3817748708, %v12719_v61, %v12752_v17  ;;  %vm12785_vm14 = vmand %vm4269_vm11, %vm4233_vm10 }
 0x31e   : > { %v5151_v53 = vld [vmem:[#allocation2 + $0x6a] sm:$0xff]  ;;  %4524 = vst [vmem:[#allocation2 + $0x7b] sm:$0xff] %v4443_v5  ;;  %v3638_v62 = vpop.f32.mrf.mxu1  ;;  %v4659_v52 = vpack.c.bf16 %v4630_v14, %v4629_v63  ;;  %v12763_v63 = vadd.s32 208, %v12022_v13  ;;  %v4067_v27 = vmul.u32 18, %v4066_v7  ;;  %v4342_v31 = vadd.s32 18, %v12744_v41  ;;  %vm12804_vm15 = vmand %vm4270_vm13, %vm4234_vm12 }
 0x31f   : > { %v5180_v51 = vpack.c.bf16 %v5151_v53, %v5150_v48  ;;  %v3759_v16 = vmax.f32 %v3637_v43, 0.0  ;;  %v12704_v10 = vadd.f32 %v3638_v62, %v12131_v6  ;;  %v4341_v53 = vadd.s32 18, %v12701_v45  ;;  %v12779_v62 = vld [vmem:[%s14738_s5 + $0x1b8] sm:$0xff]  }
 0x320   : > { %v3640_v20 = vpop.f32.mrf.mxu1  ;;  %9652 = vmatprep.mubr.bf16.mxu0 %v4659_v52  ;;  %v12791_v28 = vsub.s32 %v12613_v60, %v4056_v35  ;;  %9936 = vmatprep.subr.bf16.mxu1 %v12779_v62  ;;  %vm4411_vm0 = vcmp.lt.s32.totalorder %v4375_v34, 16  ;;  %v4077_v7 = vshrl.u32 %v12749_v19, 4  ;;  %v4378_v34 = vsel %vm12804_vm15, %v4342_v31, %v12744_v41 }
 0x321   : > { %14929 = vst [vmem:[#allocation15_spill] sm:$0xff] %v12704_v10  ;;  %9756 = vmatprep.mubr.bf16.mxu1 %v5180_v51  ;;  %v4444_v24 = vsel %vm12664_vm1, %v3759_v16, 0.0  ;;  %v3641_v37 = vadd.f32 %v3640_v20, %v12108_v47  ;;  %v4631_v30 = vld [vmem:[#allocation2 + $0x71] sm:$0xff]  ;;  %v12794_v16 = vmul.u32.u64.low 3817748708, %v12756_v50  ;;  %v12795_v59 = vmul.u32.u64.high 3817748708, %v12756_v50, %v12794_v16  ;;  %v4552_v10 = vld [vmem:[#allocation2 + $0x28] sm:$0xff] }
 0x322   : > { %4525 = vst [vmem:[#allocation2 + $0x83] sm:$0xff] %v4444_v24  ;;  %v12732_v49 = vpop.f32.mrf.mxu1  ;;  %v5152_v57 = vld [vmem:[#allocation2 + $0x72] sm:$0xff]  ;;  %vm12820_vm1 = vcmp.lt.s32.totalorder %v4376_v21, 16  ;;  %v12831_v17 = vadd.s32 216, %v12022_v13  ;;  %vm4235_vm2 = vcmp.ne.s32.totalorder %v12791_v28, 0  ;;  %vm4271_vm3 = vcmp.lt.s32.totalorder %v12791_v28, 0 }
 0x323   : > { %14936 = vst [vmem:[#allocation38_spill] sm:$0xff] %v12732_v49  ;;  %v3760_v32 = vmax.f32 %v3641_v37, 0.0  ;;  %v12809_v60 = vmul.u32.u64.low 3817748708, %v12763_v63  ;;  %v12810_v37 = vmul.u32.u64.high 3817748708, %v12763_v63, %v12809_v60  ;;  %v4343_v41 = vadd.s32 18, %v12791_v28  ;;  %vm12853_vm6 = vmand %vm4271_vm3, %vm4235_vm2  ;;  %v4549_v49 = vld [vmem:[#allocation2 + $0x10] sm:$0xff] }
 0x324   : > { %v3646_v15 = vpop.f32.mrf.mxu1  ;;  %v5839_v42 = vpack.c.bf16 %v5805_v38, %v5804_v26  ;;  %v5809_v26 = vld [vmem:[#allocation2 + $0x4b] sm:$0xff] }
 0x325   : > { %v4445_v12 = vsel %vm12724_vm8, %v3760_v32, 0.0  ;;  %v3647_v1 = vadd.f32 %v3646_v15, %v12108_v47  ;;  %v4632_v11 = vld [vmem:[#allocation2 + $0x79] sm:$0xff]  ;;  %v12817_v32 = vsub.s32 %v12629_v29, %v4067_v27  ;;  %vm12864_vm8 = vcmp.lt.s32.totalorder %v4378_v34, 16  ;;  %v10421_v38 = vld [vmem:[%s14738_s5 + $0x1a8] sm:$0xff]  }
 0x326   : > { %v5153_v4 = vld [vmem:[#allocation2 + $0x7a] sm:$0xff]  ;;  %4526 = vst [vmem:[#allocation2 + $0x8b] sm:$0xff] %v4445_v12  ;;  %v3648_v56 = vpop.f32.mrf.mxu1  ;;  %v4660_v5 = vpack.c.bf16 %v4632_v11, %v4631_v30  ;;  %v4377_v30 = vsel %vm12785_vm14, %v4341_v53, %v12701_v45  ;;  %v4088_v11 = vshrl.u32 %v12753_v44, 4  ;;  %v4099_v44 = vshrl.u32 %v12795_v59, 4 }
 0x327   : > { %v5181_v43 = vpack.c.bf16 %v5153_v4, %v5152_v57  ;;  %v3761_v14 = vmax.f32 %v3647_v1, 0.0  ;;  %v12768_v48 = vadd.f32 %v3648_v56, %v12131_v6  ;;  %vm4236_vm4 = vcmp.ne.s32.totalorder %v12817_v32, 0 }
 0x328   : > { %v3650_v52 = vpop.f32.mrf.mxu1  ;;  %9653 = vmatmul.mubr.bf16.gmra.mxu0 %v4660_v5  ;;  %vm4272_vm5 = vcmp.lt.s32.totalorder %v12817_v32, 0  ;;  %v12845_v53 = vmul.u32.u64.low 3817748708, %v12831_v17  ;;  %v12846_v27 = vmul.u32.u64.high 3817748708, %v12831_v17, %v12845_v53  ;;  %v4089_v16 = vmul.u32 18, %v4088_v11 }
 0x329   : > { %14937 = vst [vmem:[#allocation24_spill] sm:$0xff] %v12768_v48  ;;  %9757 = vmatmul.mubr.bf16.gmra.mxu1 %v5181_v43  ;;  %v4446_v20 = vsel %vm12728_vm9, %v3761_v14, 0.0  ;;  %v3651_v36 = vadd.f32 %v3650_v52, %v12108_v47  ;;  %v4633_v35 = vld [vmem:[#allocation2 + $0x81] sm:$0xff]  ;;  %v4078_v43 = vmul.u32 18, %v4077_v7  ;;  %vm4413_vm7 = vcmp.lt.s32.totalorder %v4377_v30, 16  ;;  %vm12875_vm9 = vmand %vm4272_vm5, %vm4236_vm4 }
 0x32a   : > { %4527 = vst [vmem:[#allocation2 + $0x93] sm:$0xff] %v4446_v20  ;;  %v12814_v54 = vpop.f32.mrf.mxu1  ;;  %v5154_v21 = vld [vmem:[#allocation2 + $0x82] sm:$0xff]  ;;  %v4110_v20 = vshrl.u32 %v12810_v37, 4  ;;  %v4344_v60 = vadd.s32 18, %v12817_v32 }
 0x32b   : > { %14942 = vst [vmem:[#allocation37_spill] sm:$0xff] %v12814_v54  ;;  %v3762_v39 = vmax.f32 %v3651_v36, 0.0  ;;  %v12861_v36 = vadd.s32 224, %v12022_v13  ;;  %v12880_v30 = vsub.s32 %v12715_v23, %v4078_v43 }
 0x32c   : > { %v3656_v9 = vpop.f32.mrf.mxu1  ;;  %v4380_v43 = vsel %vm12875_vm9, %v4344_v60, %v12817_v32 }
 0x32d   : > { %v4447_v29 = vsel %vm4411_vm0, %v3762_v39, 0.0  ;;  %v3657_v19 = vadd.f32 %v3656_v9, %v12108_v47  ;;  %v4634_v12 = vld [vmem:[#allocation2 + $0x89] sm:$0xff]  ;;  %v4379_v9 = vsel %vm12853_vm6, %v4343_v41, %v12791_v28  ;;  %v12884_v28 = vsub.s32 %v12719_v61, %v4089_v16 }
 0x32e   : > { %v5155_v1 = vld [vmem:[#allocation2 + $0x8a] sm:$0xff]  ;;  %4528 = vst [vmem:[#allocation2 + $0x9b] sm:$0xff] %v4447_v29  ;;  %v3658_v45 = vpop.f32.mrf.mxu1  ;;  %v4661_v57 = vpack.c.bf16 %v4634_v12, %v4633_v35  ;;  %v4100_v35 = vmul.u32 18, %v4099_v44  ;;  %v12897_v61 = vadd.s32 232, %v12022_v13  ;;  %vm4237_vm10 = vcmp.ne.s32.totalorder %v12880_v30, 0 }
 0x32f   : > { %v5182_v4 = vpack.c.bf16 %v5155_v1, %v5154_v21  ;;  %v3763_v56 = vmax.f32 %v3657_v19, 0.0  ;;  %v12839_v5 = vadd.f32 %v3658_v45, %v12131_v6  ;;  %v4111_v1 = vmul.u32 18, %v4110_v20 }
 0x330   : > { %v3660_v14 = vpop.f32.mrf.mxu1  ;;  %9656 = vmatprep.mubr.bf16.mxu0 %v4661_v57  ;;  %vm4273_vm11 = vcmp.lt.s32.totalorder %v12880_v30, 0  ;;  %v12902_v44 = vsub.s32 %v12756_v50, %v4100_v35  ;;  %vm12913_vm12 = vcmp.lt.s32.totalorder %v4379_v9, 16  ;;  %vm12919_vm13 = vcmp.lt.s32.totalorder %v4380_v43, 16 }
 0x331   : > { %14945 = vst [vmem:[#allocation25_spill] sm:$0xff] %v12839_v5  ;;  %9760 = vmatprep.mubr.bf16.mxu1 %v5182_v4  ;;  %v4448_v52 = vsel %vm12820_vm1, %v3763_v56, 0.0  ;;  %v3661_v51 = vadd.f32 %v3660_v14, %v12108_v47  ;;  %v4635_v37 = vld [vmem:[#allocation2 + $0x91] sm:$0xff]  ;;  %v12887_v4 = vmul.u32.u64.low 3817748708, %v12861_v36  ;;  %v12888_v41 = vmul.u32.u64.high 3817748708, %v12861_v36, %v12887_v4  ;;  %vm12935_vm0 = vmand %vm4273_vm11, %vm4237_vm10 }
 0x332   : > { %4529 = vst [vmem:[#allocation2 + $0xa3] sm:$0xff] %v4448_v52  ;;  %v12858_v59 = vpop.f32.mrf.mxu1  ;;  %v5156_v12 = vld [vmem:[#allocation2 + $0x92] sm:$0xff]  ;;  %v12910_v32 = vsub.s32 %v12763_v63, %v4111_v1  ;;  %v4345_v20 = vadd.s32 18, %v12880_v30  ;;  %vm4238_vm14 = vcmp.ne.s32.totalorder %v12884_v28, 0  ;;  %vm4274_vm15 = vcmp.lt.s32.totalorder %v12884_v28, 0 }
 0x333   : > { %14948 = vst [vmem:[#allocation39_spill] sm:$0xff] %v12858_v59  ;;  %v3764_v24 = vmax.f32 %v3661_v51, 0.0  ;;  %v4121_v51 = vshrl.u32 %v12846_v27, 4  ;;  %v4346_v9 = vadd.s32 18, %v12884_v28  ;;  %vm4239_vm1 = vcmp.ne.s32.totalorder %v12902_v44, 0  ;;  %vm12957_vm4 = vmand %vm4274_vm15, %vm4238_vm14 }
 0x334   : > { %v3666_v39 = vpop.f32.mrf.mxu1  ;;  %vm4275_vm2 = vcmp.lt.s32.totalorder %v12902_v44, 0  ;;  %vm4240_vm3 = vcmp.ne.s32.totalorder %v12910_v32, 0  ;;  %vm4276_vm5 = vcmp.lt.s32.totalorder %v12910_v32, 0  ;;  %v4381_v43 = vsel %vm12935_vm0, %v4345_v20, %v12880_v30 }
 0x335   : > { %v4449_v34 = vsel %vm4413_vm7, %v3764_v24, 0.0  ;;  %v3667_v29 = vadd.f32 %v3666_v39, %v12108_v47  ;;  %v4636_v19 = vld [vmem:[#allocation2 + $0x99] sm:$0xff]  ;;  %v12928_v27 = vmul.u32.u64.low 3817748708, %v12897_v61  ;;  %v12929_v24 = vmul.u32.u64.high 3817748708, %v12897_v61, %v12928_v27  ;;  %vm12977_vm6 = vmand %vm4275_vm2, %vm4239_vm1 }
 0x336   : > { %v5157_v21 = vld [vmem:[#allocation2 + $0x9a] sm:$0xff]  ;;  %4530 = vst [vmem:[#allocation2 + $0xab] sm:$0xff] %v4449_v34  ;;  %v3668_v11 = vpop.f32.mrf.mxu1  ;;  %v4662_v45 = vpack.c.bf16 %v4636_v19, %v4635_v37  ;;  %v12943_v37 = vadd.s32 240, %v12022_v13  ;;  %v4348_v27 = vadd.s32 18, %v12910_v32  ;;  %vm13001_vm7 = vmand %vm4276_vm5, %vm4240_vm3 }
 0x337   : > { %v5183_v57 = vpack.c.bf16 %v5157_v21, %v5156_v12  ;;  %v3765_v23 = vmax.f32 %v3667_v29, 0.0  ;;  %v12891_v56 = vadd.f32 %v3668_v11, %v12131_v6  ;;  %v4122_v12 = vmul.u32 18, %v4121_v51 }
 0x338   : > { %v3670_v14 = vpop.f32.mrf.mxu1  ;;  %9657 = vmatmul.mubr.bf16.gmra.mxu0 %v4662_v45  ;;  %v4347_v51 = vadd.s32 18, %v12902_v44  ;;  %v12984_v30 = vmul.u32.u64.low 3817748708, %v12943_v37  ;;  %v12985_v20 = vmul.u32.u64.high 3817748708, %v12943_v37, %v12984_v30 }
 0x339   : > { %14953 = vst [vmem:[#allocation16_spill] sm:$0xff] %v12891_v56  ;;  %9761 = vmatmul.mubr.bf16.gmra.mxu1 %v5183_v57  ;;  %v4450_v53 = vsel %vm12864_vm8, %v3765_v23, 0.0  ;;  %v12907_v52 = vadd.f32 %v3670_v14, %v12108_v47  ;;  %v4637_v7 = vld [vmem:[#allocation2 + $0xa1] sm:$0xff]  ;;  %v4132_v57 = vshrl.u32 %v12888_v41, 4  ;;  %v12971_v14 = vadd.s32 248, %v12022_v13 }
 0x33a   : > { %4531 = vst [vmem:[#allocation2 + $0xb3] sm:$0xff] %v4450_v53  ;;  %v12917_v16 = vpop.f32.mrf.mxu1  ;;  %v5158_v29 = vld [vmem:[#allocation2 + $0xa2] sm:$0xff]  ;;  %vm13008_vm8 = vcmp.lt.s32.totalorder %v4381_v43, 16 }
 0x33b   : > { %14956 = vst [vmem:[#allocation17_spill] sm:$0xff] %v12917_v16  ;;  %v14752_v63 = vmax.f32 %v12907_v52, 0.0 }
 0x33c   : > { %v3676_v60 = vpop.f32.mrf.mxu1 }
 0x33d   : > { %v4451_v15 = vsel %vm12913_vm12, %v14752_v63, 0.0  ;;  %v12950_v35 = vadd.f32 %v3676_v60, %v12108_v47  ;;  %v4638_v34 = vld [vmem:[#allocation2 + $0xa9] sm:$0xff] }
 0x33e   : > { %v5159_v19 = vld [vmem:[#allocation2 + $0xaa] sm:$0xff]  ;;  %4532 = vst [vmem:[#allocation2 + $0xbb] sm:$0xff] %v4451_v15  ;;  %v3678_v21 = vpop.f32.mrf.mxu1  ;;  %v4663_v1 = vpack.c.bf16 %v4638_v34, %v4637_v7  ;;  %v4382_v7 = vsel %vm12957_vm4, %v4346_v9, %v12884_v28  ;;  %v13006_v34 = vsub.s32 %v12831_v17, %v4122_v12  ;;  %v4143_v9 = vshrl.u32 %v12929_v24, 4 }
 0x33f   : > { %v5184_v11 = vpack.c.bf16 %v5159_v19, %v5158_v29  ;;  %v14750_v4 = vmax.f32 %v12950_v35, 0.0  ;;  %v12965_v23 = vadd.f32 %v3678_v21, %v12131_v6  ;;  %v4133_v21 = vmul.u32 18, %v4132_v57 }
 0x340   : > { %v3680_v53 = vpop.f32.mrf.mxu1  ;;  %9660 = vmatprep.mubr.bf16.mxu0 %v4663_v1  ;;  %vm13020_vm9 = vcmp.lt.s32.totalorder %v4382_v7, 16  ;;  %v4383_v12 = vsel %vm12977_vm6, %v4347_v51, %v12902_v44  ;;  %v4384_v57 = vsel %vm13001_vm7, %v4348_v27, %v12910_v32  ;;  %v13031_v24 = vadd.s32 256, %v12022_v13 }
 0x341   : > { %14963 = vst [vmem:[#allocation41_spill] sm:$0xff] %v12965_v23  ;;  %9764 = vmatprep.mubr.bf16.mxu1 %v5184_v11  ;;  %v4452_v60 = vsel %vm12919_vm13, %v14750_v4, 0.0  ;;  %v12992_v39 = vadd.f32 %v3680_v53, %v12108_v47  ;;  %v13017_v1 = vmul.u32.u64.low 3817748708, %v12971_v14  ;;  %v13018_v11 = vmul.u32.u64.high 3817748708, %v12971_v14, %v13017_v1  ;;  %v4639_v43 = vld [vmem:[#allocation2 + $0xb1] sm:$0xff] }
 0x342   : > { %4533 = vst [vmem:[#allocation2 + $0xc3] sm:$0xff] %v4452_v60  ;;  %v13012_v19 = vpop.f32.mrf.mxu1  ;;  %v5160_v7 = vld [vmem:[#allocation2 + $0xb2] sm:$0xff]  ;;  %vm4241_vm10 = vcmp.ne.s32.totalorder %v13006_v34, 0  ;;  %vm4277_vm11 = vcmp.lt.s32.totalorder %v13006_v34, 0  ;;  %v4349_v27 = vadd.s32 18, %v13006_v34  ;;  %vm13071_vm15 = vcmp.lt.s32.totalorder %v4383_v12, 16 }
 0x343   : > { %14970 = vst [vmem:[#allocation8_spill] sm:$0xff] %v13012_v19  ;;  %v14749_v28 = vmax.f32 %v12992_v39, 0.0  ;;  %vm13052_vm14 = vmand %vm4277_vm11, %vm4241_vm10  ;;  %vm13077_vm0 = vcmp.lt.s32.totalorder %v4384_v57, 16  ;;  %v4165_v12 = vshrl.u32 %v13018_v11, 4  ;;  %v15027_v31 = vmax.f32 %v12992_v39, 0.0 }
 0x344   : > { %v3686_v45 = vpop.f32.mrf.mxu1 }
 0x345   : > { %v4453_v53 = vsel %vm13008_vm8, %v14749_v28, 0.0  ;;  %v13038_v30 = vadd.f32 %v3686_v45, %v12108_v47  ;;  %v4640_v60 = vld [vmem:[#allocation2 + $0xb9] sm:$0xff]  ;;  %v13048_v45 = vsub.s32 %v12861_v36, %v4133_v21  ;;  %v4144_v28 = vmul.u32 18, %v4143_v9 }
 0x346   : > { %v5161_v41 = vld [vmem:[#allocation2 + $0xba] sm:$0xff]  ;;  %4534 = vst [vmem:[#allocation2 + $0xcb] sm:$0xff] %v4453_v53  ;;  %v3688_v44 = vpop.f32.mrf.mxu1  ;;  %v4664_v32 = vpack.c.bf16 %v4640_v60, %v4639_v43  ;;  %v4154_v43 = vshrl.u32 %v12985_v20, 4 }
 0x347   : > { %v5185_v51 = vpack.c.bf16 %v5161_v41, %v5160_v7  ;;  %v14751_v15 = vmax.f32 %v13038_v30, 0.0  ;;  %v13045_v1 = vadd.f32 %v3688_v44, %v12131_v6  ;;  %v13062_v41 = vadd.s32 264, %v12022_v13 }
 0x348   : > { %v3690_v4 = vpop.f32.mrf.mxu1  ;;  %9661 = vmatmul.mubr.bf16.gmra.mxu0 %v4664_v32  ;;  %v13058_v60 = vmul.u32.u64.low 3817748708, %v13031_v24  ;;  %v13059_v7 = vmul.u32.u64.high 3817748708, %v13031_v24, %v13058_v60  ;;  %vm4242_vm1 = vcmp.ne.s32.totalorder %v13048_v45, 0  ;;  %vm4278_vm2 = vcmp.lt.s32.totalorder %v13048_v45, 0 }
 0x349   : > { %14973 = vst [vmem:[#allocation9_spill] sm:$0xff] %v13045_v1  ;;  %9765 = vmatmul.mubr.bf16.gmra.mxu1 %v5185_v51  ;;  %v4454_v36 = vsel %vm13020_vm9, %v14751_v15, 0.0  ;;  %v13069_v21 = vadd.f32 %v3690_v4, %v12108_v47  ;;  %v4385_v51 = vsel %vm13052_vm14, %v4349_v27, %v13006_v34  ;;  %v13086_v4 = vsub.s32 %v12897_v61, %v4144_v28  ;;  %v5162_v28 = vld [vmem:[#allocation2 + $0xc2] sm:$0xff]  ;;  %vm13113_vm4 = vmand %vm4278_vm2, %vm4242_vm1 }
 0x34a   : > { %4535 = vst [vmem:[#allocation2 + $0xd3] sm:$0xff] %v4454_v36  ;;  %v13075_v20 = vpop.f32.mrf.mxu1  ;;  %v4641_v36 = vld [vmem:[#allocation2 + $0xc1] sm:$0xff]  ;;  %v4155_v15 = vmul.u32 18, %v4154_v43  ;;  %v13091_v57 = vmul.u32.u64.low 3817748708, %v13062_v41  ;;  %v13092_v63 = vmul.u32.u64.high 3817748708, %v13062_v41, %v13091_v57  ;;  %v13103_v27 = vadd.s32 272, %v12022_v13 }
 0x34b   : > { %14978 = vst [vmem:[#allocation26_spill] sm:$0xff] %v13075_v20  ;;  %v14753_v32 = vmax.f32 %v13069_v21, 0.0  ;;  %v4350_v20 = vadd.s32 18, %v13048_v45  ;;  %vm4243_vm3 = vcmp.ne.s32.totalorder %v13086_v4, 0  ;;  %vm4279_vm5 = vcmp.lt.s32.totalorder %v13086_v4, 0 }
 0x34c   : > { %v3696_v60 = vpop.f32.mrf.mxu1  ;;  %vm13136_vm6 = vcmp.lt.s32.totalorder %v4385_v51, 16  ;;  %vm13154_vm7 = vmand %vm4279_vm5, %vm4243_vm3 }
 0x34d   : > { %v4455_v53 = vsel %vm13071_vm15, %v14753_v32, 0.0  ;;  %v13099_v34 = vadd.f32 %v3696_v60, %v12108_v47  ;;  %v4642_v61 = vld [vmem:[#allocation2 + $0xc9] sm:$0xff]  ;;  %v4166_v60 = vmul.u32 18, %v4165_v12 }
 0x34e   : > { %v5163_v11 = vld [vmem:[#allocation2 + $0xca] sm:$0xff]  ;;  %4536 = vst [vmem:[#allocation2 + $0xdb] sm:$0xff] %v4455_v53  ;;  %v3698_v43 = vpop.f32.mrf.mxu1  ;;  %v4665_v1 = vpack.c.bf16 %v4642_v61, %v4641_v36  ;;  %v13119_v36 = vsub.s32 %v12943_v37, %v4155_v15  ;;  %v4176_v61 = vshrl.u32 %v13059_v7, 4  ;;  %v4187_v7 = vshrl.u32 %v13092_v63, 4 }
 0x34f   : > { %v5186_v57 = vpack.c.bf16 %v5163_v11, %v5162_v28  ;;  %v14754_v56 = vmax.f32 %v13099_v34, 0.0  ;;  %v13108_v32 = vadd.f32 %v3698_v43, %v12131_v6  ;;  %v13123_v28 = vadd.s32 280, %v12022_v13 }
 0x350   : > { %v3700_v16 = vpop.f32.mrf.mxu1  ;;  %9664 = vmatprep.mubr.bf16.mxu0 %v4665_v1  ;;  %v13133_v11 = vmul.u32.u64.low 3817748708, %v13103_v27  ;;  %v13134_v43 = vmul.u32.u64.high 3817748708, %v13103_v27, %v13133_v11  ;;  %vm4244_vm10 = vcmp.ne.s32.totalorder %v13119_v36, 0  ;;  %vm4280_vm11 = vcmp.lt.s32.totalorder %v13119_v36, 0 }
 0x351   : > { %14981 = vst [vmem:[#allocation40_spill] sm:$0xff] %v13108_v32  ;;  %9768 = vmatprep.mubr.bf16.mxu1 %v5186_v57  ;;  %v4456_v1 = vsel %vm13077_vm0, %v14754_v56, 0.0  ;;  %v13130_v12 = vadd.f32 %v3700_v16, %v12108_v47  ;;  %v4386_v57 = vsel %vm13113_vm4, %v4350_v20, %v13048_v45  ;;  %v4351_v16 = vadd.s32 18, %v13086_v4  ;;  %v5164_v23 = vld [vmem:[#allocation2 + $0xd2] sm:$0xff]  ;;  %vm13186_vm1 = vmand %vm4280_vm11, %vm4244_vm10 }
 0x352   : > { %4537 = vst [vmem:[#allocation2 + $0xe3] sm:$0xff] %v4456_v1  ;;  %v13140_v15 = vpop.f32.mrf.mxu1  ;;  %v13148_v56 = vsub.s32 %v12971_v14, %v4166_v60  ;;  %v4643_v1 = vld [vmem:[#allocation2 + $0xd1] sm:$0xff]  ;;  %v4177_v11 = vmul.u32 18, %v4176_v61  ;;  %v13160_v45 = vmul.u32.u64.low 3817748708, %v13123_v28  ;;  %v13161_v20 = vmul.u32.u64.high 3817748708, %v13123_v28, %v13160_v45 }
 0x353   : > { %14986 = vst [vmem:[#allocation18_spill] sm:$0xff] %v13140_v15  ;;  %v14989_v14 = vmax.f32 %v13130_v12, 0.0  ;;  %vm13172_vm14 = vcmp.lt.s32.totalorder %v4386_v57, 16  ;;  %v4387_v54 = vsel %vm13154_vm7, %v4351_v16, %v13086_v4  ;;  %v4352_v5 = vadd.s32 18, %v13119_v36 }
 0x354   : > { %v3706_v32 = vpop.f32.mrf.mxu1  ;;  %vm4245_vm2 = vcmp.ne.s32.totalorder %v13148_v56, 0  ;;  %vm4281_vm3 = vcmp.lt.s32.totalorder %v13148_v56, 0  ;;  %vm13203_vm4 = vcmp.lt.s32.totalorder %v4387_v54, 16  ;;  %v15030_v17 = vmax.f32 %v13099_v34, 0.0 }
 0x355   : > { %v4457_v60 = vsel %vm13136_vm6, %v14989_v14, 0.0  ;;  %v13168_v53 = vadd.f32 %v3706_v32, %v12108_v47  ;;  %v4644_v15 = vld [vmem:[#allocation2 + $0xd9] sm:$0xff]  ;;  %v4388_v51 = vsel %vm13186_vm1, %v4352_v5, %v13119_v36  ;;  %vm13216_vm5 = vmand %vm4281_vm3, %vm4245_vm2 }
 0x356   : > { %v5165_v19 = vld [vmem:[#allocation2 + $0xda] sm:$0xff]  ;;  %4538 = vst [vmem:[#allocation2 + $0xeb] sm:$0xff] %v4457_v60  ;;  %v3708_v61 = vpop.f32.mrf.mxu1  ;;  %v4666_v45 = vpack.c.bf16 %v4644_v15, %v4643_v1  ;;  %v4209_v60 = vshrl.u32 %v13161_v20, 4  ;;  %vm13233_vm11 = vcmp.lt.s32.totalorder %v4388_v51, 16 }
 0x357   : > { %v5187_v48 = vpack.c.bf16 %v5165_v19, %v5164_v23  ;;  %v14755_v14 = vmax.f32 %v13168_v53, 0.0  ;;  %v13178_v32 = vadd.f32 %v3708_v61, %v12131_v6  ;;  %v13192_v23 = vsub.s32 %v13031_v24, %v4177_v11  ;;  %v4574_v29 = vld [vmem:[#allocation2 + $0xd8] sm:$0xff] }
 0x358   : > { %v3710_v59 = vpop.f32.mrf.mxu1  ;;  %9665 = vmatmul.mubr.bf16.gmra.mxu0 %v4666_v45  ;;  %v4188_v19 = vmul.u32 18, %v4187_v7 }
 0x359   : > { %14992 = vst [vmem:[#allocation27_spill] sm:$0xff] %v13178_v32  ;;  %9769 = vmatmul.mubr.bf16.gmra.mxu1 %v5187_v48  ;;  %v4458_v4 = vsel %vm13172_vm14, %v14755_v14, 0.0  ;;  %v13199_v15 = vadd.f32 %v3710_v59, %v12108_v47  ;;  %v4198_v48 = vshrl.u32 %v13134_v43, 4  ;;  %v4353_v59 = vadd.s32 18, %v13148_v56  ;;  %v4645_v54 = vld [vmem:[#allocation2 + $0xe1] sm:$0xff] }
 0x35a   : > { %4539 = vst [vmem:[#allocation2 + $0xf3] sm:$0xff] %v4458_v4  ;;  %v13207_v24 = vpop.f32.mrf.mxu1  ;;  %vm4246_vm7 = vcmp.ne.s32.totalorder %v13192_v23, 0  ;;  %v13222_v11 = vsub.s32 %v13062_v41, %v4188_v19  ;;  %v5166_v45 = vld [vmem:[#allocation2 + $0xe2] sm:$0xff]  ;;  %vm4282_vm10 = vcmp.lt.s32.totalorder %v13192_v23, 0  ;;  %v15000_v41 = vmov 0 }
 0x35b   : > { %14997 = vst [vmem:[#allocation42_spill] sm:$0xff] %v13207_v24  ;;  %v14756_v7 = vmax.f32 %v13199_v15, 0.0  ;;  %v4199_v4 = vmul.u32 18, %v4198_v48  ;;  %v15001_v41 = vsel %vm13233_vm11, 4294967295, %v15000_v41  ;;  %v4354_v24 = vadd.s32 18, %v13192_v23  ;;  %vm13247_vm1 = vmand %vm4282_vm10, %vm4246_vm7 }
 0x35c   : > { %v3716_v1 = vpop.f32.mrf.mxu1  ;;  %vm4247_vm2 = vcmp.ne.s32.totalorder %v13222_v11, 0  ;;  %vm4283_vm3 = vcmp.lt.s32.totalorder %v13222_v11, 0 }
 0x35d   : > { %v4459_v5 = vsel %vm13203_vm4, %v14756_v7, 0.0  ;;  %v13230_v36 = vadd.f32 %v3716_v1, %v12108_v47  ;;  %v4646_v61 = vld [vmem:[#allocation2 + $0xe9] sm:$0xff]  ;;  %v4389_v1 = vsel %vm13216_vm5, %v4353_v59, %v13148_v56  ;;  %v15005_v59 = vmov 0  ;;  %vm13272_vm7 = vmand %vm4283_vm3, %vm4247_vm2 }
 0x35e   : > { %v5167_v57 = vld [vmem:[#allocation2 + $0xea] sm:$0xff]  ;;  %4540 = vst [vmem:[#allocation2 + $0xfb] sm:$0xff] %v4459_v5  ;;  %v3718_v20 = vpop.f32.mrf.mxu1  ;;  %v4667_v19 = vpack.c.bf16 %v4646_v61, %v4645_v54  ;;  %v4210_v54 = vmul.u32 18, %v4209_v60  ;;  %vm13261_vm5 = vcmp.lt.s32.totalorder %v4389_v1, 16  ;;  %v4390_v61 = vsel %vm13247_vm1, %v4354_v24, %v13192_v23 }
 0x35f   : > { %v5188_v14 = vpack.c.bf16 %v5167_v57, %v5166_v45  ;;  %v14757_v32 = vmax.f32 %v13230_v36, 0.0  ;;  %v13239_v7 = vadd.f32 %v3718_v20, %v12131_v6  ;;  %v15006_v59 = vsel %vm13261_vm5, 4294967295, %v15005_v59 }
 0x360   : > { %v3720_v48 = vpop.f32.mrf.mxu1  ;;  %9668 = vmatprep.mubr.bf16.mxu0 %v4667_v19  ;;  %v4355_v45 = vadd.s32 18, %v13222_v11  ;;  %vm13284_vm2 = vcmp.lt.s32.totalorder %v4390_v61, 16  ;;  %v15036_v63 = vmax.f32 %v13230_v36, 0.0 }
 0x361   : > { %15002 = vst [vmem:[#allocation19_spill] sm:$0xff] %v13239_v7  ;;  %9772 = vmatprep.mubr.bf16.mxu1 %v5188_v14  ;;  %v4460_v43 = vsel %vm13233_vm11, %v14757_v32, 0.0  ;;  %v13257_v56 = vadd.f32 %v3720_v48, %v12108_v47  ;;  %v4200_v14 = vsub.s32 %v13103_v27, %v4199_v4  ;;  %v4647_v27 = vld [vmem:[#allocation2 + $0xf1] sm:$0xff]  ;;  %v4211_v4 = vsub.s32 %v13123_v28, %v4210_v54 }
 0x362   : > { %4541 = vst [vmem:[#allocation2 + $0x103] sm:$0xff] %v4460_v43  ;;  %v13265_v5 = vpop.f32.mrf.mxu1  ;;  %v5168_v23 = vld [vmem:[#allocation2 + $0xf2] sm:$0xff] }
 0x363   : > { %15007 = vst [vmem:[#allocation44_spill] sm:$0xff] %v13265_v5  ;;  %v14758_v60 = vmax.f32 %v13257_v56, 0.0  ;;  %vm4248_vm10 = vcmp.ne.s32.totalorder %v4200_v14, 0  ;;  %vm4284_vm1 = vcmp.lt.s32.totalorder %v4200_v14, 0  ;;  %v4356_v7 = vadd.s32 18, %v4200_v14 }
 0x364   : > { %v3726_v57 = vpop.f32.mrf.mxu1  ;;  %vm13295_vm3 = vmand %vm4284_vm1, %vm4248_vm10  ;;  %vm4285_vm11 = vcmp.lt.s32.totalorder %v4211_v4, 0 }
 0x365   : > { %v4461_v19 = vsel %vm13261_vm5, %v14758_v60, 0.0  ;;  %v13282_v1 = vadd.f32 %v3726_v57, %v12108_v47  ;;  %v4648_v48 = vld [vmem:[#allocation2 + $0xf9] sm:$0xff]  ;;  %v4391_v57 = vsel %vm13272_vm7, %v4355_v45, %v13222_v11  ;;  %vm4249_vm5 = vcmp.ne.s32.totalorder %v4211_v4, 0  ;;  %v5473_v11 = vld [vmem:[#allocation2 + $0x2a] sm:$0xff] }
 0x366   : > { %v5169_v24 = vld [vmem:[#allocation2 + $0xfa] sm:$0xff]  ;;  %4542 = vst [vmem:[#allocation2 + $0x10b] sm:$0xff] %v4461_v19  ;;  %v3728_v43 = vpop.f32.mrf.mxu1  ;;  %v4668_v28 = vpack.c.bf16 %v4648_v48, %v4647_v27  ;;  %vm13306_vm7 = vcmp.lt.s32.totalorder %v4391_v57, 16  ;;  %v4392_v48 = vsel %vm13295_vm3, %v4356_v7, %v4200_v14  ;;  %vm13315_vm10 = vmand %vm4285_vm11, %vm4249_vm5  ;;  %vm10562_vm5 = vmmov 1  }
 0x367   : > { %v5189_v54 = vpack.c.bf16 %v5169_v24, %v5168_v23  ;;  %v14761_v32 = vmax.f32 %v13282_v1, 0.0  ;;  %v13290_v60 = vadd.f32 %v3728_v43, %v12131_v6  ;;  %v4357_v23 = vadd.s32 18, %v4211_v4  ;;  %vm10474_vm3 = vmpackc.low %vm12913_vm12, %vm10562_vm5  ;;  %v4578_v37 = vld [vmem:[#allocation2 + $0xf8] sm:$0xff] }
 0x368   : > { %v3730_v5 = vpop.f32.mrf.mxu1  ;;  %9669 = vmatmul.mubr.bf16.gmra.mxu0 %v4668_v28  ;;  %vm13326_vm1 = vcmp.lt.s32.totalorder %v4392_v48, 16  ;;  %vm10480_vm12 = vmpackc.low %vm13071_vm15, %vm13020_vm9  ;;  %vm15034_vm9 = vnez %v15001_v41  ;;  %vm15035_vm15 = vnez %v15006_v59 }
 0x369   : > { %15012 = vst [vmem:[#allocation28_spill] sm:$0xff] %v13290_v60  ;;  %9773 = vmatmul.mubr.bf16.gmra.mxu1 %v5189_v54  ;;  %v4462_v27 = vsel %vm13284_vm2, %v14761_v32, 0.0  ;;  %v13304_v19 = vadd.f32 %v3730_v5, %v12108_v47  ;;  %v4649_v5 = vld [vmem:[#allocation2 + $0x101] sm:$0xff] }
 0x36a   : > { %4543 = vst [vmem:[#allocation2 + $0x113] sm:$0xff] %v4462_v27  ;;  %v13310_v45 = vpop.f32.mrf.mxu1  ;;  %v5170_v27 = vld [vmem:[#allocation2 + $0x102] sm:$0xff] }
 0x36b   : > { %15017 = vst [vmem:[#allocation43_spill] sm:$0xff] %v13310_v45  ;;  %v14762_v20 = vmax.f32 %v13304_v19, 0.0 }
 0x36c   : > { %v3736_v24 = vpop.f32.mrf.mxu1 }
 0x36d   : > { %v4463_v28 = vsel %vm13306_vm7, %v14762_v20, 0.0  ;;  %v13324_v54 = vadd.f32 %v3736_v24, %v12108_v47  ;;  %v4650_v57 = vld [vmem:[#allocation2 + $0x109] sm:$0xff]  ;;  %v4393_v24 = vsel %vm13315_vm10, %v4357_v23, %v4211_v4  ;;  %v5803_v23 = vld [vmem:[#allocation2 + $0x1b] sm:$0xff]  ;;  %vm10477_vm10 = vmpackc.low %vm13008_vm8, %vm12919_vm13 }
 0x36e   : > { %v5171_v32 = vld [vmem:[#allocation2 + $0x10a] sm:$0xff]  ;;  %4544 = vst [vmem:[#allocation2 + $0x11b] sm:$0xff] %v4463_v28  ;;  %v3738_v14 = vpop.f32.mrf.mxu1  ;;  %v4669_v61 = vpack.c.bf16 %v4650_v57, %v4649_v5  ;;  %vm13346_vm11 = vcmp.lt.s32.totalorder %v4393_v24, 16  ;;  %vm10483_vm13 = vmpackc.low %vm13136_vm6, %vm13077_vm0 }
 0x36f   : > { %v13330_v60 = vpack.c.bf16 %v5171_v32, %v5170_v27  ;;  %v14763_v45 = vmax.f32 %v13324_v54, 0.0  ;;  %v13334_v2 = vadd.f32 %v3738_v14, %v12131_v6  ;;  %vm10486_vm8 = vmpackc.low %vm13203_vm4, %vm13172_vm14  ;;  %v6494_v55 = vld [vmem:[#allocation2 + $0x104] sm:$0xff]  ;;  %vm10564_vm4 = vmmov 0  }
 0x370   : > { %v3740_v20 = vpop.f32.mrf.mxu1  ;;  %9672 = vmatprep.mubr.bf16.mxu0 %v4669_v61  ;;  %v10472_v61 = vld [vmem:[#allocation2] sm:$0xff]  ;;  %vm10489_vm0 = vmpackc.low %vm15035_vm15, %vm15034_vm9 }
 0x371   : > { %15022 = vst [vmem:[#allocation29_spill] sm:$0xff] %v13334_v2  ;;  %9776 = vmatprep.mubr.bf16.mxu1 %v13330_v60  ;;  %v4464_v48 = vsel %vm13326_vm1, %v14763_v45, 0.0  ;;  %v13344_v32 = vadd.f32 %v3740_v20, %v12108_v47  ;;  %v4651_v4 = vld [vmem:[#allocation2 + $0x111] sm:$0xff]  ;;  %v4583_v47 = vpack.c.bf16 %v10472_v61, %v10472_v61  ;;  %v4551_v61 = vld [vmem:[#allocation2 + $0x20] sm:$0xff]  ;;  %vm10492_vm6 = vmpackc.low %vm13306_vm7, %vm13284_vm2  ;;  %vm7924_vm2 = vcmask 261120  }
 0x372   : > { %4545 = vst [vmem:[#allocation2 + $0x123] sm:$0xff] %v4464_v48  ;;  %v5172_v27 = vld [vmem:[#allocation2 + $0x112] sm:$0xff]  ;;  %vm10495_vm14 = vmpackc.low %vm13346_vm11, %vm13326_vm1 }
 0x373   : > { %v14764_v43 = vmax.f32 %v13344_v32, 0.0  ;;  %v5802_v48 = vld [vmem:[#allocation2 + $0x13] sm:$0xff]  ;;  %v15041_v51 = vmax.f32 %v13344_v32, 0.0 }
 0x374   : > { %v5838_v45 = vpack.c.bf16 %v5803_v23, %v5802_v48  ;;  %v4550_v2 = vld [vmem:[#allocation2 + $0x18] sm:$0xff]  ;;  %v10418_v23 = vld [vmem:[%s14738_s5 + $0xf0] sm:$0xff]   ;;  %v10422_v48 = vld [vmem:[%s14738_s5 + $0xe0] sm:$0xff]  }
 0x375   : > { %v4465_v28 = vsel %vm13346_vm11, %v14764_v43, 0.0  ;;  %v4652_v57 = vld [vmem:[#allocation2 + $0x119] sm:$0xff]  ;;  %v4584_v8 = vpack.c.bf16 %v4550_v2, %v4549_v49  ;;  %v10420_v2 = vld [vmem:[%s14738_s5 + $0xe8] sm:$0xff]   ;;  %v4581_v36 = vld [vmem:[#allocation2 + $0x110] sm:$0xff] }
 0x376   : > { %v5173_v14 = vld [vmem:[#allocation2 + $0x11a] sm:$0xff]  ;;  %4546 = vst [vmem:[#allocation2 + $0x12b] sm:$0xff] %v4465_v28  ;;  %v4670_v20 = vpack.c.bf16 %v4652_v57, %v4651_v4  ;;  %v4585_v4 = vpack.c.bf16 %v4552_v10, %v4551_v61  ;;  %v4553_v10 = vld [vmem:[#allocation2 + $0x30] sm:$0xff]  ;;  %v5808_v49 = vld [vmem:[#allocation2 + $0x43] sm:$0xff] }
 0x377   : > { %v13355_v24 = vpack.c.bf16 %v5173_v14, %v5172_v27  ;;  %v5807_v43 = vld [vmem:[#allocation2 + $0x3b] sm:$0xff]  ;;  %v5806_v28 = vld [vmem:[#allocation2 + $0x33] sm:$0xff]  ;;  %v5841_v14 = vpack.c.bf16 %v5809_v26, %v5808_v49 }
 0x378   : > { %9673 = vmatmul.mubr.bf16.gmra.mxu0 %v4670_v20  ;;  %v5840_v57 = vpack.c.bf16 %v5807_v43, %v5806_v28  ;;  %v4554_v27 = vld [vmem:[#allocation2 + $0x38] sm:$0xff]  ;;  %v10423_v61 = vld [vmem:[%s14738_s5 + $0x1a0] sm:$0xff]   ;;  %v4557_v26 = vld [vmem:[#allocation2 + $0x50] sm:$0xff] }
 0x379   : > { %9777 = vmatmul.mubr.bf16.gmra.mxu1 %v13355_v24  ;;  %9692 = vmatprep.mubr.bf16.mxu0 %v4583_v47  ;;  %v4586_v43 = vpack.c.bf16 %v4554_v27, %v4553_v10  ;;  %v5810_v47 = vld [vmem:[#allocation2 + $0x53] sm:$0xff]  ;;  %v5815_v27 = vld [vmem:[#allocation2 + $0x7b] sm:$0xff] }
 0x37a   : > { %9848 = vmatprep.mubr.bf16.mxu1 %v5838_v45  ;;  %v10419_v45 = vld [vmem:[%s14738_s5 + $0x1b0] sm:$0xff]   ;;  %v4558_v28 = vld [vmem:[#allocation2 + $0x58] sm:$0xff]  ;;  %v4559_v49 = vld [vmem:[#allocation2 + $0x60] sm:$0xff] }
 0x37b   : > { %v4582_v59 = vld [vmem:[#allocation2 + $0x118] sm:$0xff]  ;;  %v5504_v46 = vld [vmem:[#allocation2 + $0x122] sm:$0xff] }
 0x37c   : > { %v6497_v3 = vld [vmem:[#allocation2 + $0x11c] sm:$0xff] }
 0x37d   : > { %v6498_v58 = vld [vmem:[#allocation2 + $0x124] sm:$0xff] }
 0x37e   : > { %v5505_v33 = vld [vmem:[#allocation2 + $0x12a] sm:$0xff] }
 0x37f   : > { %v5523_v13 = vpack.c.bf16 %v5505_v33, %v5504_v46 }
 0x380   : > { %9693 = vmatmul.mubr.bf16.vlgmr.msra.gmra.mxu0 %v4584_v8  ;;  %v4556_v8 = vld [vmem:[#allocation2 + $0x48] sm:$0xff] }
 0x381   : > { %9849 = vmatmul.mubr.bf16.vlgmr.msra.gmra.mxu1 %v5839_v42  ;;  %9696 = vmatprep.mubr.bf16.mxu0 %v4585_v4  ;;  %v5811_v42 = vld [vmem:[#allocation2 + $0x5b] sm:$0xff]  ;;  %v5813_v4 = vld [vmem:[#allocation2 + $0x6b] sm:$0xff] }
 0x382   : > { %9852 = vmatprep.mubr.bf16.mxu1 %v5840_v57  ;;  %9781 = vmatpush3.bf16.msra.mxu0 %v12774_v22  ;;  %v4555_v22 = vld [vmem:[#allocation2 + $0x40] sm:$0xff]  ;;  %v5842_v20 = vpack.c.bf16 %v5811_v42, %v5810_v47  ;;  %v10424_v57 = vld [vmem:[%s14738_s5 + $0xd8] sm:$0xff]   ;;  %v4588_v42 = vpack.c.bf16 %v4558_v28, %v4557_v26 }
 0x383   : > { %9937 = vmatpush3.bf16.msra.mxu1 %v12779_v62  ;;  %9782 = vmatprep.subr.bf16.mxu0 %v10418_v23  ;;  %v4587_v62 = vpack.c.bf16 %v4556_v8, %v4555_v22  ;;  %v5812_v8 = vld [vmem:[#allocation2 + $0x63] sm:$0xff]  ;;  %v10427_v22 = vld [vmem:[%s14738_s5 + $0x190] sm:$0xff]   ;;  %v4562_v47 = vld [vmem:[#allocation2 + $0x78] sm:$0xff] }
 0x384   : > { %9938 = vmatprep.subr.bf16.mxu1 %v10419_v45  ;;  %v5843_v10 = vpack.c.bf16 %v5813_v4, %v5812_v8  ;;  %v5819_v28 = vld [vmem:[#allocation2 + $0x9b] sm:$0xff]  ;;  %v4561_v4 = vld [vmem:[#allocation2 + $0x70] sm:$0xff] }
 0x385   : > { %v4563_v8 = vld [vmem:[#allocation2 + $0x80] sm:$0xff] }
 0x386   : > { %9783 = vmatpush3.bf16.msra.mxu0 %v10418_v23  ;;  %v10425_v23 = vld [vmem:[%s14738_s5 + $0x198] sm:$0xff]  }
 0x387   : > { %9939 = vmatpush3.bf16.msra.mxu1 %v10419_v45  ;;  %9784 = vmatprep.subr.bf16.mxu0 %v10420_v2  ;;  %v4560_v45 = vld [vmem:[#allocation2 + $0x68] sm:$0xff] }
 0x388   : > { %9940 = vmatprep.subr.bf16.mxu1 %v10421_v38  ;;  %9697 = vmatmul.mubr.bf16.gmra.mxu0 %v4586_v43 }
 0x389   : > { %9853 = vmatmul.mubr.bf16.gmra.mxu1 %v5841_v14  ;;  %9700 = vmatprep.mubr.bf16.mxu0 %v4587_v62  ;;  %v10426_v14 = vld [vmem:[%s14738_s5 + $0xd0] sm:$0xff]  }
 0x38a   : > { %9856 = vmatprep.mubr.bf16.mxu1 %v5842_v20  ;;  %9785 = vmatpush3.bf16.msra.mxu0 %v10420_v2  ;;  %v5814_v2 = vld [vmem:[#allocation2 + $0x73] sm:$0xff]  ;;  %v5817_v62 = vld [vmem:[#allocation2 + $0x8b] sm:$0xff] }
 0x38b   : > { %9941 = vmatpush3.bf16.msra.mxu1 %v10421_v38  ;;  %9786 = vmatprep.subr.bf16.mxu0 %v10422_v48  ;;  %v4589_v38 = vpack.c.bf16 %v4560_v45, %v4559_v49  ;;  %v5844_v43 = vpack.c.bf16 %v5815_v27, %v5814_v2  ;;  %v10428_v20 = vld [vmem:[%s14738_s5 + $0xc8] sm:$0xff]   ;;  %v4590_v27 = vpack.c.bf16 %v4562_v47, %v4561_v4  ;;  %v10431_v49 = vld [vmem:[%s14738_s5 + $0x180] sm:$0xff]   ;;  %v4566_v2 = vld [vmem:[#allocation2 + $0x98] sm:$0xff] }
 0x38c   : > { %9942 = vmatprep.subr.bf16.mxu1 %v10423_v61  ;;  %v5816_v45 = vld [vmem:[#allocation2 + $0x83] sm:$0xff]  ;;  %v5822_v47 = vld [vmem:[#allocation2 + $0xb3] sm:$0xff] }
 0x38d   : > { %v5845_v26 = vpack.c.bf16 %v5817_v62, %v5816_v45  ;;  %v4565_v62 = vld [vmem:[#allocation2 + $0x90] sm:$0xff]  ;;  %v15025_v45 = vmax.f32 %v12907_v52, 0.0  ;;  %v15028_v52 = vmax.f32 %v13038_v30, 0.0  ;;  %v15031_v30 = vmax.f32 %v13130_v12, 0.0 }
 0x38e   : > { %9787 = vmatpush3.bf16.msra.mxu0 %v10422_v48  ;;  %v10429_v48 = vld [vmem:[%s14738_s5 + $0x188] sm:$0xff]  }
 0x38f   : > { %9943 = vmatpush3.bf16.msra.mxu1 %v10423_v61  ;;  %9788 = vmatprep.subr.bf16.mxu0 %v10424_v57  ;;  %v4564_v61 = vld [vmem:[#allocation2 + $0x88] sm:$0xff]  ;;  %v10484_v9 = vpack.c.bf16 %v15031_v30, %v15030_v17 }
 0x390   : > { %9944 = vmatprep.subr.bf16.mxu1 %v10425_v23  ;;  %9701 = vmatmul.mubr.bf16.gmra.mxu0 %v4588_v42  ;;  %v10436_v17 = vld [vmem:[%s14738_s5 + $0x168] sm:$0xff]  }
 0x391   : > { %9857 = vmatmul.mubr.bf16.gmra.mxu1 %v5843_v10  ;;  %9704 = vmatprep.mubr.bf16.mxu0 %v4589_v38  ;;  %v10430_v10 = vld [vmem:[%s14738_s5 + $0xc0] sm:$0xff]   ;;  %v5821_v38 = vld [vmem:[#allocation2 + $0xab] sm:$0xff] }
 0x392   : > { %9860 = vmatprep.mubr.bf16.mxu1 %v5844_v43  ;;  %9789 = vmatpush3.bf16.msra.mxu0 %v10424_v57  ;;  %v5818_v57 = vld [vmem:[#allocation2 + $0x93] sm:$0xff]  ;;  %v10437_v30 = vld [vmem:[%s14738_s5 + $0x228] sm:$0xff]  }
 0x393   : > { %9945 = vmatpush3.bf16.msra.mxu1 %v10425_v23  ;;  %9790 = vmatprep.subr.bf16.mxu0 %v10426_v14  ;;  %v4591_v23 = vpack.c.bf16 %v4564_v61, %v4563_v8  ;;  %v5846_v42 = vpack.c.bf16 %v5819_v28, %v5818_v57  ;;  %v13405_v43 = vld [vmem:[%s14738_s5 + $0x178] sm:$0xff]   ;;  %v5820_v61 = vld [vmem:[#allocation2 + $0xa3] sm:$0xff]  ;;  %v4592_v28 = vpack.c.bf16 %v4566_v2, %v4565_v62  ;;  %v4569_v57 = vld [vmem:[#allocation2 + $0xb0] sm:$0xff] }
 0x394   : > { %9946 = vmatprep.subr.bf16.mxu1 %v10427_v22  ;;  %v4572_v8 = vld [vmem:[#allocation2 + $0xc8] sm:$0xff]  ;;  %v4575_v62 = vld [vmem:[#allocation2 + $0xe0] sm:$0xff] }
 0x396   : > { %9791 = vmatpush3.bf16.msra.mxu0 %v10426_v14  ;;  %v13410_v14 = vld [vmem:[%s14738_s5 + $0x238] sm:$0xff]  }
 0x397   : > { %9947 = vmatpush3.bf16.msra.mxu1 %v10427_v22  ;;  %9792 = vmatprep.subr.bf16.mxu0 %v10428_v20  ;;  %v4568_v22 = vld [vmem:[#allocation2 + $0xa8] sm:$0xff] }
 0x398   : > { %9948 = vmatprep.subr.bf16.mxu1 %v10429_v48  ;;  %9705 = vmatmul.mubr.bf16.gmra.mxu0 %v4590_v27  ;;  %v10475_v27 = vpack.c.bf16 %v15025_v45, %v5822_v47  ;;  %v4573_v47 = vld [vmem:[#allocation2 + $0xd0] sm:$0xff]  ;;  %v5471_v45 = vld [vmem:[#allocation2 + $0x1a] sm:$0xff] }
 0x399   : > { %9861 = vmatmul.mubr.bf16.gmra.mxu1 %v5845_v26  ;;  %9708 = vmatprep.mubr.bf16.mxu0 %v4591_v23  ;;  %v4570_v26 = vld [vmem:[#allocation2 + $0xb8] sm:$0xff] }
 0x39a   : > { %9864 = vmatprep.mubr.bf16.mxu1 %v5846_v42  ;;  %9793 = vmatpush3.bf16.msra.mxu0 %v10428_v20  ;;  %v5847_v20 = vpack.c.bf16 %v5821_v38, %v5820_v61  ;;  %v4594_v23 = vpack.c.bf16 %v4570_v26, %v4569_v57  ;;  %v4571_v42 = vld [vmem:[#allocation2 + $0xc0] sm:$0xff]  ;;  %v15029_v38 = vmax.f32 %v13069_v21, 0.0  ;;  %v15032_v21 = vmax.f32 %v13168_v53, 0.0 }
 0x39b   : > { %9949 = vmatpush3.bf16.msra.mxu1 %v10429_v48  ;;  %9794 = vmatprep.subr.bf16.mxu0 %v10430_v10  ;;  %v4567_v48 = vld [vmem:[#allocation2 + $0xa0] sm:$0xff]  ;;  %v15033_v61 = vmax.f32 %v13199_v15, 0.0  ;;  %v15037_v53 = vmax.f32 %v13257_v56, 0.0  ;;  %v15038_v15 = vmax.f32 %v13282_v1, 0.0  ;;  %v4600_v26 = vpack.c.bf16 %v4582_v59, %v4581_v36  ;;  %v5470_v56 = vld [vmem:[#allocation2 + $0x12] sm:$0xff] }
 0x39c   : > { %9950 = vmatprep.subr.bf16.mxu1 %v10431_v49  ;;  %v4593_v4 = vpack.c.bf16 %v4568_v22, %v4567_v48  ;;  %v10481_v50 = vpack.c.bf16 %v15029_v38, %v15028_v52  ;;  %v4576_v22 = vld [vmem:[#allocation2 + $0xe8] sm:$0xff]  ;;  %v4579_v48 = vld [vmem:[#allocation2 + $0x100] sm:$0xff]  ;;  %v5506_v57 = vpack.c.bf16 %v5471_v45, %v5470_v56  ;;  %v15040_v1 = vmax.f32 %v13324_v54, 0.0  ;;  %v13477_v52 = vpop.f32.mrf.mxu1  ;;  %v5474_v38 = vld [vmem:[#allocation2 + $0x32] sm:$0xff] }
 0x39d   : > { %v4597_v39 = vpack.c.bf16 %v4576_v22, %v4575_v62  ;;  %v10487_v44 = vpack.c.bf16 %v15033_v61, %v15032_v21  ;;  %v10490_v16 = vpack.c.bf16 %v15037_v53, %v15036_v63  ;;  %15042 = vst [vmem:[#allocation45_spill] sm:$0xff] %v13477_v52  ;;  %v6470_v54 = vld [vmem:[#allocation2 + $0x44] sm:$0xff]  ;;  %v10435_v22 = vld [vmem:[%s14738_s5 + $0x230] sm:$0xff]   ;;  %v5479_v61 = vld [vmem:[#allocation2 + $0x5a] sm:$0xff] }
 0x39e   : > { %9795 = vmatpush3.bf16.msra.mxu0 %v10430_v10  ;;  %v4595_v10 = vpack.c.bf16 %v4572_v8, %v4571_v42  ;;  %v6466_v8 = vld [vmem:[#allocation2 + $0x24] sm:$0xff]  ;;  %v6469_v42 = vld [vmem:[#allocation2 + $0x3c] sm:$0xff]  ;;  %v6479_v56 = vld [vmem:[#allocation2 + $0x8c] sm:$0xff] }
 0x39f   : > { %9951 = vmatpush3.bf16.msra.mxu1 %v10431_v49  ;;  %9884 = vmatprep.subr.bf16.mxu0 %v13405_v43  ;;  %v15026_v49 = vmax.f32 %v12950_v35, 0.0  ;;  %v4596_v35 = vpack.c.bf16 %v4574_v29, %v4573_v47  ;;  %v10434_v29 = vld [vmem:[%s14738_s5 + $0x170] sm:$0xff]   ;;  %v10438_v63 = vld [vmem:[%s14738_s5 + $0x160] sm:$0xff]   ;;  %v10440_v59 = vld [vmem:[%s14738_s5 + $0x158] sm:$0xff]  }
 0x3a0   : > { %10040 = vmatprep.subr.bf16.mxu1 %v13410_v14  ;;  %9709 = vmatmul.mubr.bf16.gmra.mxu0 %v4592_v28  ;;  %v4580_v28 = vld [vmem:[#allocation2 + $0x108] sm:$0xff]  ;;  %v10439_v53 = vld [vmem:[%s14738_s5 + $0x220] sm:$0xff]   ;;  %v10441_v45 = vld [vmem:[%s14738_s5 + $0x218] sm:$0xff]  }
 0x3a1   : > { %9865 = vmatmul.mubr.bf16.gmra.mxu1 %v5847_v20  ;;  %9712 = vmatprep.mubr.bf16.mxu0 %v4593_v4  ;;  %v10478_v2 = vpack.c.bf16 %v15027_v31, %v15026_v49  ;;  %v4577_v20 = vld [vmem:[#allocation2 + $0xf0] sm:$0xff]  ;;  %v4599_v12 = vpack.c.bf16 %v4580_v28, %v4579_v48  ;;  %v15039_v4 = vmax.f32 %v13304_v19, 0.0  ;;  %v10496_v19 = vpack.c.bf16 %v15041_v51, %v15040_v1  ;;  %v5472_v31 = vld [vmem:[#allocation2 + $0x22] sm:$0xff] }
 0x3a2   : > { %10476 = vmatprep.mubr.msk.bf16.mxu1 %vm10474_vm3, %v10475_v27  ;;  %v4598_v34 = vpack.c.bf16 %v4578_v37, %v4577_v20  ;;  %v6467_v27 = vld [vmem:[#allocation2 + $0x2c] sm:$0xff]  ;;  %v5507_v7 = vpack.c.bf16 %v5473_v11, %v5472_v31  ;;  %v6472_v37 = vld [vmem:[#allocation2 + $0x54] sm:$0xff] }
 0x3a3   : > { %v10493_v41 = vpack.c.bf16 %v15039_v4, %v15038_v15  ;;  %v6471_v49 = vld [vmem:[#allocation2 + $0x4c] sm:$0xff] }
 0x3a4   : > { %v13481_v32 = vpack.c.bf16 %v6471_v49, %v6470_v54  ;;  %v5477_v62 = vld [vmem:[#allocation2 + $0x4a] sm:$0xff]  ;;  %v5478_v20 = vld [vmem:[#allocation2 + $0x52] sm:$0xff] }
 0x3a5   : > { %v5510_v48 = vpack.c.bf16 %v5479_v61, %v5478_v20  ;;  %v5481_v4 = vld [vmem:[#allocation2 + $0x6a] sm:$0xff]  ;;  %v6480_v61 = vld [vmem:[#allocation2 + $0x94] sm:$0xff] }
 0x3a6   : > { %v5486_v20 = vld [vmem:[#allocation2 + $0x92] sm:$0xff] }
 0x3a8   : > { %9713 = vmatmul.mubr.bf16.gmra.mxu0 %v4594_v23  ;;  %v13466_v23 = vpack.c.bf16 %v6467_v27, %v6466_v8  ;;  %v5480_v8 = vld [vmem:[#allocation2 + $0x62] sm:$0xff] }
 0x3a9   : > { %10479 = vmatmul.mubr.msk.bf16.gmra.mxu1 %vm10477_vm10, %v10478_v2  ;;  %9716 = vmatprep.mubr.bf16.mxu0 %v4595_v10  ;;  %v5475_v10 = vld [vmem:[#allocation2 + $0x3a] sm:$0xff] }
 0x3aa   : > { %10482 = vmatprep.mubr.msk.bf16.mxu1 %vm10480_vm12, %v10481_v50  ;;  %v6468_v2 = vld [vmem:[#allocation2 + $0x34] sm:$0xff]  ;;  %v5508_v50 = vpack.c.bf16 %v5475_v10, %v5474_v38  ;;  %v6478_v10 = vld [vmem:[#allocation2 + $0x84] sm:$0xff] }
 0x3ab   : > { %v13479_v5 = vpack.c.bf16 %v6469_v42, %v6468_v2  ;;  %v5482_v42 = vld [vmem:[#allocation2 + $0x72] sm:$0xff]  ;;  %v13539_v31 = vpack.c.bf16 %v6479_v56, %v6478_v10  ;;  %v5488_v10 = vld [vmem:[#allocation2 + $0xa2] sm:$0xff] }
 0x3ac   : > { %v10442_v2 = vld [vmem:[%s14738_s5 + $0x150] sm:$0xff]   ;;  %v13582_v56 = vld [vmem:[%s14738_s5 + $0x1f8] sm:$0xff]  }
 0x3b0   : > { %9717 = vmatmul.mubr.bf16.gmra.mxu0 %v4596_v35 }
 0x3b1   : > { %10485 = vmatmul.mubr.msk.bf16.gmra.mxu1 %vm10483_vm13, %v10484_v9  ;;  %9720 = vmatprep.mubr.bf16.mxu0 %v4597_v39  ;;  %v6473_v39 = vld [vmem:[#allocation2 + $0x5c] sm:$0xff] }
 0x3b2   : > { %10488 = vmatprep.mubr.msk.bf16.mxu1 %vm10486_vm8, %v10487_v44  ;;  %v6475_v44 = vld [vmem:[#allocation2 + $0x6c] sm:$0xff]  ;;  %v13507_v28 = vpack.c.bf16 %v6473_v39, %v6472_v37  ;;  %v5487_v39 = vld [vmem:[#allocation2 + $0x9a] sm:$0xff] }
 0x3b8   : > { %9721 = vmatmul.mubr.bf16.gmra.mxu0 %v4598_v34  ;;  %v13489_v47 = vpop.f32.mrf.mxu0  ;;  %v6474_v34 = vld [vmem:[#allocation2 + $0x64] sm:$0xff] }
 0x3b9   : > { %10491 = vmatmul.mubr.msk.bf16.gmra.mxu1 %vm10489_vm0, %v10490_v16  ;;  %9724 = vmatprep.mubr.bf16.mxu0 %v4599_v12  ;;  %v13491_v35 = vpop.f32.mrf.mxu1  ;;  %v13509_v12 = vpack.c.bf16 %v6475_v44, %v6474_v34  ;;  %v6482_v34 = vld [vmem:[#allocation2 + $0xa4] sm:$0xff] }
 0x3ba   : > { %10494 = vmatprep.mubr.msk.bf16.mxu1 %vm10492_vm6, %v10493_v41  ;;  %v13503_v9 = vpop.f32.mrf.mxu0  ;;  %v6477_v41 = vld [vmem:[#allocation2 + $0x7c] sm:$0xff] }
 0x3bb   : > { %v13505_v21 = vpop.f32.mrf.mxu1 }
 0x3bc   : > { %v13517_v16 = vpop.f32.mrf.mxu0 }
 0x3bd   : > { %v13519_v15 = vpop.f32.mrf.mxu1 }
 0x3be   : > { %v13529_v27 = vpop.f32.mrf.mxu0 }
 0x3bf   : > { %15043 = vst [vmem:[#allocation46_spill] sm:$0xff] %v13529_v27  ;;  %v13531_v36 = vpop.f32.mrf.mxu1 }
 0x3c0   : > { %9725 = vmatmul.mubr.bf16.gmra.mxu0 %v4600_v26  ;;  %15044 = vst [vmem:[#allocation47_spill] sm:$0xff] %v13531_v36  ;;  %v5483_v26 = vld [vmem:[#allocation2 + $0x7a] sm:$0xff] }
 0x3c1   : > { %10497 = vmatmul.mubr.msk.bf16.gmra.mxu1 %vm10495_vm14, %v10496_v19  ;;  %9796 = vmatprep.mubr.bf16.mxu0 %v5506_v57  ;;  %v6476_v57 = vld [vmem:[#allocation2 + $0x74] sm:$0xff]  ;;  %v5511_v19 = vpack.c.bf16 %v5481_v4, %v5480_v8  ;;  %v5512_v49 = vpack.c.bf16 %v5483_v26, %v5482_v42  ;;  %v10447_v4 = vld [vmem:[%s14738_s5 + $0x200] sm:$0xff]   ;;  %v6487_v42 = vld [vmem:[#allocation2 + $0xcc] sm:$0xff] }
 0x3c2   : > { %9952 = vmatprep.mubr.bf16.mxu1 %v13466_v23  ;;  %v13537_v11 = vpack.c.bf16 %v6477_v41, %v6476_v57  ;;  %v6485_v26 = vld [vmem:[#allocation2 + $0xbc] sm:$0xff] }
 0x3c3   : > { %v7132_v36 = vld [vmem:[#allocation2 + $0x36] sm:$0xff] }
 0x3c8   : > { %9797 = vmatmul.mubr.bf16.vlgmr.msra.gmra.mxu0 %v5507_v7  ;;  %v13533_v1 = vpop.f32.mrf.mxu0  ;;  %v10443_v7 = vld [vmem:[%s14738_s5 + $0x210] sm:$0xff]  }
 0x3c9   : > { %9953 = vmatmul.mubr.bf16.vlgmr.msra.gmra.mxu1 %v13479_v5  ;;  %9800 = vmatprep.mubr.bf16.mxu0 %v5508_v50  ;;  %v13535_v51 = vpop.f32.mrf.mxu1  ;;  %v5485_v50 = vld [vmem:[#allocation2 + $0x8a] sm:$0xff] }
 0x3ca   : > { %9956 = vmatprep.mubr.bf16.mxu1 %v13481_v32  ;;  %9885 = vmatpush3.bf16.msra.mxu0 %v13405_v43  ;;  %v5476_v43 = vld [vmem:[#allocation2 + $0x42] sm:$0xff]  ;;  %v13549_v38 = vpop.f32.mrf.mxu0 }
 0x3cb   : > { %10041 = vmatpush3.bf16.msra.mxu1 %v13410_v14  ;;  %9886 = vmatprep.subr.bf16.mxu0 %v10434_v29  ;;  %v5509_v14 = vpack.c.bf16 %v5477_v62, %v5476_v43  ;;  %v13551_v54 = vpop.f32.mrf.mxu1  ;;  %v10445_v62 = vld [vmem:[%s14738_s5 + $0x208] sm:$0xff]  }
 0x3cc   : > { %10042 = vmatprep.subr.bf16.mxu1 %v10435_v22  ;;  %v13559_v44 = vpop.f32.mrf.mxu0 }
 0x3cd   : > { %v13561_v43 = vpop.f32.mrf.mxu1 }
 0x3ce   : > { %9887 = vmatpush3.bf16.msra.mxu0 %v10434_v29  ;;  %v6481_v29 = vld [vmem:[#allocation2 + $0x9c] sm:$0xff]  ;;  %v13575_v41 = vpop.f32.mrf.mxu0 }
 0x3cf   : > { %10043 = vmatpush3.bf16.msra.mxu1 %v10435_v22  ;;  %9888 = vmatprep.subr.bf16.mxu0 %v10436_v17  ;;  %v10444_v22 = vld [vmem:[%s14738_s5 + $0x148] sm:$0xff]   ;;  %15045 = vst [vmem:[#allocation48_spill] sm:$0xff] %v13575_v41 }
 0x3d0   : > { %10044 = vmatprep.subr.bf16.mxu1 %v10437_v30  ;;  %9801 = vmatmul.mubr.bf16.gmra.mxu0 %v5509_v14  ;;  %v13563_v14 = vpack.c.bf16 %v6481_v29, %v6480_v61  ;;  %v6486_v29 = vld [vmem:[#allocation2 + $0xc4] sm:$0xff]  ;;  %v6489_v61 = vld [vmem:[#allocation2 + $0xdc] sm:$0xff] }
 0x3d1   : > { %9957 = vmatmul.mubr.bf16.gmra.mxu1 %v13507_v28  ;;  %9804 = vmatprep.mubr.bf16.mxu0 %v5510_v48  ;;  %v5514_v48 = vpack.c.bf16 %v5487_v39, %v5486_v20 }
 0x3d2   : > { %9960 = vmatprep.mubr.bf16.mxu1 %v13509_v12  ;;  %9889 = vmatpush3.bf16.msra.mxu0 %v10436_v17  ;;  %v6483_v17 = vld [vmem:[#allocation2 + $0xac] sm:$0xff] }
 0x3d3   : > { %10045 = vmatpush3.bf16.msra.mxu1 %v10437_v30  ;;  %9890 = vmatprep.subr.bf16.mxu0 %v10438_v63  ;;  %v5484_v30 = vld [vmem:[#allocation2 + $0x82] sm:$0xff] }
 0x3d4   : > { %10046 = vmatprep.subr.bf16.mxu1 %v10439_v53  ;;  %v5513_v37 = vpack.c.bf16 %v5485_v50, %v5484_v30  ;;  %v5490_v50 = vld [vmem:[#allocation2 + $0xb2] sm:$0xff]  ;;  %v5493_v30 = vld [vmem:[#allocation2 + $0xca] sm:$0xff] }
 0x3d6   : > { %9891 = vmatpush3.bf16.msra.mxu0 %v10438_v63  ;;  %v13565_v63 = vpack.c.bf16 %v6483_v17, %v6482_v34  ;;  %v5495_v34 = vld [vmem:[#allocation2 + $0xda] sm:$0xff] }
 0x3d7   : > { %10047 = vmatpush3.bf16.msra.mxu1 %v10439_v53  ;;  %9892 = vmatprep.subr.bf16.mxu0 %v10440_v59  ;;  %v10446_v53 = vld [vmem:[%s14738_s5 + $0x140] sm:$0xff]  }
 0x3d8   : > { %10048 = vmatprep.subr.bf16.mxu1 %v10441_v45  ;;  %9805 = vmatmul.mubr.bf16.gmra.mxu0 %v5511_v19  ;;  %v13584_v8 = vpop.f32.mrf.mxu0  ;;  %v5491_v19 = vld [vmem:[#allocation2 + $0xba] sm:$0xff] }
 0x3d9   : > { %9961 = vmatmul.mubr.bf16.gmra.mxu1 %v13537_v11  ;;  %9808 = vmatprep.mubr.bf16.mxu0 %v5512_v49  ;;  %v6484_v49 = vld [vmem:[#allocation2 + $0xb4] sm:$0xff] }
 0x3da   : > { %9964 = vmatprep.mubr.bf16.mxu1 %v13539_v31  ;;  %9893 = vmatpush3.bf16.msra.mxu0 %v10440_v59  ;;  %v13577_v59 = vpop.f32.mrf.mxu1  ;;  %v13593_v39 = vpop.f32.mrf.mxu0 }
 0x3db   : > { %10049 = vmatpush3.bf16.msra.mxu1 %v10441_v45  ;;  %9894 = vmatprep.subr.bf16.mxu0 %v10442_v2  ;;  %15046 = vst [vmem:[#allocation49_spill] sm:$0xff] %v13577_v59  ;;  %v5489_v45 = vld [vmem:[#allocation2 + $0xaa] sm:$0xff]  ;;  %v7133_v59 = vld [vmem:[#allocation2 + $0x3e] sm:$0xff] }
 0x3dc   : > { %10050 = vmatprep.subr.bf16.mxu1 %v10443_v7  ;;  %v13586_v57 = vpop.f32.mrf.mxu1 }
 0x3de   : > { %9895 = vmatpush3.bf16.msra.mxu0 %v10442_v2  ;;  %v5515_v2 = vpack.c.bf16 %v5489_v45, %v5488_v10  ;;  %v13595_v17 = vpop.f32.mrf.mxu1 }
 0x3df   : > { %10051 = vmatpush3.bf16.msra.mxu1 %v10443_v7  ;;  %9896 = vmatprep.subr.bf16.mxu0 %v10444_v22  ;;  %v13588_v7 = vpack.c.bf16 %v6485_v26, %v6484_v49 }
 0x3e0   : > { %10052 = vmatprep.subr.bf16.mxu1 %v10445_v62  ;;  %9809 = vmatmul.mubr.bf16.gmra.mxu0 %v5513_v37  ;;  %v13599_v37 = vpop.f32.mrf.mxu0  ;;  %v13601_v20 = vpop.f32.mrf.mxu1 }
 0x3e1   : > { %9965 = vmatmul.mubr.bf16.gmra.mxu1 %v13563_v14  ;;  %9812 = vmatprep.mubr.bf16.mxu0 %v5514_v48  ;;  %v6491_v48 = vld [vmem:[#allocation2 + $0xec] sm:$0xff] }
 0x3e2   : > { %9968 = vmatprep.mubr.bf16.mxu1 %v13565_v63  ;;  %9897 = vmatpush3.bf16.msra.mxu0 %v10444_v22  ;;  %v5516_v22 = vpack.c.bf16 %v5491_v19, %v5490_v50  ;;  %v5494_v19 = vld [vmem:[#allocation2 + $0xd2] sm:$0xff]  ;;  %v13609_v50 = vpop.f32.mrf.mxu1 }
 0x3e3   : > { %10053 = vmatpush3.bf16.msra.mxu1 %v10445_v62  ;;  %9898 = vmatprep.subr.bf16.mxu0 %v10446_v53  ;;  %v13590_v62 = vpack.c.bf16 %v6487_v42, %v6486_v29  ;;  %v6490_v42 = vld [vmem:[#allocation2 + $0xe4] sm:$0xff]  ;;  %v5518_v10 = vpack.c.bf16 %v5495_v34, %v5494_v19  ;;  %15048 = vst [vmem:[#allocation51_spill] sm:$0xff] %v13609_v50  ;;  %v6495_v34 = vld [vmem:[#allocation2 + $0x10c] sm:$0xff] }
 0x3e4   : > { %10054 = vmatprep.subr.bf16.mxu1 %v10447_v4  ;;  %v13605_v49 = vpack.c.bf16 %v6491_v48, %v6490_v42  ;;  %v5496_v48 = vld [vmem:[#allocation2 + $0xe2] sm:$0xff]  ;;  %v13623_v18 = vpack.c.bf16 %v6495_v34, %v6494_v55 }
 0x3e6   : > { %9899 = vmatpush3.bf16.msra.mxu0 %v10446_v53  ;;  %v5492_v53 = vld [vmem:[#allocation2 + $0xc2] sm:$0xff] }
 0x3e7   : > { %10055 = vmatpush3.bf16.msra.mxu1 %v10447_v4  ;;  %9988 = vmatprep.subr.bf16.mxu0 %v13582_v56  ;;  %v6488_v4 = vld [vmem:[#allocation2 + $0xd4] sm:$0xff]  ;;  %v5517_v45 = vpack.c.bf16 %v5493_v30, %v5492_v53  ;;  %v5497_v30 = vld [vmem:[#allocation2 + $0xea] sm:$0xff] }
 0x3e8   : > { %9813 = vmatmul.mubr.bf16.gmra.mxu0 %v5515_v2  ;;  %v13603_v26 = vpack.c.bf16 %v6489_v61, %v6488_v4  ;;  %v13607_v2 = vpop.f32.mrf.mxu0  ;;  %v6493_v61 = vld [vmem:[#allocation2 + $0xfc] sm:$0xff]  ;;  %v6492_v4 = vld [vmem:[#allocation2 + $0xf4] sm:$0xff] }
 0x3e9   : > { %9969 = vmatmul.mubr.bf16.gmra.mxu1 %v13588_v7  ;;  %9816 = vmatprep.mubr.bf16.mxu0 %v5516_v22  ;;  %15047 = vst [vmem:[#allocation50_spill] sm:$0xff] %v13607_v2  ;;  %v13615_v22 = vpop.f32.mrf.mxu1  ;;  %v5499_v53 = vld [vmem:[#allocation2 + $0xfa] sm:$0xff]  ;;  %v13621_v52 = vpack.c.bf16 %v6493_v61, %v6492_v4 }
 0x3ea   : > { %9972 = vmatprep.mubr.bf16.mxu1 %v13590_v62  ;;  %v13613_v29 = vpop.f32.mrf.mxu0  ;;  %v6496_v61 = vld [vmem:[#allocation2 + $0x114] sm:$0xff] }
 0x3eb   : > { %v13619_v42 = vpop.f32.mrf.mxu1  ;;  %v13635_v55 = vpack.c.bf16 %v6497_v3, %v6496_v61  ;;  %v7131_v61 = vld [vmem:[#allocation2 + $0x2e] sm:$0xff] }
 0x3ec   : > { %v13617_v19 = vpop.f32.mrf.mxu0 }
 0x3ed   : > { %v13629_v0 = vpop.f32.mrf.mxu1 }
 0x3ee   : > { %v13627_v40 = vpop.f32.mrf.mxu0 }
 0x3ef   : > { %v13633_v4 = vpop.f32.mrf.mxu1 }
 0x3f0   : > { %9817 = vmatmul.mubr.bf16.gmra.mxu0 %v5517_v45  ;;  %v5519_v45 = vpack.c.bf16 %v5497_v30, %v5496_v48  ;;  %v6499_v30 = vld [vmem:[#allocation2 + $0x12c] sm:$0xff]  ;;  %v13631_v48 = vpop.f32.mrf.mxu0  ;;  %15050 = vst [vmem:[#allocation53_spill] sm:$0xff] %v13633_v4  ;;  %v6134_v4 = vld [vmem:[#allocation2 + $0x14] sm:$0xff] }
 0x3f1   : > { %9973 = vmatmul.mubr.bf16.gmra.mxu1 %v13603_v26  ;;  %9820 = vmatprep.mubr.bf16.mxu0 %v5518_v10  ;;  %v5498_v10 = vld [vmem:[#allocation2 + $0xf2] sm:$0xff]  ;;  %15049 = vst [vmem:[#allocation52_spill] sm:$0xff] %v13631_v48 }
 0x3f2   : > { %9976 = vmatprep.mubr.bf16.mxu1 %v13605_v49  ;;  %v5520_v25 = vpack.c.bf16 %v5499_v53, %v5498_v10  ;;  %v13637_v53 = vpack.c.bf16 %v6499_v30, %v6498_v58  ;;  %v6501_v10 = vld [vmem:[#allocation2 + $0x13c] sm:$0xff] }
 0x3f3   : > { %v6135_v30 = vld [vmem:[#allocation2 + $0x1c] sm:$0xff] }
 0x3f4   : > { %v6170_v48 = vpack.c.bf16 %v6135_v30, %v6134_v4  ;;  %v7167_v4 = vpack.c.bf16 %v7133_v59, %v7132_v36  ;;  %v7134_v30 = vld [vmem:[#allocation2 + $0x46] sm:$0xff]  ;;  %v7139_v59 = vld [vmem:[#allocation2 + $0x6e] sm:$0xff] }
 0x3f5   : > { %v10450_v36 = vld [vmem:[%s14738_s5 + $0x1e8] sm:$0xff]  }
 0x3f8   : > { %9821 = vmatmul.mubr.bf16.gmra.mxu0 %v5519_v45  ;;  %v13639_v34 = vpop.f32.mrf.mxu0  ;;  %v6500_v45 = vld [vmem:[#allocation2 + $0x134] sm:$0xff] }
 0x3f9   : > { %9977 = vmatmul.mubr.bf16.gmra.mxu1 %v13621_v52  ;;  %9824 = vmatprep.mubr.bf16.mxu0 %v5520_v25  ;;  %v13641_v25 = vpop.f32.mrf.mxu1  ;;  %v6519_v58 = vpack.c.bf16 %v6501_v10, %v6500_v45  ;;  %v7135_v10 = vld [vmem:[#allocation2 + $0x4e] sm:$0xff] }
 0x3fa   : > { %9980 = vmatprep.mubr.bf16.mxu1 %v13623_v18  ;;  %v13647_v6 = vpop.f32.mrf.mxu0 }
 0x3fb   : > { %v13649_v3 = vpop.f32.mrf.mxu1 }
 0x3fc   : > { %v13651_v2 = vpop.f32.mrf.mxu0 }
 0x3fe   : > { %v13655_v41 = vpop.f32.mrf.mxu0 }
 0x3ff   : > { %15051 = vst [vmem:[#allocation54_spill] sm:$0xff] %v13655_v41  ;;  %v7144_v41 = vld [vmem:[#allocation2 + $0x96] sm:$0xff] }
 0x400   : > { %9825 = vmatmul.mubr.bf16.gmra.mxu0 %v13330_v60  ;;  %v7130_v60 = vld [vmem:[#allocation2 + $0x26] sm:$0xff] }
 0x401   : > { %9981 = vmatmul.mubr.bf16.gmra.mxu1 %v13635_v55  ;;  %9828 = vmatprep.mubr.bf16.mxu0 %v13355_v24  ;;  %v7166_v50 = vpack.c.bf16 %v7131_v61, %v7130_v60  ;;  %v13653_v24 = vpop.f32.mrf.mxu1  ;;  %v7168_v61 = vpack.c.bf16 %v7135_v10, %v7134_v30  ;;  %v7136_v60 = vld [vmem:[#allocation2 + $0x56] sm:$0xff] }
 0x402   : > { %9984 = vmatprep.mubr.bf16.mxu1 %v13637_v53 }
 0x403   : > { %v13657_v45 = vpop.f32.mrf.mxu1 }
 0x404   : > { %15052 = vst [vmem:[#allocation55_spill] sm:$0xff] %v13657_v45 }
 0x408   : > { %9829 = vmatmul.mubr.bf16.gmra.mxu0 %v5523_v13  ;;  %v13659_v46 = vpop.f32.mrf.mxu0  ;;  %v10449_v13 = vld [vmem:[%s14738_s5 + $0x1f0] sm:$0xff]  }
 0x409   : > { %9985 = vmatmul.mubr.bf16.gmra.mxu1 %v6519_v58  ;;  %9900 = vmatprep.mubr.bf16.mxu0 %v6170_v48  ;;  %v13661_v33 = vpop.f32.mrf.mxu1  ;;  %v7137_v58 = vld [vmem:[#allocation2 + $0x5e] sm:$0xff] }
 0x40a   : > { %10056 = vmatprep.mubr.bf16.mxu1 %v7166_v50  ;;  %15053 = vst [vmem:[#allocation56_spill] sm:$0xff] %v13661_v33  ;;  %v13668_v50 = vpop.f32.mrf.mxu0 }
 0x40b   : > { %v13670_v48 = vpop.f32.mrf.mxu1 }
 0x40c   : > { %15054 = vst [vmem:[#allocation57_spill] sm:$0xff] %v13670_v48  ;;  %v13676_v10 = vpop.f32.mrf.mxu0 }
 0x40d   : > { %15055 = vst [vmem:[#allocation58_spill] sm:$0xff] %v13676_v10 }
 0x410   : > { %9901 = vmatmul.mubr.bf16.vlgmr.msra.gmra.mxu0 %v13466_v23  ;;  %v13678_v23 = vpop.f32.mrf.mxu1 }
 0x411   : > { %10057 = vmatmul.mubr.bf16.vlgmr.msra.gmra.mxu1 %v7167_v4  ;;  %9904 = vmatprep.mubr.bf16.mxu0 %v13479_v5  ;;  %15056 = vst [vmem:[#allocation59_spill] sm:$0xff] %v13678_v23  ;;  %v7169_v5 = vpack.c.bf16 %v7137_v58, %v7136_v60  ;;  %v7138_v4 = vld [vmem:[#allocation2 + $0x66] sm:$0xff]  ;;  %v7141_v58 = vld [vmem:[#allocation2 + $0x7e] sm:$0xff] }
 0x412   : > { %10060 = vmatprep.mubr.bf16.mxu1 %v7168_v61  ;;  %9989 = vmatpush3.bf16.msra.mxu0 %v13582_v56  ;;  %v7170_v30 = vpack.c.bf16 %v7139_v59, %v7138_v4  ;;  %v10451_v56 = vld [vmem:[%s14738_s5 + $0x1e0] sm:$0xff]   ;;  %v13685_v61 = vpop.f32.mrf.mxu0  ;;  %v13687_v45 = vpop.f32.mrf.mxu1 }
 0x413   : > { %9990 = vmatprep.subr.bf16.mxu0 %v10449_v13  ;;  %15057 = vst [vmem:[#allocation60_spill] sm:$0xff] %v13685_v61  ;;  %15058 = vst [vmem:[#allocation61_spill] sm:$0xff] %v13687_v45 }
 0x416   : > { %9991 = vmatpush3.bf16.msra.mxu0 %v10449_v13  ;;  %v10452_v13 = vld [vmem:[%s14738_s5 + $0x1d8] sm:$0xff]  }
 0x417   : > { %9992 = vmatprep.subr.bf16.mxu0 %v10450_v36 }
 0x418   : > { %9905 = vmatmul.mubr.bf16.gmra.mxu0 %v13481_v32  ;;  %v13692_v59 = vpop.f32.mrf.mxu0  ;;  %v7143_v32 = vld [vmem:[#allocation2 + $0x8e] sm:$0xff] }
 0x419   : > { %10061 = vmatmul.mubr.bf16.gmra.mxu1 %v7169_v5  ;;  %9908 = vmatprep.mubr.bf16.mxu0 %v13507_v28  ;;  %15059 = vst [vmem:[#allocation62_spill] sm:$0xff] %v13692_v59  ;;  %v13694_v60 = vpop.f32.mrf.mxu1  ;;  %v7140_v5 = vld [vmem:[#allocation2 + $0x76] sm:$0xff]  ;;  %v7142_v28 = vld [vmem:[#allocation2 + $0x86] sm:$0xff] }
 0x41a   : > { %10064 = vmatprep.mubr.bf16.mxu1 %v7170_v30  ;;  %9993 = vmatpush3.bf16.msra.mxu0 %v10450_v36  ;;  %15060 = vst [vmem:[#allocation63_spill] sm:$0xff] %v13694_v60  ;;  %v7171_v4 = vpack.c.bf16 %v7141_v58, %v7140_v5  ;;  %v7172_v30 = vpack.c.bf16 %v7143_v32, %v7142_v28  ;;  %v10453_v36 = vld [vmem:[%s14738_s5 + $0x1d0] sm:$0xff]   ;;  %v13699_v45 = vpop.f32.mrf.mxu0  ;;  %v7145_v58 = vld [vmem:[#allocation2 + $0x9e] sm:$0xff] }
 0x41b   : > { %9994 = vmatprep.subr.bf16.mxu0 %v10451_v56  ;;  %15061 = vst [vmem:[#allocation64_spill] sm:$0xff] %v13699_v45  ;;  %v13701_v61 = vpop.f32.mrf.mxu1  ;;  %v7147_v28 = vld [vmem:[#allocation2 + $0xae] sm:$0xff]  ;;  %v7173_v27 = vpack.c.bf16 %v7145_v58, %v7144_v41  ;;  %v7148_v58 = vld [vmem:[#allocation2 + $0xb6] sm:$0xff] }
 0x41c   : > { %15062 = vst [vmem:[#allocation65_spill] sm:$0xff] %v13701_v61  ;;  %v13708_v32 = vpop.f32.mrf.mxu0  ;;  %v7146_v61 = vld [vmem:[#allocation2 + $0xa6] sm:$0xff] }
 0x41d   : > { %15063 = vst [vmem:[#allocation66_spill] sm:$0xff] %v13708_v32  ;;  %v13710_v5 = vpop.f32.mrf.mxu1 }
 0x41e   : > { %9995 = vmatpush3.bf16.msra.mxu0 %v10451_v56  ;;  %v10454_v56 = vld [vmem:[%s14738_s5 + $0x1c8] sm:$0xff]   ;;  %15064 = vst [vmem:[#allocation67_spill] sm:$0xff] %v13710_v5 }
 0x41f   : > { %9996 = vmatprep.subr.bf16.mxu0 %v10452_v13  ;;  %v7150_v5 = vld [vmem:[#allocation2 + $0xc6] sm:$0xff] }
 0x420   : > { %9909 = vmatmul.mubr.bf16.gmra.mxu0 %v13509_v12  ;;  %v7174_v12 = vpack.c.bf16 %v7147_v28, %v7146_v61  ;;  %v7149_v61 = vld [vmem:[#allocation2 + $0xbe] sm:$0xff] }
 0x421   : > { %10065 = vmatmul.mubr.bf16.gmra.mxu1 %v7171_v4  ;;  %9912 = vmatprep.mubr.bf16.mxu0 %v13537_v11  ;;  %v10455_v11 = vld [vmem:[%s14738_s5 + $0x1c0] sm:$0xff]   ;;  %v13717_v4 = vpop.f32.mrf.mxu1 }
 0x422   : > { %10068 = vmatprep.mubr.bf16.mxu1 %v7172_v30  ;;  %9997 = vmatpush3.bf16.msra.mxu0 %v10452_v13  ;;  %v13715_v13 = vpop.f32.mrf.mxu0  ;;  %15066 = vst [vmem:[#allocation69_spill] sm:$0xff] %v13717_v4  ;;  %v7175_v4 = vpack.c.bf16 %v7149_v61, %v7148_v58  ;;  %v7157_v58 = vld [vmem:[#allocation2 + $0xfe] sm:$0xff] }
 0x423   : > { %9998 = vmatprep.subr.bf16.mxu0 %v10453_v36  ;;  %15065 = vst [vmem:[#allocation68_spill] sm:$0xff] %v13715_v13 }
 0x426   : > { %9999 = vmatpush3.bf16.msra.mxu0 %v10453_v36  ;;  %v7151_v36 = vld [vmem:[#allocation2 + $0xce] sm:$0xff] }
 0x427   : > { %10000 = vmatprep.subr.bf16.mxu0 %v10454_v56 }
 0x428   : > { %9913 = vmatmul.mubr.bf16.gmra.mxu0 %v13539_v31  ;;  %v13721_v30 = vpop.f32.mrf.mxu0 }
 0x429   : > { %10069 = vmatmul.mubr.bf16.gmra.mxu1 %v7173_v27  ;;  %9916 = vmatprep.mubr.bf16.mxu0 %v13563_v14  ;;  %15067 = vst [vmem:[#allocation70_spill] sm:$0xff] %v13721_v30  ;;  %v13723_v41 = vpop.f32.mrf.mxu1  ;;  %v7176_v27 = vpack.c.bf16 %v7151_v36, %v7150_v5 }
 0x42a   : > { %10072 = vmatprep.mubr.bf16.mxu1 %v7174_v12  ;;  %15068 = vst [vmem:[#allocation71_spill] sm:$0xff] %v13723_v41  ;;  %10001 = vmatpush3.bf16.msra.mxu0 %v10454_v56  ;;  %v13725_v28 = vpop.f32.mrf.mxu0  ;;  %v7153_v56 = vld [vmem:[#allocation2 + $0xde] sm:$0xff]  ;;  %v7155_v12 = vld [vmem:[#allocation2 + $0xee] sm:$0xff]  ;;  %v7152_v41 = vld [vmem:[#allocation2 + $0xd6] sm:$0xff] }
 0x42b   : > { %10002 = vmatprep.subr.bf16.mxu0 %v10455_v11  ;;  %15069 = vst [vmem:[#allocation72_spill] sm:$0xff] %v13725_v28  ;;  %v13727_v13 = vpop.f32.mrf.mxu1  ;;  %v7177_v61 = vpack.c.bf16 %v7153_v56, %v7152_v41  ;;  %v7159_v56 = vld [vmem:[#allocation2 + $0x10e] sm:$0xff] }
 0x42c   : > { %15070 = vst [vmem:[#allocation73_spill] sm:$0xff] %v13727_v13  ;;  %v13731_v31 = vpop.f32.mrf.mxu0 }
 0x42d   : > { %15071 = vst [vmem:[#allocation74_spill] sm:$0xff] %v13731_v31  ;;  %v13733_v14 = vpop.f32.mrf.mxu1 }
 0x42e   : > { %10003 = vmatpush3.bf16.msra.mxu0 %v10455_v11  ;;  %15072 = vst [vmem:[#allocation75_spill] sm:$0xff] %v13733_v14  ;;  %v13735_v28 = vpop.f32.mrf.mxu0  ;;  %v7154_v11 = vld [vmem:[#allocation2 + $0xe6] sm:$0xff] }
 0x42f   : > { %15073 = vst [vmem:[#allocation76_spill] sm:$0xff] %v13735_v28  ;;  %v13737_v13 = vpop.f32.mrf.mxu1  ;;  %v7178_v5 = vpack.c.bf16 %v7155_v12, %v7154_v11  ;;  %v7156_v12 = vld [vmem:[#allocation2 + $0xf6] sm:$0xff]  ;;  %v6802_v14 = vld [vmem:[#allocation2 + $0x45] sm:$0xff] }
 0x430   : > { %9917 = vmatmul.mubr.bf16.gmra.mxu0 %v13565_v63  ;;  %15074 = vst [vmem:[#allocation77_spill] sm:$0xff] %v13737_v13 }
 0x431   : > { %10073 = vmatmul.mubr.bf16.gmra.mxu1 %v7175_v4  ;;  %9920 = vmatprep.mubr.bf16.mxu0 %v13588_v7 }
 0x432   : > { %10076 = vmatprep.mubr.bf16.mxu1 %v7176_v27 }
 0x438   : > { %v13739_v36 = vpop.f32.mrf.mxu0  ;;  %9921 = vmatmul.mubr.bf16.gmra.mxu0 %v13590_v62  ;;  %v7179_v62 = vpack.c.bf16 %v7157_v58, %v7156_v12  ;;  %v7163_v12 = vld [vmem:[#allocation2 + $0x12e] sm:$0xff] }
 0x439   : > { %15075 = vst [vmem:[#allocation78_spill] sm:$0xff] %v13739_v36  ;;  %v13741_v63 = vpop.f32.mrf.mxu1  ;;  %10077 = vmatmul.mubr.bf16.gmra.mxu1 %v7177_v61  ;;  %9924 = vmatprep.mubr.bf16.mxu0 %v13603_v26  ;;  %v7158_v61 = vld [vmem:[#allocation2 + $0x106] sm:$0xff] }
 0x43a   : > { %15076 = vst [vmem:[#allocation79_spill] sm:$0xff] %v13741_v63  ;;  %10080 = vmatprep.mubr.bf16.mxu1 %v7178_v5  ;;  %v13745_v7 = vpop.f32.mrf.mxu0  ;;  %v7180_v28 = vpack.c.bf16 %v7159_v56, %v7158_v61  ;;  %v7162_v56 = vld [vmem:[#allocation2 + $0x126] sm:$0xff]  ;;  %v7160_v61 = vld [vmem:[#allocation2 + $0x116] sm:$0xff] }
 0x43b   : > { %15077 = vst [vmem:[#allocation80_spill] sm:$0xff] %v13745_v7  ;;  %v13747_v4 = vpop.f32.mrf.mxu1 }
 0x43c   : > { %15078 = vst [vmem:[#allocation81_spill] sm:$0xff] %v13747_v4  ;;  %v13749_v27 = vpop.f32.mrf.mxu0 }
 0x43d   : > { %15079 = vst [vmem:[#allocation82_spill] sm:$0xff] %v13749_v27  ;;  %v13751_v41 = vpop.f32.mrf.mxu1 }
 0x43e   : > { %15080 = vst [vmem:[#allocation83_spill] sm:$0xff] %v13751_v41  ;;  %v13753_v11 = vpop.f32.mrf.mxu0 }
 0x43f   : > { %15081 = vst [vmem:[#allocation84_spill] sm:$0xff] %v13753_v11  ;;  %v13755_v13 = vpop.f32.mrf.mxu1  ;;  %v7161_v11 = vld [vmem:[#allocation2 + $0x11e] sm:$0xff] }
 0x440   : > { %15082 = vst [vmem:[#allocation85_spill] sm:$0xff] %v13755_v13  ;;  %v13757_v26 = vpop.f32.mrf.mxu0  ;;  %9925 = vmatmul.mubr.bf16.gmra.mxu0 %v13605_v49  ;;  %v7181_v49 = vpack.c.bf16 %v7161_v11, %v7160_v61 }
 0x441   : > { %v13759_v5 = vpop.f32.mrf.mxu1  ;;  %10081 = vmatmul.mubr.bf16.gmra.mxu1 %v7179_v62  ;;  %9928 = vmatprep.mubr.bf16.mxu0 %v13621_v52  ;;  %v7182_v62 = vpack.c.bf16 %v7163_v12, %v7162_v56  ;;  %v6799_v56 = vld [vmem:[#allocation2 + $0x2d] sm:$0xff] }
 0x442   : > { %15083 = vst [vmem:[#allocation86_spill] sm:$0xff] %v13759_v5  ;;  %10084 = vmatprep.mubr.bf16.mxu1 %v7180_v28  ;;  %v13763_v41 = vpop.f32.mrf.mxu0 }
 0x443   : > { %v13765_v4 = vpop.f32.mrf.mxu1 }
 0x444   : > { %15084 = vst [vmem:[#allocation87_spill] sm:$0xff] %v13765_v4  ;;  %v13767_v63 = vpop.f32.mrf.mxu0  ;;  %v7165_v4 = vld [vmem:[#allocation2 + $0x13e] sm:$0xff] }
 0x445   : > { %v13769_v58 = vpop.f32.mrf.mxu1 }
 0x446   : > { %15085 = vst [vmem:[#allocation88_spill] sm:$0xff] %v13769_v58  ;;  %v13771_v13 = vpop.f32.mrf.mxu0  ;;  %v7164_v58 = vld [vmem:[#allocation2 + $0x136] sm:$0xff] }
 0x447   : > { %15086 = vst [vmem:[#allocation89_spill] sm:$0xff] %v13771_v13  ;;  %v13773_v5 = vpop.f32.mrf.mxu1  ;;  %v7183_v12 = vpack.c.bf16 %v7165_v4, %v7164_v58 }
 0x448   : > { %15087 = vst [vmem:[#allocation90_spill] sm:$0xff] %v13773_v5  ;;  %v13775_v52 = vpop.f32.mrf.mxu0  ;;  %9929 = vmatmul.mubr.bf16.gmra.mxu0 %v13623_v18  ;;  %v6798_v18 = vld [vmem:[#allocation2 + $0x25] sm:$0xff] }
 0x449   : > { %v13777_v28 = vpop.f32.mrf.mxu1  ;;  %10085 = vmatmul.mubr.bf16.gmra.mxu1 %v7181_v49  ;;  %9932 = vmatprep.mubr.bf16.mxu0 %v13635_v55  ;;  %v6834_v49 = vpack.c.bf16 %v6799_v56, %v6798_v18 }
 0x44a   : > { %15088 = vst [vmem:[#allocation91_spill] sm:$0xff] %v13777_v28  ;;  %10088 = vmatprep.mubr.bf16.mxu1 %v7182_v62  ;;  %v13781_v27 = vpop.f32.mrf.mxu0 }
 0x44b   : > { %v13783_v7 = vpop.f32.mrf.mxu1 }
 0x44c   : > { %15089 = vst [vmem:[#allocation92_spill] sm:$0xff] %v13783_v7  ;;  %v13785_v13 = vpop.f32.mrf.mxu0 }
 0x44d   : > { %v13787_v11 = vpop.f32.mrf.mxu1 }
 0x44e   : > { %15090 = vst [vmem:[#allocation93_spill] sm:$0xff] %v13787_v11  ;;  %v13789_v61 = vpop.f32.mrf.mxu0  ;;  %v6801_v11 = vld [vmem:[#allocation2 + $0x3d] sm:$0xff] }
 0x44f   : > { %15091 = vst [vmem:[#allocation94_spill] sm:$0xff] %v13789_v61  ;;  %v13791_v28 = vpop.f32.mrf.mxu1  ;;  %v6800_v61 = vld [vmem:[#allocation2 + $0x35] sm:$0xff] }
 0x450   : > { %15092 = vst [vmem:[#allocation95_spill] sm:$0xff] %v13791_v28  ;;  %v13793_v55 = vpop.f32.mrf.mxu0  ;;  %9933 = vmatmul.mubr.bf16.gmra.mxu0 %v13637_v53  ;;  %v6803_v28 = vld [vmem:[#allocation2 + $0x4d] sm:$0xff] }
 0x451   : > { %v13795_v62 = vpop.f32.mrf.mxu1  ;;  %10089 = vmatmul.mubr.bf16.gmra.mxu1 %v7183_v12  ;;  %10004 = vmatprep.mubr.bf16.mxu0 %v6834_v49  ;;  %v6836_v53 = vpack.c.bf16 %v6803_v28, %v6802_v14 }
 0x452   : > { %15093 = vst [vmem:[#allocation96_spill] sm:$0xff] %v13795_v62  ;;  %v13798_v7 = vpop.f32.mrf.mxu0  ;;  %v6835_v62 = vpack.c.bf16 %v6801_v11, %v6800_v61  ;;  %v6806_v61 = vld [vmem:[#allocation2 + $0x65] sm:$0xff] }
 0x453   : > { %v13800_v5 = vpop.f32.mrf.mxu1 }
 0x454   : > { %15094 = vst [vmem:[#allocation97_spill] sm:$0xff] %v13800_v5  ;;  %v13802_v4 = vpop.f32.mrf.mxu0 }
 0x455   : > { %v13804_v58 = vpop.f32.mrf.mxu1 }
 0x456   : > { %15095 = vst [vmem:[#allocation98_spill] sm:$0xff] %v13804_v58  ;;  %v13806_v56 = vpop.f32.mrf.mxu0  ;;  %v6805_v58 = vld [vmem:[#allocation2 + $0x5d] sm:$0xff] }
 0x457   : > { %15096 = vst [vmem:[#allocation99_spill] sm:$0xff] %v13806_v56  ;;  %v13808_v18 = vpop.f32.mrf.mxu1  ;;  %v6807_v56 = vld [vmem:[#allocation2 + $0x6d] sm:$0xff] }
 0x458   : > { %15097 = vst [vmem:[#allocation100_spill] sm:$0xff] %v13808_v18  ;;  %v13810_v12 = vpop.f32.mrf.mxu0  ;;  %10005 = vmatmul.mubr.bf16.vlgmr.msra.gmra.mxu0 %v6835_v62  ;;  %v6804_v18 = vld [vmem:[#allocation2 + $0x55] sm:$0xff] }
 0x459   : > { %v13812_v49 = vpop.f32.mrf.mxu1  ;;  %10008 = vmatprep.mubr.bf16.mxu0 %v6836_v53  ;;  %v6837_v28 = vpack.c.bf16 %v6805_v58, %v6804_v18 }
 0x45a   : > { %15098 = vst [vmem:[#allocation101_spill] sm:$0xff] %v13812_v49  ;;  %v13814_v5 = vpop.f32.mrf.mxu0  ;;  %v6838_v49 = vpack.c.bf16 %v6807_v56, %v6806_v61  ;;  %v6810_v61 = vld [vmem:[#allocation2 + $0x85] sm:$0xff] }
 0x45b   : > { %v13816_v36 = vpop.f32.mrf.mxu1 }
 0x45c   : > { %15099 = vst [vmem:[#allocation102_spill] sm:$0xff] %v13816_v36  ;;  %v13818_v31 = vpop.f32.mrf.mxu0 }
 0x45d   : > { %v13820_v30 = vpop.f32.mrf.mxu1 }
 0x45e   : > { %15100 = vst [vmem:[#allocation103_spill] sm:$0xff] %v13820_v30  ;;  %v13822_v11 = vpop.f32.mrf.mxu0  ;;  %v6809_v30 = vld [vmem:[#allocation2 + $0x7d] sm:$0xff] }
 0x45f   : > { %15101 = vst [vmem:[#allocation104_spill] sm:$0xff] %v13822_v11  ;;  %v13824_v14 = vpop.f32.mrf.mxu1  ;;  %v6811_v11 = vld [vmem:[#allocation2 + $0x8d] sm:$0xff] }
 0x460   : > { %15102 = vst [vmem:[#allocation105_spill] sm:$0xff] %v13824_v14  ;;  %v13826_v62 = vpop.f32.mrf.mxu0  ;;  %10009 = vmatmul.mubr.bf16.gmra.mxu0 %v6837_v28  ;;  %v6808_v14 = vld [vmem:[#allocation2 + $0x75] sm:$0xff] }
 0x461   : > { %v13828_v53 = vpop.f32.mrf.mxu1  ;;  %10012 = vmatprep.mubr.bf16.mxu0 %v6838_v49  ;;  %v6839_v18 = vpack.c.bf16 %v6809_v30, %v6808_v14 }
 0x462   : > { %15103 = vst [vmem:[#allocation106_spill] sm:$0xff] %v13828_v53  ;;  %v13830_v36 = vpop.f32.mrf.mxu0  ;;  %v6840_v53 = vpack.c.bf16 %v6811_v11, %v6810_v61  ;;  %v6814_v61 = vld [vmem:[#allocation2 + $0xa5] sm:$0xff] }
 0x463   : > { %v13832_v60 = vpop.f32.mrf.mxu1 }
 0x464   : > { %15104 = vst [vmem:[#allocation107_spill] sm:$0xff] %v13832_v60  ;;  %v13834_v32 = vpop.f32.mrf.mxu0 }
 0x465   : > { %v13836_v45 = vpop.f32.mrf.mxu1 }
 0x466   : > { %15105 = vst [vmem:[#allocation108_spill] sm:$0xff] %v13836_v45  ;;  %v13838_v58 = vpop.f32.mrf.mxu0  ;;  %v6813_v45 = vld [vmem:[#allocation2 + $0x9d] sm:$0xff] }
 0x467   : > { %15106 = vst [vmem:[#allocation109_spill] sm:$0xff] %v13838_v58  ;;  %v13840_v56 = vpop.f32.mrf.mxu1  ;;  %v6815_v58 = vld [vmem:[#allocation2 + $0xad] sm:$0xff] }
 0x468   : > { %15107 = vst [vmem:[#allocation110_spill] sm:$0xff] %v13840_v56  ;;  %v13842_v28 = vpop.f32.mrf.mxu0  ;;  %10013 = vmatmul.mubr.bf16.gmra.mxu0 %v6839_v18  ;;  %v6812_v56 = vld [vmem:[#allocation2 + $0x95] sm:$0xff] }
 0x469   : > { %v13844_v49 = vpop.f32.mrf.mxu1  ;;  %10016 = vmatprep.mubr.bf16.mxu0 %v6840_v53  ;;  %v6841_v14 = vpack.c.bf16 %v6813_v45, %v6812_v56 }
 0x46a   : > { %15108 = vst [vmem:[#allocation111_spill] sm:$0xff] %v13844_v49  ;;  %v13846_v60 = vpop.f32.mrf.mxu0  ;;  %v6842_v49 = vpack.c.bf16 %v6815_v58, %v6814_v61  ;;  %v6818_v61 = vld [vmem:[#allocation2 + $0xc5] sm:$0xff] }
 0x46b   : > { %v13848_v23 = vpop.f32.mrf.mxu1 }
 0x46c   : > { %15109 = vst [vmem:[#allocation112_spill] sm:$0xff] %v13848_v23  ;;  %v13850_v59 = vpop.f32.mrf.mxu0 }
 0x46d   : > { %15110 = vst [vmem:[#allocation113_spill] sm:$0xff] %v13850_v59  ;;  %v13852_v48 = vpop.f32.mrf.mxu1 }
 0x46e   : > { %15111 = vst [vmem:[#allocation114_spill] sm:$0xff] %v13852_v48  ;;  %v13854_v30 = vpop.f32.mrf.mxu0  ;;  %v6817_v48 = vld [vmem:[#allocation2 + $0xbd] sm:$0xff] }
 0x46f   : > { %15112 = vst [vmem:[#allocation115_spill] sm:$0xff] %v13854_v30  ;;  %v13856_v11 = vpop.f32.mrf.mxu1  ;;  %v6819_v30 = vld [vmem:[#allocation2 + $0xcd] sm:$0xff] }
 0x470   : > { %15113 = vst [vmem:[#allocation116_spill] sm:$0xff] %v13856_v11  ;;  %v13858_v18 = vpop.f32.mrf.mxu0  ;;  %10017 = vmatmul.mubr.bf16.gmra.mxu0 %v6841_v14  ;;  %v6816_v11 = vld [vmem:[#allocation2 + $0xb5] sm:$0xff] }
 0x471   : > { %15114 = vst [vmem:[#allocation117_spill] sm:$0xff] %v13858_v18  ;;  %v13860_v53 = vpop.f32.mrf.mxu1  ;;  %10020 = vmatprep.mubr.bf16.mxu0 %v6842_v49  ;;  %v6843_v56 = vpack.c.bf16 %v6817_v48, %v6816_v11 }
 0x472   : > { %15115 = vst [vmem:[#allocation118_spill] sm:$0xff] %v13860_v53  ;;  %v13862_v23 = vpop.f32.mrf.mxu0  ;;  %v6844_v53 = vpack.c.bf16 %v6819_v30, %v6818_v61  ;;  %v6822_v61 = vld [vmem:[#allocation2 + $0xe5] sm:$0xff] }
 0x473   : > { %15116 = vst [vmem:[#allocation119_spill] sm:$0xff] %v13862_v23  ;;  %v13864_v33 = vpop.f32.mrf.mxu1 }
 0x474   : > { %15117 = vst [vmem:[#allocation120_spill] sm:$0xff] %v13864_v33  ;;  %v13866_v59 = vpop.f32.mrf.mxu0 }
 0x475   : > { %15118 = vst [vmem:[#allocation121_spill] sm:$0xff] %v13866_v59  ;;  %v13868_v10 = vpop.f32.mrf.mxu1 }
 0x476   : > { %15119 = vst [vmem:[#allocation122_spill] sm:$0xff] %v13868_v10  ;;  %v13870_v45 = vpop.f32.mrf.mxu0  ;;  %v6821_v10 = vld [vmem:[#allocation2 + $0xdd] sm:$0xff] }
 0x477   : > { %15120 = vst [vmem:[#allocation123_spill] sm:$0xff] %v13870_v45  ;;  %v13872_v58 = vpop.f32.mrf.mxu1  ;;  %v6823_v45 = vld [vmem:[#allocation2 + $0xed] sm:$0xff] }
 0x478   : > { %15121 = vst [vmem:[#allocation124_spill] sm:$0xff] %v13872_v58  ;;  %v13874_v14 = vpop.f32.mrf.mxu0  ;;  %10021 = vmatmul.mubr.bf16.gmra.mxu0 %v6843_v56  ;;  %v6820_v58 = vld [vmem:[#allocation2 + $0xd5] sm:$0xff] }
 0x479   : > { %v13876_v49 = vpop.f32.mrf.mxu1  ;;  %10024 = vmatprep.mubr.bf16.mxu0 %v6844_v53  ;;  %v6845_v11 = vpack.c.bf16 %v6821_v10, %v6820_v58  ;;  %v6827_v10 = vld [vmem:[#allocation2 + $0x10d] sm:$0xff]  ;;  %v6824_v58 = vld [vmem:[#allocation2 + $0xf5] sm:$0xff] }
 0x47a   : > { %15122 = vst [vmem:[#allocation125_spill] sm:$0xff] %v13876_v49  ;;  %v13878_v33 = vpop.f32.mrf.mxu0  ;;  %v6846_v49 = vpack.c.bf16 %v6823_v45, %v6822_v61  ;;  %v4996_v45 = vadd.f32 %v13763_v41, %v13503_v9 }
 0x47b   : > { %15123 = vst [vmem:[#allocation126_spill] sm:$0xff] %v13878_v33  ;;  %v13880_v59 = vpop.f32.mrf.mxu1  ;;  %v6825_v33 = vld [vmem:[#allocation2 + $0xfd] sm:$0xff] }
 0x47c   : > { %15124 = vst [vmem:[#allocation127_spill] sm:$0xff] %v13880_v59  ;;  %v13882_v23 = vpop.f32.mrf.mxu0  ;;  %v5434_v9 = vadd.f32 %v13505_v21, %v4996_v45  ;;  %v6831_v21 = vld [vmem:[#allocation2 + $0x12d] sm:$0xff] }
 0x47d   : > { %15125 = vst [vmem:[#allocation128_spill] sm:$0xff] %v13882_v23  ;;  %v13884_v18 = vpop.f32.mrf.mxu1 }
 0x47e   : > { %15126 = vst [vmem:[#allocation129_spill] sm:$0xff] %v13884_v18  ;;  %v13886_v48 = vpop.f32.mrf.mxu0  ;;  %v5004_v18 = vadd.f32 %v13757_v26, %v13489_v47 }
 0x47f   : > { %15127 = vst [vmem:[#allocation130_spill] sm:$0xff] %v13886_v48  ;;  %v13888_v30 = vpop.f32.mrf.mxu1 }
 0x480   : > { %15128 = vst [vmem:[#allocation131_spill] sm:$0xff] %v13888_v30  ;;  %v13890_v56 = vpop.f32.mrf.mxu0  ;;  %10025 = vmatmul.mubr.bf16.gmra.mxu0 %v6845_v11  ;;  %v6847_v11 = vpack.c.bf16 %v6825_v33, %v6824_v58  ;;  %v5436_v47 = vadd.f32 %v13491_v35, %v5004_v18  ;;  %v5020_v33 = vadd.f32 %v13775_v52, %v13533_v1  ;;  %v6828_v1 = vld [vmem:[#allocation2 + $0x115] sm:$0xff] }
 0x481   : > { %v13892_v53 = vpop.f32.mrf.mxu1  ;;  %10028 = vmatprep.mubr.bf16.mxu0 %v6846_v49 }
 0x482   : > { %15129 = vst [vmem:[#allocation132_spill] sm:$0xff] %v13892_v53  ;;  %v13894_v59 = vpop.f32.mrf.mxu0  ;;  %v6826_v53 = vld [vmem:[#allocation2 + $0x105] sm:$0xff] }
 0x483   : > { %15130 = vst [vmem:[#allocation133_spill] sm:$0xff] %v13894_v59  ;;  %v13896_v23 = vpop.f32.mrf.mxu1  ;;  %v6848_v26 = vpack.c.bf16 %v6827_v10, %v6826_v53  ;;  %v6830_v53 = vld [vmem:[#allocation2 + $0x125] sm:$0xff]  ;;  %v5012_v10 = vadd.f32 %v13781_v27, %v13549_v38  ;;  %v10457_v38 = vld [vmem:[%s14740_s7 + $0x30] sm:$0xff]  }
 0x484   : > { %15131 = vst [vmem:[#allocation134_spill] sm:$0xff] %v13896_v23  ;;  %v13900_v48 = vpop.f32.mrf.mxu0  ;;  %v5007_v23 = vadd.f32 %v13767_v63, %v13517_v16  ;;  %v6829_v16 = vld [vmem:[#allocation2 + $0x11d] sm:$0xff] }
 0x485   : > { %15132 = vst [vmem:[#allocation135_spill] sm:$0xff] %v13900_v48  ;;  %v13902_v30 = vpop.f32.mrf.mxu1  ;;  %v10456_v63 = vld [vmem:[%s14740_s7 + $0x38] sm:$0xff]  }
 0x486   : > { %15133 = vst [vmem:[#allocation136_spill] sm:$0xff] %v13902_v30  ;;  %v13906_v61 = vpop.f32.mrf.mxu0  ;;  %v5437_v35 = vadd.f32 %v13519_v15, %v5007_v23  ;;  %10092 = vmatprep.subr.bf16.mxu0 %v10456_v63  ;;  %v6849_v23 = vpack.c.bf16 %v6829_v16, %v6828_v1  ;;  %v6832_v16 = vld [vmem:[#allocation2 + $0x135] sm:$0xff]  ;;  %v5028_v1 = vadd.f32 %v13798_v7, %v13593_v39 }
 0x487   : > { %15134 = vst [vmem:[#allocation137_spill] sm:$0xff] %v13906_v61  ;;  %v13908_v49 = vpop.f32.mrf.mxu1  ;;  %10093 = vmatpush3.bf16.msra.mxu0 %v10456_v63  ;;  %v6833_v63 = vld [vmem:[#allocation2 + $0x13d] sm:$0xff] }
 0x488   : > { %v9798_v48 = vpop.f32.mrf.mxu0  ;;  %10029 = vmatmul.mubr.bf16.gmra.mxu0 %v6847_v11  ;;  %v5023_v11 = vadd.f32 %v13785_v13, %v13559_v44  ;;  %10094 = vmatprep.subr.bf16.mxu0 %v10457_v38  ;;  %v5442_v7 = vadd.f32 %v13595_v17, %v5028_v1  ;;  %v5044_v17 = vadd.f32 %v13814_v5, %v13617_v19 }
 0x489   : > { %v13913_v59 = vpop.f32.mrf.mxu1  ;;  %v13915_v30 = vadd.f32 %v9798_v48, %v5436_v47  ;;  %10032 = vmatprep.mubr.bf16.mxu0 %v6848_v26  ;;  %v5440_v47 = vadd.f32 %v13535_v51, %v5020_v33  ;;  %v6850_v26 = vpack.c.bf16 %v6831_v21, %v6830_v53  ;;  %v5036_v51 = vadd.f32 %v13793_v55, %v13584_v8  ;;  %v10458_v53 = vld [vmem:[%s14740_s7 + $0x28] sm:$0xff]  }
 0x48a   : > { %v5623_v41 = vpop.f32.mrf.mxu0  ;;  %v5446_v5 = vadd.f32 %v13619_v42, %v5044_v17  ;;  %v5060_v42 = vadd.f32 %v13830_v36, %v13647_v6 }
 0x48b   : > { %v13918_v61 = vpop.f32.mrf.mxu1  ;;  %v13922_v58 = vadd.f32 %v5623_v41, %v5434_v9  ;;  %10095 = vmatpush3.bf16.msra.mxu0 %v10457_v38  ;;  %v5444_v55 = vadd.f32 %v13586_v57, %v5036_v51  ;;  %v5052_v57 = vadd.f32 %v13810_v12, %v13613_v29 }
 0x48c   : > { %v9799_v18 = vpop.f32.mrf.mxu0  ;;  %10096 = vmatprep.subr.bf16.mxu0 %v10458_v53  ;;  %v5450_v36 = vadd.f32 %v13649_v3, %v5060_v42  ;;  %v15152_v42 = vld [vmem:[#allocation57_spill] sm:$0xff] }
 0x48d   : > { %v13928_v48 = vpop.f32.mrf.mxu1  ;;  %v13932_v45 = vadd.f32 %v9799_v18, %v5437_v35  ;;  %v5438_v35 = vadd.f32 %v13551_v54, %v5012_v10  ;;  %v5441_v18 = vadd.f32 %v13561_v43, %v5023_v11  ;;  %v6851_v10 = vpack.c.bf16 %v6833_v63, %v6832_v16  ;;  %v10459_v11 = vld [vmem:[%s14740_s7 + $0x20] sm:$0xff]   ;;  %v10460_v16 = vld [vmem:[%s14740_s7 + $0x18] sm:$0xff]  }
 0x48e   : > { %v13934_v52 = vpop.f32.mrf.mxu0  ;;  %v5039_v43 = vadd.f32 %v13802_v4, %v13599_v37  ;;  %v5448_v12 = vadd.f32 %v13615_v22, %v5052_v57  ;;  %v10463_v57 = vld [vmem:[%s14740_s7] sm:$0xff]  }
 0x48f   : > { %v13936_v15 = vpop.f32.mrf.mxu1  ;;  %10097 = vmatpush3.bf16.msra.mxu0 %v10458_v53  ;;  %v10461_v53 = vld [vmem:[%s14740_s7 + $0x10] sm:$0xff]  }
 0x490   : > { %v9802_v27 = vpop.f32.mrf.mxu0  ;;  %10033 = vmatmul.mubr.bf16.gmra.mxu0 %v6849_v23  ;;  %10098 = vmatprep.subr.bf16.mxu0 %v10459_v11  ;;  %v5445_v4 = vadd.f32 %v13601_v20, %v5039_v43  ;;  %v5055_v20 = vadd.f32 %v13818_v31, %v13627_v40  ;;  %v5068_v40 = vadd.f32 %v13826_v62, %v13639_v34 }
 0x491   : > { %v13944_v9 = vpop.f32.mrf.mxu1  ;;  %v13946_v41 = vadd.f32 %v9802_v27, %v5440_v47  ;;  %10036 = vmatprep.mubr.bf16.mxu0 %v6850_v26 }
 0x492   : > { %v5639_v44 = vpop.f32.mrf.mxu0  ;;  %v5449_v31 = vadd.f32 %v13629_v0, %v5055_v20  ;;  %v5071_v0 = vadd.f32 %v13834_v32, %v13651_v2  ;;  %v5452_v62 = vadd.f32 %v13641_v25, %v5068_v40  ;;  %v5084_v2 = vadd.f32 %v13842_v28, %v13659_v46  ;;  %v15149_v40 = vld [vmem:[#allocation113_spill] sm:$0xff]  ;;  %v15150_v46 = vld [vmem:[#allocation56_spill] sm:$0xff] }
 0x493   : > { %v13949_v13 = vpop.f32.mrf.mxu1  ;;  %v13953_v33 = vadd.f32 %v5639_v44, %v5438_v35  ;;  %10099 = vmatpush3.bf16.msra.mxu0 %v10459_v11 }
 0x494   : > { %v9803_v21 = vpop.f32.mrf.mxu0  ;;  %10100 = vmatprep.subr.bf16.mxu0 %v10460_v16  ;;  %v5453_v32 = vadd.f32 %v13653_v24, %v5071_v0  ;;  %v5456_v28 = vadd.f32 %v15150_v46, %v5084_v2  ;;  %v15158_v2 = vld [vmem:[#allocation64_spill] sm:$0xff] }
 0x495   : > { %v13959_v54 = vpop.f32.mrf.mxu1  ;;  %v13963_v23 = vadd.f32 %v9803_v21, %v5441_v18 }
 0x496   : > { %v13965_v47 = vpop.f32.mrf.mxu0 }
 0x497   : > { %v13967_v8 = vpop.f32.mrf.mxu1  ;;  %10101 = vmatpush3.bf16.msra.mxu0 %v10460_v16 }
 0x498   : > { %15135 = vst [vmem:[#allocation138_spill] sm:$0xff] %v13967_v8  ;;  %v9806_v26 = vpop.f32.mrf.mxu0  ;;  %10037 = vmatmul.mubr.bf16.gmra.mxu0 %v6851_v10  ;;  %10102 = vmatprep.subr.bf16.mxu0 %v10461_v53 }
 0x499   : > { %v13975_v38 = vpop.f32.mrf.mxu1  ;;  %v13977_v39 = vadd.f32 %v9806_v26, %v5444_v55  ;;  %v10462_v55 = vld [vmem:[%s14740_s7 + $0x8] sm:$0xff]  }
 0x49a   : > { %15136 = vst [vmem:[#allocation139_spill] sm:$0xff] %v13975_v38  ;;  %v5655_v27 = vpop.f32.mrf.mxu0 }
 0x49b   : > { %v13980_v35 = vpop.f32.mrf.mxu1  ;;  %v13984_v37 = vadd.f32 %v5655_v27, %v5442_v7  ;;  %10103 = vmatpush3.bf16.msra.mxu0 %v10461_v53  ;;  %v5076_v53 = vadd.f32 %v13846_v60, %v13668_v50  ;;  %v15154_v60 = vld [vmem:[#allocation62_spill] sm:$0xff] }
 0x49c   : > { %15137 = vst [vmem:[#allocation140_spill] sm:$0xff] %v13980_v35  ;;  %v9807_v63 = vpop.f32.mrf.mxu0  ;;  %10104 = vmatprep.subr.bf16.mxu0 %v10462_v55 }
 0x49d   : > { %v13990_v44 = vpop.f32.mrf.mxu1  ;;  %v13994_v51 = vadd.f32 %v9807_v63, %v5445_v4  ;;  %v5454_v0 = vadd.f32 %v15152_v42, %v5076_v53  ;;  %v15161_v42 = vld [vmem:[#allocation66_spill] sm:$0xff] }
 0x49e   : > { %15138 = vst [vmem:[#allocation141_spill] sm:$0xff] %v13990_v44  ;;  %v13996_v18 = vpop.f32.mrf.mxu0 }
 0x49f   : > { %v13998_v29 = vpop.f32.mrf.mxu1  ;;  %10105 = vmatpush3.bf16.msra.mxu0 %v10462_v55 }
 0x4a0   : > { %15139 = vst [vmem:[#allocation142_spill] sm:$0xff] %v13998_v29  ;;  %v9810_v21 = vpop.f32.mrf.mxu0  ;;  %10106 = vmatprep.subr.bf16.mxu0 %v10463_v57 }
 0x4a1   : > { %v14006_v10 = vpop.f32.mrf.mxu1  ;;  %v14008_v19 = vadd.f32 %v9810_v21, %v5448_v12 }
 0x4a2   : > { %15140 = vst [vmem:[#allocation143_spill] sm:$0xff] %v14006_v10  ;;  %v5671_v1 = vpop.f32.mrf.mxu0 }
 0x4a3   : > { %v14011_v43 = vpop.f32.mrf.mxu1  ;;  %v14015_v22 = vadd.f32 %v5671_v1, %v5446_v5  ;;  %10107 = vmatpush3.bf16.msra.mxu0 %v10463_v57  ;;  %v15148_v1 = vld [vmem:[#allocation58_spill] sm:$0xff]  ;;  %v15155_v57 = vld [vmem:[#allocation117_spill] sm:$0xff] }
 0x4a4   : > { %15141 = vst [vmem:[#allocation144_spill] sm:$0xff] %v14011_v43  ;;  %v9811_v11 = vpop.f32.mrf.mxu0 }
 0x4a5   : > { %v14021_v26 = vpop.f32.mrf.mxu1  ;;  %v14025_v7 = vadd.f32 %v9811_v11, %v5449_v31  ;;  %v5087_v31 = vadd.f32 %v15149_v40, %v15148_v1  ;;  %v15159_v40 = vld [vmem:[#allocation119_spill] sm:$0xff] }
 0x4a6   : > { %15142 = vst [vmem:[#allocation145_spill] sm:$0xff] %v14021_v26  ;;  %v14027_v27 = vpop.f32.mrf.mxu0  ;;  %v5092_v46 = vadd.f32 %v15159_v40, %v15158_v2 }
 0x4a7   : > { %v14029_v34 = vpop.f32.mrf.mxu1 }
 0x4a8   : > { %15143 = vst [vmem:[#allocation146_spill] sm:$0xff] %v14029_v34  ;;  %v9814_v4 = vpop.f32.mrf.mxu0 }
 0x4a9   : > { %v14037_v16 = vpop.f32.mrf.mxu1  ;;  %v14039_v6 = vadd.f32 %v9814_v4, %v5452_v62  ;;  %v5100_v4 = vadd.f32 %v15155_v57, %v15154_v60  ;;  %v15163_v60 = vld [vmem:[#allocation63_spill] sm:$0xff] }
 0x4aa   : > { %15144 = vst [vmem:[#allocation147_spill] sm:$0xff] %v14037_v16  ;;  %v5687_v63 = vpop.f32.mrf.mxu0 }
 0x4ab   : > { %v14042_v17 = vpop.f32.mrf.mxu1  ;;  %v14046_v25 = vadd.f32 %v5687_v63, %v5450_v36  ;;  %v15156_v63 = vld [vmem:[#allocation59_spill] sm:$0xff] }
 0x4ac   : > { %15145 = vst [vmem:[#allocation148_spill] sm:$0xff] %v14042_v17  ;;  %v9815_v20 = vpop.f32.mrf.mxu0 }
 0x4ad   : > { %v14049_v12 = vpop.f32.mrf.mxu1  ;;  %v14053_v21 = vadd.f32 %v9815_v20, %v5453_v32  ;;  %v5457_v32 = vadd.f32 %v15156_v63, %v5087_v31  ;;  %v15165_v63 = vld [vmem:[#allocation65_spill] sm:$0xff] }
 0x4ae   : > { %15146 = vst [vmem:[#allocation149_spill] sm:$0xff] %v14049_v12  ;;  %v14055_v3 = vpop.f32.mrf.mxu0 }
 0x4af   : > { %v14057_v5 = vpop.f32.mrf.mxu1 }
 0x4b0   : > { %15147 = vst [vmem:[#allocation150_spill] sm:$0xff] %v14057_v5  ;;  %v9818_v55 = vpop.f32.mrf.mxu0 }
 0x4b1   : > { %v14062_v11 = vpop.f32.mrf.mxu1  ;;  %v14064_v24 = vadd.f32 %v9818_v55, %v5456_v28 }
 0x4b2   : > { %15151 = vst [vmem:[#allocation58_spill] sm:$0xff] %v14062_v11  ;;  %v5703_v62 = vpop.f32.mrf.mxu0 }
 0x4b3   : > { %v14067_v50 = vpop.f32.mrf.mxu1  ;;  %v14071_v36 = vadd.f32 %v5703_v62, %v5454_v0  ;;  %v5460_v0 = vadd.f32 %v15163_v60, %v5100_v4  ;;  %v15170_v4 = vld [vmem:[#allocation72_spill] sm:$0xff]  ;;  %v15171_v60 = vld [vmem:[#allocation126_spill] sm:$0xff] }
 0x4b4   : > { %15153 = vst [vmem:[#allocation113_spill] sm:$0xff] %v14067_v50  ;;  %v9819_v20 = vpop.f32.mrf.mxu0  ;;  %v15162_v50 = vld [vmem:[#allocation121_spill] sm:$0xff] }
 0x4b5   : > { %v14074_v1 = vpop.f32.mrf.mxu1  ;;  %v14078_v28 = vadd.f32 %v9819_v20, %v5457_v32  ;;  %v5103_v11 = vadd.f32 %v15162_v50, %v15161_v42  ;;  %v15167_v32 = vld [vmem:[#allocation70_spill] sm:$0xff] }
 0x4b6   : > { %15157 = vst [vmem:[#allocation56_spill] sm:$0xff] %v14074_v1  ;;  %v14080_v55 = vpop.f32.mrf.mxu0  ;;  %v5458_v1 = vadd.f32 %v15165_v63, %v5092_v46  ;;  %v5116_v20 = vadd.f32 %v13874_v14, %v15167_v32  ;;  %v15173_v63 = vld [vmem:[#allocation74_spill] sm:$0xff]  ;;  %v15175_v14 = vld [vmem:[#allocation71_spill] sm:$0xff] }
 0x4b7   : > { %v14082_v53 = vpop.f32.mrf.mxu1 }
 0x4b8   : > { %15160 = vst [vmem:[#allocation57_spill] sm:$0xff] %v14082_v53  ;;  %v9822_v62 = vpop.f32.mrf.mxu0  ;;  %v15168_v53 = vld [vmem:[#allocation67_spill] sm:$0xff] }
 0x4b9   : > { %v14087_v57 = vpop.f32.mrf.mxu1  ;;  %v14089_v31 = vadd.f32 %v9822_v62, %v5460_v0  ;;  %v5461_v12 = vadd.f32 %v15168_v53, %v5103_v11  ;;  %v15177_v53 = vld [vmem:[#allocation73_spill] sm:$0xff] }
 0x4ba   : > { %15164 = vst [vmem:[#allocation62_spill] sm:$0xff] %v14087_v57  ;;  %v5719_v5 = vpop.f32.mrf.mxu0  ;;  %v5108_v57 = vadd.f32 %v15171_v60, %v15170_v4 }
 0x4bb   : > { %v14092_v2 = vpop.f32.mrf.mxu1  ;;  %v14096_v40 = vadd.f32 %v5719_v5, %v5458_v1  ;;  %v5464_v5 = vadd.f32 %v15175_v14, %v5116_v20  ;;  %v15182_v20 = vld [vmem:[#allocation80_spill] sm:$0xff]  ;;  %v15183_v14 = vld [vmem:[#allocation133_spill] sm:$0xff] }
 0x4bc   : > { %15166 = vst [vmem:[#allocation117_spill] sm:$0xff] %v14092_v2  ;;  %v9823_v50 = vpop.f32.mrf.mxu0  ;;  %v15174_v2 = vld [vmem:[#allocation128_spill] sm:$0xff] }
 0x4bd   : > { %v14099_v42 = vpop.f32.mrf.mxu1  ;;  %v14103_v0 = vadd.f32 %v9823_v50, %v5461_v12  ;;  %v5119_v17 = vadd.f32 %v15174_v2, %v15173_v63  ;;  %v15179_v12 = vld [vmem:[#allocation78_spill] sm:$0xff] }
 0x4be   : > { %15169 = vst [vmem:[#allocation59_spill] sm:$0xff] %v14099_v42  ;;  %v14105_v62 = vpop.f32.mrf.mxu0  ;;  %v5462_v42 = vadd.f32 %v15177_v53, %v5108_v57  ;;  %v5132_v50 = vadd.f32 %v13890_v56, %v15179_v12  ;;  %v15185_v53 = vld [vmem:[#allocation82_spill] sm:$0xff]  ;;  %v15187_v56 = vld [vmem:[#allocation79_spill] sm:$0xff] }
 0x4bf   : > { %v14107_v46 = vpop.f32.mrf.mxu1 }
 0x4c0   : > { %15172 = vst [vmem:[#allocation64_spill] sm:$0xff] %v14107_v46  ;;  %v9826_v1 = vpop.f32.mrf.mxu0  ;;  %v15180_v46 = vld [vmem:[#allocation75_spill] sm:$0xff] }
 0x4c1   : > { %v14112_v32 = vpop.f32.mrf.mxu1  ;;  %v14114_v11 = vadd.f32 %v9826_v1, %v5464_v5  ;;  %v5465_v34 = vadd.f32 %v15180_v46, %v5119_v17  ;;  %v15189_v46 = vld [vmem:[#allocation81_spill] sm:$0xff] }
 0x4c2   : > { %15176 = vst [vmem:[#allocation119_spill] sm:$0xff] %v14112_v32  ;;  %v5735_v16 = vpop.f32.mrf.mxu0  ;;  %v5124_v32 = vadd.f32 %v15183_v14, %v15182_v20 }
 0x4c3   : > { %v14117_v4 = vpop.f32.mrf.mxu1  ;;  %v14121_v60 = vadd.f32 %v5735_v16, %v5462_v42  ;;  %v5468_v16 = vadd.f32 %v15187_v56, %v5132_v50 }
 0x4c4   : > { %15178 = vst [vmem:[#allocation66_spill] sm:$0xff] %v14117_v4  ;;  %v9827_v2 = vpop.f32.mrf.mxu0  ;;  %v15186_v4 = vld [vmem:[#allocation135_spill] sm:$0xff] }
 0x4c5   : > { %v14124_v63 = vpop.f32.mrf.mxu1  ;;  %v14128_v5 = vadd.f32 %v9827_v2, %v5465_v34  ;;  %v5135_v26 = vadd.f32 %v15186_v4, %v15185_v53  ;;  %v15191_v34 = vld [vmem:[#allocation46_spill] sm:$0xff]  ;;  %v15192_v2 = vld [vmem:[#allocation89_spill] sm:$0xff] }
 0x4c6   : > { %15181 = vst [vmem:[#allocation121_spill] sm:$0xff] %v14124_v63  ;;  %v14130_v1 = vpop.f32.mrf.mxu0  ;;  %v5466_v63 = vadd.f32 %v15189_v46, %v5124_v32  ;;  %v4999_v14 = vadd.f32 %v15192_v2, %v15191_v34  ;;  %v15196_v32 = vld [vmem:[#allocation86_spill] sm:$0xff] }
 0x4c7   : > { %v14132_v57 = vpop.f32.mrf.mxu1  ;;  %v6100_v46 = vadd.f32 %v15196_v32, %v13915_v30  ;;  %v15200_v2 = vld [vmem:[#allocation94_spill] sm:$0xff] }
 0x4c8   : > { %15184 = vst [vmem:[#allocation63_spill] sm:$0xff] %v14132_v57  ;;  %v9830_v42 = vpop.f32.mrf.mxu0  ;;  %v15193_v57 = vld [vmem:[#allocation83_spill] sm:$0xff] }
 0x4c9   : > { %v14137_v12 = vpop.f32.mrf.mxu1  ;;  %v14139_v17 = vadd.f32 %v9830_v42, %v5468_v16  ;;  %v5469_v29 = vadd.f32 %v15193_v57, %v5135_v26  ;;  %v15195_v16 = vld [vmem:[#allocation47_spill] sm:$0xff] }
 0x4ca   : > { %15188 = vst [vmem:[#allocation65_spill] sm:$0xff] %v14137_v12  ;;  %v5751_v43 = vpop.f32.mrf.mxu0  ;;  %v5435_v42 = vadd.f32 %v15195_v16, %v4999_v14  ;;  %v15198_v26 = vld [vmem:[#allocation87_spill] sm:$0xff]  ;;  %v15201_v14 = vld [vmem:[#allocation88_spill] sm:$0xff] }
 0x4cb   : > { %v14142_v20 = vpop.f32.mrf.mxu1  ;;  %v14146_v10 = vadd.f32 %v5751_v43, %v5466_v63  ;;  %v6098_v57 = vadd.f32 %v15198_v26, %v13922_v58  ;;  %v6101_v16 = vadd.f32 %v15201_v14, %v13932_v45  ;;  %v15204_v26 = vld [vmem:[#allocation91_spill] sm:$0xff]  ;;  %v15205_v14 = vld [vmem:[#allocation92_spill] sm:$0xff] }
 0x4cc   : > { %15190 = vst [vmem:[#allocation70_spill] sm:$0xff] %v14142_v20  ;;  %v9831_v4 = vpop.f32.mrf.mxu0  ;;  %v5767_v43 = vadd.f32 %v13934_v52, %v5435_v42  ;;  %v15202_v52 = vld [vmem:[#allocation90_spill] sm:$0xff] }
 0x4cd   : > { %v14149_v53 = vpop.f32.mrf.mxu1  ;;  %v14151_v50 = vadd.f32 %v9831_v4, %v5469_v29  ;;  %v15199_v29 = vld [vmem:[#allocation48_spill] sm:$0xff] }
 0x4ce   : > { %15194 = vst [vmem:[#allocation67_spill] sm:$0xff] %v14149_v53  ;;  %v14153_v56 = vpop.f32.mrf.mxu0  ;;  %v5015_v4 = vadd.f32 %v15200_v2, %v15199_v29  ;;  %v6104_v29 = vadd.f32 %v15204_v26, %v13946_v41 }
 0x4cf   : > { %v14158_v20 = vpop.f32.mrf.mxu1 }
 0x4d0   : > { %15197 = vst [vmem:[#allocation72_spill] sm:$0xff] %v14158_v20  ;;  %v9902_v12 = vpop.f32.mrf.mxu0 }
 0x4d1   : > { %v14161_v63 = vadd.f32 %v9902_v12, %v6100_v46  ;;  %v14171_v30 = vpop.f32.mrf.mxu1  ;;  %v6099_v12 = vadd.f32 %v15202_v52, %v5767_v43  ;;  %v15203_v46 = vld [vmem:[#allocation49_spill] sm:$0xff]  ;;  %v15206_v43 = vld [vmem:[#allocation50_spill] sm:$0xff]  ;;  %v15207_v52 = vld [vmem:[#allocation99_spill] sm:$0xff] }
 0x4d2   : > { %v6287_v34 = vpop.f32.mrf.mxu0  ;;  %v5439_v44 = vadd.f32 %v15203_v46, %v5015_v4  ;;  %v5031_v35 = vadd.f32 %v15207_v52, %v15206_v43 }
 0x4d3   : > { %v14167_v53 = vadd.f32 %v6287_v34, %v6098_v57  ;;  %v14181_v57 = vpop.f32.mrf.mxu1 }
 0x4d4   : > { %v9903_v32 = vpop.f32.mrf.mxu0  ;;  %v5771_v45 = vadd.f32 %v13965_v47, %v5439_v44  ;;  %v15209_v47 = vld [vmem:[#allocation95_spill] sm:$0xff] }
 0x4d5   : > { %v14173_v20 = vadd.f32 %v9903_v32, %v6101_v16  ;;  %v6102_v16 = vadd.f32 %v15205_v14, %v13953_v33  ;;  %v14194_v41 = vpop.f32.mrf.mxu1  ;;  %v15211_v14 = vld [vmem:[#allocation96_spill] sm:$0xff] }
 0x4d6   : > { %v6290_v42 = vpop.f32.mrf.mxu0  ;;  %v6103_v44 = vadd.f32 %v15209_v47, %v5771_v45  ;;  %v6108_v43 = vadd.f32 %v15211_v14, %v13977_v39  ;;  %v15214_v45 = vld [vmem:[#allocation52_spill] sm:$0xff] }
 0x4d7   : > { %v14177_v58 = vadd.f32 %v6290_v42, %v6099_v12  ;;  %v15208_v12 = vld [vmem:[#allocation93_spill] sm:$0xff]  ;;  %v15215_v47 = vld [vmem:[#allocation104_spill] sm:$0xff] }
 0x4d8   : > { %v9906_v34 = vpop.f32.mrf.mxu0  ;;  %v6105_v42 = vadd.f32 %v15208_v12, %v13963_v23  ;;  %v15213_v12 = vld [vmem:[#allocation97_spill] sm:$0xff]  ;;  %v5047_v8 = vadd.f32 %v15215_v47, %v15214_v45 }
 0x4d9   : > { %v14184_v2 = vadd.f32 %v9906_v34, %v6104_v29  ;;  %v15210_v34 = vld [vmem:[#allocation51_spill] sm:$0xff] }
 0x4da   : > { %v6303_v32 = vpop.f32.mrf.mxu0  ;;  %v5443_v38 = vadd.f32 %v15210_v34, %v5031_v35 }
 0x4db   : > { %v14190_v4 = vadd.f32 %v6303_v32, %v6102_v16  ;;  %v14204_v16 = vpop.f32.mrf.mxu1 }
 0x4dc   : > { %v9907_v46 = vpop.f32.mrf.mxu0  ;;  %v5775_v23 = vadd.f32 %v13996_v18, %v5443_v38  ;;  %v15218_v38 = vld [vmem:[#allocation100_spill] sm:$0xff] }
 0x4dd   : > { %v14196_v26 = vadd.f32 %v9907_v46, %v6105_v42  ;;  %v6106_v42 = vadd.f32 %v15213_v12, %v13984_v37  ;;  %v14217_v39 = vpop.f32.mrf.mxu1  ;;  %v15220_v12 = vld [vmem:[#allocation101_spill] sm:$0xff] }
 0x4de   : > { %v6306_v29 = vpop.f32.mrf.mxu0  ;;  %v6107_v18 = vadd.f32 %v15218_v38, %v5775_v23  ;;  %v6112_v45 = vadd.f32 %v15220_v12, %v14008_v19  ;;  %v15223_v23 = vld [vmem:[#allocation54_spill] sm:$0xff]  ;;  %v15224_v38 = vld [vmem:[#allocation109_spill] sm:$0xff] }
 0x4df   : > { %v14200_v33 = vadd.f32 %v6306_v29, %v6103_v44  ;;  %v15216_v44 = vld [vmem:[#allocation98_spill] sm:$0xff] }
 0x4e0   : > { %v9910_v32 = vpop.f32.mrf.mxu0  ;;  %v6109_v29 = vadd.f32 %v15216_v44, %v13994_v51  ;;  %v15222_v44 = vld [vmem:[#allocation102_spill] sm:$0xff] }
 0x4e1   : > { %v14207_v52 = vadd.f32 %v9910_v32, %v6108_v43  ;;  %v15219_v32 = vld [vmem:[#allocation53_spill] sm:$0xff] }
 0x4e2   : > { %v6319_v46 = vpop.f32.mrf.mxu0 }
 0x4e3   : > { %15212 = vst [vmem:[#allocation126_spill] sm:$0xff] %v14207_v52  ;;  %v14213_v35 = vadd.f32 %v6319_v46, %v6106_v42  ;;  %v5447_v52 = vadd.f32 %v15219_v32, %v5047_v8  ;;  %v14227_v42 = vpop.f32.mrf.mxu1 }
 0x4e4   : > { %v9911_v34 = vpop.f32.mrf.mxu0 }
 0x4e5   : > { %v14219_v14 = vadd.f32 %v9911_v34, %v6109_v29  ;;  %v5779_v51 = vadd.f32 %v14027_v27, %v5447_v52  ;;  %v6110_v29 = vadd.f32 %v15222_v44, %v14015_v22  ;;  %v14240_v19 = vpop.f32.mrf.mxu1  ;;  %v15227_v27 = vld [vmem:[#allocation105_spill] sm:$0xff]  ;;  %v15229_v44 = vld [vmem:[#allocation106_spill] sm:$0xff] }
 0x4e6   : > { %v6322_v43 = vpop.f32.mrf.mxu0 }
 0x4e7   : > { %15217 = vst [vmem:[#allocation74_spill] sm:$0xff] %v14219_v14  ;;  %v14223_v37 = vadd.f32 %v6322_v43, %v6107_v18  ;;  %v5063_v14 = vadd.f32 %v15224_v38, %v15223_v23  ;;  %v15225_v18 = vld [vmem:[#allocation103_spill] sm:$0xff]  ;;  %v6111_v52 = vadd.f32 %v15227_v27, %v5779_v51  ;;  %v6116_v23 = vadd.f32 %v15229_v44, %v14039_v6  ;;  %v15232_v51 = vld [vmem:[#allocation60_spill] sm:$0xff] }
 0x4e8   : > { %v9914_v46 = vpop.f32.mrf.mxu0  ;;  %v6113_v43 = vadd.f32 %v15225_v18, %v14025_v7  ;;  %v15231_v18 = vld [vmem:[#allocation107_spill] sm:$0xff] }
 0x4e9   : > { %v14230_v47 = vadd.f32 %v9914_v46, %v6112_v45  ;;  %v15228_v46 = vld [vmem:[#allocation55_spill] sm:$0xff] }
 0x4ea   : > { %v6335_v34 = vpop.f32.mrf.mxu0  ;;  %v15233_v27 = vld [vmem:[#allocation115_spill] sm:$0xff] }
 0x4eb   : > { %15221 = vst [vmem:[#allocation128_spill] sm:$0xff] %v14230_v47  ;;  %v14236_v8 = vadd.f32 %v6335_v34, %v6110_v29  ;;  %v5451_v47 = vadd.f32 %v15228_v46, %v5063_v14  ;;  %v14250_v29 = vpop.f32.mrf.mxu1 }
 0x4ec   : > { %v9915_v32 = vpop.f32.mrf.mxu0 }
 0x4ed   : > { %v14242_v12 = vadd.f32 %v9915_v32, %v6113_v43  ;;  %v5783_v7 = vadd.f32 %v14055_v3, %v5451_v47  ;;  %v6114_v43 = vadd.f32 %v15231_v18, %v14046_v25  ;;  %v14263_v6 = vpop.f32.mrf.mxu1  ;;  %v15236_v3 = vld [vmem:[#allocation110_spill] sm:$0xff]  ;;  %v15238_v18 = vld [vmem:[#allocation111_spill] sm:$0xff] }
 0x4ee   : > { %v6338_v45 = vpop.f32.mrf.mxu0 }
 0x4ef   : > { %15226 = vst [vmem:[#allocation71_spill] sm:$0xff] %v14242_v12  ;;  %v14246_v22 = vadd.f32 %v6338_v45, %v6111_v52  ;;  %v5079_v12 = vadd.f32 %v15233_v27, %v15232_v51  ;;  %v15234_v52 = vld [vmem:[#allocation108_spill] sm:$0xff]  ;;  %v6115_v47 = vadd.f32 %v15236_v3, %v5783_v7  ;;  %v6120_v51 = vadd.f32 %v15238_v18, %v14064_v24  ;;  %v15242_v3 = vld [vmem:[#allocation123_spill] sm:$0xff] }
 0x4f0   : > { %v9918_v34 = vpop.f32.mrf.mxu0  ;;  %v6117_v45 = vadd.f32 %v15234_v52, %v14053_v21  ;;  %v15240_v52 = vld [vmem:[#allocation112_spill] sm:$0xff] }
 0x4f1   : > { %v14253_v38 = vadd.f32 %v9918_v34, %v6116_v23  ;;  %v15237_v34 = vld [vmem:[#allocation61_spill] sm:$0xff]  ;;  %v15241_v7 = vld [vmem:[#allocation68_spill] sm:$0xff] }
 0x4f2   : > { %v6351_v32 = vpop.f32.mrf.mxu0 }
 0x4f3   : > { %15230 = vst [vmem:[#allocation73_spill] sm:$0xff] %v14253_v38  ;;  %v14259_v14 = vadd.f32 %v6351_v32, %v6114_v43  ;;  %v5455_v38 = vadd.f32 %v15237_v34, %v5079_v12  ;;  %v14273_v43 = vpop.f32.mrf.mxu1 }
 0x4f4   : > { %v9919_v46 = vpop.f32.mrf.mxu0 }
 0x4f5   : > { %v14265_v44 = vadd.f32 %v9919_v46, %v6117_v45  ;;  %v5787_v21 = vadd.f32 %v14080_v55, %v5455_v38  ;;  %v6118_v45 = vadd.f32 %v15240_v52, %v14071_v36  ;;  %v14286_v24 = vpop.f32.mrf.mxu1  ;;  %v15245_v55 = vld [vmem:[#allocation116_spill] sm:$0xff]  ;;  %v15247_v52 = vld [vmem:[#allocation118_spill] sm:$0xff] }
 0x4f6   : > { %v6354_v23 = vpop.f32.mrf.mxu0 }
 0x4f7   : > { %15235 = vst [vmem:[#allocation78_spill] sm:$0xff] %v14265_v44  ;;  %v14269_v25 = vadd.f32 %v6354_v23, %v6115_v47  ;;  %v5095_v44 = vadd.f32 %v15242_v3, %v15241_v7  ;;  %v15243_v47 = vld [vmem:[#allocation114_spill] sm:$0xff]  ;;  %v6119_v38 = vadd.f32 %v15245_v55, %v5787_v21  ;;  %v6124_v7 = vadd.f32 %v15247_v52, %v14089_v31  ;;  %v15250_v21 = vld [vmem:[#allocation76_spill] sm:$0xff] }
 0x4f8   : > { %v9922_v32 = vpop.f32.mrf.mxu0  ;;  %v6121_v23 = vadd.f32 %v15243_v47, %v14078_v28  ;;  %v15249_v47 = vld [vmem:[#allocation120_spill] sm:$0xff]  ;;  %v15251_v55 = vld [vmem:[#allocation130_spill] sm:$0xff] }
 0x4f9   : > { %v14276_v27 = vadd.f32 %v9922_v32, %v6120_v51  ;;  %v15246_v32 = vld [vmem:[#allocation69_spill] sm:$0xff] }
 0x4fa   : > { %v6367_v46 = vpop.f32.mrf.mxu0 }
 0x4fb   : > { %15239 = vst [vmem:[#allocation75_spill] sm:$0xff] %v14276_v27  ;;  %v14282_v12 = vadd.f32 %v6367_v46, %v6118_v45  ;;  %v5459_v27 = vadd.f32 %v15246_v32, %v5095_v44  ;;  %v14296_v45 = vpop.f32.mrf.mxu1 }
 0x4fc   : > { %v9923_v34 = vpop.f32.mrf.mxu0 }
 0x4fd   : > { %v14288_v18 = vadd.f32 %v9923_v34, %v6121_v23  ;;  %v5791_v28 = vadd.f32 %v14105_v62, %v5459_v27  ;;  %v6122_v23 = vadd.f32 %v15249_v47, %v14096_v40  ;;  %v14309_v31 = vpop.f32.mrf.mxu1  ;;  %v15254_v62 = vld [vmem:[#allocation124_spill] sm:$0xff]  ;;  %v15256_v47 = vld [vmem:[#allocation125_spill] sm:$0xff] }
 0x4fe   : > { %v6370_v51 = vpop.f32.mrf.mxu0 }
 0x4ff   : > { %15244 = vst [vmem:[#allocation80_spill] sm:$0xff] %v14288_v18  ;;  %v14292_v36 = vadd.f32 %v6370_v51, %v6119_v38  ;;  %v5111_v18 = vadd.f32 %v15251_v55, %v15250_v21  ;;  %v15252_v38 = vld [vmem:[#allocation122_spill] sm:$0xff]  ;;  %v6123_v27 = vadd.f32 %v15254_v62, %v5791_v28  ;;  %v6128_v21 = vadd.f32 %v15256_v47, %v14114_v11  ;;  %v15259_v28 = vld [vmem:[#allocation84_spill] sm:$0xff]  ;;  %v15260_v62 = vld [vmem:[#allocation137_spill] sm:$0xff] }
 0x500   : > { %v9926_v46 = vpop.f32.mrf.mxu0  ;;  %v6125_v51 = vadd.f32 %v15252_v38, %v14103_v0  ;;  %v15258_v38 = vld [vmem:[#allocation127_spill] sm:$0xff] }
 0x501   : > { %v14299_v3 = vadd.f32 %v9926_v46, %v6124_v7  ;;  %v15255_v46 = vld [vmem:[#allocation77_spill] sm:$0xff] }
 0x502   : > { %v6383_v34 = vpop.f32.mrf.mxu0 }
 0x503   : > { %15248 = vst [vmem:[#allocation133_spill] sm:$0xff] %v14299_v3  ;;  %v14305_v44 = vadd.f32 %v6383_v34, %v6122_v23  ;;  %v5463_v3 = vadd.f32 %v15255_v46, %v5111_v18  ;;  %v14319_v23 = vpop.f32.mrf.mxu1 }
 0x504   : > { %v9927_v32 = vpop.f32.mrf.mxu0 }
 0x505   : > { %v14311_v52 = vadd.f32 %v9927_v32, %v6125_v51  ;;  %v5795_v0 = vadd.f32 %v14130_v1, %v5463_v3  ;;  %v6126_v51 = vadd.f32 %v15258_v38, %v14121_v60  ;;  %v14332_v11 = vpop.f32.mrf.mxu1  ;;  %v15262_v1 = vld [vmem:[#allocation131_spill] sm:$0xff]  ;;  %v15264_v38 = vld [vmem:[#allocation132_spill] sm:$0xff] }
 0x506   : > { %v6386_v7 = vpop.f32.mrf.mxu0 }
 0x507   : > { %15253 = vst [vmem:[#allocation82_spill] sm:$0xff] %v14311_v52  ;;  %v14315_v40 = vadd.f32 %v6386_v7, %v6123_v27  ;;  %v5127_v52 = vadd.f32 %v15260_v62, %v15259_v28  ;;  %v15261_v27 = vld [vmem:[#allocation129_spill] sm:$0xff]  ;;  %v6127_v3 = vadd.f32 %v15262_v1, %v5795_v0  ;;  %v6132_v28 = vadd.f32 %v15264_v38, %v14139_v17 }
 0x508   : > { %v9930_v34 = vpop.f32.mrf.mxu0  ;;  %v6129_v7 = vadd.f32 %v15261_v27, %v14128_v5  ;;  %v15265_v27 = vld [vmem:[#allocation134_spill] sm:$0xff] }
 0x509   : > { %v14322_v55 = vadd.f32 %v9930_v34, %v6128_v21  ;;  %v15263_v34 = vld [vmem:[#allocation85_spill] sm:$0xff] }
 0x50a   : > { %v6399_v32 = vpop.f32.mrf.mxu0 }
 0x50b   : > { %15257 = vst [vmem:[#allocation135_spill] sm:$0xff] %v14322_v55  ;;  %v14328_v18 = vadd.f32 %v6399_v32, %v6126_v51  ;;  %v5467_v55 = vadd.f32 %v15263_v34, %v5127_v52  ;;  %v14342_v51 = vpop.f32.mrf.mxu1  ;;  %v15266_v52 = vld [vmem:[#allocation136_spill] sm:$0xff] }
 0x50c   : > { %v9931_v46 = vpop.f32.mrf.mxu0  ;;  %v6133_v1 = vadd.f32 %v15266_v52, %v14151_v50  ;;  %v6762_v50 = vadd.f32 %v13918_v61, %v14167_v53  ;;  %v6763_v61 = vadd.f32 %v13936_v15, %v14177_v58 }
 0x50d   : > { %v14334_v47 = vadd.f32 %v9931_v46, %v6129_v7  ;;  %v5799_v5 = vadd.f32 %v14153_v56, %v5467_v55  ;;  %v6130_v7 = vadd.f32 %v15265_v27, %v14146_v10  ;;  %v6764_v55 = vadd.f32 %v13913_v59, %v14161_v63  ;;  %v14374_v59 = vld [vmem:[%s14739_s6] ss:$0 sm:$0xff] }
 0x50e   : > { %v6402_v21 = vpop.f32.mrf.mxu0 }
 0x50f   : > { %v14338_v60 = vadd.f32 %v6402_v21, %v6127_v3  ;;  %v14353_v3 = vpop.f32.mrf.mxu1  ;;  %v6131_v34 = vadd.f32 %v13908_v49, %v5799_v5  ;;  %v6765_v49 = vadd.f32 %v13928_v48, %v14173_v20  ;;  %v6768_v20 = vadd.f32 %v13944_v9, %v14184_v2 }
 0x510   : > { %v9934_v32 = vpop.f32.mrf.mxu0 }
 0x511   : > { %v14345_v62 = vadd.f32 %v9934_v32, %v6132_v28  ;;  %v14362_v10 = vpop.f32.mrf.mxu1 }
 0x512   : > { %v6415_v46 = vpop.f32.mrf.mxu0 }
 0x513   : > { %v14349_v0 = vadd.f32 %v6415_v46, %v6130_v7  ;;  %v14369_v5 = vpop.f32.mrf.mxu1 }
 0x514   : > { %v9935_v21 = vpop.f32.mrf.mxu0 }
 0x515   : > { %v14355_v17 = vadd.f32 %v9935_v21, %v6133_v1 }
 0x516   : > { %v6418_v38 = vpop.f32.mrf.mxu0 }
 0x517   : > { %v14358_v56 = vadd.f32 %v6418_v38, %v6131_v34  ;;  %v14383_v34 = vpop.f32.mrf.mxu1 }
 0x518   : > { %v10006_v28 = vpop.f32.mrf.mxu0 }
 0x519   : > { %v7096_v32 = vadd.f32 %v10006_v28, %v6764_v55  ;;  %v6766_v55 = vadd.f32 %v13949_v13, %v14190_v4  ;;  %v14391_v9 = vpop.f32.mrf.mxu1  ;;  %v6769_v13 = vadd.f32 %v13959_v54, %v14196_v26 }
 0x51a   : > { %v6951_v27 = vpop.f32.mrf.mxu0 }
 0x51b   : > { %v7428_v7 = vadd.f32 %v14171_v30, %v7096_v32  ;;  %v7094_v46 = vadd.f32 %v6951_v27, %v6762_v50 }
 0x51c   : > { %v10007_v63 = vpop.f32.mrf.mxu0 }
 0x51d   : > { %v7426_v52 = vadd.f32 %v14181_v57, %v7094_v46  ;;  %v7097_v1 = vadd.f32 %v10007_v63, %v6765_v49  ;;  %v7471_v30 = vadd.f32 %v14374_v59, %v7428_v7 }
 0x51e   : > { %v6954_v53 = vpop.f32.mrf.mxu0 }
 0x51f   : > { %v7429_v21 = vadd.f32 %v14194_v41, %v7097_v1  ;;  %v7095_v48 = vadd.f32 %v6954_v53, %v6763_v61  ;;  %v7469_v57 = vadd.f32 %v14374_v59, %v7426_v52  ;;  %v7507_v50 = vmax.f32 %v7471_v30, 0.0 }
 0x520   : > { %v10010_v38 = vpop.f32.mrf.mxu0 }
 0x521   : > { %v7472_v28 = vadd.f32 %v14374_v59, %v7429_v21  ;;  %v7427_v15 = vadd.f32 %v14204_v16, %v7095_v48  ;;  %v7100_v58 = vadd.f32 %v10010_v38, %v6768_v20  ;;  %v7505_v46 = vmax.f32 %v7469_v57, 0.0  ;;  %v15267_v16 = vld [vmem:[#allocation138_spill] sm:$0xff]  ;;  %v15269_v48 = vld [vmem:[#allocation139_spill] sm:$0xff] }
 0x522   : > { %v6967_v32 = vpop.f32.mrf.mxu0  ;;  %v6767_v52 = vadd.f32 %v15267_v16, %v14200_v33  ;;  %v15268_v21 = vld [vmem:[#allocation126_spill] sm:$0xff]  ;;  %v15270_v33 = vld [vmem:[#allocation140_spill] sm:$0xff] }
 0x523   : > { %v7508_v41 = vmax.f32 %v7472_v28, 0.0  ;;  %v7470_v27 = vadd.f32 %v14374_v59, %v7427_v15  ;;  %v7098_v7 = vadd.f32 %v6967_v32, %v6766_v55  ;;  %v7432_v2 = vadd.f32 %v14217_v39, %v7100_v58  ;;  %v14401_v39 = vpop.f32.mrf.mxu1 }
 0x524   : > { %v10011_v4 = vpop.f32.mrf.mxu0  ;;  %v6772_v20 = vadd.f32 %v15269_v48, %v15268_v21  ;;  %v15274_v48 = vld [vmem:[#allocation128_spill] sm:$0xff] }
 0x525   : > { %v7542_v49 = vpack.c.bf16 %v7508_v41, %v7507_v50  ;;  %v7506_v63 = vmax.f32 %v7470_v27, 0.0  ;;  %v7430_v1 = vadd.f32 %v14227_v42, %v7098_v7  ;;  %v7101_v61 = vadd.f32 %v10011_v4, %v6769_v13  ;;  %v15272_v7 = vld [vmem:[#allocation141_spill] sm:$0xff] }
 0x526   : > { %v6970_v53 = vpop.f32.mrf.mxu0  ;;  %v7475_v54 = vadd.f32 %v14374_v59, %v7432_v2  ;;  %v6770_v42 = vadd.f32 %v15270_v33, %v14213_v35 }
 0x527   : > { %v7099_v30 = vadd.f32 %v6970_v53, %v6767_v52  ;;  %v7541_v38 = vpack.c.bf16 %v7506_v63, %v7505_v46  ;;  %v7433_v26 = vadd.f32 %v14240_v19, %v7101_v61  ;;  %v7473_v15 = vadd.f32 %v14374_v59, %v7430_v1  ;;  %v15271_v19 = vld [vmem:[#allocation74_spill] sm:$0xff] }
 0x528   : > { %v10014_v55 = vpop.f32.mrf.mxu0  ;;  %v6773_v2 = vadd.f32 %v15272_v7, %v15271_v19  ;;  %v7511_v13 = vmax.f32 %v7475_v54, 0.0  ;;  %v15273_v52 = vld [vmem:[#allocation142_spill] sm:$0xff]  ;;  %v15278_v19 = vld [vmem:[#allocation145_spill] sm:$0xff] }
 0x529   : > { %v7431_v57 = vadd.f32 %v14250_v29, %v7099_v30  ;;  %v7104_v28 = vadd.f32 %v10014_v55, %v6772_v20  ;;  %10108 = vmatprep.mubr.bf16.mxu0 %v7541_v38  ;;  %v7476_v58 = vadd.f32 %v14374_v59, %v7433_v26  ;;  %v14414_v29 = vpop.f32.mrf.mxu1  ;;  %v7509_v1 = vmax.f32 %v7473_v15, 0.0  ;;  %v15275_v20 = vld [vmem:[#allocation143_spill] sm:$0xff] }
 0x52a   : > { %v6983_v32 = vpop.f32.mrf.mxu0  ;;  %10109 = vmatmul.mubr.bf16.vlgmr.msra.gmra.mxu0 %v7542_v49  ;;  %v6771_v49 = vadd.f32 %v15273_v52, %v14223_v37  ;;  %v6776_v38 = vadd.f32 %v15275_v20, %v15274_v48 }
 0x52b   : > { %v7474_v50 = vadd.f32 %v14374_v59, %v7431_v57  ;;  %v7436_v41 = vadd.f32 %v14263_v6, %v7104_v28  ;;  %v7102_v27 = vadd.f32 %v6983_v32, %v6770_v42  ;;  %v7512_v4 = vmax.f32 %v7476_v58, 0.0  ;;  %v14423_v54 = vpop.f32.mrf.mxu1 }
 0x52c   : > { %v10015_v46 = vpop.f32.mrf.mxu0 }
 0x52d   : > { %v7510_v35 = vmax.f32 %v7474_v50, 0.0  ;;  %v7434_v63 = vadd.f32 %v14273_v43, %v7102_v27  ;;  %v7105_v16 = vadd.f32 %v10015_v46, %v6773_v2  ;;  %v7544_v61 = vpack.c.bf16 %v7512_v4, %v7511_v13  ;;  %v15276_v43 = vld [vmem:[#allocation144_spill] sm:$0xff]  ;;  %v15279_v46 = vld [vmem:[#allocation146_spill] sm:$0xff] }
 0x52e   : > { %v6986_v53 = vpop.f32.mrf.mxu0  ;;  %v7479_v6 = vadd.f32 %v14374_v59, %v7436_v41  ;;  %v6774_v57 = vadd.f32 %v15276_v43, %v14236_v8  ;;  %v14431_v41 = vpop.f32.mrf.mxu1  ;;  %v15277_v8 = vld [vmem:[#allocation71_spill] sm:$0xff] }
 0x52f   : > { %v7437_v30 = vadd.f32 %v14286_v24, %v7105_v16  ;;  %v7103_v21 = vadd.f32 %v6986_v53, %v6771_v49  ;;  %v7543_v55 = vpack.c.bf16 %v7510_v35, %v7509_v1  ;;  %v7477_v37 = vadd.f32 %v14374_v59, %v7434_v63  ;;  %v15280_v1 = vld [vmem:[#allocation73_spill] sm:$0xff] }
 0x530   : > { %v10018_v26 = vpop.f32.mrf.mxu0  ;;  %v7515_v15 = vmax.f32 %v7479_v6, 0.0  ;;  %v6777_v7 = vadd.f32 %v15278_v19, %v15277_v8  ;;  %v6775_v35 = vadd.f32 %v15279_v46, %v14246_v22  ;;  %v15282_v22 = vld [vmem:[#allocation148_spill] sm:$0xff]  ;;  %v15287_v46 = vld [vmem:[#allocation58_spill] sm:$0xff] }
 0x531   : > { %v7480_v28 = vadd.f32 %v14374_v59, %v7437_v30  ;;  %v7435_v33 = vadd.f32 %v14296_v45, %v7103_v21  ;;  %v7108_v42 = vadd.f32 %v10018_v26, %v6776_v38  ;;  %10112 = vmatprep.mubr.bf16.mxu0 %v7543_v55  ;;  %v7513_v13 = vmax.f32 %v7477_v37, 0.0 }
 0x532   : > { %v6999_v24 = vpop.f32.mrf.mxu0  ;;  %10113 = vmatmul.mubr.bf16.gmra.mxu0 %v7544_v61  ;;  %v15281_v61 = vld [vmem:[#allocation147_spill] sm:$0xff] }
 0x533   : > { %v7516_v58 = vmax.f32 %v7480_v28, 0.0  ;;  %v7478_v32 = vadd.f32 %v14374_v59, %v7435_v33  ;;  %v7106_v50 = vadd.f32 %v6999_v24, %v6774_v57  ;;  %v7440_v27 = vadd.f32 %v14309_v31, %v7108_v42  ;;  %v14441_v31 = vpop.f32.mrf.mxu1  ;;  %v15284_v33 = vld [vmem:[#allocation149_spill] sm:$0xff] }
 0x534   : > { %v10019_v2 = vpop.f32.mrf.mxu0  ;;  %v6780_v53 = vadd.f32 %v15281_v61, %v15280_v1 }
 0x535   : > { %v7546_v4 = vpack.c.bf16 %v7516_v58, %v7515_v15  ;;  %v7514_v45 = vmax.f32 %v7478_v32, 0.0  ;;  %v7438_v63 = vadd.f32 %v14319_v23, %v7106_v50  ;;  %v7109_v16 = vadd.f32 %v10019_v2, %v6777_v7 }
 0x536   : > { %v7002_v52 = vpop.f32.mrf.mxu0  ;;  %v7483_v30 = vadd.f32 %v14374_v59, %v7440_v27  ;;  %v6778_v23 = vadd.f32 %v15282_v22, %v14259_v14  ;;  %v15285_v27 = vld [vmem:[#allocation150_spill] sm:$0xff]  ;;  %v15289_v22 = vld [vmem:[#allocation80_spill] sm:$0xff] }
 0x537   : > { %v7107_v49 = vadd.f32 %v7002_v52, %v6775_v35  ;;  %v7545_v6 = vpack.c.bf16 %v7514_v45, %v7513_v13  ;;  %v7441_v21 = vadd.f32 %v14332_v11, %v7109_v16  ;;  %v7481_v26 = vadd.f32 %v14374_v59, %v7438_v63  ;;  %v15283_v11 = vld [vmem:[#allocation78_spill] sm:$0xff]  ;;  %v15286_v45 = vld [vmem:[#allocation75_spill] sm:$0xff] }
 0x538   : > { %v10022_v48 = vpop.f32.mrf.mxu0  ;;  %v6781_v42 = vadd.f32 %v15284_v33, %v15283_v11  ;;  %v7519_v24 = vmax.f32 %v7483_v30, 0.0  ;;  %v6779_v8 = vadd.f32 %v15285_v27, %v14269_v25  ;;  %v6784_v35 = vadd.f32 %v15287_v46, %v15286_v45  ;;  %v15296_v46 = vld [vmem:[#allocation59_spill] sm:$0xff] }
 0x539   : > { %v7439_v20 = vadd.f32 %v14342_v51, %v7107_v49  ;;  %v7112_v38 = vadd.f32 %v10022_v48, %v6780_v53  ;;  %10116 = vmatprep.mubr.bf16.mxu0 %v7545_v6  ;;  %v7484_v55 = vadd.f32 %v14374_v59, %v7441_v21  ;;  %v14454_v51 = vpop.f32.mrf.mxu1  ;;  %v7517_v19 = vmax.f32 %v7481_v26, 0.0 }
 0x53a   : > { %v7015_v43 = vpop.f32.mrf.mxu0  ;;  %10117 = vmatmul.mubr.bf16.gmra.mxu0 %v7546_v4 }
 0x53b   : > { %v7482_v57 = vadd.f32 %v14374_v59, %v7439_v20  ;;  %v7444_v37 = vadd.f32 %v14353_v3, %v7112_v38  ;;  %v7110_v28 = vadd.f32 %v7015_v43, %v6778_v23  ;;  %v7520_v15 = vmax.f32 %v7484_v55, 0.0  ;;  %v14463_v63 = vpop.f32.mrf.mxu1 }
 0x53c   : > { %v10023_v58 = vpop.f32.mrf.mxu0 }
 0x53d   : > { %v7518_v14 = vmax.f32 %v7482_v57, 0.0  ;;  %v7442_v32 = vadd.f32 %v14362_v10, %v7110_v28  ;;  %v7113_v50 = vadd.f32 %v10023_v58, %v6781_v42  ;;  %v7548_v7 = vpack.c.bf16 %v7520_v15, %v7519_v24  ;;  %v15288_v10 = vld [vmem:[#allocation113_spill] sm:$0xff]  ;;  %v10086_v20 = vpop.f32.mrf.mxu1  ;;  %v15293_v15 = vld [vmem:[#allocation62_spill] sm:$0xff] }
 0x53e   : > { %v7018_v3 = vpop.f32.mrf.mxu0  ;;  %v7487_v2 = vadd.f32 %v14374_v59, %v7444_v37  ;;  %v6782_v49 = vadd.f32 %v15288_v10, %v14282_v12  ;;  %v15290_v12 = vld [vmem:[#allocation56_spill] sm:$0xff]  ;;  %v15292_v24 = vld [vmem:[#allocation133_spill] sm:$0xff] }
 0x53f   : > { %v7445_v13 = vadd.f32 %v14369_v5, %v7113_v50  ;;  %v7111_v4 = vadd.f32 %v7018_v3, %v6779_v8  ;;  %v7547_v52 = vpack.c.bf16 %v7518_v14, %v7517_v19  ;;  %v7485_v25 = vadd.f32 %v14374_v59, %v7442_v32 }
 0x540   : > { %v10026_v16 = vpop.f32.mrf.mxu0  ;;  %v7523_v6 = vmax.f32 %v7487_v2, 0.0  ;;  %v6785_v23 = vadd.f32 %v15290_v12, %v15289_v22  ;;  %v6788_v58 = vadd.f32 %v15293_v15, %v15292_v24  ;;  %v15301_v15 = vld [vmem:[#allocation121_spill] sm:$0xff] }
 0x541   : > { %v7488_v1 = vadd.f32 %v14374_v59, %v7445_v13  ;;  %v7443_v61 = vadd.f32 %v14383_v34, %v7111_v4  ;;  %v7116_v53 = vadd.f32 %v10026_v16, %v6784_v35  ;;  %10120 = vmatprep.mubr.bf16.mxu0 %v7547_v52  ;;  %v7521_v55 = vmax.f32 %v7485_v25, 0.0  ;;  %v15291_v34 = vld [vmem:[#allocation57_spill] sm:$0xff] }
 0x542   : > { %v7031_v5 = vpop.f32.mrf.mxu0  ;;  %10121 = vmatmul.mubr.bf16.gmra.mxu0 %v7548_v7  ;;  %v6783_v37 = vadd.f32 %v15291_v34, %v14292_v36  ;;  %v15294_v36 = vld [vmem:[#allocation117_spill] sm:$0xff] }
 0x543   : > { %v7524_v30 = vmax.f32 %v7488_v1, 0.0  ;;  %v7486_v21 = vadd.f32 %v14374_v59, %v7443_v61  ;;  %v7114_v48 = vadd.f32 %v7031_v5, %v6782_v49  ;;  %v7448_v38 = vadd.f32 %v14391_v9, %v7116_v53  ;;  %v7395_v9 = vpop.f32.mrf.mxu1  ;;  %v15297_v1 = vld [vmem:[#allocation64_spill] sm:$0xff] }
 0x544   : > { %v10027_v26 = vpop.f32.mrf.mxu0  ;;  %v6787_v61 = vadd.f32 %v15297_v1, %v14315_v40 }
 0x545   : > { %v7550_v43 = vpack.c.bf16 %v7524_v30, %v7523_v6  ;;  %v7522_v57 = vmax.f32 %v7486_v21, 0.0  ;;  %v7446_v28 = vadd.f32 %v14401_v39, %v7114_v48  ;;  %v7117_v11 = vadd.f32 %v10027_v26, %v6785_v23  ;;  %v15298_v48 = vld [vmem:[#allocation135_spill] sm:$0xff] }
 0x546   : > { %v7034_v33 = vpop.f32.mrf.mxu0  ;;  %v7491_v32 = vadd.f32 %v14374_v59, %v7448_v38  ;;  %v6786_v39 = vadd.f32 %v15294_v36, %v14305_v44  ;;  %v15299_v38 = vld [vmem:[#allocation119_spill] sm:$0xff] }
 0x547   : > { %v7115_v42 = vadd.f32 %v7034_v33, %v6783_v37  ;;  %v7549_v14 = vpack.c.bf16 %v7522_v57, %v7521_v55  ;;  %v7449_v50 = vadd.f32 %v14414_v29, %v7117_v11  ;;  %v7489_v7 = vadd.f32 %v14374_v59, %v7446_v28  ;;  %v15295_v29 = vld [vmem:[#allocation82_spill] sm:$0xff] }
 0x548   : > { %v10030_v27 = vpop.f32.mrf.mxu0  ;;  %v6789_v35 = vadd.f32 %v15296_v46, %v15295_v29  ;;  %v7527_v16 = vmax.f32 %v7491_v32, 0.0  ;;  %v6792_v22 = vadd.f32 %v15299_v38, %v15298_v48  ;;  %v15304_v46 = vld [vmem:[#allocation70_spill] sm:$0xff] }
 0x549   : > { %v7447_v8 = vadd.f32 %v14423_v54, %v7115_v42  ;;  %v7120_v19 = vadd.f32 %v10030_v27, %v6788_v58  ;;  %10124 = vmatprep.mubr.bf16.mxu0 %v7549_v14  ;;  %v7492_v3 = vadd.f32 %v14374_v59, %v7449_v50  ;;  %v10087_v54 = vpop.f32.mrf.mxu1  ;;  %v7525_v53 = vmax.f32 %v7489_v7, 0.0 }
 0x54a   : > { %v7047_v2 = vpop.f32.mrf.mxu0  ;;  %10125 = vmatmul.mubr.bf16.gmra.mxu0 %v7550_v43 }
 0x54b   : > { %v7490_v13 = vadd.f32 %v14374_v59, %v7447_v8  ;;  %v7452_v4 = vadd.f32 %v14431_v41, %v7120_v19  ;;  %v7118_v45 = vadd.f32 %v7047_v2, %v6786_v39  ;;  %v7528_v52 = vmax.f32 %v7492_v3, 0.0  ;;  %v7398_v12 = vpop.f32.mrf.mxu1  ;;  %v15303_v3 = vld [vmem:[#allocation65_spill] sm:$0xff] }
 0x54c   : > { %v10031_v10 = vpop.f32.mrf.mxu0  ;;  %v6796_v2 = vadd.f32 %v15303_v3, %v14345_v62 }
 0x54d   : > { %v7526_v49 = vmax.f32 %v7490_v13, 0.0  ;;  %v7450_v44 = vadd.f32 %v14441_v31, %v7118_v45  ;;  %v7121_v25 = vadd.f32 %v10031_v10, %v6789_v35  ;;  %v7552_v5 = vpack.c.bf16 %v7528_v52, %v7527_v16  ;;  %v15300_v31 = vld [vmem:[#allocation66_spill] sm:$0xff] }
 0x54e   : > { %v7050_v6 = vpop.f32.mrf.mxu0  ;;  %v7495_v41 = vadd.f32 %v14374_v59, %v7452_v4  ;;  %v6790_v55 = vadd.f32 %v15300_v31, %v14328_v18  ;;  %v6793_v18 = vadd.f32 %v15301_v15, %v14334_v47  ;;  %v6794_v35 = vadd.f32 %v15304_v46, %v14349_v0  ;;  %v15307_v15 = vld [vmem:[#allocation30_spill] sm:$0xff] }
 0x54f   : > { %v7453_v30 = vadd.f32 %v14454_v51, %v7121_v25  ;;  %v7119_v21 = vadd.f32 %v7050_v6, %v6787_v61  ;;  %v7551_v26 = vpack.c.bf16 %v7526_v49, %v7525_v53  ;;  %v7493_v43 = vadd.f32 %v14374_v59, %v7450_v44  ;;  %v10090_v51 = vpop.f32.mrf.mxu1  ;;  %v15306_v6 = vld [vmem:[#allocation72_spill] sm:$0xff] }
 0x550   : > { %v10034_v23 = vpop.f32.mrf.mxu0  ;;  %v7531_v28 = vmax.f32 %v7495_v41, 0.0  ;;  %v6795_v41 = vadd.f32 %v15306_v6, %v14358_v56  ;;  %v15315_v6 = vld [vmem:[#allocation21_spill] sm:$0xff] }
 0x551   : > { %v7496_v40 = vadd.f32 %v14374_v59, %v7453_v30  ;;  %v7451_v57 = vadd.f32 %v14463_v63, %v7119_v21  ;;  %v7124_v34 = vadd.f32 %v10034_v23, %v6792_v22  ;;  %10128 = vmatprep.mubr.bf16.mxu0 %v7551_v26  ;;  %v7529_v14 = vmax.f32 %v7493_v43, 0.0  ;;  %v15302_v63 = vld [vmem:[#allocation63_spill] sm:$0xff]  ;;  %v7411_v39 = vpop.f32.mrf.mxu1 }
 0x552   : > { %v7063_v37 = vpop.f32.mrf.mxu0  ;;  %10129 = vmatmul.mubr.bf16.gmra.mxu0 %v7552_v5  ;;  %v6791_v27 = vadd.f32 %v15302_v63, %v14338_v60 }
 0x553   : > { %v7532_v11 = vmax.f32 %v7496_v40, 0.0  ;;  %v7494_v33 = vadd.f32 %v14374_v59, %v7451_v57  ;;  %v7122_v42 = vadd.f32 %v7063_v37, %v6790_v55  ;;  %v7456_v24 = vadd.f32 %v10086_v20, %v7124_v34  ;;  %v10091_v52 = vpop.f32.mrf.mxu1 }
 0x554   : > { %v10035_v58 = vpop.f32.mrf.mxu0 }
 0x555   : > { %v7554_v32 = vpack.c.bf16 %v7532_v11, %v7531_v28  ;;  %v7530_v50 = vmax.f32 %v7494_v33, 0.0  ;;  %v7454_v8 = vadd.f32 %v7395_v9, %v7122_v42  ;;  %v7125_v19 = vadd.f32 %v10035_v58, %v6793_v18  ;;  %v7414_v38 = vpop.f32.mrf.mxu1  ;;  %v8615_v42 = vld.sshfl [vmem:[%s14744_s11] sm:$0x13 pattern:$0x75316420] }
 0x556   : > { %v7066_v36 = vpop.f32.mrf.mxu0  ;;  %v7499_v20 = vadd.f32 %v14374_v59, %v7456_v24  ;;  %v10563_v28 = vmov 1966171168   ;;  %v7906_v24 = vcombine.high %v8615_v42, %v8615_v42 }
 0x557   : > { %v7123_v7 = vadd.f32 %v7066_v36, %v6791_v27  ;;  %v7553_v13 = vpack.c.bf16 %v7530_v50, %v7529_v14  ;;  %v7457_v4 = vadd.f32 %v10087_v54, %v7125_v19  ;;  %v7497_v60 = vadd.f32 %v14374_v59, %v7454_v8  ;;  %v15305_v54 = vld [vmem:[#allocation67_spill] sm:$0xff]  ;;  %v14532_v14 = vld [vmem:[%s14741_s8] ss:$0 sm:$0xff]  ;;  %v15308_v27 = vld [vmem:[#allocation20_spill] sm:$0xff] }
 0x558   : > { %v10038_v47 = vpop.f32.mrf.mxu0  ;;  %v6797_v44 = vadd.f32 %v15305_v54, %v14355_v17  ;;  %v7535_v25 = vmax.f32 %v7499_v20, 0.0  ;;  %v7908_v11 = vunpack.c.l.s4 %v10563_v28 }
 0x559   : > { %v7455_v45 = vadd.f32 %v7398_v12, %v7123_v7  ;;  %v7128_v29 = vadd.f32 %v10038_v47, %v6796_v2  ;;  %10132 = vmatprep.mubr.bf16.mxu0 %v7553_v13  ;;  %v7500_v9 = vadd.f32 %v14374_v59, %v7457_v4  ;;  %v7533_v30 = vmax.f32 %v7497_v60, 0.0  ;;  %v15310_v7 = vld [vmem:[#allocation31_spill] sm:$0xff]  ;;  %v15312_v47 = vld [vmem:[#allocation32_spill] sm:$0xff] }
 0x55a   : > { %v7079_v16 = vpop.f32.mrf.mxu0  ;;  %10133 = vmatmul.mubr.bf16.gmra.mxu0 %v7554_v32  ;;  %v7909_v33 = vunpack.c.0.s8 %v7908_v11  ;;  %v15311_v2 = vld [vmem:[#allocation11_spill] sm:$0xff] }
 0x55b   : > { %v7498_v10 = vadd.f32 %v14374_v59, %v7455_v45  ;;  %v7126_v62 = vadd.f32 %v7079_v16, %v6794_v35  ;;  %v7460_v49 = vadd.f32 %v10090_v51, %v7128_v29  ;;  %v7536_v1 = vmax.f32 %v7500_v9, 0.0 }
 0x55c   : > { %v10039_v61 = vpop.f32.mrf.mxu0  ;;  %v7912_v18 = vsub.s32 %v7909_v33, %v15307_v15  ;;  %v15318_v33 = vld [vmem:[#allocation34_spill] sm:$0xff] }
 0x55d   : > { %v7534_v53 = vmax.f32 %v7498_v10, 0.0  ;;  %v7129_v5 = vadd.f32 %v10039_v61, %v6797_v44  ;;  %v7458_v0 = vadd.f32 %v7411_v39, %v7126_v62  ;;  %v7556_v21 = vpack.c.bf16 %v7536_v1, %v7535_v25  ;;  %v15309_v39 = vld [vmem:[#allocation10_spill] sm:$0xff]  ;;  %v15313_v44 = vld [vmem:[#allocation12_spill] sm:$0xff] }
 0x55e   : > { %v7082_v48 = vpop.f32.mrf.mxu0  ;;  %v7503_v22 = vadd.f32 %v14374_v59, %v7460_v49  ;;  %v14527_v58 = vrot.slane %v8615_v42, %v7912_v18  ;;  %v3583_v3 = vadd.f32 %v15310_v7, %v15309_v39  ;;  %v3573_v45 = vadd.f32 %v15312_v47, %v15309_v39 }
 0x55f   : > { %v7127_v12 = vadd.f32 %v7082_v48, %v6795_v41  ;;  %v7461_v23 = vadd.f32 %v10091_v52, %v7129_v5  ;;  %v7555_v26 = vpack.c.bf16 %v7534_v53, %v7533_v30  ;;  %v7501_v17 = vadd.f32 %v14374_v59, %v7458_v0  ;;  %v15314_v5 = vld [vmem:[#allocation13_spill] sm:$0xff] }
 0x560   : > { %v7539_v43 = vmax.f32 %v7503_v22, 0.0  ;;  %v3603_v0 = vadd.f32 %v15314_v5, %v15309_v39  ;;  %v15316_v48 = vld [vmem:[#allocation33_spill] sm:$0xff] }
 0x561   : > { %v7504_v31 = vadd.f32 %v14374_v59, %v7461_v23  ;;  %v7459_v55 = vadd.f32 %v7414_v38, %v7127_v12  ;;  %10136 = vmatprep.mubr.bf16.mxu0 %v7555_v26  ;;  %v7537_v56 = vmax.f32 %v7501_v17, 0.0  ;;  %v3593_v38 = vadd.f32 %v15316_v48, %v15309_v39 }
 0x562   : > { %10137 = vmatmul.mubr.bf16.gmra.mxu0 %v7556_v21 }
 0x563   : > { %v7540_v40 = vmax.f32 %v7504_v31, 0.0  ;;  %v7502_v57 = vadd.f32 %v14374_v59, %v7459_v55  ;;  %v7920_v59 = vrot.slane %v7906_v24, %v7912_v18  ;;  %v15319_v18 = vld [vmem:[#allocation22_spill] sm:$0xff] }
 0x565   : > { %v7558_v34 = vpack.c.bf16 %v7540_v40, %v7539_v43  ;;  %v7538_v37 = vmax.f32 %v7502_v57, 0.0  ;;  %7960 = vmatprep.mubr.bf16.mxu1 %v7920_v59  ;;  %v3613_v59 = vadd.f32 %v15319_v18, %v15309_v39 }
 0x567   : > { %v7557_v51 = vpack.c.bf16 %v7538_v37, %v7537_v56 }
 0x569   : > { %10140 = vmatprep.mubr.bf16.mxu0 %v7557_v51  ;;  %v15317_v51 = vld [vmem:[#allocation23_spill] sm:$0xff] }
 0x56a   : > { %10141 = vmatmul.mubr.bf16.gmra.mxu0 %v7558_v34  ;;  %v3623_v28 = vadd.f32 %v15317_v51, %v15309_v39 }
 0x5ea   : > { %v10110_v32 = vpop.f32.mrf.mxu0 }
 0x5eb   : > { %v7673_v50 = vadd.f32 %v10110_v32, %v14532_v14  ;;  %v15320_v32 = vld [vmem:[#allocation35_spill] sm:$0xff] }
 0x5ec   : > { %v7664_v63 = vpop.f32.mrf.mxu0 }
 0x5ed   : > { %v7809_v8 = vadd.f32 %v7673_v50, %v15308_v27  ;;  %v7665_v19 = vadd.f32 %v14532_v14, %v7664_v63 }
 0x5ee   : > { %v10111_v36 = vpop.f32.mrf.mxu0 }
 0x5ef   : > { %v7807_v13 = vadd.f32 %v7665_v19, %v15311_v2  ;;  %v7676_v20 = vadd.f32 %v10111_v36, %v14532_v14  ;;  %v7845_v35 = vmax.f32 %v7809_v8, 0.0 }
 0x5f0   : > { %v7667_v4 = vpop.f32.mrf.mxu0 }
 0x5f1   : > { %v7810_v29 = vadd.f32 %v7676_v20, %v3583_v3  ;;  %v7668_v46 = vadd.f32 %v14532_v14, %v7667_v4  ;;  %v7843_v10 = vmax.f32 %v7807_v13, 0.0 }
 0x5f2   : > { %v10114_v16 = vpop.f32.mrf.mxu0 }
 0x5f3   : > { %v7846_v60 = vmax.f32 %v7810_v29, 0.0  ;;  %v7808_v9 = vadd.f32 %v7668_v46, %v3573_v45  ;;  %v7689_v52 = vadd.f32 %v10114_v16, %v14532_v14  ;;  %v15321_v29 = vld [vmem:[#allocation38_spill] sm:$0xff] }
 0x5f4   : > { %v7680_v54 = vpop.f32.mrf.mxu0  ;;  %v3643_v46 = vadd.f32 %v15321_v29, %v15309_v39 }
 0x5f5   : > { %v14545_v62 = vpack.c.bf16 %v7846_v60, %v7845_v35  ;;  %v7844_v49 = vmax.f32 %v7808_v9, 0.0  ;;  %v7813_v25 = vadd.f32 %v7689_v52, %v15313_v44  ;;  %v7681_v1 = vadd.f32 %v14532_v14, %v7680_v54  ;;  %v15322_v60 = vld [vmem:[#allocation15_spill] sm:$0xff]  ;;  %v15324_v54 = vld [vmem:[#allocation36_spill] sm:$0xff] }
 0x5f6   : > { %v10115_v53 = vpop.f32.mrf.mxu0 }
 0x5f7   : > { %v14549_v61 = vpack.c.bf16 %v7844_v49, %v7843_v10  ;;  %v7811_v41 = vadd.f32 %v7681_v1, %v15315_v6  ;;  %v7692_v30 = vadd.f32 %v10115_v53, %v14532_v14  ;;  %v7849_v26 = vmax.f32 %v7813_v25, 0.0  ;;  %v15323_v10 = vld [vmem:[#allocation14_spill] sm:$0xff] }
 0x5f8   : > { %v7683_v21 = vpop.f32.mrf.mxu0  ;;  %v3633_v49 = vadd.f32 %v15323_v10, %v15309_v39 }
 0x5f9   : > { %v7814_v22 = vadd.f32 %v7692_v30, %v3603_v0  ;;  %v7684_v12 = vadd.f32 %v14532_v14, %v7683_v21  ;;  %v7847_v40 = vmax.f32 %v7811_v41, 0.0 }
 0x5fa   : > { %v10118_v23 = vpop.f32.mrf.mxu0 }
 0x5fb   : > { %v7850_v17 = vmax.f32 %v7814_v22, 0.0  ;;  %v7812_v31 = vadd.f32 %v7684_v12, %v3593_v38  ;;  %v7705_v55 = vadd.f32 %v10118_v23, %v14532_v14  ;;  %v15325_v23 = vld [vmem:[#allocation39_spill] sm:$0xff] }
 0x5fc   : > { %v7696_v43 = vpop.f32.mrf.mxu0 }
 0x5fd   : > { %v14559_v57 = vpack.c.bf16 %v7850_v17, %v7849_v26  ;;  %v7848_v56 = vmax.f32 %v7812_v31, 0.0  ;;  %v7697_v34 = vadd.f32 %v14532_v14, %v7696_v43  ;;  %v7817_v42 = vadd.f32 %v7705_v55, %v15318_v33  ;;  %v15326_v31 = vld [vmem:[#allocation25_spill] sm:$0xff] }
 0x5fe   : > { %v10119_v37 = vpop.f32.mrf.mxu0  ;;  %v3663_v26 = vadd.f32 %v15325_v23, %v15309_v39 }
 0x5ff   : > { %v14564_v11 = vpack.c.bf16 %v7848_v56, %v7847_v40  ;;  %v7708_v24 = vadd.f32 %v10119_v37, %v14532_v14  ;;  %v7815_v50 = vadd.f32 %v7697_v34, %v15320_v32  ;;  %v7853_v19 = vmax.f32 %v7817_v42, 0.0  ;;  %v15327_v56 = vld [vmem:[#allocation37_spill] sm:$0xff]  ;;  %v15328_v37 = vld [vmem:[#allocation24_spill] sm:$0xff] }
 0x600   : > { %v7699_v15 = vpop.f32.mrf.mxu0  ;;  %v3653_v34 = vadd.f32 %v15327_v56, %v15309_v39 }
 0x601   : > { %v7818_v63 = vadd.f32 %v7708_v24, %v3623_v28  ;;  %v7700_v27 = vadd.f32 %v14532_v14, %v7699_v15  ;;  %v7851_v13 = vmax.f32 %v7815_v50, 0.0 }
 0x602   : > { %v10122_v8 = vpop.f32.mrf.mxu0 }
 0x603   : > { %v7854_v36 = vmax.f32 %v7818_v63, 0.0  ;;  %v7816_v7 = vadd.f32 %v7700_v27, %v3613_v59  ;;  %v7721_v3 = vadd.f32 %v10122_v8, %v14532_v14 }
 0x604   : > { %v7712_v2 = vpop.f32.mrf.mxu0 }
 0x605   : > { %v14573_v20 = vpack.c.bf16 %v7854_v36, %v7853_v19  ;;  %v7852_v4 = vmax.f32 %v7816_v7, 0.0  ;;  %v7713_v47 = vadd.f32 %v14532_v14, %v7712_v2  ;;  %v7821_v9 = vadd.f32 %v7721_v3, %v15322_v60  ;;  %v15329_v36 = vld [vmem:[#allocation8_spill] sm:$0xff]  ;;  %v15330_v3 = vld [vmem:[#allocation41_spill] sm:$0xff] }
 0x606   : > { %v10123_v45 = vpop.f32.mrf.mxu0  ;;  %v3683_v7 = vadd.f32 %v15329_v36, %v15309_v39 }
 0x607   : > { %v14578_v35 = vpack.c.bf16 %v7852_v4, %v7851_v13  ;;  %v7724_v16 = vadd.f32 %v10123_v45, %v14532_v14  ;;  %v7819_v44 = vadd.f32 %v7713_v47, %v15324_v54  ;;  %v7857_v5 = vmax.f32 %v7821_v9, 0.0  ;;  %v15331_v45 = vld [vmem:[#allocation17_spill] sm:$0xff] }
 0x608   : > { %v7715_v52 = vpop.f32.mrf.mxu0  ;;  %v3673_v29 = vadd.f32 %v15331_v45, %v15309_v39 }
 0x609   : > { %v7822_v25 = vadd.f32 %v7724_v16, %v3643_v46  ;;  %v7716_v1 = vadd.f32 %v14532_v14, %v7715_v52  ;;  %v7855_v21 = vmax.f32 %v7819_v44, 0.0  ;;  %v15332_v46 = vld [vmem:[#allocation16_spill] sm:$0xff] }
 0x60a   : > { %v10126_v53 = vpop.f32.mrf.mxu0 }
 0x60b   : > { %v7858_v0 = vmax.f32 %v7822_v25, 0.0  ;;  %v7820_v6 = vadd.f32 %v7716_v1, %v3633_v49  ;;  %v7737_v41 = vadd.f32 %v10126_v53, %v14532_v14 }
 0x60c   : > { %v7728_v30 = vpop.f32.mrf.mxu0 }
 0x60d   : > { %v14587_v48 = vpack.c.bf16 %v7858_v0, %v7857_v5  ;;  %v7856_v38 = vmax.f32 %v7820_v6, 0.0  ;;  %v7729_v22 = vadd.f32 %v14532_v14, %v7728_v30  ;;  %v7825_v55 = vadd.f32 %v7737_v41, %v15326_v31  ;;  %v15333_v41 = vld [vmem:[#allocation18_spill] sm:$0xff] }
 0x60e   : > { %v10127_v12 = vpop.f32.mrf.mxu0  ;;  %v3703_v30 = vadd.f32 %v15333_v41, %v15309_v39  ;;  %v15342_v41 = vld [vmem:[#allocation29_spill] sm:$0xff] }
 0x60f   : > { %v14592_v17 = vpack.c.bf16 %v7856_v38, %v7855_v21  ;;  %v7740_v43 = vadd.f32 %v10127_v12, %v14532_v14  ;;  %v7823_v51 = vadd.f32 %v7729_v22, %v15328_v37  ;;  %v7861_v24 = vmax.f32 %v7825_v55, 0.0  ;;  %v15334_v21 = vld [vmem:[#allocation40_spill] sm:$0xff]  ;;  %v15336_v55 = vld [vmem:[#allocation9_spill] sm:$0xff] }
 0x610   : > { %v7731_v40 = vpop.f32.mrf.mxu0 }
 0x611   : > { %v7826_v28 = vadd.f32 %v7740_v43, %v3663_v26  ;;  %v7732_v33 = vadd.f32 %v14532_v14, %v7731_v40  ;;  %v7859_v50 = vmax.f32 %v7823_v51, 0.0  ;;  %v15335_v26 = vld [vmem:[#allocation26_spill] sm:$0xff] }
 0x612   : > { %v10130_v42 = vpop.f32.mrf.mxu0  ;;  %v3693_v31 = vadd.f32 %v15335_v26, %v15309_v39 }
 0x613   : > { %v7862_v15 = vmax.f32 %v7826_v28, 0.0  ;;  %v7824_v18 = vadd.f32 %v7732_v33, %v3653_v34  ;;  %v7753_v59 = vadd.f32 %v10130_v42, %v14532_v14 }
 0x614   : > { %v7744_v32 = vpop.f32.mrf.mxu0 }
 0x615   : > { %v7860_v63 = vmax.f32 %v7824_v18, 0.0  ;;  %v7745_v27 = vadd.f32 %v14532_v14, %v7744_v32  ;;  %v14602_v8 = vpack.c.bf16 %v7862_v15, %v7861_v24  ;;  %v7829_v2 = vadd.f32 %v7753_v59, %v15330_v3 }
 0x616   : > { %v10131_v19 = vpop.f32.mrf.mxu0 }
 0x617   : > { %v7756_v13 = vadd.f32 %v10131_v19, %v14532_v14  ;;  %v14608_v4 = vpack.c.bf16 %v7860_v63, %v7859_v50  ;;  %v7827_v60 = vadd.f32 %v7745_v27, %v15332_v46  ;;  %v7865_v10 = vmax.f32 %v7829_v2, 0.0  ;;  %v15337_v50 = vld [vmem:[#allocation44_spill] sm:$0xff]  ;;  %v15338_v27 = vld [vmem:[#allocation19_spill] sm:$0xff]  ;;  %v15339_v2 = vld [vmem:[#allocation42_spill] sm:$0xff] }
 0x618   : > { %v7747_v47 = vpop.f32.mrf.mxu0  ;;  %v3723_v63 = vadd.f32 %v15337_v50, %v15309_v39 }
 0x619   : > { %v7830_v9 = vadd.f32 %v7756_v13, %v3683_v7  ;;  %v7748_v16 = vadd.f32 %v14532_v14, %v7747_v47  ;;  %v7863_v1 = vmax.f32 %v7827_v60, 0.0  ;;  %v3713_v13 = vadd.f32 %v15339_v2, %v15309_v39  ;;  %v15340_v47 = vld [vmem:[#allocation27_spill] sm:$0xff] }
 0x61a   : > { %v10134_v52 = vpop.f32.mrf.mxu0 }
 0x61b   : > { %v7866_v49 = vmax.f32 %v7830_v9, 0.0  ;;  %v7828_v54 = vadd.f32 %v7748_v16, %v3673_v29  ;;  %v7769_v44 = vadd.f32 %v10134_v52, %v14532_v14 }
 0x61c   : > { %v7760_v25 = vpop.f32.mrf.mxu0 }
 0x61d   : > { %v7864_v53 = vmax.f32 %v7828_v54, 0.0  ;;  %v7761_v5 = vadd.f32 %v14532_v14, %v7760_v25  ;;  %v14616_v0 = vpack.c.bf16 %v7866_v49, %v7865_v10  ;;  %v7833_v38 = vadd.f32 %v7769_v44, %v15334_v21 }
 0x61e   : > { %v10135_v6 = vpop.f32.mrf.mxu0 }
 0x61f   : > { %v7772_v22 = vadd.f32 %v10135_v6, %v14532_v14  ;;  %v7890_v12 = vpack.c.bf16 %v7864_v53, %v7863_v1  ;;  %v7831_v43 = vadd.f32 %v7761_v5, %v15336_v55  ;;  %v7869_v37 = vmax.f32 %v7833_v38, 0.0  ;;  %v15341_v5 = vld [vmem:[#allocation45_spill] sm:$0xff] }
 0x620   : > { %v7763_v23 = vpop.f32.mrf.mxu0  ;;  %v3743_v6 = vadd.f32 %v15341_v5, %v15309_v39 }
 0x621   : > { %v7834_v40 = vadd.f32 %v7772_v22, %v3703_v30  ;;  %v7764_v56 = vadd.f32 %v14532_v14, %v7763_v23  ;;  %v7867_v24 = vmax.f32 %v7831_v43, 0.0  ;;  %v15343_v23 = vld [vmem:[#allocation43_spill] sm:$0xff] }
 0x622   : > { %v10138_v34 = vpop.f32.mrf.mxu0  ;;  %v3733_v26 = vadd.f32 %v15343_v23, %v15309_v39  ;;  %v7921_v39 = vcombine.high %v14527_v58, %v14527_v58 }
 0x623   : > { %v7870_v51 = vmax.f32 %v7834_v40, 0.0  ;;  %v7832_v28 = vadd.f32 %v7764_v56, %v3693_v31  ;;  %v7785_v33 = vadd.f32 %v10138_v34, %v14532_v14  ;;  %v15344_v31 = vld [vmem:[#allocation28_spill] sm:$0xff] }
 0x624   : > { %v7776_v42 = vpop.f32.mrf.mxu0 }
 0x625   : > { %v7868_v15 = vmax.f32 %v7832_v28, 0.0  ;;  %v7777_v18 = vadd.f32 %v14532_v14, %v7776_v42  ;;  %v7893_v59 = vpack.c.bf16 %v7870_v51, %v7869_v37  ;;  %v7837_v19 = vadd.f32 %v7785_v33, %v15338_v27 }
 0x626   : > { %v10139_v32 = vpop.f32.mrf.mxu0 }
 0x627   : > { %v7788_v36 = vadd.f32 %v10139_v32, %v14532_v14  ;;  %v7892_v7 = vpack.c.bf16 %v7868_v15, %v7867_v24  ;;  %v7835_v45 = vadd.f32 %v7777_v18, %v15340_v47  ;;  %v7873_v9 = vmax.f32 %v7837_v19, 0.0 }
 0x628   : > { %v7779_v3 = vpop.f32.mrf.mxu0 }
 0x629   : > { %v7838_v29 = vadd.f32 %v7788_v36, %v3723_v63  ;;  %v7780_v46 = vadd.f32 %v14532_v14, %v7779_v3  ;;  %v7871_v54 = vmax.f32 %v7835_v45, 0.0  ;;  %v8025_v63 = vld [vmem:[%s14743_s10] sm:$0x1] }
 0x62a   : > { %v10142_v60 = vpop.f32.mrf.mxu0 }
 0x62b   : > { %v7874_v16 = vmax.f32 %v7838_v29, 0.0  ;;  %v7836_v52 = vadd.f32 %v7780_v46, %v3713_v13  ;;  %v7801_v10 = vadd.f32 %v10142_v60, %v14532_v14 }
 0x62c   : > { %v7792_v49 = vpop.f32.mrf.mxu0 }
 0x62d   : > { %v7872_v44 = vmax.f32 %v7836_v52, 0.0  ;;  %v7793_v25 = vadd.f32 %v14532_v14, %v7792_v49  ;;  %v7895_v1 = vpack.c.bf16 %v7874_v16, %v7873_v9  ;;  %v7841_v30 = vadd.f32 %v7801_v10, %v15342_v41 }
 0x62e   : > { %v10143_v53 = vpop.f32.mrf.mxu0 }
 0x62f   : > { %v7804_v21 = vadd.f32 %v10143_v53, %v14532_v14  ;;  %9122 = vmatprep.subr.bf16.mxu1 %v7895_v1  ;;  %v7894_v38 = vpack.c.bf16 %v7872_v44, %v7871_v54  ;;  %v7839_v55 = vadd.f32 %v7793_v25, %v15344_v31  ;;  %v7877_v56 = vmax.f32 %v7841_v30, 0.0 }
 0x630   : > { %v7795_v22 = vpop.f32.mrf.mxu0  ;;  %9123 = vmatpush3.bf16.msra.mxu1 %v14587_v48  ;;  %v10471_v48 = vld [vmem:[%s14742_s9] sm:$0xff]  }
 0x631   : > { %v7842_v43 = vadd.f32 %v7804_v21, %v3743_v6  ;;  %v7796_v40 = vadd.f32 %v14532_v14, %v7795_v22  ;;  %9124 = vmatprep.subr.bf16.mxu1 %v7894_v38  ;;  %v7875_v51 = vmax.f32 %v7839_v55, 0.0  ;;  %v10473_v14 = vld [vmem:[#allocation2] sm:$0xff] }
 0x633   : > { %v7878_v34 = vmax.f32 %v7842_v43, 0.0  ;;  %v7840_v37 = vadd.f32 %v7796_v40, %v3733_v26 }
 0x634   : > { %9125 = vmatpush3.bf16.msra.mxu1 %v14592_v17 }
 0x635   : > { %v7897_v28 = vpack.c.bf16 %v7878_v34, %v7877_v56  ;;  %v7876_v33 = vmax.f32 %v7840_v37, 0.0  ;;  %9126 = vmatprep.subr.bf16.mxu1 %v7893_v59 }
 0x637   : > { %v7896_v42 = vpack.c.bf16 %v7876_v33, %v7875_v51 }
 0x638   : > { %9127 = vmatpush3.bf16.msra.mxu1 %v14573_v20  ;;  %v10469_v20 = vld [vmem:[%s14742_s9 + $0x10] sm:$0xff]  }
 0x639   : > { %9128 = vmatprep.subr.bf16.mxu1 %v7892_v7 }
 0x63c   : > { %9129 = vmatpush3.bf16.msra.mxu1 %v14578_v35  ;;  %v10470_v35 = vld [vmem:[%s14742_s9 + $0x8] sm:$0xff]  }
 0x63d   : > { %9130 = vmatprep.subr.bf16.mxu1 %v14616_v0 }
 0x640   : > { %9131 = vmatpush3.bf16.msra.mxu1 %v14559_v57  ;;  %v10467_v57 = vld [vmem:[%s14742_s9 + $0x20] sm:$0xff]  }
 0x641   : > { %9132 = vmatprep.subr.bf16.mxu1 %v7890_v12 }
 0x644   : > { %9133 = vmatpush3.bf16.msra.mxu1 %v14564_v11  ;;  %v10468_v11 = vld [vmem:[%s14742_s9 + $0x18] sm:$0xff]  }
 0x645   : > { %9134 = vmatprep.subr.bf16.mxu1 %v14602_v8 }
 0x648   : > { %9135 = vmatpush3.bf16.msra.mxu1 %v14545_v62  ;;  %v10464_v62 = vld [vmem:[%s14742_s9 + $0x38] sm:$0xff]  }
 0x649   : > { %9136 = vmatprep.subr.bf16.mxu1 %v14608_v4 }
 0x64c   : > { %9137 = vmatpush3.bf16.msra.mxu1 %v14549_v61  ;;  %v10465_v61 = vld [vmem:[%s14742_s9 + $0x30] sm:$0xff]  }
 0x64d   : > { %10144 = vmatprep.subr.bf16.mxu1 %v10473_v14 }
 0x64f   : > { %7961 = vmatmul.mubr.bf16.vlgmr.msra.gmra.mxu1 %v14527_v58  ;;  %v10466_v58 = vld [vmem:[%s14742_s9 + $0x28] sm:$0xff]  }
 0x650   : > { %10145 = vmatpush3.bf16.msra.mxu1 %v7897_v28  ;;  %10148 = vmatprep.mubr.msk.bf16.mxu1 %vm10564_vm4, %v10473_v14 }
 0x651   : > { %10146 = vmatprep.subr.bf16.mxu1 %v10473_v14 }
 0x654   : > { %10147 = vmatpush3.bf16.msra.mxu1 %v7896_v42 }
 0x655   : > { %10152 = vmatprep.subr.bf16.mxu1 %v10473_v14 }
 0x657   : > { %10149 = vmatmul.mubr.msk.bf16.vlgmr.msra.gmra.mxu1 %vm7924_vm2, %v7921_v39 }
 0x658   : > { %10153 = vmatpush3.bf16.msra.mxu1 %v10464_v62  ;;  %10168 = vmatprep.mubr.msk.bf16.mxu1 %vm10564_vm4, %v10473_v14 }
 0x659   : > { %10154 = vmatprep.subr.bf16.mxu1 %v10473_v14 }
 0x65c   : > { %10155 = vmatpush3.bf16.msra.mxu1 %v10465_v61 }
 0x65d   : > { %10156 = vmatprep.subr.bf16.mxu1 %v10473_v14 }
 0x660   : > { %10157 = vmatpush3.bf16.msra.mxu1 %v10466_v58 }
 0x661   : > { %10158 = vmatprep.subr.bf16.mxu1 %v10473_v14 }
 0x664   : > { %10159 = vmatpush3.bf16.msra.mxu1 %v10467_v57 }
 0x665   : > { %10160 = vmatprep.subr.bf16.mxu1 %v10473_v14 }
 0x668   : > { %10161 = vmatpush3.bf16.msra.mxu1 %v10468_v11 }
 0x669   : > { %10162 = vmatprep.subr.bf16.mxu1 %v10473_v14 }
 0x66c   : > { %10163 = vmatpush3.bf16.msra.mxu1 %v10469_v20 }
 0x66d   : > { %10164 = vmatprep.subr.bf16.mxu1 %v10473_v14 }
 0x670   : > { %10165 = vmatpush3.bf16.msra.mxu1 %v10470_v35 }
 0x671   : > { %10166 = vmatprep.subr.bf16.mxu1 %v10473_v14 }
 0x674   : > { %10167 = vmatpush3.bf16.msra.mxu1 %v10471_v48 }
 0x70f   : > { %v9138_v17 = vpop.f32.mrf.mxu1 }
 0x711   : > { %v9139_v8 = vpop.f32.mrf.mxu1 }
 0x712   : > { %v9140_v12 = vadd.f32 %v9139_v8, %v9138_v17 }
 0x713   : > { %v9141_v4 = vpop.f32.mrf.mxu1 }
 0x715   : > { %v9142_v0 = vpop.f32.mrf.mxu1 }
 0x717   : > { %v8002_v24 = vpop.f32.mrf.mxu1 }
 0x718   : > { %v8003_v15 = vadd.f32 %v9140_v12, %v8002_v24 }
 0x719   : > { %v10150_v18 = vpop.f32.mrf.mxu1 }
 0x71a   : > { %v8008_v59 = vpack.c.bf16 %v8003_v15, %v8003_v15 }
 0x71b   : > { %v8005_v32 = vpop.f32.mrf.mxu1 }
 0x71c   : > { %10169 = vmatmul.mubr.bf16.vlgmr.msra.gmra.mxu1 %v8008_v59 }
 0x71d   : > { %v10151_v50 = vpop.f32.mrf.mxu1 }
 0x7dc   : > { %v8108_v27 = vpop.f32.mrf.mxu1 }
 0x7dd   : > { %v8109_v19 = vadd.f32 %v8108_v27, %v8025_v63 }
 0x7de   : > { %v10170_v36 = vpop.f32.mrf.mxu1 }
 0x7df   : > { %8114 = vst [vmem:[%s405_s17] sm:$0x1] %v8109_v19 }
 0x7e0   : > { %v8111_v7 = vpop.f32.mrf.mxu1 }
 0x7e1   : > { %10511 = shalt.err (!%p10508_p3)
}
 0x7e2   : > { %s10512_s16 = scalar_lea.hbm %s14692_s18, 16  ;;  %s10516_s20 = scalar_lea.hbm %s14745_s12, 32 }
 0x7e3   : > { %p10513_p4 = scmp.ne.s32.totalorder %s14692_s18, %s10512_s16  ;;  %p10517_p9 = scmp.lt.s32.totalorder %s14692_s18, %s14745_s12 }
 0x7e4   : > { %p10518_p10 = scmp.lt.s32.totalorder %s10516_s20, %s10512_s16 }
 0x7e5   : > { %p10514_p7 = pnand %p10513_p4, %p10669_p5 }
 0x7e6   : > { %p10519_p11 = por %p10518_p10, %p10517_p9 }
 0x7e7   : > { %p10515_p8 = pneg %p10514_p7 }
 0x7e9   : > { %p10520_p12 = pnand %p10519_p11, %p10515_p8 }
 0x7eb   : > { %10523 = shalt.err (!%p10520_p12)
}
 0x7ec   : > { %10245 = dma.vmem_to_hbm [thread:$0]  (%p10669_p5), %s14694_s19, 16, %s14692_s18, %s8116_s26   ;;  %v10171_v3 = vpop.f32.mrf.mxu1 }
 0x7ed PF: > { %p10251_p13 = scmp.ge.s32.totalorder %s10558_s24, 2  ;;  %s8140_s30 = sand.u32 1, %s10546_s21  }
 0x7ee   : > { %s8141_s29 = scalar_lea.sflag [#allocation4], %s8140_s30 }
 0x7ef   : > { %p10248_p0 = pnand %p10251_p13, %p10673_p6 }
 0x7f1   : > { %p10249_p1 = pneg %p10248_p0 }
 0x7f3   : > { %10541 = dma.done.wait (%p10249_p1), %s8141_s29, 16  }
 0x7f4   : > { %10543 = vsyncadd (%p10249_p1), %s8141_s29, 4294967280  ;;  %s15345_s15 = sld [smem:[#allocation6_spill]]  ;;  %p22_p2 = scmp.ge.s32.totalorder %s10656_s27, 4  }
 0x7f5   : > { %s15346_s23 = sld [smem:[#allocation7_spill]]  ;;  %s15347_s21 = smov %s10550_s22 }
 0x7f6   : > { %s15349_s24 = smov %s10656_s27  ;;  %24 = sbr.rel (!%p22_p2) target bundleno = 3 (0x3), region = 119 }
 0x7fa   : > { %s15348_s22 = smov %s15345_s15 }
 0x7fb   :  { %8145 = vsyncpa [#allocation4], 1 }
 0x7fc   :  { %8147 = vsyncpa [#allocation4 + $0x1], 1 }

</bundles_post_ra>
